<compile_context>
chip_gen: v6e
topology: v6e:2x2x1
jax: 0.10.0
libtpu: 0.0.40
codegen_flags: <defaults>
</compile_context>

<pallas_src>
import functools
import math

import numpy as np
import jax
import jax.numpy as jnp
from jax import lax
from jax.experimental import pallas as pl
from jax.experimental.pallas import tpu as pltpu

NUM_CLASSES = 91          # COCO (incl. background at index 0)
NUM_ANCHORS = 3
POOL = 4
NUM_PROPOSALS = 8
ANCHOR_SIZES = (8.0, 16.0, 32.0)
BBOX_XFORM_CLIP = math.log(1000.0 / 16.0)

_COCO_HEAD = ["__background__", "person", "bicycle", "car", "motorcycle",
              "airplane", "bus", "train", "truck", "boat", "traffic light"]
CATEGORIES = _COCO_HEAD + [f"category_{i}" for i in range(len(_COCO_HEAD), NUM_CLASSES)]


def _ceil_to(x, m):
    return ((x + m - 1) // m) * m


# --------------------------- Pallas kernels ---------------------------------

def _normalize_kernel(x_ref, sc_ref, sh_ref, o_ref):
    # (x/255 - mean)/std  ==  x*scale + shift, folded once at init.
    o_ref[...] = x_ref[...] * sc_ref[...] + sh_ref[...]


def pallas_normalize(img_hwc, scale, shift, tm=512):
    """GeneralizedRCNNTransform normalization over an HWC image (unpadded C)."""
    H, W, C = img_hwc.shape
    M = H * W
    Mp = _ceil_to(M, tm)
    x2 = img_hwc.reshape(M, C)
    if Mp != M:
        x2 = jnp.pad(x2, ((0, Mp - M), (0, 0)))
    out = pl.pallas_call(
        _normalize_kernel,
        out_shape=jax.ShapeDtypeStruct((Mp, C), jnp.float32),
        grid=(Mp // tm,),
        in_specs=[
            pl.BlockSpec((tm, C), lambda i: (i, 0)),
            pl.BlockSpec((1, C), lambda i: (0, 0)),
            pl.BlockSpec((1, C), lambda i: (0, 0)),
        ],
        out_specs=pl.BlockSpec((tm, C), lambda i: (i, 0)),
        compiler_params=pltpu.CompilerParams(dimension_semantics=("parallel",)),
    )(x2, scale, shift)
    return out[:M].reshape(H, W, C)


def _conv_kernel(x_ref, w_ref, b_ref, o_ref, *, k, s, Ho_blk, Wo, relu):
    """Fused im2col conv: k*k taps accumulated as k*k MXU matmuls in-kernel.

    x_ref : (s*s, Hps, Wps, Cin)  stride-phase-decomposed, spatially padded map
    w_ref : (k*k, Cin, Cout)      bf16 weights
    b_ref : (1, Cout)             f32 bias
    o_ref : (Ho_blk*Wo, Cout)     f32 output rows for this grid step
    """
    Cin = x_ref.shape[-1]
    row0 = pl.program_id(0) * Ho_blk
    acc = None
    for ki in range(k):
        for kj in range(k):
            phase = (ki % s) * s + (kj % s)
            qi, qj = ki // s, kj // s
            tap = x_ref[phase, pl.ds(qi + row0, Ho_blk), qj:qj + Wo, :]
            tap2 = tap.reshape(Ho_blk * Wo, Cin).astype(jnp.bfloat16)
            contrib = jnp.dot(tap2, w_ref[ki * k + kj],
                              preferred_element_type=jnp.float32)
            acc = contrib if acc is None else acc + contrib
    acc = acc + b_ref[...]
    if relu:
        acc = jnp.maximum(acc, 0.0)
    o_ref[...] = acc.astype(o_ref.dtype)


def conv2d_pallas(x_hwc, w_packed, b_packed, *, k, stride, pad, relu=False):
    """Single-image NHWC conv as one pallas_call (no HBM patch matrix)."""
    H, W, Cin = x_hwc.shape
    Cout = w_packed.shape[-1]
    s = stride
    Ho = (H + 2 * pad - k) // s + 1
    Wo = (W + 2 * pad - k) // s + 1
    m_splits = 2 if (Ho % 2 == 0 and Ho >= 16) else 1   # parallel grid -> megacore
    Ho_blk = Ho // m_splits

    # stride-phase decomposition: phases[pi*s+pj, i, j, c] == xp[i*s+pi, j*s+pj, c]
    qmax = (k - 1) // s
    Hps = max(-(-(H + 2 * pad) // s), qmax + Ho)
    Wps = max(-(-(W + 2 * pad) // s), qmax + Wo)
    xp = jnp.pad(x_hwc, ((pad, Hps * s - H - pad), (pad, Wps * s - W - pad), (0, 0)))
    phases = xp.reshape(Hps, s, Wps, s, Cin).transpose(1, 3, 0, 2, 4)
    phases = phases.reshape(s * s, Hps, Wps, Cin)

    kern = functools.partial(_conv_kernel, k=k, s=s, Ho_blk=Ho_blk, Wo=Wo, relu=relu)
    out = pl.pallas_call(
        kern,
        out_shape=jax.ShapeDtypeStruct((Ho * Wo, Cout), jnp.float32),
        grid=(m_splits,),
        in_specs=[
            pl.BlockSpec((s * s, Hps, Wps, Cin), lambda g: (0, 0, 0, 0)),
            pl.BlockSpec((k * k, Cin, Cout), lambda g: (0, 0, 0)),
            pl.BlockSpec((1, Cout), lambda g: (0, 0)),
        ],
        out_specs=pl.BlockSpec((Ho_blk * Wo, Cout), lambda g: (g, 0)),
        compiler_params=pltpu.CompilerParams(dimension_semantics=("parallel",)),
    )(phases, w_packed, b_packed)
    return out.reshape(Ho, Wo, Cout)


def _box_head_kernel(x_ref, w1_ref, b1_ref, w2_ref, b2_ref, w3_ref, b3_ref,
                     o_ref, *, num_classes):
    """fc1+ReLU -> fc2+ReLU -> fused {cls|reg} predictor -> softmax(cls)."""
    x = x_ref[...].astype(jnp.bfloat16)
    h1 = jnp.dot(x, w1_ref[...], preferred_element_type=jnp.float32) + b1_ref[...]
    h1 = jnp.maximum(h1, 0.0).astype(jnp.bfloat16)
    h2 = jnp.dot(h1, w2_ref[...], preferred_element_type=jnp.float32) + b2_ref[...]
    h2 = jnp.maximum(h2, 0.0).astype(jnp.bfloat16)
    out = jnp.dot(h2, w3_ref[...], preferred_element_type=jnp.float32) + b3_ref[...]
    # fused softmax over the first num_classes columns (class logits); the
    # remaining columns are raw box-regression deltas and pass through.
    cols = lax.broadcasted_iota(jnp.int32, out.shape, 1)
    is_cls = cols < num_classes
    logits = jnp.where(is_cls, out, -1e30)
    m = jnp.max(logits, axis=-1, keepdims=True)
    e = jnp.exp(logits - m)
    denom = jnp.sum(e, axis=-1, keepdims=True)
    probs = e * pl.reciprocal(denom, approx=True)
    o_ref[...] = jnp.where(is_cls, probs, out)


def pallas_box_head(flat, w1, b1, w2, b2, w3, b3):
    P, D = flat.shape
    H1 = w1.shape[1]
    NTOT = w3.shape[1]
    kern = functools.partial(_box_head_kernel, num_classes=NUM_CLASSES)
    return pl.pallas_call(
        kern,
        out_shape=jax.ShapeDtypeStruct((P, NTOT), jnp.float32),
        grid=(1,),
        in_specs=[
            pl.BlockSpec((P, D), lambda i: (0, 0)),
            pl.BlockSpec((D, H1), lambda i: (0, 0)),
            pl.BlockSpec((1, H1), lambda i: (0, 0)),
            pl.BlockSpec((H1, H1), lambda i: (0, 0)),
            pl.BlockSpec((1, H1), lambda i: (0, 0)),
            pl.BlockSpec((H1, NTOT), lambda i: (0, 0)),
            pl.BlockSpec((1, NTOT), lambda i: (0, 0)),
        ],
        out_specs=pl.BlockSpec((P, NTOT), lambda i: (0, 0)),
    )(flat, w1, b1, w2, b2, w3, b3)


# ------------------------------ Glue ops -------------------------------------

def make_anchors(Hf, Wf, stride, sizes=ANCHOR_SIZES):
    ys = (jnp.arange(Hf, dtype=jnp.float32) + 0.5) * stride
    xs = (jnp.arange(Wf, dtype=jnp.float32) + 0.5) * stride
    cy, cx = jnp.meshgrid(ys, xs, indexing="ij")
    A = len(sizes)
    sz = jnp.asarray(sizes, jnp.float32)
    cx = jnp.broadcast_to(cx[:, :, None], (Hf, Wf, A))
    cy = jnp.broadcast_to(cy[:, :, None], (Hf, Wf, A))
    half = jnp.broadcast_to(sz[None, None, :] * 0.5, (Hf, Wf, A))
    anchors = jnp.stack([cx - half, cy - half, cx + half, cy + half], axis=-1)
    return anchors.reshape(-1, 4)


def decode_boxes(ref_boxes, deltas):
    x1, y1, x2, y2 = (ref_boxes[:, i] for i in range(4))
    w = jnp.maximum(x2 - x1, 1e-3)
    h = jnp.maximum(y2 - y1, 1e-3)
    cx = x1 + 0.5 * w
    cy = y1 + 0.5 * h
    dx, dy, dw, dh = (deltas[:, i] for i in range(4))
    dw = jnp.clip(dw, -BBOX_XFORM_CLIP, BBOX_XFORM_CLIP)
    dh = jnp.clip(dh, -BBOX_XFORM_CLIP, BBOX_XFORM_CLIP)
    ncx = cx + dx * w
    ncy = cy + dy * h
    nw = w * jnp.exp(dw)
    nh = h * jnp.exp(dh)
    return jnp.stack([ncx - 0.5 * nw, ncy - 0.5 * nh,
                      ncx + 0.5 * nw, ncy + 0.5 * nh], axis=-1)


def clip_boxes(boxes, H, W):
    x1 = jnp.clip(boxes[:, 0], 0.0, W - 1.0)
    y1 = jnp.clip(boxes[:, 1], 0.0, H - 1.0)
    x2 = jnp.clip(boxes[:, 2], 0.0, W - 1.0)
    y2 = jnp.clip(boxes[:, 3], 0.0, H - 1.0)
    return jnp.stack([x1, y1, x2, y2], axis=-1)


def roi_pool_nearest(feat, boxes, stride, pool=POOL):
    # TODO(synk): torchvision MultiScaleRoIAlign uses bilinear roi_align; this
    # uses nearest-neighbour sampling on a fixed pool x pool grid.
    Hf, Wf, _ = feat.shape
    x1 = boxes[:, 0] / stride
    y1 = boxes[:, 1] / stride
    x2 = boxes[:, 2] / stride
    y2 = boxes[:, 3] / stride
    bw = jnp.maximum(x2 - x1, 1.0)
    bh = jnp.maximum(y2 - y1, 1.0)
    g = (jnp.arange(pool, dtype=jnp.float32) + 0.5) / pool
    xs = x1[:, None] + g[None, :] * bw[:, None]
    ys = y1[:, None] + g[None, :] * bh[:, None]
    ix = jnp.clip(jnp.round(xs).astype(jnp.int32), 0, Wf - 1)
    iy = jnp.clip(jnp.round(ys).astype(jnp.int32), 0, Hf - 1)
    return feat[iy[:, :, None], ix[:, None, :], :]   # (P, pool, pool, C)


# ------------------------------ Params ----------------------------------------

def _init_params(key):
    def w(k, shape, scale=0.05):
        return scale * jax.random.normal(k, shape, jnp.float32)
    ks = jax.random.split(key, 12)
    p = {}
    p["stem1_w"] = w(ks[0], (3, 3, 3, 16));          p["stem1_b"] = jnp.zeros((16,), jnp.float32)
    p["stem2_w"] = w(ks[1], (3, 3, 16, 32));         p["stem2_b"] = jnp.zeros((32,), jnp.float32)
    p["fpn_lat_w"] = w(ks[2], (1, 1, 32, 32));       p["fpn_lat_b"] = jnp.zeros((32,), jnp.float32)
    p["fpn_out_w"] = w(ks[3], (3, 3, 32, 32));       p["fpn_out_b"] = jnp.zeros((32,), jnp.float32)
    p["rpn_conv_w"] = w(ks[4], (3, 3, 32, 32));      p["rpn_conv_b"] = jnp.zeros((32,), jnp.float32)
    p["rpn_cls_w"] = w(ks[5], (1, 1, 32, NUM_ANCHORS))
    p["rpn_cls_b"] = jnp.zeros((NUM_ANCHORS,), jnp.float32)
    p["rpn_reg_w"] = w(ks[6], (1, 1, 32, 4 * NUM_ANCHORS))
    p["rpn_reg_b"] = jnp.zeros((4 * NUM_ANCHORS,), jnp.float32)
    p["fc1_w"] = w(ks[7], (POOL * POOL * 32, 128));  p["fc1_b"] = jnp.zeros((128,), jnp.float32)
    p["fc2_w"] = w(ks[8], (128, 128));               p["fc2_b"] = jnp.zeros((128,), jnp.float32)
    p["cls_w"] = w(ks[9], (128, NUM_CLASSES));       p["cls_b"] = jnp.zeros((NUM_CLASSES,), jnp.float32)
    p["reg_w"] = w(ks[10], (128, NUM_CLASSES * 4));  p["reg_b"] = jnp.zeros((NUM_CLASSES * 4,), jnp.float32)
    return p


def _pack_conv(w, b):
    k = w.shape[0]
    cin, cout = w.shape[2], w.shape[3]
    return (w.reshape(k * k, cin, cout).astype(jnp.bfloat16),
            b.reshape(1, cout).astype(jnp.float32))


def _prepare_params(p, mean, std):
    """Pack / cast / fuse all weights once at init (done exactly once)."""
    q = {}
    q["stem1_w"], q["stem1_b"] = _pack_conv(p["stem1_w"], p["stem1_b"])
    q["stem2_w"], q["stem2_b"] = _pack_conv(p["stem2_w"], p["stem2_b"])
    q["fpn_lat_w"], q["fpn_lat_b"] = _pack_conv(p["fpn_lat_w"], p["fpn_lat_b"])
    q["fpn_out_w"], q["fpn_out_b"] = _pack_conv(p["fpn_out_w"], p["fpn_out_b"])
    q["rpn_conv_w"], q["rpn_conv_b"] = _pack_conv(p["rpn_conv_w"], p["rpn_conv_b"])
    # fuse RPN objectness + box-regression 1x1 convs along output channels
    rpn_pred_w = jnp.concatenate([p["rpn_cls_w"], p["rpn_reg_w"]], axis=-1)
    rpn_pred_b = jnp.concatenate([p["rpn_cls_b"], p["rpn_reg_b"]], axis=0)
    q["rpn_pred_w"], q["rpn_pred_b"] = _pack_conv(rpn_pred_w, rpn_pred_b)
    # ROI box head: two FCs + fused (cls | reg) predictor
    q["fc1_w"] = p["fc1_w"].astype(jnp.bfloat16)
    q["fc1_b"] = p["fc1_b"].reshape(1, -1).astype(jnp.float32)
    q["fc2_w"] = p["fc2_w"].astype(jnp.bfloat16)
    q["fc2_b"] = p["fc2_b"].reshape(1, -1).astype(jnp.float32)
    q["pred_w"] = jnp.concatenate([p["cls_w"], p["reg_w"]], axis=1).astype(jnp.bfloat16)
    q["pred_b"] = jnp.concatenate([p["cls_b"], p["reg_b"]], axis=0).reshape(1, -1)
    # GeneralizedRCNNTransform constants: (x/255 - mean)/std == x*scale + shift
    q["norm_scale"] = (1.0 / (255.0 * std)).reshape(1, 3).astype(jnp.float32)
    q["norm_shift"] = (-mean / std).reshape(1, 3).astype(jnp.float32)
    return q


# ------------------------------ Forward ----------------------------------------

def _forward_impl(q, img_f32):
    H, W = img_f32.shape[0], img_f32.shape[1]

    # transforms(): to-float + ImageNet normalization (Pallas kernel)
    x = pallas_normalize(img_f32, q["norm_scale"], q["norm_shift"])   # (H, W, 3)

    # backbone + single-level FPN (each conv = one fused im2col pallas_call)
    x = conv2d_pallas(x, q["stem1_w"], q["stem1_b"], k=3, stride=2, pad=1, relu=True)
    x = conv2d_pallas(x, q["stem2_w"], q["stem2_b"], k=3, stride=2, pad=1, relu=True)
    lat = conv2d_pallas(x, q["fpn_lat_w"], q["fpn_lat_b"], k=1, stride=1, pad=0)
    feat = conv2d_pallas(lat, q["fpn_out_w"], q["fpn_out_b"], k=3, stride=1, pad=1)

    # RPN head (cls + reg fused into one 1x1 conv)
    t = conv2d_pallas(feat, q["rpn_conv_w"], q["rpn_conv_b"], k=3, stride=1, pad=1, relu=True)
    rpn = conv2d_pallas(t, q["rpn_pred_w"], q["rpn_pred_b"], k=1, stride=1, pad=0)

    Hf, Wf = feat.shape[0], feat.shape[1]
    fstride = H // Hf
    anchors = make_anchors(Hf, Wf, fstride)                           # (Hf*Wf*A, 4)
    rpn2 = rpn.reshape(Hf * Wf, NUM_ANCHORS + 4 * NUM_ANCHORS)
    obj_flat = rpn2[:, :NUM_ANCHORS].reshape(-1)
    reg_flat = rpn2[:, NUM_ANCHORS:].reshape(-1, 4)
    proposals_all = decode_boxes(anchors, reg_flat)
    _, topk_idx = lax.top_k(obj_flat, NUM_PROPOSALS)
    proposals = clip_boxes(proposals_all[topk_idx], H, W)
    # TODO(synk): torchvision RPN applies per-level NMS on the proposals; omitted.

    # ROI heads (single fused Pallas kernel, M = NUM_PROPOSALS = 8 rows)
    pooled = roi_pool_nearest(feat, proposals, fstride)               # (P, 4, 4, 32)
    flat = pooled.reshape(NUM_PROPOSALS, -1)
    head = pallas_box_head(flat, q["fc1_w"], q["fc1_b"], q["fc2_w"], q["fc2_b"],
                           q["pred_w"], q["pred_b"])                  # (P, 91 + 364)
    probs = head[:, :NUM_CLASSES]
    deltas = head[:, NUM_CLASSES:]

    fg = probs[:, 1:]
    scores = jnp.max(fg, axis=-1)
    labels = jnp.argmax(fg, axis=-1) + 1
    deltas_pc = deltas.reshape(NUM_PROPOSALS, NUM_CLASSES, 4)
    sel = deltas_pc[jnp.arange(NUM_PROPOSALS), labels]
    boxes = clip_boxes(decode_boxes(proposals, sel), H, W)
    return boxes, scores, labels


class FasterRCNNPallas:
    def __init__(self, key):
        mean = jnp.array([0.485, 0.456, 0.406], jnp.float32)
        std = jnp.array([0.229, 0.224, 0.225], jnp.float32)
        self.params = _prepare_params(_init_params(key), mean, std)
        self._fwd = jax.jit(_forward_impl)

    def forward(self, rgb_im, timestamp):
        del timestamp  # unused by the reference forward as well
        img = jnp.asarray(np.asarray(rgb_im), jnp.float32)            # (H, W, 3)
        boxes, scores, labels = self._fwd(self.params, img)
        boxes, scores, labels = jax.device_get((boxes, scores, labels))
        label_names = np.array([CATEGORIES[int(l)] for l in labels])
        # indices = scores > 0.7 would gate the visualization step.
        # TODO(synk): draw_bounding_boxes / show are host-side PIL/matplotlib viz; no Pallas equivalent.
        return (np.asarray(boxes), np.asarray(scores), label_names)


if __name__ == "__main__":
    key = jax.random.PRNGKey(0)
    k_img, k_par = jax.random.split(key)
    rgb_im = np.asarray(
        jax.random.randint(k_img, (64, 64, 3), 0, 256, jnp.int32),
        dtype=np.uint8)
    model = FasterRCNNPallas(k_par)
    boxes, scores, labels = model.forward(rgb_im, timestamp=0.0)
    jax.block_until_ready(jnp.asarray(boxes))
    jax.block_until_ready(jnp.asarray(scores))
    assert boxes.shape == (NUM_PROPOSALS, 4)
    assert scores.shape == (NUM_PROPOSALS,)
    assert labels.shape == (NUM_PROPOSALS,)
    assert np.all(np.isfinite(boxes)) and np.all(np.isfinite(scores))
    print("KERNEL_OK")
</pallas_src>

<mosaic_0001>
module attributes {stable_mosaic.version = 11 : i64} {
  func.func @_normalize_kernel(%arg0: i32, %arg1: memref<512x3xf32, #tpu.memory_space<vmem>>, %arg2: memref<1x3xf32, #tpu.memory_space<vmem>>, %arg3: memref<1x3xf32, #tpu.memory_space<vmem>>, %arg4: memref<512x3xf32, #tpu.memory_space<vmem>>) attributes {dimension_semantics = [#tpu.dimension_semantics<parallel>], iteration_bounds = array<i64: 8>, scalar_prefetch = 0 : i64, scratch_operands = 0 : i64, tpu.core_type = #tpu.core_type<tc>, window_params = [{transform_indices = @transform_0, window_bounds = array<i64: 512, 3>}, {pipeline_mode = #tpu.pipeline_mode<synchronous>, transform_indices = @transform_1, window_bounds = array<i64: 1, 3>}, {pipeline_mode = #tpu.pipeline_mode<synchronous>, transform_indices = @transform_2, window_bounds = array<i64: 1, 3>}, {transform_indices = @transform_3, window_bounds = array<i64: 512, 3>}]} {
    %c0 = arith.constant 0 : index
    %c0_0 = arith.constant 0 : index
    %0 = vector.load %arg1[%c0, %c0_0] : memref<512x3xf32, #tpu.memory_space<vmem>>, vector<512x3xf32>
    %c0_1 = arith.constant 0 : index
    %c0_2 = arith.constant 0 : index
    %1 = vector.load %arg2[%c0_1, %c0_2] : memref<1x3xf32, #tpu.memory_space<vmem>>, vector<1x3xf32>
    %2 = vector.broadcast %1 : vector<1x3xf32> to vector<512x3xf32>
    %3 = arith.mulf %0, %2 : vector<512x3xf32>
    %c0_3 = arith.constant 0 : index
    %c0_4 = arith.constant 0 : index
    %4 = vector.load %arg3[%c0_3, %c0_4] : memref<1x3xf32, #tpu.memory_space<vmem>>, vector<1x3xf32>
    %5 = vector.broadcast %4 : vector<1x3xf32> to vector<512x3xf32>
    %6 = arith.addf %3, %5 : vector<512x3xf32>
    %c0_5 = arith.constant 0 : index
    %c0_6 = arith.constant 0 : index
    %7 = vector.load %arg4[%c0_5, %c0_6] : memref<512x3xf32, #tpu.memory_space<vmem>>, vector<512x3xf32>
    tpu.vector_store %arg4[%c0_5, %c0_6], %6 {strides = array<i32>} : memref<512x3xf32, #tpu.memory_space<vmem>>, vector<512x3xf32>,
    return
  }
  func.func @transform_0(%arg0: i32) -> (i32, i32) {
    %c0_i32 = arith.constant 0 : i32
    %c0_i32_0 = arith.constant 0 : i32
    return %arg0, %c0_i32 : i32, i32
  }
  func.func @transform_1(%arg0: i32) -> (i32, i32) {
    %c0_i32 = arith.constant 0 : i32
    %c0_i32_0 = arith.constant 0 : i32
    %c0_i32_1 = arith.constant 0 : i32
    return %c0_i32, %c0_i32_0 : i32, i32
  }
  func.func @transform_2(%arg0: i32) -> (i32, i32) {
    %c0_i32 = arith.constant 0 : i32
    %c0_i32_0 = arith.constant 0 : i32
    %c0_i32_1 = arith.constant 0 : i32
    return %c0_i32, %c0_i32_0 : i32, i32
  }
  func.func @transform_3(%arg0: i32) -> (i32, i32) {
    %c0_i32 = arith.constant 0 : i32
    %c0_i32_0 = arith.constant 0 : i32
    return %arg0, %c0_i32 : i32, i32
  }
}

module attributes {stable_mosaic.version = 11 : i64} {
  func.func @_conv_kernel(%arg0: i32, %arg1: memref<4x33x33x3xf32, #tpu.memory_space<vmem>>, %arg2: memref<9x3x16xbf16, #tpu.memory_space<vmem>>, %arg3: memref<1x16xf32, #tpu.memory_space<vmem>>, %arg4: memref<512x16xf32, #tpu.memory_space<vmem>>) attributes {dimension_semantics = [#tpu.dimension_semantics<parallel>], iteration_bounds = array<i64: 2>, scalar_prefetch = 0 : i64, scratch_operands = 0 : i64, tpu.core_type = #tpu.core_type<tc>, window_params = [{pipeline_mode = #tpu.pipeline_mode<synchronous>, transform_indices = @transform_0, window_bounds = array<i64: 4, 33, 33, 3>}, {pipeline_mode = #tpu.pipeline_mode<synchronous>, transform_indices = @transform_1, window_bounds = array<i64: 9, 3, 16>}, {pipeline_mode = #tpu.pipeline_mode<synchronous>, transform_indices = @transform_2, window_bounds = array<i64: 1, 16>}, {transform_indices = @transform_3, window_bounds = array<i64: 512, 16>}]} {
    %c16_i32 = arith.constant 16 : i32
    %0 = arith.muli %arg0, %c16_i32 : i32
    %c0_i32 = arith.constant 0 : i32
    %1 = arith.addi %c0_i32, %0 : i32
    %c0 = arith.constant 0 : index
    %2 = arith.index_cast %1 : i32 to index
    %c0_0 = arith.constant 0 : index
    %c0_1 = arith.constant 0 : index
    %3 = vector.load %arg1[%c0, %2, %c0_0, %c0_1] : memref<4x33x33x3xf32, #tpu.memory_space<vmem>>, vector<1x16x32x3xf32>
    %4 = vector.shape_cast %3 : vector<1x16x32x3xf32> to vector<16x32x3xf32>
    %5 = vector.shape_cast %4 : vector<16x32x3xf32> to vector<512x3xf32>
    %6 = arith.truncf %5 : vector<512x3xf32> to vector<512x3xbf16>
    %c0_2 = arith.constant 0 : index
    %c0_3 = arith.constant 0 : index
    %c0_4 = arith.constant 0 : index
    %7 = vector.load %arg2[%c0_2, %c0_3, %c0_4] : memref<9x3x16xbf16, #tpu.memory_space<vmem>>, vector<1x3x16xbf16>
    %8 = vector.shape_cast %7 : vector<1x3x16xbf16> to vector<3x16xbf16>
    %cst = arith.constant dense<0.000000e+00> : vector<512x16xf32>
    %9 = tpu.matmul %6, %8, %cst {dimension_numbers = #tpu.dot_dimension_numbers<[1], [0], [0], [1], [0, 0, 1, 1], [], []>} : vector<512x3xbf16>, vector<3x16xbf16>, vector<512x16xf32> -> vector<512x16xf32>
    %c0_i32_5 = arith.constant 0 : i32
    %10 = arith.addi %c0_i32_5, %0 : i32
    %c1 = arith.constant 1 : index
    %11 = arith.index_cast %10 : i32 to index
    %c0_6 = arith.constant 0 : index
    %c0_7 = arith.constant 0 : index
    %12 = vector.load %arg1[%c1, %11, %c0_6, %c0_7] : memref<4x33x33x3xf32, #tpu.memory_space<vmem>>, vector<1x16x32x3xf32>
    %13 = vector.shape_cast %12 : vector<1x16x32x3xf32> to vector<16x32x3xf32>
    %14 = vector.shape_cast %13 : vector<16x32x3xf32> to vector<512x3xf32>
    %15 = arith.truncf %14 : vector<512x3xf32> to vector<512x3xbf16>
    %c1_8 = arith.constant 1 : index
    %c0_9 = arith.constant 0 : index
    %c0_10 = arith.constant 0 : index
    %16 = vector.load %arg2[%c1_8, %c0_9, %c0_10] : memref<9x3x16xbf16, #tpu.memory_space<vmem>>, vector<1x3x16xbf16>
    %17 = vector.shape_cast %16 : vector<1x3x16xbf16> to vector<3x16xbf16>
    %cst_11 = arith.constant dense<0.000000e+00> : vector<512x16xf32>
    %18 = tpu.matmul %15, %17, %cst_11 {dimension_numbers = #tpu.dot_dimension_numbers<[1], [0], [0], [1], [0, 0, 1, 1], [], []>} : vector<512x3xbf16>, vector<3x16xbf16>, vector<512x16xf32> -> vector<512x16xf32>
    %19 = arith.addf %9, %18 : vector<512x16xf32>
    %c0_i32_12 = arith.constant 0 : i32
    %20 = arith.addi %c0_i32_12, %0 : i32
    %c0_13 = arith.constant 0 : index
    %21 = arith.index_cast %20 : i32 to index
    %c1_14 = arith.constant 1 : index
    %c0_15 = arith.constant 0 : index
    %22 = vector.load %arg1[%c0_13, %21, %c1_14, %c0_15] : memref<4x33x33x3xf32, #tpu.memory_space<vmem>>, vector<1x16x32x3xf32>
    %23 = vector.shape_cast %22 : vector<1x16x32x3xf32> to vector<16x32x3xf32>
    %24 = vector.shape_cast %23 : vector<16x32x3xf32> to vector<512x3xf32>
    %25 = arith.truncf %24 : vector<512x3xf32> to vector<512x3xbf16>
    %c2 = arith.constant 2 : index
    %c0_16 = arith.constant 0 : index
    %c0_17 = arith.constant 0 : index
    %26 = vector.load %arg2[%c2, %c0_16, %c0_17] : memref<9x3x16xbf16, #tpu.memory_space<vmem>>, vector<1x3x16xbf16>
    %27 = vector.shape_cast %26 : vector<1x3x16xbf16> to vector<3x16xbf16>
    %cst_18 = arith.constant dense<0.000000e+00> : vector<512x16xf32>
    %28 = tpu.matmul %25, %27, %cst_18 {dimension_numbers = #tpu.dot_dimension_numbers<[1], [0], [0], [1], [0, 0, 1, 1], [], []>} : vector<512x3xbf16>, vector<3x16xbf16>, vector<512x16xf32> -> vector<512x16xf32>
    %29 = arith.addf %19, %28 : vector<512x16xf32>
    %c0_i32_19 = arith.constant 0 : i32
    %30 = arith.addi %c0_i32_19, %0 : i32
    %c2_20 = arith.constant 2 : index
    %31 = arith.index_cast %30 : i32 to index
    %c0_21 = arith.constant 0 : index
    %c0_22 = arith.constant 0 : index
    %32 = vector.load %arg1[%c2_20, %31, %c0_21, %c0_22] : memref<4x33x33x3xf32, #tpu.memory_space<vmem>>, vector<1x16x32x3xf32>
    %33 = vector.shape_cast %32 : vector<1x16x32x3xf32> to vector<16x32x3xf32>
    %34 = vector.shape_cast %33 : vector<16x32x3xf32> to vector<512x3xf32>
    %35 = arith.truncf %34 : vector<512x3xf32> to vector<512x3xbf16>
    %c3 = arith.constant 3 : index
    %c0_23 = arith.constant 0 : index
    %c0_24 = arith.constant 0 : index
    %36 = vector.load %arg2[%c3, %c0_23, %c0_24] : memref<9x3x16xbf16, #tpu.memory_space<vmem>>, vector<1x3x16xbf16>
    %37 = vector.shape_cast %36 : vector<1x3x16xbf16> to vector<3x16xbf16>
    %cst_25 = arith.constant dense<0.000000e+00> : vector<512x16xf32>
    %38 = tpu.matmul %35, %37, %cst_25 {dimension_numbers = #tpu.dot_dimension_numbers<[1], [0], [0], [1], [0, 0, 1, 1], [], []>} : vector<512x3xbf16>, vector<3x16xbf16>, vector<512x16xf32> -> vector<512x16xf32>
    %39 = arith.addf %29, %38 : vector<512x16xf32>
    %c0_i32_26 = arith.constant 0 : i32
    %40 = arith.addi %c0_i32_26, %0 : i32
    %c3_27 = arith.constant 3 : index
    %41 = arith.index_cast %40 : i32 to index
    %c0_28 = arith.constant 0 : index
    %c0_29 = arith.constant 0 : index
    %42 = vector.load %arg1[%c3_27, %41, %c0_28, %c0_29] : memref<4x33x33x3xf32, #tpu.memory_space<vmem>>, vector<1x16x32x3xf32>
    %43 = vector.shape_cast %42 : vector<1x16x32x3xf32> to vector<16x32x3xf32>
    %44 = vector.shape_cast %43 : vector<16x32x3xf32> to vector<512x3xf32>
    %45 = arith.truncf %44 : vector<512x3xf32> to vector<512x3xbf16>
    %c4 = arith.constant 4 : index
    %c0_30 = arith.constant 0 : index
    %c0_31 = arith.constant 0 : index
    %46 = vector.load %arg2[%c4, %c0_30, %c0_31] : memref<9x3x16xbf16, #tpu.memory_space<vmem>>, vector<1x3x16xbf16>
    %47 = vector.shape_cast %46 : vector<1x3x16xbf16> to vector<3x16xbf16>
    %cst_32 = arith.constant dense<0.000000e+00> : vector<512x16xf32>
    %48 = tpu.matmul %45, %47, %cst_32 {dimension_numbers = #tpu.dot_dimension_numbers<[1], [0], [0], [1], [0, 0, 1, 1], [], []>} : vector<512x3xbf16>, vector<3x16xbf16>, vector<512x16xf32> -> vector<512x16xf32>
    %49 = arith.addf %39, %48 : vector<512x16xf32>
    %c0_i32_33 = arith.constant 0 : i32
    %50 = arith.addi %c0_i32_33, %0 : i32
    %c2_34 = arith.constant 2 : index
    %51 = arith.index_cast %50 : i32 to index
    %c1_35 = arith.constant 1 : index
    %c0_36 = arith.constant 0 : index
    %52 = vector.load %arg1[%c2_34, %51, %c1_35, %c0_36] : memref<4x33x33x3xf32, #tpu.memory_space<vmem>>, vector<1x16x32x3xf32>
    %53 = vector.shape_cast %52 : vector<1x16x32x3xf32> to vector<16x32x3xf32>
    %54 = vector.shape_cast %53 : vector<16x32x3xf32> to vector<512x3xf32>
    %55 = arith.truncf %54 : vector<512x3xf32> to vector<512x3xbf16>
    %c5 = arith.constant 5 : index
    %c0_37 = arith.constant 0 : index
    %c0_38 = arith.constant 0 : index
    %56 = vector.load %arg2[%c5, %c0_37, %c0_38] : memref<9x3x16xbf16, #tpu.memory_space<vmem>>, vector<1x3x16xbf16>
    %57 = vector.shape_cast %56 : vector<1x3x16xbf16> to vector<3x16xbf16>
    %cst_39 = arith.constant dense<0.000000e+00> : vector<512x16xf32>
    %58 = tpu.matmul %55, %57, %cst_39 {dimension_numbers = #tpu.dot_dimension_numbers<[1], [0], [0], [1], [0, 0, 1, 1], [], []>} : vector<512x3xbf16>, vector<3x16xbf16>, vector<512x16xf32> -> vector<512x16xf32>
    %59 = arith.addf %49, %58 : vector<512x16xf32>
    %c1_i32 = arith.constant 1 : i32
    %60 = arith.addi %c1_i32, %0 : i32
    %c0_40 = arith.constant 0 : index
    %61 = arith.index_cast %60 : i32 to index
    %c0_41 = arith.constant 0 : index
    %c0_42 = arith.constant 0 : index
    %62 = vector.load %arg1[%c0_40, %61, %c0_41, %c0_42] : memref<4x33x33x3xf32, #tpu.memory_space<vmem>>, vector<1x16x32x3xf32>
    %63 = vector.shape_cast %62 : vector<1x16x32x3xf32> to vector<16x32x3xf32>
    %64 = vector.shape_cast %63 : vector<16x32x3xf32> to vector<512x3xf32>
    %65 = arith.truncf %64 : vector<512x3xf32> to vector<512x3xbf16>
    %c6 = arith.constant 6 : index
    %c0_43 = arith.constant 0 : index
    %c0_44 = arith.constant 0 : index
    %66 = vector.load %arg2[%c6, %c0_43, %c0_44] : memref<9x3x16xbf16, #tpu.memory_space<vmem>>, vector<1x3x16xbf16>
    %67 = vector.shape_cast %66 : vector<1x3x16xbf16> to vector<3x16xbf16>
    %cst_45 = arith.constant dense<0.000000e+00> : vector<512x16xf32>
    %68 = tpu.matmul %65, %67, %cst_45 {dimension_numbers = #tpu.dot_dimension_numbers<[1], [0], [0], [1], [0, 0, 1, 1], [], []>} : vector<512x3xbf16>, vector<3x16xbf16>, vector<512x16xf32> -> vector<512x16xf32>
    %69 = arith.addf %59, %68 : vector<512x16xf32>
    %c1_i32_46 = arith.constant 1 : i32
    %70 = arith.addi %c1_i32_46, %0 : i32
    %c1_47 = arith.constant 1 : index
    %71 = arith.index_cast %70 : i32 to index
    %c0_48 = arith.constant 0 : index
    %c0_49 = arith.constant 0 : index
    %72 = vector.load %arg1[%c1_47, %71, %c0_48, %c0_49] : memref<4x33x33x3xf32, #tpu.memory_space<vmem>>, vector<1x16x32x3xf32>
    %73 = vector.shape_cast %72 : vector<1x16x32x3xf32> to vector<16x32x3xf32>
    %74 = vector.shape_cast %73 : vector<16x32x3xf32> to vector<512x3xf32>
    %75 = arith.truncf %74 : vector<512x3xf32> to vector<512x3xbf16>
    %c7 = arith.constant 7 : index
    %c0_50 = arith.constant 0 : index
    %c0_51 = arith.constant 0 : index
    %76 = vector.load %arg2[%c7, %c0_50, %c0_51] : memref<9x3x16xbf16, #tpu.memory_space<vmem>>, vector<1x3x16xbf16>
    %77 = vector.shape_cast %76 : vector<1x3x16xbf16> to vector<3x16xbf16>
    %cst_52 = arith.constant dense<0.000000e+00> : vector<512x16xf32>
    %78 = tpu.matmul %75, %77, %cst_52 {dimension_numbers = #tpu.dot_dimension_numbers<[1], [0], [0], [1], [0, 0, 1, 1], [], []>} : vector<512x3xbf16>, vector<3x16xbf16>, vector<512x16xf32> -> vector<512x16xf32>
    %79 = arith.addf %69, %78 : vector<512x16xf32>
    %c1_i32_53 = arith.constant 1 : i32
    %80 = arith.addi %c1_i32_53, %0 : i32
    %c0_54 = arith.constant 0 : index
    %81 = arith.index_cast %80 : i32 to index
    %c1_55 = arith.constant 1 : index
    %c0_56 = arith.constant 0 : index
    %82 = vector.load %arg1[%c0_54, %81, %c1_55, %c0_56] : memref<4x33x33x3xf32, #tpu.memory_space<vmem>>, vector<1x16x32x3xf32>
    %83 = vector.shape_cast %82 : vector<1x16x32x3xf32> to vector<16x32x3xf32>
    %84 = vector.shape_cast %83 : vector<16x32x3xf32> to vector<512x3xf32>
    %85 = arith.truncf %84 : vector<512x3xf32> to vector<512x3xbf16>
    %c8 = arith.constant 8 : index
    %c0_57 = arith.constant 0 : index
    %c0_58 = arith.constant 0 : index
    %86 = vector.load %arg2[%c8, %c0_57, %c0_58] : memref<9x3x16xbf16, #tpu.memory_space<vmem>>, vector<1x3x16xbf16>
    %87 = vector.shape_cast %86 : vector<1x3x16xbf16> to vector<3x16xbf16>
    %cst_59 = arith.constant dense<0.000000e+00> : vector<512x16xf32>
    %88 = tpu.matmul %85, %87, %cst_59 {dimension_numbers = #tpu.dot_dimension_numbers<[1], [0], [0], [1], [0, 0, 1, 1], [], []>} : vector<512x3xbf16>, vector<3x16xbf16>, vector<512x16xf32> -> vector<512x16xf32>
    %89 = arith.addf %79, %88 : vector<512x16xf32>
    %c0_60 = arith.constant 0 : index
    %c0_61 = arith.constant 0 : index
    %90 = vector.load %arg3[%c0_60, %c0_61] : memref<1x16xf32, #tpu.memory_space<vmem>>, vector<1x16xf32>
    %91 = vector.broadcast %90 : vector<1x16xf32> to vector<512x16xf32>
    %92 = arith.addf %89, %91 : vector<512x16xf32>
    %cst_62 = arith.constant 0.000000e+00 : f32
    %93 = vector.broadcast %cst_62 : f32 to vector<512x16xf32>
    %94 = arith.maximumf %92, %93 : vector<512x16xf32>
    %c0_63 = arith.constant 0 : index
    %c0_64 = arith.constant 0 : index
    %95 = vector.load %arg4[%c0_63, %c0_64] : memref<512x16xf32, #tpu.memory_space<vmem>>, vector<512x16xf32>
    tpu.vector_store %arg4[%c0_63, %c0_64], %94 {strides = array<i32>} : memref<512x16xf32, #tpu.memory_space<vmem>>, vector<512x16xf32>,
    return
  }
  func.func @transform_0(%arg0: i32) -> (i32, i32, i32, i32) {
    %c0_i32 = arith.constant 0 : i32
    %c0_i32_0 = arith.constant 0 : i32
    %c0_i32_1 = arith.constant 0 : i32
    %c0_i32_2 = arith.constant 0 : i32
    %c0_i32_3 = arith.constant 0 : i32
    return %c0_i32, %c0_i32_0, %c0_i32_1, %c0_i32_2 : i32, i32, i32, i32
  }
  func.func @transform_1(%arg0: i32) -> (i32, i32, i32) {
    %c0_i32 = arith.constant 0 : i32
    %c0_i32_0 = arith.constant 0 : i32
    %c0_i32_1 = arith.constant 0 : i32
    %c0_i32_2 = arith.constant 0 : i32
    return %c0_i32, %c0_i32_0, %c0_i32_1 : i32, i32, i32
  }
  func.func @transform_2(%arg0: i32) -> (i32, i32) {
    %c0_i32 = arith.constant 0 : i32
    %c0_i32_0 = arith.constant 0 : i32
    %c0_i32_1 = arith.constant 0 : i32
    return %c0_i32, %c0_i32_0 : i32, i32
  }
  func.func @transform_3(%arg0: i32) -> (i32, i32) {
    %c0_i32 = arith.constant 0 : i32
    %c0_i32_0 = arith.constant 0 : i32
    return %arg0, %c0_i32 : i32, i32
  }
}

module attributes {stable_mosaic.version = 11 : i64} {
  func.func @_conv_kernel(%arg0: i32, %arg1: memref<4x17x17x16xf32, #tpu.memory_space<vmem>>, %arg2: memref<9x16x32xbf16, #tpu.memory_space<vmem>>, %arg3: memref<1x32xf32, #tpu.memory_space<vmem>>, %arg4: memref<128x32xf32, #tpu.memory_space<vmem>>) attributes {dimension_semantics = [#tpu.dimension_semantics<parallel>], iteration_bounds = array<i64: 2>, scalar_prefetch = 0 : i64, scratch_operands = 0 : i64, tpu.core_type = #tpu.core_type<tc>, window_params = [{pipeline_mode = #tpu.pipeline_mode<synchronous>, transform_indices = @transform_0, window_bounds = array<i64: 4, 17, 17, 16>}, {pipeline_mode = #tpu.pipeline_mode<synchronous>, transform_indices = @transform_1, window_bounds = array<i64: 9, 16, 32>}, {pipeline_mode = #tpu.pipeline_mode<synchronous>, transform_indices = @transform_2, window_bounds = array<i64: 1, 32>}, {transform_indices = @transform_3, window_bounds = array<i64: 128, 32>}]} {
    %c8_i32 = arith.constant 8 : i32
    %0 = arith.muli %arg0, %c8_i32 : i32
    %c0_i32 = arith.constant 0 : i32
    %1 = arith.addi %c0_i32, %0 : i32
    %c0 = arith.constant 0 : index
    %2 = arith.index_cast %1 : i32 to index
    %c0_0 = arith.constant 0 : index
    %c0_1 = arith.constant 0 : index
    %3 = vector.load %arg1[%c0, %2, %c0_0, %c0_1] : memref<4x17x17x16xf32, #tpu.memory_space<vmem>>, vector<1x8x16x16xf32>
    %4 = vector.shape_cast %3 : vector<1x8x16x16xf32> to vector<8x16x16xf32>
    %5 = vector.shape_cast %4 : vector<8x16x16xf32> to vector<128x16xf32>
    %6 = arith.truncf %5 : vector<128x16xf32> to vector<128x16xbf16>
    %c0_2 = arith.constant 0 : index
    %c0_3 = arith.constant 0 : index
    %c0_4 = arith.constant 0 : index
    %7 = vector.load %arg2[%c0_2, %c0_3, %c0_4] : memref<9x16x32xbf16, #tpu.memory_space<vmem>>, vector<1x16x32xbf16>
    %8 = vector.shape_cast %7 : vector<1x16x32xbf16> to vector<16x32xbf16>
    %cst = arith.constant dense<0.000000e+00> : vector<128x32xf32>
    %9 = tpu.matmul %6, %8, %cst {dimension_numbers = #tpu.dot_dimension_numbers<[1], [0], [0], [1], [0, 0, 1, 1], [], []>} : vector<128x16xbf16>, vector<16x32xbf16>, vector<128x32xf32> -> vector<128x32xf32>
    %c0_i32_5 = arith.constant 0 : i32
    %10 = arith.addi %c0_i32_5, %0 : i32
    %c1 = arith.constant 1 : index
    %11 = arith.index_cast %10 : i32 to index
    %c0_6 = arith.constant 0 : index
    %c0_7 = arith.constant 0 : index
    %12 = vector.load %arg1[%c1, %11, %c0_6, %c0_7] : memref<4x17x17x16xf32, #tpu.memory_space<vmem>>, vector<1x8x16x16xf32>
    %13 = vector.shape_cast %12 : vector<1x8x16x16xf32> to vector<8x16x16xf32>
    %14 = vector.shape_cast %13 : vector<8x16x16xf32> to vector<128x16xf32>
    %15 = arith.truncf %14 : vector<128x16xf32> to vector<128x16xbf16>
    %c1_8 = arith.constant 1 : index
    %c0_9 = arith.constant 0 : index
    %c0_10 = arith.constant 0 : index
    %16 = vector.load %arg2[%c1_8, %c0_9, %c0_10] : memref<9x16x32xbf16, #tpu.memory_space<vmem>>, vector<1x16x32xbf16>
    %17 = vector.shape_cast %16 : vector<1x16x32xbf16> to vector<16x32xbf16>
    %cst_11 = arith.constant dense<0.000000e+00> : vector<128x32xf32>
    %18 = tpu.matmul %15, %17, %cst_11 {dimension_numbers = #tpu.dot_dimension_numbers<[1], [0], [0], [1], [0, 0, 1, 1], [], []>} : vector<128x16xbf16>, vector<16x32xbf16>, vector<128x32xf32> -> vector<128x32xf32>
    %19 = arith.addf %9, %18 : vector<128x32xf32>
    %c0_i32_12 = arith.constant 0 : i32
    %20 = arith.addi %c0_i32_12, %0 : i32
    %c0_13 = arith.constant 0 : index
    %21 = arith.index_cast %20 : i32 to index
    %c1_14 = arith.constant 1 : index
    %c0_15 = arith.constant 0 : index
    %22 = vector.load %arg1[%c0_13, %21, %c1_14, %c0_15] : memref<4x17x17x16xf32, #tpu.memory_space<vmem>>, vector<1x8x16x16xf32>
    %23 = vector.shape_cast %22 : vector<1x8x16x16xf32> to vector<8x16x16xf32>
    %24 = vector.shape_cast %23 : vector<8x16x16xf32> to vector<128x16xf32>
    %25 = arith.truncf %24 : vector<128x16xf32> to vector<128x16xbf16>
    %c2 = arith.constant 2 : index
    %c0_16 = arith.constant 0 : index
    %c0_17 = arith.constant 0 : index
    %26 = vector.load %arg2[%c2, %c0_16, %c0_17] : memref<9x16x32xbf16, #tpu.memory_space<vmem>>, vector<1x16x32xbf16>
    %27 = vector.shape_cast %26 : vector<1x16x32xbf16> to vector<16x32xbf16>
    %cst_18 = arith.constant dense<0.000000e+00> : vector<128x32xf32>
    %28 = tpu.matmul %25, %27, %cst_18 {dimension_numbers = #tpu.dot_dimension_numbers<[1], [0], [0], [1], [0, 0, 1, 1], [], []>} : vector<128x16xbf16>, vector<16x32xbf16>, vector<128x32xf32> -> vector<128x32xf32>
    %29 = arith.addf %19, %28 : vector<128x32xf32>
    %c0_i32_19 = arith.constant 0 : i32
    %30 = arith.addi %c0_i32_19, %0 : i32
    %c2_20 = arith.constant 2 : index
    %31 = arith.index_cast %30 : i32 to index
    %c0_21 = arith.constant 0 : index
    %c0_22 = arith.constant 0 : index
    %32 = vector.load %arg1[%c2_20, %31, %c0_21, %c0_22] : memref<4x17x17x16xf32, #tpu.memory_space<vmem>>, vector<1x8x16x16xf32>
    %33 = vector.shape_cast %32 : vector<1x8x16x16xf32> to vector<8x16x16xf32>
    %34 = vector.shape_cast %33 : vector<8x16x16xf32> to vector<128x16xf32>
    %35 = arith.truncf %34 : vector<128x16xf32> to vector<128x16xbf16>
    %c3 = arith.constant 3 : index
    %c0_23 = arith.constant 0 : index
    %c0_24 = arith.constant 0 : index
    %36 = vector.load %arg2[%c3, %c0_23, %c0_24] : memref<9x16x32xbf16, #tpu.memory_space<vmem>>, vector<1x16x32xbf16>
    %37 = vector.shape_cast %36 : vector<1x16x32xbf16> to vector<16x32xbf16>
    %cst_25 = arith.constant dense<0.000000e+00> : vector<128x32xf32>
    %38 = tpu.matmul %35, %37, %cst_25 {dimension_numbers = #tpu.dot_dimension_numbers<[1], [0], [0], [1], [0, 0, 1, 1], [], []>} : vector<128x16xbf16>, vector<16x32xbf16>, vector<128x32xf32> -> vector<128x32xf32>
    %39 = arith.addf %29, %38 : vector<128x32xf32>
    %c0_i32_26 = arith.constant 0 : i32
    %40 = arith.addi %c0_i32_26, %0 : i32
    %c3_27 = arith.constant 3 : index
    %41 = arith.index_cast %40 : i32 to index
    %c0_28 = arith.constant 0 : index
    %c0_29 = arith.constant 0 : index
    %42 = vector.load %arg1[%c3_27, %41, %c0_28, %c0_29] : memref<4x17x17x16xf32, #tpu.memory_space<vmem>>, vector<1x8x16x16xf32>
    %43 = vector.shape_cast %42 : vector<1x8x16x16xf32> to vector<8x16x16xf32>
    %44 = vector.shape_cast %43 : vector<8x16x16xf32> to vector<128x16xf32>
    %45 = arith.truncf %44 : vector<128x16xf32> to vector<128x16xbf16>
    %c4 = arith.constant 4 : index
    %c0_30 = arith.constant 0 : index
    %c0_31 = arith.constant 0 : index
    %46 = vector.load %arg2[%c4, %c0_30, %c0_31] : memref<9x16x32xbf16, #tpu.memory_space<vmem>>, vector<1x16x32xbf16>
    %47 = vector.shape_cast %46 : vector<1x16x32xbf16> to vector<16x32xbf16>
    %cst_32 = arith.constant dense<0.000000e+00> : vector<128x32xf32>
    %48 = tpu.matmul %45, %47, %cst_32 {dimension_numbers = #tpu.dot_dimension_numbers<[1], [0], [0], [1], [0, 0, 1, 1], [], []>} : vector<128x16xbf16>, vector<16x32xbf16>, vector<128x32xf32> -> vector<128x32xf32>
    %49 = arith.addf %39, %48 : vector<128x32xf32>
    %c0_i32_33 = arith.constant 0 : i32
    %50 = arith.addi %c0_i32_33, %0 : i32
    %c2_34 = arith.constant 2 : index
    %51 = arith.index_cast %50 : i32 to index
    %c1_35 = arith.constant 1 : index
    %c0_36 = arith.constant 0 : index
    %52 = vector.load %arg1[%c2_34, %51, %c1_35, %c0_36] : memref<4x17x17x16xf32, #tpu.memory_space<vmem>>, vector<1x8x16x16xf32>
    %53 = vector.shape_cast %52 : vector<1x8x16x16xf32> to vector<8x16x16xf32>
    %54 = vector.shape_cast %53 : vector<8x16x16xf32> to vector<128x16xf32>
    %55 = arith.truncf %54 : vector<128x16xf32> to vector<128x16xbf16>
    %c5 = arith.constant 5 : index
    %c0_37 = arith.constant 0 : index
    %c0_38 = arith.constant 0 : index
    %56 = vector.load %arg2[%c5, %c0_37, %c0_38] : memref<9x16x32xbf16, #tpu.memory_space<vmem>>, vector<1x16x32xbf16>
    %57 = vector.shape_cast %56 : vector<1x16x32xbf16> to vector<16x32xbf16>
    %cst_39 = arith.constant dense<0.000000e+00> : vector<128x32xf32>
    %58 = tpu.matmul %55, %57, %cst_39 {dimension_numbers = #tpu.dot_dimension_numbers<[1], [0], [0], [1], [0, 0, 1, 1], [], []>} : vector<128x16xbf16>, vector<16x32xbf16>, vector<128x32xf32> -> vector<128x32xf32>
    %59 = arith.addf %49, %58 : vector<128x32xf32>
    %c1_i32 = arith.constant 1 : i32
    %60 = arith.addi %c1_i32, %0 : i32
    %c0_40 = arith.constant 0 : index
    %61 = arith.index_cast %60 : i32 to index
    %c0_41 = arith.constant 0 : index
    %c0_42 = arith.constant 0 : index
    %62 = vector.load %arg1[%c0_40, %61, %c0_41, %c0_42] : memref<4x17x17x16xf32, #tpu.memory_space<vmem>>, vector<1x8x16x16xf32>
    %63 = vector.shape_cast %62 : vector<1x8x16x16xf32> to vector<8x16x16xf32>
    %64 = vector.shape_cast %63 : vector<8x16x16xf32> to vector<128x16xf32>
    %65 = arith.truncf %64 : vector<128x16xf32> to vector<128x16xbf16>
    %c6 = arith.constant 6 : index
    %c0_43 = arith.constant 0 : index
    %c0_44 = arith.constant 0 : index
    %66 = vector.load %arg2[%c6, %c0_43, %c0_44] : memref<9x16x32xbf16, #tpu.memory_space<vmem>>, vector<1x16x32xbf16>
    %67 = vector.shape_cast %66 : vector<1x16x32xbf16> to vector<16x32xbf16>
    %cst_45 = arith.constant dense<0.000000e+00> : vector<128x32xf32>
    %68 = tpu.matmul %65, %67, %cst_45 {dimension_numbers = #tpu.dot_dimension_numbers<[1], [0], [0], [1], [0, 0, 1, 1], [], []>} : vector<128x16xbf16>, vector<16x32xbf16>, vector<128x32xf32> -> vector<128x32xf32>
    %69 = arith.addf %59, %68 : vector<128x32xf32>
    %c1_i32_46 = arith.constant 1 : i32
    %70 = arith.addi %c1_i32_46, %0 : i32
    %c1_47 = arith.constant 1 : index
    %71 = arith.index_cast %70 : i32 to index
    %c0_48 = arith.constant 0 : index
    %c0_49 = arith.constant 0 : index
    %72 = vector.load %arg1[%c1_47, %71, %c0_48, %c0_49] : memref<4x17x17x16xf32, #tpu.memory_space<vmem>>, vector<1x8x16x16xf32>
    %73 = vector.shape_cast %72 : vector<1x8x16x16xf32> to vector<8x16x16xf32>
    %74 = vector.shape_cast %73 : vector<8x16x16xf32> to vector<128x16xf32>
    %75 = arith.truncf %74 : vector<128x16xf32> to vector<128x16xbf16>
    %c7 = arith.constant 7 : index
    %c0_50 = arith.constant 0 : index
    %c0_51 = arith.constant 0 : index
    %76 = vector.load %arg2[%c7, %c0_50, %c0_51] : memref<9x16x32xbf16, #tpu.memory_space<vmem>>, vector<1x16x32xbf16>
    %77 = vector.shape_cast %76 : vector<1x16x32xbf16> to vector<16x32xbf16>
    %cst_52 = arith.constant dense<0.000000e+00> : vector<128x32xf32>
    %78 = tpu.matmul %75, %77, %cst_52 {dimension_numbers = #tpu.dot_dimension_numbers<[1], [0], [0], [1], [0, 0, 1, 1], [], []>} : vector<128x16xbf16>, vector<16x32xbf16>, vector<128x32xf32> -> vector<128x32xf32>
    %79 = arith.addf %69, %78 : vector<128x32xf32>
    %c1_i32_53 = arith.constant 1 : i32
    %80 = arith.addi %c1_i32_53, %0 : i32
    %c0_54 = arith.constant 0 : index
    %81 = arith.index_cast %80 : i32 to index
    %c1_55 = arith.constant 1 : index
    %c0_56 = arith.constant 0 : index
    %82 = vector.load %arg1[%c0_54, %81, %c1_55, %c0_56] : memref<4x17x17x16xf32, #tpu.memory_space<vmem>>, vector<1x8x16x16xf32>
    %83 = vector.shape_cast %82 : vector<1x8x16x16xf32> to vector<8x16x16xf32>
    %84 = vector.shape_cast %83 : vector<8x16x16xf32> to vector<128x16xf32>
    %85 = arith.truncf %84 : vector<128x16xf32> to vector<128x16xbf16>
    %c8 = arith.constant 8 : index
    %c0_57 = arith.constant 0 : index
    %c0_58 = arith.constant 0 : index
    %86 = vector.load %arg2[%c8, %c0_57, %c0_58] : memref<9x16x32xbf16, #tpu.memory_space<vmem>>, vector<1x16x32xbf16>
    %87 = vector.shape_cast %86 : vector<1x16x32xbf16> to vector<16x32xbf16>
    %cst_59 = arith.constant dense<0.000000e+00> : vector<128x32xf32>
    %88 = tpu.matmul %85, %87, %cst_59 {dimension_numbers = #tpu.dot_dimension_numbers<[1], [0], [0], [1], [0, 0, 1, 1], [], []>} : vector<128x16xbf16>, vector<16x32xbf16>, vector<128x32xf32> -> vector<128x32xf32>
    %89 = arith.addf %79, %88 : vector<128x32xf32>
    %c0_60 = arith.constant 0 : index
    %c0_61 = arith.constant 0 : index
    %90 = vector.load %arg3[%c0_60, %c0_61] : memref<1x32xf32, #tpu.memory_space<vmem>>, vector<1x32xf32>
    %91 = vector.broadcast %90 : vector<1x32xf32> to vector<128x32xf32>
    %92 = arith.addf %89, %91 : vector<128x32xf32>
    %cst_62 = arith.constant 0.000000e+00 : f32
    %93 = vector.broadcast %cst_62 : f32 to vector<128x32xf32>
    %94 = arith.maximumf %92, %93 : vector<128x32xf32>
    %c0_63 = arith.constant 0 : index
    %c0_64 = arith.constant 0 : index
    %95 = vector.load %arg4[%c0_63, %c0_64] : memref<128x32xf32, #tpu.memory_space<vmem>>, vector<128x32xf32>
    tpu.vector_store %arg4[%c0_63, %c0_64], %94 {strides = array<i32>} : memref<128x32xf32, #tpu.memory_space<vmem>>, vector<128x32xf32>,
    return
  }
  func.func @transform_0(%arg0: i32) -> (i32, i32, i32, i32) {
    %c0_i32 = arith.constant 0 : i32
    %c0_i32_0 = arith.constant 0 : i32
    %c0_i32_1 = arith.constant 0 : i32
    %c0_i32_2 = arith.constant 0 : i32
    %c0_i32_3 = arith.constant 0 : i32
    return %c0_i32, %c0_i32_0, %c0_i32_1, %c0_i32_2 : i32, i32, i32, i32
  }
  func.func @transform_1(%arg0: i32) -> (i32, i32, i32) {
    %c0_i32 = arith.constant 0 : i32
    %c0_i32_0 = arith.constant 0 : i32
    %c0_i32_1 = arith.constant 0 : i32
    %c0_i32_2 = arith.constant 0 : i32
    return %c0_i32, %c0_i32_0, %c0_i32_1 : i32, i32, i32
  }
  func.func @transform_2(%arg0: i32) -> (i32, i32) {
    %c0_i32 = arith.constant 0 : i32
    %c0_i32_0 = arith.constant 0 : i32
    %c0_i32_1 = arith.constant 0 : i32
    return %c0_i32, %c0_i32_0 : i32, i32
  }
  func.func @transform_3(%arg0: i32) -> (i32, i32) {
    %c0_i32 = arith.constant 0 : i32
    %c0_i32_0 = arith.constant 0 : i32
    return %arg0, %c0_i32 : i32, i32
  }
}

module attributes {stable_mosaic.version = 11 : i64} {
  func.func @_conv_kernel(%arg0: i32, %arg1: memref<1x16x16x32xf32, #tpu.memory_space<vmem>>, %arg2: memref<1x32x32xbf16, #tpu.memory_space<vmem>>, %arg3: memref<1x32xf32, #tpu.memory_space<vmem>>, %arg4: memref<128x32xf32, #tpu.memory_space<vmem>>) attributes {dimension_semantics = [#tpu.dimension_semantics<parallel>], iteration_bounds = array<i64: 2>, scalar_prefetch = 0 : i64, scratch_operands = 0 : i64, tpu.core_type = #tpu.core_type<tc>, window_params = [{pipeline_mode = #tpu.pipeline_mode<synchronous>, transform_indices = @transform_0, window_bounds = array<i64: 1, 16, 16, 32>}, {pipeline_mode = #tpu.pipeline_mode<synchronous>, transform_indices = @transform_1, window_bounds = array<i64: 1, 32, 32>}, {pipeline_mode = #tpu.pipeline_mode<synchronous>, transform_indices = @transform_2, window_bounds = array<i64: 1, 32>}, {transform_indices = @transform_3, window_bounds = array<i64: 128, 32>}]} {
    %c8_i32 = arith.constant 8 : i32
    %0 = arith.muli %arg0, %c8_i32 : i32
    %c0_i32 = arith.constant 0 : i32
    %1 = arith.addi %c0_i32, %0 : i32
    %c0 = arith.constant 0 : index
    %2 = arith.index_cast %1 : i32 to index
    %c0_0 = arith.constant 0 : index
    %c0_1 = arith.constant 0 : index
    %3 = vector.load %arg1[%c0, %2, %c0_0, %c0_1] : memref<1x16x16x32xf32, #tpu.memory_space<vmem>>, vector<1x8x16x32xf32>
    %4 = vector.shape_cast %3 : vector<1x8x16x32xf32> to vector<8x16x32xf32>
    %5 = vector.shape_cast %4 : vector<8x16x32xf32> to vector<128x32xf32>
    %6 = arith.truncf %5 : vector<128x32xf32> to vector<128x32xbf16>
    %c0_2 = arith.constant 0 : index
    %c0_3 = arith.constant 0 : index
    %c0_4 = arith.constant 0 : index
    %7 = vector.load %arg2[%c0_2, %c0_3, %c0_4] : memref<1x32x32xbf16, #tpu.memory_space<vmem>>, vector<1x32x32xbf16>
    %8 = vector.shape_cast %7 : vector<1x32x32xbf16> to vector<32x32xbf16>
    %cst = arith.constant dense<0.000000e+00> : vector<128x32xf32>
    %9 = tpu.matmul %6, %8, %cst {dimension_numbers = #tpu.dot_dimension_numbers<[1], [0], [0], [1], [0, 0, 1, 1], [], []>} : vector<128x32xbf16>, vector<32x32xbf16>, vector<128x32xf32> -> vector<128x32xf32>
    %c0_5 = arith.constant 0 : index
    %c0_6 = arith.constant 0 : index
    %10 = vector.load %arg3[%c0_5, %c0_6] : memref<1x32xf32, #tpu.memory_space<vmem>>, vector<1x32xf32>
    %11 = vector.broadcast %10 : vector<1x32xf32> to vector<128x32xf32>
    %12 = arith.addf %9, %11 : vector<128x32xf32>
    %c0_7 = arith.constant 0 : index
    %c0_8 = arith.constant 0 : index
    %13 = vector.load %arg4[%c0_7, %c0_8] : memref<128x32xf32, #tpu.memory_space<vmem>>, vector<128x32xf32>
    tpu.vector_store %arg4[%c0_7, %c0_8], %12 {strides = array<i32>} : memref<128x32xf32, #tpu.memory_space<vmem>>, vector<128x32xf32>,
    return
  }
  func.func @transform_0(%arg0: i32) -> (i32, i32, i32, i32) {
    %c0_i32 = arith.constant 0 : i32
    %c0_i32_0 = arith.constant 0 : i32
    %c0_i32_1 = arith.constant 0 : i32
    %c0_i32_2 = arith.constant 0 : i32
    %c0_i32_3 = arith.constant 0 : i32
    return %c0_i32, %c0_i32_0, %c0_i32_1, %c0_i32_2 : i32, i32, i32, i32
  }
  func.func @transform_1(%arg0: i32) -> (i32, i32, i32) {
    %c0_i32 = arith.constant 0 : i32
    %c0_i32_0 = arith.constant 0 : i32
    %c0_i32_1 = arith.constant 0 : i32
    %c0_i32_2 = arith.constant 0 : i32
    return %c0_i32, %c0_i32_0, %c0_i32_1 : i32, i32, i32
  }
  func.func @transform_2(%arg0: i32) -> (i32, i32) {
    %c0_i32 = arith.constant 0 : i32
    %c0_i32_0 = arith.constant 0 : i32
    %c0_i32_1 = arith.constant 0 : i32
    return %c0_i32, %c0_i32_0 : i32, i32
  }
  func.func @transform_3(%arg0: i32) -> (i32, i32) {
    %c0_i32 = arith.constant 0 : i32
    %c0_i32_0 = arith.constant 0 : i32
    return %arg0, %c0_i32 : i32, i32
  }
}

module attributes {stable_mosaic.version = 11 : i64} {
  func.func @_conv_kernel(%arg0: i32, %arg1: memref<1x18x18x32xf32, #tpu.memory_space<vmem>>, %arg2: memref<9x32x32xbf16, #tpu.memory_space<vmem>>, %arg3: memref<1x32xf32, #tpu.memory_space<vmem>>, %arg4: memref<128x32xf32, #tpu.memory_space<vmem>>) attributes {dimension_semantics = [#tpu.dimension_semantics<parallel>], iteration_bounds = array<i64: 2>, scalar_prefetch = 0 : i64, scratch_operands = 0 : i64, tpu.core_type = #tpu.core_type<tc>, window_params = [{pipeline_mode = #tpu.pipeline_mode<synchronous>, transform_indices = @transform_0, window_bounds = array<i64: 1, 18, 18, 32>}, {pipeline_mode = #tpu.pipeline_mode<synchronous>, transform_indices = @transform_1, window_bounds = array<i64: 9, 32, 32>}, {pipeline_mode = #tpu.pipeline_mode<synchronous>, transform_indices = @transform_2, window_bounds = array<i64: 1, 32>}, {transform_indices = @transform_3, window_bounds = array<i64: 128, 32>}]} {
    %c8_i32 = arith.constant 8 : i32
    %0 = arith.muli %arg0, %c8_i32 : i32
    %c0_i32 = arith.constant 0 : i32
    %1 = arith.addi %c0_i32, %0 : i32
    %c0 = arith.constant 0 : index
    %2 = arith.index_cast %1 : i32 to index
    %c0_0 = arith.constant 0 : index
    %c0_1 = arith.constant 0 : index
    %3 = vector.load %arg1[%c0, %2, %c0_0, %c0_1] : memref<1x18x18x32xf32, #tpu.memory_space<vmem>>, vector<1x8x16x32xf32>
    %4 = vector.shape_cast %3 : vector<1x8x16x32xf32> to vector<8x16x32xf32>
    %5 = vector.shape_cast %4 : vector<8x16x32xf32> to vector<128x32xf32>
    %6 = arith.truncf %5 : vector<128x32xf32> to vector<128x32xbf16>
    %c0_2 = arith.constant 0 : index
    %c0_3 = arith.constant 0 : index
    %c0_4 = arith.constant 0 : index
    %7 = vector.load %arg2[%c0_2, %c0_3, %c0_4] : memref<9x32x32xbf16, #tpu.memory_space<vmem>>, vector<1x32x32xbf16>
    %8 = vector.shape_cast %7 : vector<1x32x32xbf16> to vector<32x32xbf16>
    %cst = arith.constant dense<0.000000e+00> : vector<128x32xf32>
    %9 = tpu.matmul %6, %8, %cst {dimension_numbers = #tpu.dot_dimension_numbers<[1], [0], [0], [1], [0, 0, 1, 1], [], []>} : vector<128x32xbf16>, vector<32x32xbf16>, vector<128x32xf32> -> vector<128x32xf32>
    %c0_i32_5 = arith.constant 0 : i32
    %10 = arith.addi %c0_i32_5, %0 : i32
    %c0_6 = arith.constant 0 : index
    %11 = arith.index_cast %10 : i32 to index
    %c1 = arith.constant 1 : index
    %c0_7 = arith.constant 0 : index
    %12 = vector.load %arg1[%c0_6, %11, %c1, %c0_7] : memref<1x18x18x32xf32, #tpu.memory_space<vmem>>, vector<1x8x16x32xf32>
    %13 = vector.shape_cast %12 : vector<1x8x16x32xf32> to vector<8x16x32xf32>
    %14 = vector.shape_cast %13 : vector<8x16x32xf32> to vector<128x32xf32>
    %15 = arith.truncf %14 : vector<128x32xf32> to vector<128x32xbf16>
    %c1_8 = arith.constant 1 : index
    %c0_9 = arith.constant 0 : index
    %c0_10 = arith.constant 0 : index
    %16 = vector.load %arg2[%c1_8, %c0_9, %c0_10] : memref<9x32x32xbf16, #tpu.memory_space<vmem>>, vector<1x32x32xbf16>
    %17 = vector.shape_cast %16 : vector<1x32x32xbf16> to vector<32x32xbf16>
    %cst_11 = arith.constant dense<0.000000e+00> : vector<128x32xf32>
    %18 = tpu.matmul %15, %17, %cst_11 {dimension_numbers = #tpu.dot_dimension_numbers<[1], [0], [0], [1], [0, 0, 1, 1], [], []>} : vector<128x32xbf16>, vector<32x32xbf16>, vector<128x32xf32> -> vector<128x32xf32>
    %19 = arith.addf %9, %18 : vector<128x32xf32>
    %c0_i32_12 = arith.constant 0 : i32
    %20 = arith.addi %c0_i32_12, %0 : i32
    %c0_13 = arith.constant 0 : index
    %21 = arith.index_cast %20 : i32 to index
    %c2 = arith.constant 2 : index
    %c0_14 = arith.constant 0 : index
    %22 = vector.load %arg1[%c0_13, %21, %c2, %c0_14] : memref<1x18x18x32xf32, #tpu.memory_space<vmem>>, vector<1x8x16x32xf32>
    %23 = vector.shape_cast %22 : vector<1x8x16x32xf32> to vector<8x16x32xf32>
    %24 = vector.shape_cast %23 : vector<8x16x32xf32> to vector<128x32xf32>
    %25 = arith.truncf %24 : vector<128x32xf32> to vector<128x32xbf16>
    %c2_15 = arith.constant 2 : index
    %c0_16 = arith.constant 0 : index
    %c0_17 = arith.constant 0 : index
    %26 = vector.load %arg2[%c2_15, %c0_16, %c0_17] : memref<9x32x32xbf16, #tpu.memory_space<vmem>>, vector<1x32x32xbf16>
    %27 = vector.shape_cast %26 : vector<1x32x32xbf16> to vector<32x32xbf16>
    %cst_18 = arith.constant dense<0.000000e+00> : vector<128x32xf32>
    %28 = tpu.matmul %25, %27, %cst_18 {dimension_numbers = #tpu.dot_dimension_numbers<[1], [0], [0], [1], [0, 0, 1, 1], [], []>} : vector<128x32xbf16>, vector<32x32xbf16>, vector<128x32xf32> -> vector<128x32xf32>
    %29 = arith.addf %19, %28 : vector<128x32xf32>
    %c1_i32 = arith.constant 1 : i32
    %30 = arith.addi %c1_i32, %0 : i32
    %c0_19 = arith.constant 0 : index
    %31 = arith.index_cast %30 : i32 to index
    %c0_20 = arith.constant 0 : index
    %c0_21 = arith.constant 0 : index
    %32 = vector.load %arg1[%c0_19, %31, %c0_20, %c0_21] : memref<1x18x18x32xf32, #tpu.memory_space<vmem>>, vector<1x8x16x32xf32>
    %33 = vector.shape_cast %32 : vector<1x8x16x32xf32> to vector<8x16x32xf32>
    %34 = vector.shape_cast %33 : vector<8x16x32xf32> to vector<128x32xf32>
    %35 = arith.truncf %34 : vector<128x32xf32> to vector<128x32xbf16>
    %c3 = arith.constant 3 : index
    %c0_22 = arith.constant 0 : index
    %c0_23 = arith.constant 0 : index
    %36 = vector.load %arg2[%c3, %c0_22, %c0_23] : memref<9x32x32xbf16, #tpu.memory_space<vmem>>, vector<1x32x32xbf16>
    %37 = vector.shape_cast %36 : vector<1x32x32xbf16> to vector<32x32xbf16>
    %cst_24 = arith.constant dense<0.000000e+00> : vector<128x32xf32>
    %38 = tpu.matmul %35, %37, %cst_24 {dimension_numbers = #tpu.dot_dimension_numbers<[1], [0], [0], [1], [0, 0, 1, 1], [], []>} : vector<128x32xbf16>, vector<32x32xbf16>, vector<128x32xf32> -> vector<128x32xf32>
    %39 = arith.addf %29, %38 : vector<128x32xf32>
    %c1_i32_25 = arith.constant 1 : i32
    %40 = arith.addi %c1_i32_25, %0 : i32
    %c0_26 = arith.constant 0 : index
    %41 = arith.index_cast %40 : i32 to index
    %c1_27 = arith.constant 1 : index
    %c0_28 = arith.constant 0 : index
    %42 = vector.load %arg1[%c0_26, %41, %c1_27, %c0_28] : memref<1x18x18x32xf32, #tpu.memory_space<vmem>>, vector<1x8x16x32xf32>
    %43 = vector.shape_cast %42 : vector<1x8x16x32xf32> to vector<8x16x32xf32>
    %44 = vector.shape_cast %43 : vector<8x16x32xf32> to vector<128x32xf32>
    %45 = arith.truncf %44 : vector<128x32xf32> to vector<128x32xbf16>
    %c4 = arith.constant 4 : index
    %c0_29 = arith.constant 0 : index
    %c0_30 = arith.constant 0 : index
    %46 = vector.load %arg2[%c4, %c0_29, %c0_30] : memref<9x32x32xbf16, #tpu.memory_space<vmem>>, vector<1x32x32xbf16>
    %47 = vector.shape_cast %46 : vector<1x32x32xbf16> to vector<32x32xbf16>
    %cst_31 = arith.constant dense<0.000000e+00> : vector<128x32xf32>
    %48 = tpu.matmul %45, %47, %cst_31 {dimension_numbers = #tpu.dot_dimension_numbers<[1], [0], [0], [1], [0, 0, 1, 1], [], []>} : vector<128x32xbf16>, vector<32x32xbf16>, vector<128x32xf32> -> vector<128x32xf32>
    %49 = arith.addf %39, %48 : vector<128x32xf32>
    %c1_i32_32 = arith.constant 1 : i32
    %50 = arith.addi %c1_i32_32, %0 : i32
    %c0_33 = arith.constant 0 : index
    %51 = arith.index_cast %50 : i32 to index
    %c2_34 = arith.constant 2 : index
    %c0_35 = arith.constant 0 : index
    %52 = vector.load %arg1[%c0_33, %51, %c2_34, %c0_35] : memref<1x18x18x32xf32, #tpu.memory_space<vmem>>, vector<1x8x16x32xf32>
    %53 = vector.shape_cast %52 : vector<1x8x16x32xf32> to vector<8x16x32xf32>
    %54 = vector.shape_cast %53 : vector<8x16x32xf32> to vector<128x32xf32>
    %55 = arith.truncf %54 : vector<128x32xf32> to vector<128x32xbf16>
    %c5 = arith.constant 5 : index
    %c0_36 = arith.constant 0 : index
    %c0_37 = arith.constant 0 : index
    %56 = vector.load %arg2[%c5, %c0_36, %c0_37] : memref<9x32x32xbf16, #tpu.memory_space<vmem>>, vector<1x32x32xbf16>
    %57 = vector.shape_cast %56 : vector<1x32x32xbf16> to vector<32x32xbf16>
    %cst_38 = arith.constant dense<0.000000e+00> : vector<128x32xf32>
    %58 = tpu.matmul %55, %57, %cst_38 {dimension_numbers = #tpu.dot_dimension_numbers<[1], [0], [0], [1], [0, 0, 1, 1], [], []>} : vector<128x32xbf16>, vector<32x32xbf16>, vector<128x32xf32> -> vector<128x32xf32>
    %59 = arith.addf %49, %58 : vector<128x32xf32>
    %c2_i32 = arith.constant 2 : i32
    %60 = arith.addi %c2_i32, %0 : i32
    %c0_39 = arith.constant 0 : index
    %61 = arith.index_cast %60 : i32 to index
    %c0_40 = arith.constant 0 : index
    %c0_41 = arith.constant 0 : index
    %62 = vector.load %arg1[%c0_39, %61, %c0_40, %c0_41] : memref<1x18x18x32xf32, #tpu.memory_space<vmem>>, vector<1x8x16x32xf32>
    %63 = vector.shape_cast %62 : vector<1x8x16x32xf32> to vector<8x16x32xf32>
    %64 = vector.shape_cast %63 : vector<8x16x32xf32> to vector<128x32xf32>
    %65 = arith.truncf %64 : vector<128x32xf32> to vector<128x32xbf16>
    %c6 = arith.constant 6 : index
    %c0_42 = arith.constant 0 : index
    %c0_43 = arith.constant 0 : index
    %66 = vector.load %arg2[%c6, %c0_42, %c0_43] : memref<9x32x32xbf16, #tpu.memory_space<vmem>>, vector<1x32x32xbf16>
    %67 = vector.shape_cast %66 : vector<1x32x32xbf16> to vector<32x32xbf16>
    %cst_44 = arith.constant dense<0.000000e+00> : vector<128x32xf32>
    %68 = tpu.matmul %65, %67, %cst_44 {dimension_numbers = #tpu.dot_dimension_numbers<[1], [0], [0], [1], [0, 0, 1, 1], [], []>} : vector<128x32xbf16>, vector<32x32xbf16>, vector<128x32xf32> -> vector<128x32xf32>
    %69 = arith.addf %59, %68 : vector<128x32xf32>
    %c2_i32_45 = arith.constant 2 : i32
    %70 = arith.addi %c2_i32_45, %0 : i32
    %c0_46 = arith.constant 0 : index
    %71 = arith.index_cast %70 : i32 to index
    %c1_47 = arith.constant 1 : index
    %c0_48 = arith.constant 0 : index
    %72 = vector.load %arg1[%c0_46, %71, %c1_47, %c0_48] : memref<1x18x18x32xf32, #tpu.memory_space<vmem>>, vector<1x8x16x32xf32>
    %73 = vector.shape_cast %72 : vector<1x8x16x32xf32> to vector<8x16x32xf32>
    %74 = vector.shape_cast %73 : vector<8x16x32xf32> to vector<128x32xf32>
    %75 = arith.truncf %74 : vector<128x32xf32> to vector<128x32xbf16>
    %c7 = arith.constant 7 : index
    %c0_49 = arith.constant 0 : index
    %c0_50 = arith.constant 0 : index
    %76 = vector.load %arg2[%c7, %c0_49, %c0_50] : memref<9x32x32xbf16, #tpu.memory_space<vmem>>, vector<1x32x32xbf16>
    %77 = vector.shape_cast %76 : vector<1x32x32xbf16> to vector<32x32xbf16>
    %cst_51 = arith.constant dense<0.000000e+00> : vector<128x32xf32>
    %78 = tpu.matmul %75, %77, %cst_51 {dimension_numbers = #tpu.dot_dimension_numbers<[1], [0], [0], [1], [0, 0, 1, 1], [], []>} : vector<128x32xbf16>, vector<32x32xbf16>, vector<128x32xf32> -> vector<128x32xf32>
    %79 = arith.addf %69, %78 : vector<128x32xf32>
    %c2_i32_52 = arith.constant 2 : i32
    %80 = arith.addi %c2_i32_52, %0 : i32
    %c0_53 = arith.constant 0 : index
    %81 = arith.index_cast %80 : i32 to index
    %c2_54 = arith.constant 2 : index
    %c0_55 = arith.constant 0 : index
    %82 = vector.load %arg1[%c0_53, %81, %c2_54, %c0_55] : memref<1x18x18x32xf32, #tpu.memory_space<vmem>>, vector<1x8x16x32xf32>
    %83 = vector.shape_cast %82 : vector<1x8x16x32xf32> to vector<8x16x32xf32>
    %84 = vector.shape_cast %83 : vector<8x16x32xf32> to vector<128x32xf32>
    %85 = arith.truncf %84 : vector<128x32xf32> to vector<128x32xbf16>
    %c8 = arith.constant 8 : index
    %c0_56 = arith.constant 0 : index
    %c0_57 = arith.constant 0 : index
    %86 = vector.load %arg2[%c8, %c0_56, %c0_57] : memref<9x32x32xbf16, #tpu.memory_space<vmem>>, vector<1x32x32xbf16>
    %87 = vector.shape_cast %86 : vector<1x32x32xbf16> to vector<32x32xbf16>
    %cst_58 = arith.constant dense<0.000000e+00> : vector<128x32xf32>
    %88 = tpu.matmul %85, %87, %cst_58 {dimension_numbers = #tpu.dot_dimension_numbers<[1], [0], [0], [1], [0, 0, 1, 1], [], []>} : vector<128x32xbf16>, vector<32x32xbf16>, vector<128x32xf32> -> vector<128x32xf32>
    %89 = arith.addf %79, %88 : vector<128x32xf32>
    %c0_59 = arith.constant 0 : index
    %c0_60 = arith.constant 0 : index
    %90 = vector.load %arg3[%c0_59, %c0_60] : memref<1x32xf32, #tpu.memory_space<vmem>>, vector<1x32xf32>
    %91 = vector.broadcast %90 : vector<1x32xf32> to vector<128x32xf32>
    %92 = arith.addf %89, %91 : vector<128x32xf32>
    %c0_61 = arith.constant 0 : index
    %c0_62 = arith.constant 0 : index
    %93 = vector.load %arg4[%c0_61, %c0_62] : memref<128x32xf32, #tpu.memory_space<vmem>>, vector<128x32xf32>
    tpu.vector_store %arg4[%c0_61, %c0_62], %92 {strides = array<i32>} : memref<128x32xf32, #tpu.memory_space<vmem>>, vector<128x32xf32>,
    return
  }
  func.func @transform_0(%arg0: i32) -> (i32, i32, i32, i32) {
    %c0_i32 = arith.constant 0 : i32
    %c0_i32_0 = arith.constant 0 : i32
    %c0_i32_1 = arith.constant 0 : i32
    %c0_i32_2 = arith.constant 0 : i32
    %c0_i32_3 = arith.constant 0 : i32
    return %c0_i32, %c0_i32_0, %c0_i32_1, %c0_i32_2 : i32, i32, i32, i32
  }
  func.func @transform_1(%arg0: i32) -> (i32, i32, i32) {
    %c0_i32 = arith.constant 0 : i32
    %c0_i32_0 = arith.constant 0 : i32
    %c0_i32_1 = arith.constant 0 : i32
    %c0_i32_2 = arith.constant 0 : i32
    return %c0_i32, %c0_i32_0, %c0_i32_1 : i32, i32, i32
  }
  func.func @transform_2(%arg0: i32) -> (i32, i32) {
    %c0_i32 = arith.constant 0 : i32
    %c0_i32_0 = arith.constant 0 : i32
    %c0_i32_1 = arith.constant 0 : i32
    return %c0_i32, %c0_i32_0 : i32, i32
  }
  func.func @transform_3(%arg0: i32) -> (i32, i32) {
    %c0_i32 = arith.constant 0 : i32
    %c0_i32_0 = arith.constant 0 : i32
    return %arg0, %c0_i32 : i32, i32
  }
}

module attributes {stable_mosaic.version = 11 : i64} {
  func.func @_conv_kernel(%arg0: i32, %arg1: memref<1x18x18x32xf32, #tpu.memory_space<vmem>>, %arg2: memref<9x32x32xbf16, #tpu.memory_space<vmem>>, %arg3: memref<1x32xf32, #tpu.memory_space<vmem>>, %arg4: memref<128x32xf32, #tpu.memory_space<vmem>>) attributes {dimension_semantics = [#tpu.dimension_semantics<parallel>], iteration_bounds = array<i64: 2>, scalar_prefetch = 0 : i64, scratch_operands = 0 : i64, tpu.core_type = #tpu.core_type<tc>, window_params = [{pipeline_mode = #tpu.pipeline_mode<synchronous>, transform_indices = @transform_0, window_bounds = array<i64: 1, 18, 18, 32>}, {pipeline_mode = #tpu.pipeline_mode<synchronous>, transform_indices = @transform_1, window_bounds = array<i64: 9, 32, 32>}, {pipeline_mode = #tpu.pipeline_mode<synchronous>, transform_indices = @transform_2, window_bounds = array<i64: 1, 32>}, {transform_indices = @transform_3, window_bounds = array<i64: 128, 32>}]} {
    %c8_i32 = arith.constant 8 : i32
    %0 = arith.muli %arg0, %c8_i32 : i32
    %c0_i32 = arith.constant 0 : i32
    %1 = arith.addi %c0_i32, %0 : i32
    %c0 = arith.constant 0 : index
    %2 = arith.index_cast %1 : i32 to index
    %c0_0 = arith.constant 0 : index
    %c0_1 = arith.constant 0 : index
    %3 = vector.load %arg1[%c0, %2, %c0_0, %c0_1] : memref<1x18x18x32xf32, #tpu.memory_space<vmem>>, vector<1x8x16x32xf32>
    %4 = vector.shape_cast %3 : vector<1x8x16x32xf32> to vector<8x16x32xf32>
    %5 = vector.shape_cast %4 : vector<8x16x32xf32> to vector<128x32xf32>
    %6 = arith.truncf %5 : vector<128x32xf32> to vector<128x32xbf16>
    %c0_2 = arith.constant 0 : index
    %c0_3 = arith.constant 0 : index
    %c0_4 = arith.constant 0 : index
    %7 = vector.load %arg2[%c0_2, %c0_3, %c0_4] : memref<9x32x32xbf16, #tpu.memory_space<vmem>>, vector<1x32x32xbf16>
    %8 = vector.shape_cast %7 : vector<1x32x32xbf16> to vector<32x32xbf16>
    %cst = arith.constant dense<0.000000e+00> : vector<128x32xf32>
    %9 = tpu.matmul %6, %8, %cst {dimension_numbers = #tpu.dot_dimension_numbers<[1], [0], [0], [1], [0, 0, 1, 1], [], []>} : vector<128x32xbf16>, vector<32x32xbf16>, vector<128x32xf32> -> vector<128x32xf32>
    %c0_i32_5 = arith.constant 0 : i32
    %10 = arith.addi %c0_i32_5, %0 : i32
    %c0_6 = arith.constant 0 : index
    %11 = arith.index_cast %10 : i32 to index
    %c1 = arith.constant 1 : index
    %c0_7 = arith.constant 0 : index
    %12 = vector.load %arg1[%c0_6, %11, %c1, %c0_7] : memref<1x18x18x32xf32, #tpu.memory_space<vmem>>, vector<1x8x16x32xf32>
    %13 = vector.shape_cast %12 : vector<1x8x16x32xf32> to vector<8x16x32xf32>
    %14 = vector.shape_cast %13 : vector<8x16x32xf32> to vector<128x32xf32>
    %15 = arith.truncf %14 : vector<128x32xf32> to vector<128x32xbf16>
    %c1_8 = arith.constant 1 : index
    %c0_9 = arith.constant 0 : index
    %c0_10 = arith.constant 0 : index
    %16 = vector.load %arg2[%c1_8, %c0_9, %c0_10] : memref<9x32x32xbf16, #tpu.memory_space<vmem>>, vector<1x32x32xbf16>
    %17 = vector.shape_cast %16 : vector<1x32x32xbf16> to vector<32x32xbf16>
    %cst_11 = arith.constant dense<0.000000e+00> : vector<128x32xf32>
    %18 = tpu.matmul %15, %17, %cst_11 {dimension_numbers = #tpu.dot_dimension_numbers<[1], [0], [0], [1], [0, 0, 1, 1], [], []>} : vector<128x32xbf16>, vector<32x32xbf16>, vector<128x32xf32> -> vector<128x32xf32>
    %19 = arith.addf %9, %18 : vector<128x32xf32>
    %c0_i32_12 = arith.constant 0 : i32
    %20 = arith.addi %c0_i32_12, %0 : i32
    %c0_13 = arith.constant 0 : index
    %21 = arith.index_cast %20 : i32 to index
    %c2 = arith.constant 2 : index
    %c0_14 = arith.constant 0 : index
    %22 = vector.load %arg1[%c0_13, %21, %c2, %c0_14] : memref<1x18x18x32xf32, #tpu.memory_space<vmem>>, vector<1x8x16x32xf32>
    %23 = vector.shape_cast %22 : vector<1x8x16x32xf32> to vector<8x16x32xf32>
    %24 = vector.shape_cast %23 : vector<8x16x32xf32> to vector<128x32xf32>
    %25 = arith.truncf %24 : vector<128x32xf32> to vector<128x32xbf16>
    %c2_15 = arith.constant 2 : index
    %c0_16 = arith.constant 0 : index
    %c0_17 = arith.constant 0 : index
    %26 = vector.load %arg2[%c2_15, %c0_16, %c0_17] : memref<9x32x32xbf16, #tpu.memory_space<vmem>>, vector<1x32x32xbf16>
    %27 = vector.shape_cast %26 : vector<1x32x32xbf16> to vector<32x32xbf16>
    %cst_18 = arith.constant dense<0.000000e+00> : vector<128x32xf32>
    %28 = tpu.matmul %25, %27, %cst_18 {dimension_numbers = #tpu.dot_dimension_numbers<[1], [0], [0], [1], [0, 0, 1, 1], [], []>} : vector<128x32xbf16>, vector<32x32xbf16>, vector<128x32xf32> -> vector<128x32xf32>
    %29 = arith.addf %19, %28 : vector<128x32xf32>
    %c1_i32 = arith.constant 1 : i32
    %30 = arith.addi %c1_i32, %0 : i32
    %c0_19 = arith.constant 0 : index
    %31 = arith.index_cast %30 : i32 to index
    %c0_20 = arith.constant 0 : index
    %c0_21 = arith.constant 0 : index
    %32 = vector.load %arg1[%c0_19, %31, %c0_20, %c0_21] : memref<1x18x18x32xf32, #tpu.memory_space<vmem>>, vector<1x8x16x32xf32>
    %33 = vector.shape_cast %32 : vector<1x8x16x32xf32> to vector<8x16x32xf32>
    %34 = vector.shape_cast %33 : vector<8x16x32xf32> to vector<128x32xf32>
    %35 = arith.truncf %34 : vector<128x32xf32> to vector<128x32xbf16>
    %c3 = arith.constant 3 : index
    %c0_22 = arith.constant 0 : index
    %c0_23 = arith.constant 0 : index
    %36 = vector.load %arg2[%c3, %c0_22, %c0_23] : memref<9x32x32xbf16, #tpu.memory_space<vmem>>, vector<1x32x32xbf16>
    %37 = vector.shape_cast %36 : vector<1x32x32xbf16> to vector<32x32xbf16>
    %cst_24 = arith.constant dense<0.000000e+00> : vector<128x32xf32>
    %38 = tpu.matmul %35, %37, %cst_24 {dimension_numbers = #tpu.dot_dimension_numbers<[1], [0], [0], [1], [0, 0, 1, 1], [], []>} : vector<128x32xbf16>, vector<32x32xbf16>, vector<128x32xf32> -> vector<128x32xf32>
    %39 = arith.addf %29, %38 : vector<128x32xf32>
    %c1_i32_25 = arith.constant 1 : i32
    %40 = arith.addi %c1_i32_25, %0 : i32
    %c0_26 = arith.constant 0 : index
    %41 = arith.index_cast %40 : i32 to index
    %c1_27 = arith.constant 1 : index
    %c0_28 = arith.constant 0 : index
    %42 = vector.load %arg1[%c0_26, %41, %c1_27, %c0_28] : memref<1x18x18x32xf32, #tpu.memory_space<vmem>>, vector<1x8x16x32xf32>
    %43 = vector.shape_cast %42 : vector<1x8x16x32xf32> to vector<8x16x32xf32>
    %44 = vector.shape_cast %43 : vector<8x16x32xf32> to vector<128x32xf32>
    %45 = arith.truncf %44 : vector<128x32xf32> to vector<128x32xbf16>
    %c4 = arith.constant 4 : index
    %c0_29 = arith.constant 0 : index
    %c0_30 = arith.constant 0 : index
    %46 = vector.load %arg2[%c4, %c0_29, %c0_30] : memref<9x32x32xbf16, #tpu.memory_space<vmem>>, vector<1x32x32xbf16>
    %47 = vector.shape_cast %46 : vector<1x32x32xbf16> to vector<32x32xbf16>
    %cst_31 = arith.constant dense<0.000000e+00> : vector<128x32xf32>
    %48 = tpu.matmul %45, %47, %cst_31 {dimension_numbers = #tpu.dot_dimension_numbers<[1], [0], [0], [1], [0, 0, 1, 1], [], []>} : vector<128x32xbf16>, vector<32x32xbf16>, vector<128x32xf32> -> vector<128x32xf32>
    %49 = arith.addf %39, %48 : vector<128x32xf32>
    %c1_i32_32 = arith.constant 1 : i32
    %50 = arith.addi %c1_i32_32, %0 : i32
    %c0_33 = arith.constant 0 : index
    %51 = arith.index_cast %50 : i32 to index
    %c2_34 = arith.constant 2 : index
    %c0_35 = arith.constant 0 : index
    %52 = vector.load %arg1[%c0_33, %51, %c2_34, %c0_35] : memref<1x18x18x32xf32, #tpu.memory_space<vmem>>, vector<1x8x16x32xf32>
    %53 = vector.shape_cast %52 : vector<1x8x16x32xf32> to vector<8x16x32xf32>
    %54 = vector.shape_cast %53 : vector<8x16x32xf32> to vector<128x32xf32>
    %55 = arith.truncf %54 : vector<128x32xf32> to vector<128x32xbf16>
    %c5 = arith.constant 5 : index
    %c0_36 = arith.constant 0 : index
    %c0_37 = arith.constant 0 : index
    %56 = vector.load %arg2[%c5, %c0_36, %c0_37] : memref<9x32x32xbf16, #tpu.memory_space<vmem>>, vector<1x32x32xbf16>
    %57 = vector.shape_cast %56 : vector<1x32x32xbf16> to vector<32x32xbf16>
    %cst_38 = arith.constant dense<0.000000e+00> : vector<128x32xf32>
    %58 = tpu.matmul %55, %57, %cst_38 {dimension_numbers = #tpu.dot_dimension_numbers<[1], [0], [0], [1], [0, 0, 1, 1], [], []>} : vector<128x32xbf16>, vector<32x32xbf16>, vector<128x32xf32> -> vector<128x32xf32>
    %59 = arith.addf %49, %58 : vector<128x32xf32>
    %c2_i32 = arith.constant 2 : i32
    %60 = arith.addi %c2_i32, %0 : i32
    %c0_39 = arith.constant 0 : index
    %61 = arith.index_cast %60 : i32 to index
    %c0_40 = arith.constant 0 : index
    %c0_41 = arith.constant 0 : index
    %62 = vector.load %arg1[%c0_39, %61, %c0_40, %c0_41] : memref<1x18x18x32xf32, #tpu.memory_space<vmem>>, vector<1x8x16x32xf32>
    %63 = vector.shape_cast %62 : vector<1x8x16x32xf32> to vector<8x16x32xf32>
    %64 = vector.shape_cast %63 : vector<8x16x32xf32> to vector<128x32xf32>
    %65 = arith.truncf %64 : vector<128x32xf32> to vector<128x32xbf16>
    %c6 = arith.constant 6 : index
    %c0_42 = arith.constant 0 : index
    %c0_43 = arith.constant 0 : index
    %66 = vector.load %arg2[%c6, %c0_42, %c0_43] : memref<9x32x32xbf16, #tpu.memory_space<vmem>>, vector<1x32x32xbf16>
    %67 = vector.shape_cast %66 : vector<1x32x32xbf16> to vector<32x32xbf16>
    %cst_44 = arith.constant dense<0.000000e+00> : vector<128x32xf32>
    %68 = tpu.matmul %65, %67, %cst_44 {dimension_numbers = #tpu.dot_dimension_numbers<[1], [0], [0], [1], [0, 0, 1, 1], [], []>} : vector<128x32xbf16>, vector<32x32xbf16>, vector<128x32xf32> -> vector<128x32xf32>
    %69 = arith.addf %59, %68 : vector<128x32xf32>
    %c2_i32_45 = arith.constant 2 : i32
    %70 = arith.addi %c2_i32_45, %0 : i32
    %c0_46 = arith.constant 0 : index
    %71 = arith.index_cast %70 : i32 to index
    %c1_47 = arith.constant 1 : index
    %c0_48 = arith.constant 0 : index
    %72 = vector.load %arg1[%c0_46, %71, %c1_47, %c0_48] : memref<1x18x18x32xf32, #tpu.memory_space<vmem>>, vector<1x8x16x32xf32>
    %73 = vector.shape_cast %72 : vector<1x8x16x32xf32> to vector<8x16x32xf32>
    %74 = vector.shape_cast %73 : vector<8x16x32xf32> to vector<128x32xf32>
    %75 = arith.truncf %74 : vector<128x32xf32> to vector<128x32xbf16>
    %c7 = arith.constant 7 : index
    %c0_49 = arith.constant 0 : index
    %c0_50 = arith.constant 0 : index
    %76 = vector.load %arg2[%c7, %c0_49, %c0_50] : memref<9x32x32xbf16, #tpu.memory_space<vmem>>, vector<1x32x32xbf16>
    %77 = vector.shape_cast %76 : vector<1x32x32xbf16> to vector<32x32xbf16>
    %cst_51 = arith.constant dense<0.000000e+00> : vector<128x32xf32>
    %78 = tpu.matmul %75, %77, %cst_51 {dimension_numbers = #tpu.dot_dimension_numbers<[1], [0], [0], [1], [0, 0, 1, 1], [], []>} : vector<128x32xbf16>, vector<32x32xbf16>, vector<128x32xf32> -> vector<128x32xf32>
    %79 = arith.addf %69, %78 : vector<128x32xf32>
    %c2_i32_52 = arith.constant 2 : i32
    %80 = arith.addi %c2_i32_52, %0 : i32
    %c0_53 = arith.constant 0 : index
    %81 = arith.index_cast %80 : i32 to index
    %c2_54 = arith.constant 2 : index
    %c0_55 = arith.constant 0 : index
    %82 = vector.load %arg1[%c0_53, %81, %c2_54, %c0_55] : memref<1x18x18x32xf32, #tpu.memory_space<vmem>>, vector<1x8x16x32xf32>
    %83 = vector.shape_cast %82 : vector<1x8x16x32xf32> to vector<8x16x32xf32>
    %84 = vector.shape_cast %83 : vector<8x16x32xf32> to vector<128x32xf32>
    %85 = arith.truncf %84 : vector<128x32xf32> to vector<128x32xbf16>
    %c8 = arith.constant 8 : index
    %c0_56 = arith.constant 0 : index
    %c0_57 = arith.constant 0 : index
    %86 = vector.load %arg2[%c8, %c0_56, %c0_57] : memref<9x32x32xbf16, #tpu.memory_space<vmem>>, vector<1x32x32xbf16>
    %87 = vector.shape_cast %86 : vector<1x32x32xbf16> to vector<32x32xbf16>
    %cst_58 = arith.constant dense<0.000000e+00> : vector<128x32xf32>
    %88 = tpu.matmul %85, %87, %cst_58 {dimension_numbers = #tpu.dot_dimension_numbers<[1], [0], [0], [1], [0, 0, 1, 1], [], []>} : vector<128x32xbf16>, vector<32x32xbf16>, vector<128x32xf32> -> vector<128x32xf32>
    %89 = arith.addf %79, %88 : vector<128x32xf32>
    %c0_59 = arith.constant 0 : index
    %c0_60 = arith.constant 0 : index
    %90 = vector.load %arg3[%c0_59, %c0_60] : memref<1x32xf32, #tpu.memory_space<vmem>>, vector<1x32xf32>
    %91 = vector.broadcast %90 : vector<1x32xf32> to vector<128x32xf32>
    %92 = arith.addf %89, %91 : vector<128x32xf32>
    %cst_61 = arith.constant 0.000000e+00 : f32
    %93 = vector.broadcast %cst_61 : f32 to vector<128x32xf32>
    %94 = arith.maximumf %92, %93 : vector<128x32xf32>
    %c0_62 = arith.constant 0 : index
    %c0_63 = arith.constant 0 : index
    %95 = vector.load %arg4[%c0_62, %c0_63] : memref<128x32xf32, #tpu.memory_space<vmem>>, vector<128x32xf32>
    tpu.vector_store %arg4[%c0_62, %c0_63], %94 {strides = array<i32>} : memref<128x32xf32, #tpu.memory_space<vmem>>, vector<128x32xf32>,
    return
  }
  func.func @transform_0(%arg0: i32) -> (i32, i32, i32, i32) {
    %c0_i32 = arith.constant 0 : i32
    %c0_i32_0 = arith.constant 0 : i32
    %c0_i32_1 = arith.constant 0 : i32
    %c0_i32_2 = arith.constant 0 : i32
    %c0_i32_3 = arith.constant 0 : i32
    return %c0_i32, %c0_i32_0, %c0_i32_1, %c0_i32_2 : i32, i32, i32, i32
  }
  func.func @transform_1(%arg0: i32) -> (i32, i32, i32) {
    %c0_i32 = arith.constant 0 : i32
    %c0_i32_0 = arith.constant 0 : i32
    %c0_i32_1 = arith.constant 0 : i32
    %c0_i32_2 = arith.constant 0 : i32
    return %c0_i32, %c0_i32_0, %c0_i32_1 : i32, i32, i32
  }
  func.func @transform_2(%arg0: i32) -> (i32, i32) {
    %c0_i32 = arith.constant 0 : i32
    %c0_i32_0 = arith.constant 0 : i32
    %c0_i32_1 = arith.constant 0 : i32
    return %c0_i32, %c0_i32_0 : i32, i32
  }
  func.func @transform_3(%arg0: i32) -> (i32, i32) {
    %c0_i32 = arith.constant 0 : i32
    %c0_i32_0 = arith.constant 0 : i32
    return %arg0, %c0_i32 : i32, i32
  }
}

module attributes {stable_mosaic.version = 11 : i64} {
  func.func @_conv_kernel(%arg0: i32, %arg1: memref<1x16x16x32xf32, #tpu.memory_space<vmem>>, %arg2: memref<1x32x15xbf16, #tpu.memory_space<vmem>>, %arg3: memref<1x15xf32, #tpu.memory_space<vmem>>, %arg4: memref<128x15xf32, #tpu.memory_space<vmem>>) attributes {dimension_semantics = [#tpu.dimension_semantics<parallel>], iteration_bounds = array<i64: 2>, scalar_prefetch = 0 : i64, scratch_operands = 0 : i64, tpu.core_type = #tpu.core_type<tc>, window_params = [{pipeline_mode = #tpu.pipeline_mode<synchronous>, transform_indices = @transform_0, window_bounds = array<i64: 1, 16, 16, 32>}, {pipeline_mode = #tpu.pipeline_mode<synchronous>, transform_indices = @transform_1, window_bounds = array<i64: 1, 32, 15>}, {pipeline_mode = #tpu.pipeline_mode<synchronous>, transform_indices = @transform_2, window_bounds = array<i64: 1, 15>}, {transform_indices = @transform_3, window_bounds = array<i64: 128, 15>}]} {
    %c8_i32 = arith.constant 8 : i32
    %0 = arith.muli %arg0, %c8_i32 : i32
    %c0_i32 = arith.constant 0 : i32
    %1 = arith.addi %c0_i32, %0 : i32
    %c0 = arith.constant 0 : index
    %2 = arith.index_cast %1 : i32 to index
    %c0_0 = arith.constant 0 : index
    %c0_1 = arith.constant 0 : index
    %3 = vector.load %arg1[%c0, %2, %c0_0, %c0_1] : memref<1x16x16x32xf32, #tpu.memory_space<vmem>>, vector<1x8x16x32xf32>
    %4 = vector.shape_cast %3 : vector<1x8x16x32xf32> to vector<8x16x32xf32>
    %5 = vector.shape_cast %4 : vector<8x16x32xf32> to vector<128x32xf32>
    %6 = arith.truncf %5 : vector<128x32xf32> to vector<128x32xbf16>
    %c0_2 = arith.constant 0 : index
    %c0_3 = arith.constant 0 : index
    %c0_4 = arith.constant 0 : index
    %7 = vector.load %arg2[%c0_2, %c0_3, %c0_4] : memref<1x32x15xbf16, #tpu.memory_space<vmem>>, vector<1x32x15xbf16>
    %8 = vector.shape_cast %7 : vector<1x32x15xbf16> to vector<32x15xbf16>
    %cst = arith.constant dense<0.000000e+00> : vector<128x15xf32>
    %9 = tpu.matmul %6, %8, %cst {dimension_numbers = #tpu.dot_dimension_numbers<[1], [0], [0], [1], [0, 0, 1, 1], [], []>} : vector<128x32xbf16>, vector<32x15xbf16>, vector<128x15xf32> -> vector<128x15xf32>
    %c0_5 = arith.constant 0 : index
    %c0_6 = arith.constant 0 : index
    %10 = vector.load %arg3[%c0_5, %c0_6] : memref<1x15xf32, #tpu.memory_space<vmem>>, vector<1x15xf32>
    %11 = vector.broadcast %10 : vector<1x15xf32> to vector<128x15xf32>
    %12 = arith.addf %9, %11 : vector<128x15xf32>
    %c0_7 = arith.constant 0 : index
    %c0_8 = arith.constant 0 : index
    %13 = vector.load %arg4[%c0_7, %c0_8] : memref<128x15xf32, #tpu.memory_space<vmem>>, vector<128x15xf32>
    tpu.vector_store %arg4[%c0_7, %c0_8], %12 {strides = array<i32>} : memref<128x15xf32, #tpu.memory_space<vmem>>, vector<128x15xf32>,
    return
  }
  func.func @transform_0(%arg0: i32) -> (i32, i32, i32, i32) {
    %c0_i32 = arith.constant 0 : i32
    %c0_i32_0 = arith.constant 0 : i32
    %c0_i32_1 = arith.constant 0 : i32
    %c0_i32_2 = arith.constant 0 : i32
    %c0_i32_3 = arith.constant 0 : i32
    return %c0_i32, %c0_i32_0, %c0_i32_1, %c0_i32_2 : i32, i32, i32, i32
  }
  func.func @transform_1(%arg0: i32) -> (i32, i32, i32) {
    %c0_i32 = arith.constant 0 : i32
    %c0_i32_0 = arith.constant 0 : i32
    %c0_i32_1 = arith.constant 0 : i32
    %c0_i32_2 = arith.constant 0 : i32
    return %c0_i32, %c0_i32_0, %c0_i32_1 : i32, i32, i32
  }
  func.func @transform_2(%arg0: i32) -> (i32, i32) {
    %c0_i32 = arith.constant 0 : i32
    %c0_i32_0 = arith.constant 0 : i32
    %c0_i32_1 = arith.constant 0 : i32
    return %c0_i32, %c0_i32_0 : i32, i32
  }
  func.func @transform_3(%arg0: i32) -> (i32, i32) {
    %c0_i32 = arith.constant 0 : i32
    %c0_i32_0 = arith.constant 0 : i32
    return %arg0, %c0_i32 : i32, i32
  }
}

module attributes {stable_mosaic.version = 11 : i64} {
  func.func @_box_head_kernel(%arg0: i32, %arg1: memref<8x512xf32, #tpu.memory_space<vmem>>, %arg2: memref<512x128xbf16, #tpu.memory_space<vmem>>, %arg3: memref<1x128xf32, #tpu.memory_space<vmem>>, %arg4: memref<128x128xbf16, #tpu.memory_space<vmem>>, %arg5: memref<1x128xf32, #tpu.memory_space<vmem>>, %arg6: memref<128x455xbf16, #tpu.memory_space<vmem>>, %arg7: memref<1x455xf32, #tpu.memory_space<vmem>>, %arg8: memref<8x455xf32, #tpu.memory_space<vmem>>) attributes {dimension_semantics = [#tpu.dimension_semantics<arbitrary>], iteration_bounds = array<i64: 1>, scalar_prefetch = 0 : i64, scratch_operands = 0 : i64, tpu.core_type = #tpu.core_type<tc>, window_params = [{pipeline_mode = #tpu.pipeline_mode<synchronous>, transform_indices = @transform_0, window_bounds = array<i64: 8, 512>}, {pipeline_mode = #tpu.pipeline_mode<synchronous>, transform_indices = @transform_1, window_bounds = array<i64: 512, 128>}, {pipeline_mode = #tpu.pipeline_mode<synchronous>, transform_indices = @transform_2, window_bounds = array<i64: 1, 128>}, {pipeline_mode = #tpu.pipeline_mode<synchronous>, transform_indices = @transform_3, window_bounds = array<i64: 128, 128>}, {pipeline_mode = #tpu.pipeline_mode<synchronous>, transform_indices = @transform_4, window_bounds = array<i64: 1, 128>}, {pipeline_mode = #tpu.pipeline_mode<synchronous>, transform_indices = @transform_5, window_bounds = array<i64: 128, 455>}, {pipeline_mode = #tpu.pipeline_mode<synchronous>, transform_indices = @transform_6, window_bounds = array<i64: 1, 455>}, {pipeline_mode = #tpu.pipeline_mode<synchronous>, transform_indices = @transform_7, window_bounds = array<i64: 8, 455>}]} {
    %c0 = arith.constant 0 : index
    %c0_0 = arith.constant 0 : index
    %0 = vector.load %arg1[%c0, %c0_0] : memref<8x512xf32, #tpu.memory_space<vmem>>, vector<8x512xf32>
    %1 = arith.truncf %0 : vector<8x512xf32> to vector<8x512xbf16>
    %c0_1 = arith.constant 0 : index
    %c0_2 = arith.constant 0 : index
    %2 = vector.load %arg2[%c0_1, %c0_2] : memref<512x128xbf16, #tpu.memory_space<vmem>>, vector<512x128xbf16>
    %cst = arith.constant dense<0.000000e+00> : vector<8x128xf32>
    %3 = tpu.matmul %1, %2, %cst {dimension_numbers = #tpu.dot_dimension_numbers<[1], [0], [0], [1], [0, 0, 1, 1], [], []>} : vector<8x512xbf16>, vector<512x128xbf16>, vector<8x128xf32> -> vector<8x128xf32>
    %c0_3 = arith.constant 0 : index
    %c0_4 = arith.constant 0 : index
    %4 = vector.load %arg3[%c0_3, %c0_4] : memref<1x128xf32, #tpu.memory_space<vmem>>, vector<1x128xf32>
    %5 = vector.broadcast %4 : vector<1x128xf32> to vector<8x128xf32>
    %6 = arith.addf %3, %5 : vector<8x128xf32>
    %cst_5 = arith.constant 0.000000e+00 : f32
    %7 = vector.broadcast %cst_5 : f32 to vector<8x128xf32>
    %8 = arith.maximumf %6, %7 : vector<8x128xf32>
    %9 = arith.truncf %8 : vector<8x128xf32> to vector<8x128xbf16>
    %c0_6 = arith.constant 0 : index
    %c0_7 = arith.constant 0 : index
    %10 = vector.load %arg4[%c0_6, %c0_7] : memref<128x128xbf16, #tpu.memory_space<vmem>>, vector<128x128xbf16>
    %cst_8 = arith.constant dense<0.000000e+00> : vector<8x128xf32>
    %11 = tpu.matmul %9, %10, %cst_8 {dimension_numbers = #tpu.dot_dimension_numbers<[1], [0], [0], [1], [0, 0, 1, 1], [], []>} : vector<8x128xbf16>, vector<128x128xbf16>, vector<8x128xf32> -> vector<8x128xf32>
    %c0_9 = arith.constant 0 : index
    %c0_10 = arith.constant 0 : index
    %12 = vector.load %arg5[%c0_9, %c0_10] : memref<1x128xf32, #tpu.memory_space<vmem>>, vector<1x128xf32>
    %13 = vector.broadcast %12 : vector<1x128xf32> to vector<8x128xf32>
    %14 = arith.addf %11, %13 : vector<8x128xf32>
    %cst_11 = arith.constant 0.000000e+00 : f32
    %15 = vector.broadcast %cst_11 : f32 to vector<8x128xf32>
    %16 = arith.maximumf %14, %15 : vector<8x128xf32>
    %17 = arith.truncf %16 : vector<8x128xf32> to vector<8x128xbf16>
    %c0_12 = arith.constant 0 : index
    %c0_13 = arith.constant 0 : index
    %18 = vector.load %arg6[%c0_12, %c0_13] : memref<128x455xbf16, #tpu.memory_space<vmem>>, vector<128x455xbf16>
    %cst_14 = arith.constant dense<0.000000e+00> : vector<8x455xf32>
    %19 = tpu.matmul %17, %18, %cst_14 {dimension_numbers = #tpu.dot_dimension_numbers<[1], [0], [0], [1], [0, 0, 1, 1], [], []>} : vector<8x128xbf16>, vector<128x455xbf16>, vector<8x455xf32> -> vector<8x455xf32>
    %c0_15 = arith.constant 0 : index
    %c0_16 = arith.constant 0 : index
    %20 = vector.load %arg7[%c0_15, %c0_16] : memref<1x455xf32, #tpu.memory_space<vmem>>, vector<1x455xf32>
    %21 = vector.broadcast %20 : vector<1x455xf32> to vector<8x455xf32>
    %22 = arith.addf %19, %21 : vector<8x455xf32>
    %23 = tpu.iota {dimensions = array<i32: 1>} : vector<8x455xi32>
    %c91_i32 = arith.constant 91 : i32
    %24 = vector.broadcast %c91_i32 : i32 to vector<8x455xi32>
    %25 = arith.cmpi slt, %23, %24 : vector<8x455xi32>
    %cst_17 = arith.constant -1.000000e+30 : f32
    %26 = vector.broadcast %cst_17 : f32 to vector<8x455xf32>
    %27 = arith.select %25, %22, %26 : vector<8x455xi1>, vector<8x455xf32>
    %cst_18 = arith.constant dense<0xFF800000> : vector<8xf32>
    %28 = vector.multi_reduction <maximumf>, %27, %cst_18 [1] : vector<8x455xf32> to vector<8xf32>
    %29 = vector.shape_cast %28 : vector<8xf32> to vector<8x1xf32>
    %30 = vector.broadcast %29 : vector<8x1xf32> to vector<8x455xf32>
    %31 = arith.subf %27, %30 : vector<8x455xf32>
    %32 = math.exp %31 : vector<8x455xf32>
    %cst_19 = arith.constant dense<0.000000e+00> : vector<8xf32>
    %33 = vector.multi_reduction <add>, %32, %cst_19 [1] : vector<8x455xf32> to vector<8xf32>
    %34 = vector.shape_cast %33 : vector<8xf32> to vector<8x1xf32>
    %35 = tpu.reciprocal %34 {approx = true} : vector<8x1xf32> -> vector<8x1xf32>
    %36 = vector.broadcast %35 : vector<8x1xf32> to vector<8x455xf32>
    %37 = arith.mulf %32, %36 : vector<8x455xf32>
    %38 = arith.select %25, %37, %22 : vector<8x455xi1>, vector<8x455xf32>
    %c0_20 = arith.constant 0 : index
    %c0_21 = arith.constant 0 : index
    %39 = vector.load %arg8[%c0_20, %c0_21] : memref<8x455xf32, #tpu.memory_space<vmem>>, vector<8x455xf32>
    tpu.vector_store %arg8[%c0_20, %c0_21], %38 {strides = array<i32>} : memref<8x455xf32, #tpu.memory_space<vmem>>, vector<8x455xf32>,
    return
  }
  func.func @transform_0(%arg0: i32) -> (i32, i32) {
    %c0_i32 = arith.constant 0 : i32
    %c0_i32_0 = arith.constant 0 : i32
    %c0_i32_1 = arith.constant 0 : i32
    return %c0_i32, %c0_i32_0 : i32, i32
  }
  func.func @transform_1(%arg0: i32) -> (i32, i32) {
    %c0_i32 = arith.constant 0 : i32
    %c0_i32_0 = arith.constant 0 : i32
    %c0_i32_1 = arith.constant 0 : i32
    return %c0_i32, %c0_i32_0 : i32, i32
  }
  func.func @transform_2(%arg0: i32) -> (i32, i32) {
    %c0_i32 = arith.constant 0 : i32
    %c0_i32_0 = arith.constant 0 : i32
    %c0_i32_1 = arith.constant 0 : i32
    return %c0_i32, %c0_i32_0 : i32, i32
  }
  func.func @transform_3(%arg0: i32) -> (i32, i32) {
    %c0_i32 = arith.constant 0 : i32
    %c0_i32_0 = arith.constant 0 : i32
    %c0_i32_1 = arith.constant 0 : i32
    return %c0_i32, %c0_i32_0 : i32, i32
  }
  func.func @transform_4(%arg0: i32) -> (i32, i32) {
    %c0_i32 = arith.constant 0 : i32
    %c0_i32_0 = arith.constant 0 : i32
    %c0_i32_1 = arith.constant 0 : i32
    return %c0_i32, %c0_i32_0 : i32, i32
  }
  func.func @transform_5(%arg0: i32) -> (i32, i32) {
    %c0_i32 = arith.constant 0 : i32
    %c0_i32_0 = arith.constant 0 : i32
    %c0_i32_1 = arith.constant 0 : i32
    return %c0_i32, %c0_i32_0 : i32, i32
  }
  func.func @transform_6(%arg0: i32) -> (i32, i32) {
    %c0_i32 = arith.constant 0 : i32
    %c0_i32_0 = arith.constant 0 : i32
    %c0_i32_1 = arith.constant 0 : i32
    return %c0_i32, %c0_i32_0 : i32, i32
  }
  func.func @transform_7(%arg0: i32) -> (i32, i32) {
    %c0_i32 = arith.constant 0 : i32
    %c0_i32_0 = arith.constant 0 : i32
    %c0_i32_1 = arith.constant 0 : i32
    return %c0_i32, %c0_i32_0 : i32, i32
  }
}

</mosaic_0001>

<bundles_post_ra>
// kernel: _forward_impl.8
= control target key start
LH: loop header
LB: loop body
LE: loop exit
PB: predicated region body
PF: predicated region fallthrough
CT: control target
= control target key end

     0   :  { %8 = vsyncpa [#allocation3], 0  ;;  %s1078_s0 = inlined_call_operand.vmem [shape: f32[4096,3], index: 0, kind: input, shape index: {}]   ;;  %s1079_s1 = inlined_call_operand.hbm [shape: f32[1,3], index: 1, kind: input, shape index: {}]   ;;  %s1080_s2 = inlined_call_operand.hbm [shape: f32[1,3], index: 2, kind: input, shape index: {}]   ;;  %s1081_s3 = inlined_call_operand.vmem [shape: f32[4096,3], index: 3, kind: output, shape index: {}]  }
   0x1   :  { %9 = vsyncpa [#allocation5], 0  ;;  %s685_s12 = smov 0  }
   0x2 LB: > { %s549_s13 = sadd.s32 4294967295, %s661_s12   ;;  %p551_p0 = scmp.ge.s32.totalorder %s661_s12, 1  ;;  %s661_s12 = sphi %s685_s12, %s15_s12  }
   0x3   : > { %p114_p1 = scmp.lt.s32.totalorder %s661_s12, 9  ;;  %p695_p2 = scmp.eq.s32.totalorder %s549_s13, 0 }
   0x4   : > { %s663_s16 = smov [#allocation2]   ;;  %s664_s18 = smov [#allocation4]  }
   0x5   : > { %s1084_s14 = scalar_select %p695_p2, 1, 0 }
   0x6   : > { %p699_p3 = pnand %p551_p0, %p114_p1  ;;  %s127_s17 = sshll.u32 %s663_s16, 4  ;;  %s128_s17 = int_to_ptr.vmem [resolvable:$true] %s127_s17 }
   0x7   : > { %s138_s19 = sshll.u32 %s664_s18, 4  ;;  %s606_s21 = scalar_lea.vmem %s128_s17, 16  ;;  %s139_s19 = int_to_ptr.vmem [resolvable:$true] %s138_s19 }
   0x8   : > { %p574_p4 = pneg %p699_p3  ;;  %p607_p7 = scmp.ne.s32.totalorder %s128_s17, %s606_s21 }
   0x9   : > { %s613_s22 = scalar_lea.vmem %s128_s17, 32  ;;  %p614_p10 = scmp.lt.s32.totalorder %s128_s17, %s128_s17 }
   0xa   : > { %p707_p5 = pnand %p695_p2, %p574_p4  ;;  %p615_p11 = scmp.lt.s32.totalorder %s613_s22, %s606_s21 }
   0xc   : > { %p597_p6 = pneg %p707_p5  ;;  %p616_p12 = por %p615_p11, %p614_p10 }
   0xe   : > { %p609_p8 = pnand %p607_p7, %p597_p6 }
  0x10   : > { %p610_p9 = pneg %p609_p8 }
  0x12   : > { %p617_p13 = pnand %p616_p12, %p610_p9 }
  0x14   : > { %620 = shalt.err (!%p617_p13)
}
  0x15   : > { %577 = dma.hbm_to_vmem [thread:$0]  (!%p707_p5), %s1079_s1, 16, %s128_s17, [#allocation3]  }
  0x16   : > { %s632_s25 = scalar_lea.vmem %s139_s19, 16  ;;  %s639_s26 = scalar_lea.vmem %s139_s19, 32 }
  0x17   : > { %p633_p0 = scmp.ne.s32.totalorder %s139_s19, %s632_s25  ;;  %p640_p7 = scmp.lt.s32.totalorder %s139_s19, %s139_s19 }
  0x18   : > { %p641_p8 = scmp.lt.s32.totalorder %s639_s26, %s632_s25 }
  0x19   : > { %p635_p1 = pnand %p633_p0, %p597_p6 }
  0x1a   : > { %p642_p2 = por %p641_p8, %p640_p7 }
  0x1b   : > { %p636_p4 = pneg %p635_p1 }
  0x1d   : > { %p643_p10 = pnand %p642_p2, %p636_p4 }
  0x1f   : > { %646 = shalt.err (!%p643_p10)
}
  0x20   : > { %580 = dma.hbm_to_vmem [thread:$0]  (!%p707_p5), %s1080_s2, 16, %s139_s19, [#allocation5]  }
  0x21   : > { %160 = sbr.rel (%p699_p3) target bundleno = 90 (0x5a), region = 32  ;;  %p1087_p9 = scmp.ne.s32.totalorder (!%p699_p3), %s1084_s14, 0 }
  0x26   : > { %652 = dma.done.wait (%p1087_p9), [#allocation3], 16  }
  0x27   : > { %654 = vsyncadd (%p1087_p9), [#allocation3], 4294967280 }
  0x28   : > { %656 = dma.done.wait (%p1087_p9), [#allocation5], 16  }
  0x29   : > { %658 = vsyncadd (%p1087_p9), [#allocation5], 4294967280  ;;  %s558_s29 = sshll.u32 %s549_s13, 6  ;;  %v747_v1 = vld [vmem:[#allocation2] ss:$0 sm:$0xff]  ;;  %vm406_vm0 = vcmask 23552  }
  0x2a   : > { %p189_p2 = scmp.lt.s32.totalorder %s558_s29, 511  ;;  %v749_v2 = vld [vmem:[#allocation4] ss:$0 sm:$0xff] }
  0x2c   : > { %s1089_s29 = smov (!%p189_p2, %s558_s29), 511 }
  0x2d   : > { %s559_s30 = sshll.u32 %s1089_s29, 3 }
  0x2e   : > { %s744_s6 = scalar_lea.vmem %s1078_s0, %s559_s30  ;;  %s758_s9 = scalar_lea.vmem %s1081_s3, %s559_s30 }
  0x2f   : > { %v200_v0 = vld [vmem:[%s744_s6] sm:$0xff]  ;;  %v201_v4 = vld [vmem:[%s744_s6 + $0x8] sm:$0xff]  ;;  %v202_v5 = vld [vmem:[%s744_s6 + $0x10] sm:$0xff] }
  0x30   : > { %v271_v3 = vmul.f32 %v747_v1, %v200_v0  ;;  %v203_v6 = vld [vmem:[%s744_s6 + $0x18] sm:$0xff]  ;;  %v272_v7 = vmul.f32 %v747_v1, %v201_v4  ;;  %v273_v8 = vmul.f32 %v747_v1, %v202_v5  ;;  %v204_v10 = vld [vmem:[%s744_s6 + $0x20] sm:$0xff]  ;;  %v205_v11 = vld [vmem:[%s744_s6 + $0x28] sm:$0xff] }
  0x31   : > { %v274_v9 = vmul.f32 %v747_v1, %v203_v6  ;;  %v206_v12 = vld [vmem:[%s744_s6 + $0x30] sm:$0xff]  ;;  %v275_v14 = vmul.f32 %v747_v1, %v204_v10  ;;  %v276_v15 = vmul.f32 %v747_v1, %v205_v11  ;;  %v207_v17 = vld [vmem:[%s744_s6 + $0x38] sm:$0xff]  ;;  %v208_v18 = vld [vmem:[%s744_s6 + $0x40] sm:$0xff] }
  0x32   : > { %v342_v13 = vadd.f32 %v749_v2, %v271_v3  ;;  %v277_v16 = vmul.f32 %v747_v1, %v206_v12  ;;  %v209_v19 = vld [vmem:[%s744_s6 + $0x48] sm:$0xff]  ;;  %v343_v20 = vadd.f32 %v749_v2, %v272_v7  ;;  %v344_v21 = vadd.f32 %v749_v2, %v273_v8  ;;  %v210_v24 = vld [vmem:[%s744_s6 + $0x50] sm:$0xff]  ;;  %v211_v25 = vld [vmem:[%s744_s6 + $0x58] sm:$0xff] }
  0x33   : > { %v345_v22 = vadd.f32 %v749_v2, %v274_v9  ;;  %v278_v23 = vmul.f32 %v747_v1, %v207_v17  ;;  %v212_v26 = vld [vmem:[%s744_s6 + $0x60] sm:$0xff]  ;;  %v346_v27 = vadd.f32 %v749_v2, %v275_v14  ;;  %v347_v28 = vadd.f32 %v749_v2, %v276_v15  ;;  %v213_v31 = vld [vmem:[%s744_s6 + $0x68] sm:$0xff]  ;;  %v214_v32 = vld [vmem:[%s744_s6 + $0x70] sm:$0xff] }
  0x34   : > { %407 = vst.msk [vmem:[%s758_s9] sm:$0xff] %vm406_vm0, %v342_v13  ;;  %v348_v29 = vadd.f32 %v749_v2, %v277_v16  ;;  %v279_v30 = vmul.f32 %v747_v1, %v208_v18  ;;  %v215_v33 = vld [vmem:[%s744_s6 + $0x78] sm:$0xff]  ;;  %408 = vst.msk [vmem:[%s758_s9 + $0x8] sm:$0xff] %vm406_vm0, %v343_v20  ;;  %v280_v35 = vmul.f32 %v747_v1, %v209_v19  ;;  %v216_v38 = vld [vmem:[%s744_s6 + $0x80] sm:$0xff] }
  0x35   : > { %409 = vst.msk [vmem:[%s758_s9 + $0x10] sm:$0xff] %vm406_vm0, %v344_v21  ;;  %410 = vst.msk [vmem:[%s758_s9 + $0x18] sm:$0xff] %vm406_vm0, %v345_v22  ;;  %v349_v34 = vadd.f32 %v749_v2, %v278_v23  ;;  %v281_v36 = vmul.f32 %v747_v1, %v210_v24  ;;  %v282_v37 = vmul.f32 %v747_v1, %v211_v25  ;;  %v217_v43 = vld [vmem:[%s744_s6 + $0x88] sm:$0xff]  ;;  %v218_v44 = vld [vmem:[%s744_s6 + $0x90] sm:$0xff] }
  0x36   : > { %411 = vst.msk [vmem:[%s758_s9 + $0x20] sm:$0xff] %vm406_vm0, %v346_v27  ;;  %412 = vst.msk [vmem:[%s758_s9 + $0x28] sm:$0xff] %vm406_vm0, %v347_v28  ;;  %v350_v39 = vadd.f32 %v749_v2, %v279_v30  ;;  %v283_v40 = vmul.f32 %v747_v1, %v212_v26  ;;  %v284_v41 = vmul.f32 %v747_v1, %v213_v31  ;;  %v219_v45 = vld [vmem:[%s744_s6 + $0x98] sm:$0xff]  ;;  %v220_v50 = vld [vmem:[%s744_s6 + $0xa0] sm:$0xff] }
  0x37   : > { %413 = vst.msk [vmem:[%s758_s9 + $0x30] sm:$0xff] %vm406_vm0, %v348_v29  ;;  %v285_v42 = vmul.f32 %v747_v1, %v214_v32  ;;  %414 = vst.msk [vmem:[%s758_s9 + $0x38] sm:$0xff] %vm406_vm0, %v349_v34  ;;  %v351_v46 = vadd.f32 %v749_v2, %v280_v35  ;;  %v352_v47 = vadd.f32 %v749_v2, %v281_v36  ;;  %v221_v51 = vld [vmem:[%s744_s6 + $0xa8] sm:$0xff]  ;;  %v222_v52 = vld [vmem:[%s744_s6 + $0xb0] sm:$0xff] }
  0x38   : > { %v353_v48 = vadd.f32 %v749_v2, %v282_v37  ;;  %v286_v49 = vmul.f32 %v747_v1, %v215_v33  ;;  %415 = vst.msk [vmem:[%s758_s9 + $0x40] sm:$0xff] %vm406_vm0, %v350_v39  ;;  %v354_v53 = vadd.f32 %v749_v2, %v283_v40  ;;  %v355_v54 = vadd.f32 %v749_v2, %v284_v41  ;;  %v223_v57 = vld [vmem:[%s744_s6 + $0xb8] sm:$0xff]  ;;  %v224_v62 = vld [vmem:[%s744_s6 + $0xc0] sm:$0xff]  ;;  %v225_v5 = vld [vmem:[%s744_s6 + $0xc8] sm:$0xff] }
  0x39   : > { %v356_v55 = vadd.f32 %v749_v2, %v285_v42  ;;  %v287_v56 = vmul.f32 %v747_v1, %v216_v38  ;;  %416 = vst.msk [vmem:[%s758_s9 + $0x48] sm:$0xff] %vm406_vm0, %v351_v46  ;;  %417 = vst.msk [vmem:[%s758_s9 + $0x50] sm:$0xff] %vm406_vm0, %v352_v47  ;;  %v288_v59 = vmul.f32 %v747_v1, %v217_v43  ;;  %v226_v6 = vld [vmem:[%s744_s6 + $0xd0] sm:$0xff]  ;;  %v227_v7 = vld [vmem:[%s744_s6 + $0xd8] sm:$0xff] }
  0x3a   : > { %418 = vst.msk [vmem:[%s758_s9 + $0x58] sm:$0xff] %vm406_vm0, %v353_v48  ;;  %v357_v58 = vadd.f32 %v749_v2, %v286_v49  ;;  %v289_v60 = vmul.f32 %v747_v1, %v218_v44  ;;  %v290_v61 = vmul.f32 %v747_v1, %v219_v45  ;;  %419 = vst.msk [vmem:[%s758_s9 + $0x60] sm:$0xff] %vm406_vm0, %v354_v53  ;;  %v228_v12 = vld [vmem:[%s744_s6 + $0xe0] sm:$0xff]  ;;  %v229_v13 = vld [vmem:[%s744_s6 + $0xe8] sm:$0xff] }
  0x3b   : > { %420 = vst.msk [vmem:[%s758_s9 + $0x68] sm:$0xff] %vm406_vm0, %v355_v54  ;;  %421 = vst.msk [vmem:[%s758_s9 + $0x70] sm:$0xff] %vm406_vm0, %v356_v55  ;;  %v358_v63 = vadd.f32 %v749_v2, %v287_v56  ;;  %v291_v0 = vmul.f32 %v747_v1, %v220_v50  ;;  %v292_v3 = vmul.f32 %v747_v1, %v221_v51  ;;  %v230_v14 = vld [vmem:[%s744_s6 + $0xf0] sm:$0xff]  ;;  %v231_v19 = vld [vmem:[%s744_s6 + $0xf8] sm:$0xff] }
  0x3c   : > { %v293_v4 = vmul.f32 %v747_v1, %v222_v52  ;;  %422 = vst.msk [vmem:[%s758_s9 + $0x78] sm:$0xff] %vm406_vm0, %v357_v58  ;;  %v359_v8 = vadd.f32 %v749_v2, %v288_v59  ;;  %v360_v9 = vadd.f32 %v749_v2, %v289_v60  ;;  %v361_v10 = vadd.f32 %v749_v2, %v290_v61  ;;  %v232_v24 = vld [vmem:[%s744_s6 + $0x100] sm:$0xff]  ;;  %v233_v29 = vld [vmem:[%s744_s6 + $0x108] sm:$0xff]  ;;  %v234_v30 = vld [vmem:[%s744_s6 + $0x110] sm:$0xff] }
  0x3d   : > { %v294_v11 = vmul.f32 %v747_v1, %v223_v57  ;;  %423 = vst.msk [vmem:[%s758_s9 + $0x80] sm:$0xff] %vm406_vm0, %v358_v63  ;;  %v362_v15 = vadd.f32 %v749_v2, %v291_v0  ;;  %v363_v16 = vadd.f32 %v749_v2, %v292_v3  ;;  %v295_v18 = vmul.f32 %v747_v1, %v224_v62  ;;  %v235_v31 = vld [vmem:[%s744_s6 + $0x118] sm:$0xff]  ;;  %v236_v36 = vld [vmem:[%s744_s6 + $0x120] sm:$0xff]  ;;  %v237_v37 = vld [vmem:[%s744_s6 + $0x128] sm:$0xff] }
  0x3e   : > { %v364_v17 = vadd.f32 %v749_v2, %v293_v4  ;;  %424 = vst.msk [vmem:[%s758_s9 + $0x88] sm:$0xff] %vm406_vm0, %v359_v8  ;;  %425 = vst.msk [vmem:[%s758_s9 + $0x90] sm:$0xff] %vm406_vm0, %v360_v9  ;;  %v296_v21 = vmul.f32 %v747_v1, %v225_v5  ;;  %v297_v22 = vmul.f32 %v747_v1, %v226_v6  ;;  %v238_v38 = vld [vmem:[%s744_s6 + $0x130] sm:$0xff]  ;;  %v239_v43 = vld [vmem:[%s744_s6 + $0x138] sm:$0xff] }
  0x3f   : > { %426 = vst.msk [vmem:[%s758_s9 + $0x98] sm:$0xff] %vm406_vm0, %v361_v10  ;;  %v365_v20 = vadd.f32 %v749_v2, %v294_v11  ;;  %v298_v23 = vmul.f32 %v747_v1, %v227_v7  ;;  %427 = vst.msk [vmem:[%s758_s9 + $0xa0] sm:$0xff] %vm406_vm0, %v362_v15  ;;  %v366_v25 = vadd.f32 %v749_v2, %v295_v18  ;;  %v240_v48 = vld [vmem:[%s744_s6 + $0x140] sm:$0xff]  ;;  %v241_v53 = vld [vmem:[%s744_s6 + $0x148] sm:$0xff] }
  0x40   : > { %428 = vst.msk [vmem:[%s758_s9 + $0xa8] sm:$0xff] %vm406_vm0, %v363_v16  ;;  %429 = vst.msk [vmem:[%s758_s9 + $0xb0] sm:$0xff] %vm406_vm0, %v364_v17  ;;  %v299_v26 = vmul.f32 %v747_v1, %v228_v12  ;;  %v300_v27 = vmul.f32 %v747_v1, %v229_v13  ;;  %v301_v28 = vmul.f32 %v747_v1, %v230_v14  ;;  %v242_v54 = vld [vmem:[%s744_s6 + $0x150] sm:$0xff]  ;;  %v243_v55 = vld [vmem:[%s744_s6 + $0x158] sm:$0xff] }
  0x41   : > { %430 = vst.msk [vmem:[%s758_s9 + $0xb8] sm:$0xff] %vm406_vm0, %v365_v20  ;;  %v367_v32 = vadd.f32 %v749_v2, %v296_v21  ;;  %v368_v33 = vadd.f32 %v749_v2, %v297_v22  ;;  %v369_v34 = vadd.f32 %v749_v2, %v298_v23  ;;  %v302_v35 = vmul.f32 %v747_v1, %v231_v19  ;;  %v244_v60 = vld [vmem:[%s744_s6 + $0x160] sm:$0xff]  ;;  %v245_v61 = vld [vmem:[%s744_s6 + $0x168] sm:$0xff]  ;;  %v246_v62 = vld [vmem:[%s744_s6 + $0x170] sm:$0xff] }
  0x42   : > { %431 = vst.msk [vmem:[%s758_s9 + $0xc0] sm:$0xff] %vm406_vm0, %v366_v25  ;;  %v370_v39 = vadd.f32 %v749_v2, %v299_v26  ;;  %v371_v40 = vadd.f32 %v749_v2, %v300_v27  ;;  %v372_v41 = vadd.f32 %v749_v2, %v301_v28  ;;  %v303_v42 = vmul.f32 %v747_v1, %v232_v24  ;;  %v247_v5 = vld [vmem:[%s744_s6 + $0x178] sm:$0xff]  ;;  %v248_v10 = vld [vmem:[%s744_s6 + $0x180] sm:$0xff]  ;;  %v249_v15 = vld [vmem:[%s744_s6 + $0x188] sm:$0xff] }
  0x43   : > { %432 = vst.msk [vmem:[%s758_s9 + $0xc8] sm:$0xff] %vm406_vm0, %v367_v32  ;;  %433 = vst.msk [vmem:[%s758_s9 + $0xd0] sm:$0xff] %vm406_vm0, %v368_v33  ;;  %v373_v44 = vadd.f32 %v749_v2, %v302_v35  ;;  %v304_v45 = vmul.f32 %v747_v1, %v233_v29  ;;  %v305_v46 = vmul.f32 %v747_v1, %v234_v30  ;;  %v250_v16 = vld [vmem:[%s744_s6 + $0x190] sm:$0xff]  ;;  %v251_v17 = vld [vmem:[%s744_s6 + $0x198] sm:$0xff] }
  0x44   : > { %434 = vst.msk [vmem:[%s758_s9 + $0xd8] sm:$0xff] %vm406_vm0, %v369_v34  ;;  %v306_v47 = vmul.f32 %v747_v1, %v235_v31  ;;  %435 = vst.msk [vmem:[%s758_s9 + $0xe0] sm:$0xff] %vm406_vm0, %v370_v39  ;;  %v374_v49 = vadd.f32 %v749_v2, %v303_v42  ;;  %v307_v50 = vmul.f32 %v747_v1, %v236_v36  ;;  %v252_v22 = vld [vmem:[%s744_s6 + $0x1a0] sm:$0xff]  ;;  %v253_v23 = vld [vmem:[%s744_s6 + $0x1a8] sm:$0xff] }
  0x45   : > { %436 = vst.msk [vmem:[%s758_s9 + $0xe8] sm:$0xff] %vm406_vm0, %v371_v40  ;;  %437 = vst.msk [vmem:[%s758_s9 + $0xf0] sm:$0xff] %vm406_vm0, %v372_v41  ;;  %v308_v51 = vmul.f32 %v747_v1, %v237_v37  ;;  %v309_v52 = vmul.f32 %v747_v1, %v238_v38  ;;  %v375_v56 = vadd.f32 %v749_v2, %v304_v45  ;;  %v254_v24 = vld [vmem:[%s744_s6 + $0x1b0] sm:$0xff]  ;;  %v255_v29 = vld [vmem:[%s744_s6 + $0x1b8] sm:$0xff] }
  0x46   : > { %438 = vst.msk [vmem:[%s758_s9 + $0xf8] sm:$0xff] %vm406_vm0, %v373_v44  ;;  %v376_v57 = vadd.f32 %v749_v2, %v305_v46  ;;  %v377_v58 = vadd.f32 %v749_v2, %v306_v47  ;;  %v310_v59 = vmul.f32 %v747_v1, %v239_v43  ;;  %439 = vst.msk [vmem:[%s758_s9 + $0x100] sm:$0xff] %vm406_vm0, %v374_v49  ;;  %v256_v34 = vld [vmem:[%s744_s6 + $0x1c0] sm:$0xff]  ;;  %v257_v39 = vld [vmem:[%s744_s6 + $0x1c8] sm:$0xff] }
  0x47   : > { %v378_v63 = vadd.f32 %v749_v2, %v307_v50  ;;  %v379_v0 = vadd.f32 %v749_v2, %v308_v51  ;;  %v380_v3 = vadd.f32 %v749_v2, %v309_v52  ;;  %v311_v4 = vmul.f32 %v747_v1, %v240_v48  ;;  %440 = vst.msk [vmem:[%s758_s9 + $0x108] sm:$0xff] %vm406_vm0, %v375_v56  ;;  %v258_v40 = vld [vmem:[%s744_s6 + $0x1d0] sm:$0xff]  ;;  %v259_v41 = vld [vmem:[%s744_s6 + $0x1d8] sm:$0xff]  ;;  %v260_v46 = vld [vmem:[%s744_s6 + $0x1e0] sm:$0xff] }
  0x48   : > { %441 = vst.msk [vmem:[%s758_s9 + $0x110] sm:$0xff] %vm406_vm0, %v376_v57  ;;  %442 = vst.msk [vmem:[%s758_s9 + $0x118] sm:$0xff] %vm406_vm0, %v377_v58  ;;  %v381_v6 = vadd.f32 %v749_v2, %v310_v59  ;;  %v312_v7 = vmul.f32 %v747_v1, %v241_v53  ;;  %v313_v8 = vmul.f32 %v747_v1, %v242_v54  ;;  %v261_v47 = vld [vmem:[%s744_s6 + $0x1e8] sm:$0xff]  ;;  %v262_v48 = vld [vmem:[%s744_s6 + $0x1f0] sm:$0xff] }
  0x49   : > { %v314_v9 = vmul.f32 %v747_v1, %v243_v55  ;;  %443 = vst.msk [vmem:[%s758_s9 + $0x120] sm:$0xff] %vm406_vm0, %v378_v63  ;;  %444 = vst.msk [vmem:[%s758_s9 + $0x128] sm:$0xff] %vm406_vm0, %v379_v0  ;;  %v382_v11 = vadd.f32 %v749_v2, %v311_v4  ;;  %v315_v12 = vmul.f32 %v747_v1, %v244_v60  ;;  %v263_v53 = vld [vmem:[%s744_s6 + $0x1f8] sm:$0xff] }
  0x4a   : > { %445 = vst.msk [vmem:[%s758_s9 + $0x130] sm:$0xff] %vm406_vm0, %v380_v3  ;;  %v316_v13 = vmul.f32 %v747_v1, %v245_v61  ;;  %v317_v14 = vmul.f32 %v747_v1, %v246_v62  ;;  %446 = vst.msk [vmem:[%s758_s9 + $0x138] sm:$0xff] %vm406_vm0, %v381_v6  ;;  %v383_v18 = vadd.f32 %v749_v2, %v312_v7 }
  0x4b   : > { %v384_v19 = vadd.f32 %v749_v2, %v313_v8  ;;  %v385_v20 = vadd.f32 %v749_v2, %v314_v9  ;;  %v318_v21 = vmul.f32 %v747_v1, %v247_v5  ;;  %447 = vst.msk [vmem:[%s758_s9 + $0x140] sm:$0xff] %vm406_vm0, %v382_v11  ;;  %v386_v25 = vadd.f32 %v749_v2, %v315_v12 }
  0x4c   : > { %v387_v26 = vadd.f32 %v749_v2, %v316_v13  ;;  %v388_v27 = vadd.f32 %v749_v2, %v317_v14  ;;  %v319_v28 = vmul.f32 %v747_v1, %v248_v10  ;;  %448 = vst.msk [vmem:[%s758_s9 + $0x148] sm:$0xff] %vm406_vm0, %v383_v18  ;;  %v320_v31 = vmul.f32 %v747_v1, %v249_v15 }
  0x4d   : > { %449 = vst.msk [vmem:[%s758_s9 + $0x150] sm:$0xff] %vm406_vm0, %v384_v19  ;;  %450 = vst.msk [vmem:[%s758_s9 + $0x158] sm:$0xff] %vm406_vm0, %v385_v20  ;;  %v389_v30 = vadd.f32 %v749_v2, %v318_v21  ;;  %v321_v32 = vmul.f32 %v747_v1, %v250_v16  ;;  %v322_v33 = vmul.f32 %v747_v1, %v251_v17 }
  0x4e   : > { %451 = vst.msk [vmem:[%s758_s9 + $0x160] sm:$0xff] %vm406_vm0, %v386_v25  ;;  %452 = vst.msk [vmem:[%s758_s9 + $0x168] sm:$0xff] %vm406_vm0, %v387_v26  ;;  %v390_v35 = vadd.f32 %v749_v2, %v319_v28  ;;  %v323_v36 = vmul.f32 %v747_v1, %v252_v22  ;;  %v324_v37 = vmul.f32 %v747_v1, %v253_v23 }
  0x4f   : > { %453 = vst.msk [vmem:[%s758_s9 + $0x170] sm:$0xff] %vm406_vm0, %v388_v27  ;;  %v325_v38 = vmul.f32 %v747_v1, %v254_v24  ;;  %454 = vst.msk [vmem:[%s758_s9 + $0x178] sm:$0xff] %vm406_vm0, %v389_v30  ;;  %v391_v42 = vadd.f32 %v749_v2, %v320_v31  ;;  %v392_v43 = vadd.f32 %v749_v2, %v321_v32 }
  0x50   : > { %v393_v44 = vadd.f32 %v749_v2, %v322_v33  ;;  %v326_v45 = vmul.f32 %v747_v1, %v255_v29  ;;  %455 = vst.msk [vmem:[%s758_s9 + $0x180] sm:$0xff] %vm406_vm0, %v390_v35  ;;  %v394_v49 = vadd.f32 %v749_v2, %v323_v36  ;;  %v395_v50 = vadd.f32 %v749_v2, %v324_v37 }
  0x51   : > { %v396_v51 = vadd.f32 %v749_v2, %v325_v38  ;;  %v327_v52 = vmul.f32 %v747_v1, %v256_v34  ;;  %456 = vst.msk [vmem:[%s758_s9 + $0x188] sm:$0xff] %vm406_vm0, %v391_v42  ;;  %457 = vst.msk [vmem:[%s758_s9 + $0x190] sm:$0xff] %vm406_vm0, %v392_v43  ;;  %v328_v55 = vmul.f32 %v747_v1, %v257_v39 }
  0x52   : > { %458 = vst.msk [vmem:[%s758_s9 + $0x198] sm:$0xff] %vm406_vm0, %v393_v44  ;;  %v397_v54 = vadd.f32 %v749_v2, %v326_v45  ;;  %v329_v56 = vmul.f32 %v747_v1, %v258_v40  ;;  %v330_v57 = vmul.f32 %v747_v1, %v259_v41  ;;  %459 = vst.msk [vmem:[%s758_s9 + $0x1a0] sm:$0xff] %vm406_vm0, %v394_v49 }
  0x53   : > { %460 = vst.msk [vmem:[%s758_s9 + $0x1a8] sm:$0xff] %vm406_vm0, %v395_v50  ;;  %461 = vst.msk [vmem:[%s758_s9 + $0x1b0] sm:$0xff] %vm406_vm0, %v396_v51  ;;  %v398_v58 = vadd.f32 %v749_v2, %v327_v52  ;;  %v331_v59 = vmul.f32 %v747_v1, %v260_v46  ;;  %v332_v60 = vmul.f32 %v747_v1, %v261_v47 }
  0x54   : > { %v333_v61 = vmul.f32 %v747_v1, %v262_v48  ;;  %462 = vst.msk [vmem:[%s758_s9 + $0x1b8] sm:$0xff] %vm406_vm0, %v397_v54  ;;  %v399_v62 = vadd.f32 %v749_v2, %v328_v55  ;;  %v400_v63 = vadd.f32 %v749_v2, %v329_v56  ;;  %v401_v0 = vadd.f32 %v749_v2, %v330_v57 }
  0x55   : > { %v334_v3 = vmul.f32 %v747_v1, %v263_v53  ;;  %463 = vst.msk [vmem:[%s758_s9 + $0x1c0] sm:$0xff] %vm406_vm0, %v398_v58  ;;  %v402_v4 = vadd.f32 %v749_v2, %v331_v59  ;;  %v403_v5 = vadd.f32 %v749_v2, %v332_v60 }
  0x56   : > { %v404_v6 = vadd.f32 %v749_v2, %v333_v61  ;;  %464 = vst.msk [vmem:[%s758_s9 + $0x1c8] sm:$0xff] %vm406_vm0, %v399_v62  ;;  %465 = vst.msk [vmem:[%s758_s9 + $0x1d0] sm:$0xff] %vm406_vm0, %v400_v63 }
  0x57   : > { %466 = vst.msk [vmem:[%s758_s9 + $0x1d8] sm:$0xff] %vm406_vm0, %v401_v0  ;;  %v405_v7 = vadd.f32 %v749_v2, %v334_v3  ;;  %467 = vst.msk [vmem:[%s758_s9 + $0x1e0] sm:$0xff] %vm406_vm0, %v402_v4 }
  0x58   : > { %468 = vst.msk [vmem:[%s758_s9 + $0x1e8] sm:$0xff] %vm406_vm0, %v403_v5  ;;  %469 = vst.msk [vmem:[%s758_s9 + $0x1f0] sm:$0xff] %vm406_vm0, %v404_v6 }
  0x59   : > { %470 = vst.msk [vmem:[%s758_s9 + $0x1f8] sm:$0xff] %vm406_vm0, %v405_v7 }
  0x5a PF: > { %s15_s12 = sadd.s32 1, %s661_s12  }
  0x5b   : > { %p12_p3 = scmp.ge.s32.totalorder %s15_s12, 10  }
  0x5d   :  { %14 = sbr.rel (!%p12_p3) target bundleno = 2 (0x2), region = 71 }
  0x62   :  { %493 = vsyncpa [#allocation3], 1 }
  0x63   :  { %495 = vsyncpa [#allocation3 + $0x1], 1 }
  0x64   :  { %496 = vsyncpa [#allocation5], 1 }

// kernel: _forward_impl.9
= control target key start
LH: loop header
LB: loop body
LE: loop exit
PB: predicated region body
PF: predicated region fallthrough
CT: control target
= control target key end

     0   :  { %s6946_s12 = smov 0   ;;  %s8862_s0 = inlined_call_operand.vmem [shape: f32[4,33,33,3], index: 0, kind: input, shape index: {}]   ;;  %s8863_s1 = inlined_call_operand.vmem [shape: bf16[9,3,16], index: 1, kind: input, shape index: {}]   ;;  %s8864_s2 = inlined_call_operand.vmem [shape: f32[1,16], index: 2, kind: input, shape index: {}]   ;;  %s8865_s3 = inlined_call_operand.vmem [shape: f32[1024,16], index: 3, kind: output, shape index: {}]  }
   0x1 LB: > { %s5256_s13 = sadd.s32 4294967295, %s6923_s12   ;;  %p5259_p0 = scmp.ge.s32.totalorder %s6923_s12, 1  ;;  %s6923_s12 = sphi %s6946_s12, %s13_s12  }
   0x2   : > { %p127_p1 = scmp.lt.s32.totalorder %s6923_s12, 3 }
   0x4   : > { %p128_p2 = pnand %p5259_p0, %p127_p1 }
   0x6   : > { %131 = sbr.rel (%p128_p2) target bundleno = 796 (0x31c), region = 32 }
   0xb   : > { %v5328_v0 = vld [vmem:[%s8863_s1 + $0x2] sm:$0x3]  ;;  %vm450_vm0 = vcmask 1040384   ;;  %vm451_vm1 = vcmask 1041408   ;;  %s5263_s16 = smul.u32 640, %s5256_s13  ;;  %v6925_v1 = vmov 65535  }
   0xc   : > { %v452_v2 = vsel %vm450_vm0, 4294967295, %v6925_v1  ;;  %v252_v3 = vld [vmem:[%s8863_s1] sm:$0x3]  ;;  %v5393_v4 = vld [vmem:[%s8863_s1 + $0x4] sm:$0x3]  ;;  %vm353_vm2 = vcmask 23552  }
   0xd   : > { %v6965_v5 = vsel %vm451_vm1, %v452_v2, 0  ;;  %s6970_s23 = scalar_lea.vmem %s8862_s0, %s5263_s16  ;;  %v5490_v10 = vld [vmem:[%s8863_s1 + $0x6] sm:$0x3]  ;;  %v5587_v11 = vld [vmem:[%s8863_s1 + $0x8] sm:$0x3]  ;;  %s5260_s9 = sshll.u32 %s5256_s13, 6 }
   0xe   : > { %v455_v6 = vand.u32 %v5328_v0, %v6965_v5  ;;  %v5264_v7 = vld [vmem:[%s6970_s23 + $0x528] sm:$0xff]  ;;  %v5265_v8 = vld [vmem:[%s6970_s23 + $0x530] sm:$0xff]  ;;  %v5266_v14 = vld [vmem:[%s6970_s23 + $0x538] sm:$0xff]  ;;  %v843_v16 = vand.u32 %v6965_v5, %v252_v3  ;;  %v1329_v17 = vand.u32 %v5393_v4, %v6965_v5  ;;  %v6996_v29 = vand.u32 %v5490_v10, %v6965_v5  ;;  %p147_p3 = scmp.lt.s32.totalorder %s5260_s9, 127 }
   0xf   : > { %v5296_v9 = vld [vmem:[%s6970_s23 + $0x668] sm:$0xff]  ;;  %v319_v12 = vpack.c.bf16 %v5265_v8, %v5264_v7  ;;  %v5297_v13 = vld [vmem:[%s6970_s23 + $0x670] sm:$0xff]  ;;  %v5267_v15 = vld [vmem:[%s6970_s23 + $0x540] sm:$0xff]  ;;  %v6999_v30 = vand.u32 %v5587_v11, %v6965_v5  ;;  %vm5128_vm3 = vcmask 130048  }
  0x10   : > { %6312 = vmatprep.subr.bf16.mxu0 %v455_v6  ;;  %6906 = vmatprep.subr.bf16.mxu1 %v455_v6  ;;  %v335_v18 = vpack.c.bf16 %v5297_v13, %v5296_v9  ;;  %v320_v19 = vpack.c.bf16 %v5267_v15, %v5266_v14  ;;  %v5298_v20 = vld [vmem:[%s6970_s23 + $0x678] sm:$0xff]  ;;  %v5299_v21 = vld [vmem:[%s6970_s23 + $0x680] sm:$0xff]  ;;  %v5268_v22 = vld [vmem:[%s6970_s23 + $0x550] sm:$0xff]  ;;  %s9035_s9 = smov (!%p147_p3, %s5260_s9), 127 }
  0x11   : > { %6313 = vmatpush3.bf16.msra.mxu0 %v455_v6  ;;  %6907 = vmatpush3.bf16.msra.mxu1 %v455_v6  ;;  %v336_v23 = vpack.c.bf16 %v5299_v21, %v5298_v20  ;;  %v5269_v24 = vld [vmem:[%s6970_s23 + $0x558] sm:$0xff]  ;;  %v5300_v25 = vld [vmem:[%s6970_s23 + $0x690] sm:$0xff]  ;;  %v5270_v31 = vld [vmem:[%s6970_s23 + $0x560] sm:$0xff]  ;;  %s5261_s13 = sshll.u32 %s9035_s9, 3 }
  0x12   : > { %v5301_v26 = vld [vmem:[%s6970_s23 + $0x698] sm:$0xff]  ;;  %6314 = vmatprep.mubr.msk.bf16.mxu0 %vm353_vm2, %v319_v12  ;;  %6346 = vmatprep.mubr.msk.bf16.mxu1 %vm353_vm2, %v335_v18  ;;  %v321_v27 = vpack.c.bf16 %v5269_v24, %v5268_v22  ;;  %v5271_v32 = vld [vmem:[%s6970_s23 + $0x568] sm:$0xff]  ;;  %v5302_v33 = vld [vmem:[%s6970_s23 + $0x6a0] sm:$0xff]  ;;  %s8605_s16 = scalar_lea.vmem %s8865_s3, %s5261_s13 }
  0x13   : > { %v337_v28 = vpack.c.bf16 %v5301_v26, %v5300_v25  ;;  %6378 = vmatprep.subr.bf16.mxu1 %v843_v16  ;;  %6444 = vmatprep.subr.bf16.mxu0 %v1329_v17  ;;  %v5303_v34 = vld [vmem:[%s6970_s23 + $0x6a8] sm:$0xff]  ;;  %v5272_v35 = vld [vmem:[%s6970_s23 + $0x578] sm:$0xff]  ;;  %v5273_v36 = vld [vmem:[%s6970_s23 + $0x580] sm:$0xff]  ;;  %v322_v39 = vpack.c.bf16 %v5271_v32, %v5270_v31 }
  0x14   : > { %6315 = vmatmul.mubr.msk.bf16.vlgmr.msra.gmra.mxu0 %vm353_vm2, %v320_v19  ;;  %6347 = vmatmul.mubr.msk.bf16.vlgmr.msra.gmra.mxu1 %vm353_vm2, %v336_v23  ;;  %v5304_v37 = vld [vmem:[%s6970_s23 + $0x6b8] sm:$0xff]  ;;  %v5305_v38 = vld [vmem:[%s6970_s23 + $0x6c0] sm:$0xff]  ;;  %v338_v40 = vpack.c.bf16 %v5303_v34, %v5302_v33  ;;  %v323_v41 = vpack.c.bf16 %v5273_v36, %v5272_v35  ;;  %v5274_v43 = vld [vmem:[%s6970_s23 + $0x588] sm:$0xff] }
  0x15   : > { %6379 = vmatpush3.bf16.msra.mxu1 %v843_v16  ;;  %6445 = vmatpush3.bf16.msra.mxu0 %v1329_v17  ;;  %v339_v42 = vpack.c.bf16 %v5305_v38, %v5304_v37  ;;  %v5275_v44 = vld [vmem:[%s6970_s23 + $0x590] sm:$0xff]  ;;  %v5306_v45 = vld [vmem:[%s6970_s23 + $0x6c8] sm:$0xff]  ;;  %v5276_v47 = vld [vmem:[%s6970_s23 + $0x5a0] sm:$0xff] }
  0x16   : > { %6318 = vmatprep.mubr.msk.bf16.mxu0 %vm353_vm2, %v321_v27  ;;  %6350 = vmatprep.mubr.msk.bf16.mxu1 %vm353_vm2, %v337_v28  ;;  %v5307_v46 = vld [vmem:[%s6970_s23 + $0x6d0] sm:$0xff]  ;;  %v5277_v48 = vld [vmem:[%s6970_s23 + $0x5a8] sm:$0xff]  ;;  %v5308_v49 = vld [vmem:[%s6970_s23 + $0x6e0] sm:$0xff]  ;;  %v324_v51 = vpack.c.bf16 %v5275_v44, %v5274_v43 }
  0x17   : > { %6510 = vmatprep.subr.bf16.mxu1 %v6996_v29  ;;  %6576 = vmatprep.subr.bf16.mxu0 %v6999_v30  ;;  %v5309_v50 = vld [vmem:[%s6970_s23 + $0x6e8] sm:$0xff]  ;;  %v340_v52 = vpack.c.bf16 %v5307_v46, %v5306_v45  ;;  %v325_v53 = vpack.c.bf16 %v5277_v48, %v5276_v47  ;;  %v5278_v55 = vld [vmem:[%s6970_s23 + $0x5b0] sm:$0xff]  ;;  %v5279_v56 = vld [vmem:[%s6970_s23 + $0x5b8] sm:$0xff] }
  0x18   : > { %v341_v54 = vpack.c.bf16 %v5309_v50, %v5308_v49  ;;  %v5310_v57 = vld [vmem:[%s6970_s23 + $0x6f0] sm:$0xff]  ;;  %v5311_v58 = vld [vmem:[%s6970_s23 + $0x6f8] sm:$0xff]  ;;  %v5280_v59 = vld [vmem:[%s6970_s23 + $0x5c8] sm:$0xff]  ;;  %v326_v63 = vpack.c.bf16 %v5279_v56, %v5278_v55 }
  0x19   : > { %v5281_v60 = vld [vmem:[%s6970_s23 + $0x5d0] sm:$0xff]  ;;  %v5312_v61 = vld [vmem:[%s6970_s23 + $0x708] sm:$0xff]  ;;  %v342_v0 = vpack.c.bf16 %v5311_v58, %v5310_v57  ;;  %v5282_v3 = vld [vmem:[%s6970_s23 + $0x5d8] sm:$0xff] }
  0x1a   : > { %v5313_v62 = vld [vmem:[%s6970_s23 + $0x710] sm:$0xff]  ;;  %v327_v1 = vpack.c.bf16 %v5281_v60, %v5280_v59  ;;  %v5283_v4 = vld [vmem:[%s6970_s23 + $0x5e0] sm:$0xff]  ;;  %v5314_v6 = vld [vmem:[%s6970_s23 + $0x718] sm:$0xff] }
  0x1b   : > { %v343_v2 = vpack.c.bf16 %v5313_v62, %v5312_v61  ;;  %v5315_v7 = vld [vmem:[%s6970_s23 + $0x720] sm:$0xff]  ;;  %v5284_v8 = vld [vmem:[%s6970_s23 + $0x5f0] sm:$0xff]  ;;  %v5285_v9 = vld [vmem:[%s6970_s23 + $0x5f8] sm:$0xff]  ;;  %v328_v12 = vpack.c.bf16 %v5283_v4, %v5282_v3 }
  0x1c   : > { %6319 = vmatmul.mubr.msk.bf16.gmra.mxu0 %vm353_vm2, %v322_v39  ;;  %6351 = vmatmul.mubr.msk.bf16.gmra.mxu1 %vm353_vm2, %v338_v40  ;;  %v5316_v10 = vld [vmem:[%s6970_s23 + $0x730] sm:$0xff]  ;;  %v5317_v11 = vld [vmem:[%s6970_s23 + $0x738] sm:$0xff]  ;;  %v344_v13 = vpack.c.bf16 %v5315_v7, %v5314_v6  ;;  %v329_v14 = vpack.c.bf16 %v5285_v9, %v5284_v8  ;;  %v5286_v16 = vld [vmem:[%s6970_s23 + $0x600] sm:$0xff] }
  0x1d   : > { %6322 = vmatprep.mubr.msk.bf16.mxu0 %vm353_vm2, %v323_v41  ;;  %6354 = vmatprep.mubr.msk.bf16.mxu1 %vm353_vm2, %v339_v42  ;;  %v345_v15 = vpack.c.bf16 %v5317_v11, %v5316_v10  ;;  %v5287_v17 = vld [vmem:[%s6970_s23 + $0x608] sm:$0xff]  ;;  %v5318_v18 = vld [vmem:[%s6970_s23 + $0x740] sm:$0xff]  ;;  %v5288_v20 = vld [vmem:[%s6970_s23 + $0x618] sm:$0xff] }
  0x1e   : > { %v5319_v19 = vld [vmem:[%s6970_s23 + $0x748] sm:$0xff]  ;;  %v5289_v21 = vld [vmem:[%s6970_s23 + $0x620] sm:$0xff]  ;;  %v5320_v22 = vld [vmem:[%s6970_s23 + $0x758] sm:$0xff]  ;;  %v330_v24 = vpack.c.bf16 %v5287_v17, %v5286_v16 }
  0x1f   : > { %v5321_v23 = vld [vmem:[%s6970_s23 + $0x760] sm:$0xff]  ;;  %v346_v25 = vpack.c.bf16 %v5319_v19, %v5318_v18  ;;  %v331_v26 = vpack.c.bf16 %v5289_v21, %v5288_v20  ;;  %v5290_v28 = vld [vmem:[%s6970_s23 + $0x628] sm:$0xff]  ;;  %v5291_v31 = vld [vmem:[%s6970_s23 + $0x630] sm:$0xff] }
  0x20   : > { %v347_v27 = vpack.c.bf16 %v5321_v23, %v5320_v22  ;;  %v5322_v32 = vld [vmem:[%s6970_s23 + $0x768] sm:$0xff]  ;;  %v5323_v33 = vld [vmem:[%s6970_s23 + $0x770] sm:$0xff]  ;;  %v5292_v34 = vld [vmem:[%s6970_s23 + $0x640] sm:$0xff]  ;;  %v332_v38 = vpack.c.bf16 %v5291_v31, %v5290_v28 }
  0x21   : > { %v5293_v35 = vld [vmem:[%s6970_s23 + $0x648] sm:$0xff]  ;;  %v5324_v36 = vld [vmem:[%s6970_s23 + $0x780] sm:$0xff]  ;;  %v348_v39 = vpack.c.bf16 %v5323_v33, %v5322_v32  ;;  %v5294_v42 = vld [vmem:[%s6970_s23 + $0x650] sm:$0xff] }
  0x22   : > { %v5325_v37 = vld [vmem:[%s6970_s23 + $0x788] sm:$0xff]  ;;  %v333_v40 = vpack.c.bf16 %v5293_v35, %v5292_v34  ;;  %v5295_v43 = vld [vmem:[%s6970_s23 + $0x658] sm:$0xff]  ;;  %v5326_v44 = vld [vmem:[%s6970_s23 + $0x790] sm:$0xff] }
  0x23   : > { %v349_v41 = vpack.c.bf16 %v5325_v37, %v5324_v36  ;;  %v5327_v45 = vld [vmem:[%s6970_s23 + $0x798] sm:$0xff]  ;;  %v156_v46 = vld [vmem:[%s6970_s23] sm:$0xff]  ;;  %v157_v47 = vld [vmem:[%s6970_s23 + $0x8] sm:$0xff]  ;;  %v334_v50 = vpack.c.bf16 %v5295_v43, %v5294_v42 }
  0x24   : > { %6323 = vmatmul.mubr.msk.bf16.gmra.mxu0 %vm353_vm2, %v324_v51  ;;  %6355 = vmatmul.mubr.msk.bf16.gmra.mxu1 %vm353_vm2, %v340_v52  ;;  %v1134_v48 = vld [vmem:[%s6970_s23 + $0x1] sm:$0xff]  ;;  %v1135_v49 = vld [vmem:[%s6970_s23 + $0x9] sm:$0xff]  ;;  %v350_v51 = vpack.c.bf16 %v5327_v45, %v5326_v44  ;;  %v220_v52 = vpack.c.bf16 %v157_v47, %v156_v46  ;;  %v159_v55 = vld [vmem:[%s6970_s23 + $0x18] sm:$0xff] }
  0x25   : > { %6326 = vmatprep.mubr.msk.bf16.mxu0 %vm353_vm2, %v325_v53  ;;  %6358 = vmatprep.mubr.msk.bf16.mxu1 %vm353_vm2, %v341_v54  ;;  %v1198_v53 = vpack.c.bf16 %v1135_v49, %v1134_v48  ;;  %v158_v54 = vld [vmem:[%s6970_s23 + $0x10] sm:$0xff]  ;;  %v1137_v57 = vld [vmem:[%s6970_s23 + $0x19] sm:$0xff]  ;;  %v160_v58 = vld [vmem:[%s6970_s23 + $0x28] sm:$0xff] }
  0x26   : > { %v1136_v56 = vld [vmem:[%s6970_s23 + $0x11] sm:$0xff]  ;;  %v1138_v60 = vld [vmem:[%s6970_s23 + $0x29] sm:$0xff]  ;;  %v221_v62 = vpack.c.bf16 %v159_v55, %v158_v54  ;;  %v163_v3 = vld [vmem:[%s6970_s23 + $0x40] sm:$0xff] }
  0x27   : > { %v161_v59 = vld [vmem:[%s6970_s23 + $0x30] sm:$0xff]  ;;  %v1140_v4 = vld [vmem:[%s6970_s23 + $0x39] sm:$0xff]  ;;  %v5684_v6 = vld [vmem:[%s8863_s1 + $0xa] sm:$0x3] }
  0x28   : > { %v1139_v61 = vld [vmem:[%s6970_s23 + $0x31] sm:$0xff]  ;;  %v1141_v7 = vld [vmem:[%s6970_s23 + $0x41] sm:$0xff]  ;;  %v7113_v10 = vand.u32 %v5684_v6, %v6965_v5  ;;  %v1145_v20 = vld [vmem:[%s6970_s23 + $0x69] sm:$0xff] }
  0x29   : > { %v164_v8 = vld [vmem:[%s6970_s23 + $0x50] sm:$0xff]  ;;  %v165_v9 = vld [vmem:[%s6970_s23 + $0x58] sm:$0xff]  ;;  %v166_v17 = vld [vmem:[%s6970_s23 + $0x60] sm:$0xff] }
  0x2a   : > { %v1142_v11 = vld [vmem:[%s6970_s23 + $0x51] sm:$0xff]  ;;  %v167_v18 = vld [vmem:[%s6970_s23 + $0x68] sm:$0xff]  ;;  %v169_v22 = vld [vmem:[%s6970_s23 + $0x80] sm:$0xff] }
  0x2b   : > { %v1144_v19 = vld [vmem:[%s6970_s23 + $0x61] sm:$0xff]  ;;  %v168_v21 = vld [vmem:[%s6970_s23 + $0x78] sm:$0xff]  ;;  %v171_v32 = vld [vmem:[%s6970_s23 + $0x90] sm:$0xff] }
  0x2c   : > { %6327 = vmatmul.mubr.msk.bf16.gmra.mxu0 %vm353_vm2, %v326_v63  ;;  %6359 = vmatmul.mubr.msk.bf16.gmra.mxu1 %vm353_vm2, %v342_v0  ;;  %v1199_v63 = vpack.c.bf16 %v1137_v57, %v1136_v56  ;;  %v222_v0 = vpack.c.bf16 %v161_v59, %v160_v58  ;;  %v1146_v23 = vld [vmem:[%s6970_s23 + $0x79] sm:$0xff]  ;;  %v170_v31 = vld [vmem:[%s6970_s23 + $0x88] sm:$0xff]  ;;  %v1149_v34 = vld [vmem:[%s6970_s23 + $0x91] sm:$0xff] }
  0x2d   : > { %6330 = vmatprep.mubr.msk.bf16.mxu0 %vm353_vm2, %v327_v1  ;;  %6362 = vmatprep.mubr.msk.bf16.mxu1 %vm353_vm2, %v343_v2  ;;  %v1200_v1 = vpack.c.bf16 %v1139_v61, %v1138_v60  ;;  %v162_v2 = vld [vmem:[%s6970_s23 + $0x38] sm:$0xff]  ;;  %v1148_v33 = vld [vmem:[%s6970_s23 + $0x89] sm:$0xff]  ;;  %v172_v35 = vld [vmem:[%s6970_s23 + $0xa0] sm:$0xff] }
  0x2e   : > { %v173_v36 = vld [vmem:[%s6970_s23 + $0xa8] sm:$0xff]  ;;  %v174_v43 = vld [vmem:[%s6970_s23 + $0xb0] sm:$0xff]  ;;  %v175_v44 = vld [vmem:[%s6970_s23 + $0xb8] sm:$0xff] }
  0x2f   : > { %v1150_v37 = vld [vmem:[%s6970_s23 + $0xa1] sm:$0xff]  ;;  %v1152_v45 = vld [vmem:[%s6970_s23 + $0xb1] sm:$0xff]  ;;  %v1153_v46 = vld [vmem:[%s6970_s23 + $0xb9] sm:$0xff] }
  0x30   : > { %v176_v47 = vld [vmem:[%s6970_s23 + $0xc8] sm:$0xff]  ;;  %v177_v48 = vld [vmem:[%s6970_s23 + $0xd0] sm:$0xff]  ;;  %v178_v55 = vld [vmem:[%s6970_s23 + $0xd8] sm:$0xff] }
  0x31   : > { %v1154_v49 = vld [vmem:[%s6970_s23 + $0xc9] sm:$0xff]  ;;  %v179_v56 = vld [vmem:[%s6970_s23 + $0xe0] sm:$0xff]  ;;  %v181_v60 = vld [vmem:[%s6970_s23 + $0xf8] sm:$0xff] }
  0x32   : > { %v1156_v57 = vld [vmem:[%s6970_s23 + $0xd9] sm:$0xff]  ;;  %v1157_v58 = vld [vmem:[%s6970_s23 + $0xe1] sm:$0xff]  ;;  %v180_v59 = vld [vmem:[%s6970_s23 + $0xf0] sm:$0xff] }
  0x33   : > { %v1158_v61 = vld [vmem:[%s6970_s23 + $0xf1] sm:$0xff]  ;;  %v1160_v6 = vld [vmem:[%s6970_s23 + $0x101] sm:$0xff] }
  0x34   : > { %6331 = vmatmul.mubr.msk.bf16.gmra.mxu0 %vm353_vm2, %v328_v12  ;;  %6363 = vmatmul.mubr.msk.bf16.gmra.mxu1 %vm353_vm2, %v344_v13  ;;  %v1143_v12 = vld [vmem:[%s6970_s23 + $0x59] sm:$0xff]  ;;  %v223_v13 = vpack.c.bf16 %v163_v3, %v162_v2 }
  0x35   : > { %6334 = vmatprep.mubr.msk.bf16.mxu0 %vm353_vm2, %v329_v14  ;;  %6366 = vmatprep.mubr.msk.bf16.mxu1 %vm353_vm2, %v345_v15  ;;  %v1201_v14 = vpack.c.bf16 %v1141_v7, %v1140_v4  ;;  %v224_v15 = vpack.c.bf16 %v165_v9, %v164_v8  ;;  %v1202_v16 = vpack.c.bf16 %v1143_v12, %v1142_v11  ;;  %v182_v3 = vld [vmem:[%s6970_s23 + $0x100] sm:$0xff]  ;;  %v183_v4 = vld [vmem:[%s6970_s23 + $0x108] sm:$0xff]  ;;  %v184_v8 = vld [vmem:[%s6970_s23 + $0x118] sm:$0xff] }
  0x36   : > { %v1161_v7 = vld [vmem:[%s6970_s23 + $0x109] sm:$0xff]  ;;  %v185_v9 = vld [vmem:[%s6970_s23 + $0x120] sm:$0xff] }
  0x37   : > { %v1162_v11 = vld [vmem:[%s6970_s23 + $0x119] sm:$0xff]  ;;  %v1163_v12 = vld [vmem:[%s6970_s23 + $0x121] sm:$0xff] }
  0x3c   : > { %6335 = vmatmul.mubr.msk.bf16.gmra.mxu0 %vm353_vm2, %v330_v24  ;;  %6367 = vmatmul.mubr.msk.bf16.gmra.mxu1 %vm353_vm2, %v346_v25  ;;  %v1147_v24 = vld [vmem:[%s6970_s23 + $0x81] sm:$0xff]  ;;  %v225_v25 = vpack.c.bf16 %v167_v18, %v166_v17  ;;  %v187_v17 = vld [vmem:[%s6970_s23 + $0x130] sm:$0xff] }
  0x3d   : > { %6338 = vmatprep.mubr.msk.bf16.mxu0 %vm353_vm2, %v331_v26  ;;  %6370 = vmatprep.mubr.msk.bf16.mxu1 %vm353_vm2, %v347_v27  ;;  %v1203_v26 = vpack.c.bf16 %v1145_v20, %v1144_v19  ;;  %v226_v27 = vpack.c.bf16 %v169_v22, %v168_v21  ;;  %v1204_v28 = vpack.c.bf16 %v1147_v24, %v1146_v23  ;;  %v1164_v18 = vld [vmem:[%s6970_s23 + $0x129] sm:$0xff]  ;;  %v1165_v19 = vld [vmem:[%s6970_s23 + $0x131] sm:$0xff]  ;;  %v188_v20 = vld [vmem:[%s6970_s23 + $0x140] sm:$0xff] }
  0x3e   : > { %v189_v21 = vld [vmem:[%s6970_s23 + $0x148] sm:$0xff] }
  0x3f   : > { %v1166_v22 = vld [vmem:[%s6970_s23 + $0x141] sm:$0xff]  ;;  %v1167_v23 = vld [vmem:[%s6970_s23 + $0x149] sm:$0xff] }
  0x44   : > { %6339 = vmatmul.mubr.msk.bf16.gmra.mxu0 %vm353_vm2, %v332_v38  ;;  %6371 = vmatmul.mubr.msk.bf16.gmra.mxu1 %vm353_vm2, %v348_v39  ;;  %v1151_v38 = vld [vmem:[%s6970_s23 + $0xa9] sm:$0xff]  ;;  %v227_v39 = vpack.c.bf16 %v171_v32, %v170_v31  ;;  %v191_v31 = vld [vmem:[%s6970_s23 + $0x158] sm:$0xff] }
  0x45   : > { %6342 = vmatprep.mubr.msk.bf16.mxu0 %vm353_vm2, %v333_v40  ;;  %6374 = vmatprep.mubr.msk.bf16.mxu1 %vm353_vm2, %v349_v41  ;;  %v1205_v40 = vpack.c.bf16 %v1149_v34, %v1148_v33  ;;  %v228_v41 = vpack.c.bf16 %v173_v36, %v172_v35  ;;  %v1206_v42 = vpack.c.bf16 %v1151_v38, %v1150_v37  ;;  %v1168_v32 = vld [vmem:[%s6970_s23 + $0x151] sm:$0xff]  ;;  %v1169_v33 = vld [vmem:[%s6970_s23 + $0x159] sm:$0xff]  ;;  %v192_v34 = vld [vmem:[%s6970_s23 + $0x168] sm:$0xff] }
  0x46   : > { %v193_v35 = vld [vmem:[%s6970_s23 + $0x170] sm:$0xff] }
  0x47   : > { %v1170_v36 = vld [vmem:[%s6970_s23 + $0x169] sm:$0xff]  ;;  %v1171_v37 = vld [vmem:[%s6970_s23 + $0x171] sm:$0xff] }
  0x4c   : > { %6343 = vmatmul.mubr.msk.bf16.gmra.mxu0 %vm353_vm2, %v334_v50  ;;  %6375 = vmatmul.mubr.msk.bf16.gmra.mxu1 %vm353_vm2, %v350_v51  ;;  %v1155_v50 = vld [vmem:[%s6970_s23 + $0xd1] sm:$0xff]  ;;  %v229_v51 = vpack.c.bf16 %v175_v44, %v174_v43  ;;  %v195_v43 = vld [vmem:[%s6970_s23 + $0x180] sm:$0xff] }
  0x4d   : > { %6380 = vmatprep.mubr.msk.bf16.mxu1 %vm353_vm2, %v220_v52  ;;  %6446 = vmatprep.mubr.msk.bf16.mxu0 %vm353_vm2, %v1198_v53  ;;  %v1207_v52 = vpack.c.bf16 %v1153_v46, %v1152_v45  ;;  %v230_v53 = vpack.c.bf16 %v177_v48, %v176_v47  ;;  %v1208_v54 = vpack.c.bf16 %v1155_v50, %v1154_v49  ;;  %v1172_v44 = vld [vmem:[%s6970_s23 + $0x179] sm:$0xff]  ;;  %v1173_v45 = vld [vmem:[%s6970_s23 + $0x181] sm:$0xff]  ;;  %v196_v46 = vld [vmem:[%s6970_s23 + $0x190] sm:$0xff] }
  0x4e   : > { %v197_v47 = vld [vmem:[%s6970_s23 + $0x198] sm:$0xff] }
  0x4f   : > { %v1174_v48 = vld [vmem:[%s6970_s23 + $0x191] sm:$0xff]  ;;  %v1175_v49 = vld [vmem:[%s6970_s23 + $0x199] sm:$0xff] }
  0x54   : > { %6381 = vmatmul.mubr.msk.bf16.vlgmr.msra.gmra.mxu1 %vm353_vm2, %v221_v62  ;;  %6447 = vmatmul.mubr.msk.bf16.vlgmr.msra.gmra.mxu0 %vm353_vm2, %v1199_v63  ;;  %v1159_v62 = vld [vmem:[%s6970_s23 + $0xf9] sm:$0xff]  ;;  %v231_v63 = vpack.c.bf16 %v179_v56, %v178_v55  ;;  %v199_v55 = vld [vmem:[%s6970_s23 + $0x1a8] sm:$0xff] }
  0x55   : > { %6511 = vmatpush3.bf16.msra.mxu1 %v6996_v29  ;;  %6577 = vmatpush3.bf16.msra.mxu0 %v6999_v30  ;;  %v5783_v29 = vld [vmem:[%s8863_s1 + $0xc] sm:$0x3]  ;;  %v1210_v2 = vpack.c.bf16 %v1159_v62, %v1158_v61  ;;  %v1176_v56 = vld [vmem:[%s6970_s23 + $0x1a1] sm:$0xff] }
  0x56   : > { %6384 = vmatprep.mubr.msk.bf16.mxu1 %vm353_vm2, %v222_v0  ;;  %6450 = vmatprep.mubr.msk.bf16.mxu0 %vm353_vm2, %v1200_v1  ;;  %v7124_v30 = vand.u32 %v5783_v29, %v6965_v5  ;;  %v1209_v0 = vpack.c.bf16 %v1157_v58, %v1156_v57  ;;  %v232_v1 = vpack.c.bf16 %v181_v60, %v180_v59  ;;  %v1177_v57 = vld [vmem:[%s6970_s23 + $0x1a9] sm:$0xff]  ;;  %v200_v58 = vld [vmem:[%s6970_s23 + $0x1b8] sm:$0xff]  ;;  %v201_v59 = vld [vmem:[%s6970_s23 + $0x1c0] sm:$0xff] }
  0x57   : > { %6642 = vmatprep.subr.bf16.mxu1 %v7113_v10  ;;  %v233_v29 = vpack.c.bf16 %v183_v4, %v182_v3  ;;  %v1178_v60 = vld [vmem:[%s6970_s23 + $0x1b9] sm:$0xff]  ;;  %v1179_v61 = vld [vmem:[%s6970_s23 + $0x1c1] sm:$0xff]  ;;  %v203_v3 = vld [vmem:[%s6970_s23 + $0x1d0] sm:$0xff] }
  0x58   : > { %6708 = vmatprep.subr.bf16.mxu0 %v7124_v30  ;;  %v1180_v4 = vld [vmem:[%s6970_s23 + $0x1c9] sm:$0xff] }
  0x5c   : > { %6385 = vmatmul.mubr.msk.bf16.gmra.mxu1 %vm353_vm2, %v223_v13  ;;  %6451 = vmatmul.mubr.msk.bf16.gmra.mxu0 %vm353_vm2, %v1201_v14  ;;  %v1211_v13 = vpack.c.bf16 %v1161_v7, %v1160_v6  ;;  %v234_v14 = vpack.c.bf16 %v185_v9, %v184_v8  ;;  %v1181_v6 = vld [vmem:[%s6970_s23 + $0x1d1] sm:$0xff]  ;;  %v204_v7 = vld [vmem:[%s6970_s23 + $0x1e0] sm:$0xff]  ;;  %v205_v8 = vld [vmem:[%s6970_s23 + $0x1e8] sm:$0xff] }
  0x5d   : > { %6388 = vmatprep.mubr.msk.bf16.mxu1 %vm353_vm2, %v224_v15  ;;  %6454 = vmatprep.mubr.msk.bf16.mxu0 %vm353_vm2, %v1202_v16  ;;  %v1212_v15 = vpack.c.bf16 %v1163_v12, %v1162_v11  ;;  %v186_v16 = vld [vmem:[%s6970_s23 + $0x128] sm:$0xff] }
  0x5e   : > { %v235_v24 = vpack.c.bf16 %v187_v17, %v186_v16  ;;  %v1182_v9 = vld [vmem:[%s6970_s23 + $0x1e1] sm:$0xff]  ;;  %v1183_v11 = vld [vmem:[%s6970_s23 + $0x1e9] sm:$0xff]  ;;  %v207_v16 = vld [vmem:[%s6970_s23 + $0x1f8] sm:$0xff] }
  0x5f   : > { %v1184_v17 = vld [vmem:[%s6970_s23 + $0x1f1] sm:$0xff] }
  0x64   : > { %6389 = vmatmul.mubr.msk.bf16.gmra.mxu1 %vm353_vm2, %v225_v25  ;;  %6455 = vmatmul.mubr.msk.bf16.gmra.mxu0 %vm353_vm2, %v1203_v26  ;;  %v1213_v25 = vpack.c.bf16 %v1165_v19, %v1164_v18  ;;  %v236_v26 = vpack.c.bf16 %v189_v21, %v188_v20  ;;  %v1185_v18 = vld [vmem:[%s6970_s23 + $0x1f9] sm:$0xff]  ;;  %v208_v19 = vld [vmem:[%s6970_s23 + $0x208] sm:$0xff]  ;;  %v209_v20 = vld [vmem:[%s6970_s23 + $0x210] sm:$0xff] }
  0x65   : > { %6392 = vmatprep.mubr.msk.bf16.mxu1 %vm353_vm2, %v226_v27  ;;  %6458 = vmatprep.mubr.msk.bf16.mxu0 %vm353_vm2, %v1204_v28  ;;  %v1214_v27 = vpack.c.bf16 %v1167_v23, %v1166_v22  ;;  %v190_v28 = vld [vmem:[%s6970_s23 + $0x150] sm:$0xff] }
  0x66   : > { %v237_v38 = vpack.c.bf16 %v191_v31, %v190_v28  ;;  %v1186_v21 = vld [vmem:[%s6970_s23 + $0x209] sm:$0xff]  ;;  %v1187_v22 = vld [vmem:[%s6970_s23 + $0x211] sm:$0xff]  ;;  %v211_v28 = vld [vmem:[%s6970_s23 + $0x220] sm:$0xff] }
  0x67   : > { %v1188_v31 = vld [vmem:[%s6970_s23 + $0x219] sm:$0xff] }
  0x6c   : > { %6393 = vmatmul.mubr.msk.bf16.gmra.mxu1 %vm353_vm2, %v227_v39  ;;  %6459 = vmatmul.mubr.msk.bf16.gmra.mxu0 %vm353_vm2, %v1205_v40  ;;  %v1215_v39 = vpack.c.bf16 %v1169_v33, %v1168_v32  ;;  %v238_v40 = vpack.c.bf16 %v193_v35, %v192_v34  ;;  %v1189_v32 = vld [vmem:[%s6970_s23 + $0x221] sm:$0xff]  ;;  %v212_v33 = vld [vmem:[%s6970_s23 + $0x230] sm:$0xff]  ;;  %v213_v34 = vld [vmem:[%s6970_s23 + $0x238] sm:$0xff] }
  0x6d   : > { %6396 = vmatprep.mubr.msk.bf16.mxu1 %vm353_vm2, %v228_v41  ;;  %6462 = vmatprep.mubr.msk.bf16.mxu0 %vm353_vm2, %v1206_v42  ;;  %v1216_v41 = vpack.c.bf16 %v1171_v37, %v1170_v36  ;;  %v194_v42 = vld [vmem:[%s6970_s23 + $0x178] sm:$0xff] }
  0x6e   : > { %v239_v50 = vpack.c.bf16 %v195_v43, %v194_v42  ;;  %v1190_v35 = vld [vmem:[%s6970_s23 + $0x231] sm:$0xff]  ;;  %v1191_v36 = vld [vmem:[%s6970_s23 + $0x239] sm:$0xff]  ;;  %v215_v42 = vld [vmem:[%s6970_s23 + $0x248] sm:$0xff] }
  0x6f   : > { %v1192_v43 = vld [vmem:[%s6970_s23 + $0x241] sm:$0xff] }
  0x74   : > { %6397 = vmatmul.mubr.msk.bf16.gmra.mxu1 %vm353_vm2, %v229_v51  ;;  %6463 = vmatmul.mubr.msk.bf16.gmra.mxu0 %vm353_vm2, %v1207_v52  ;;  %v1217_v51 = vpack.c.bf16 %v1173_v45, %v1172_v44  ;;  %v240_v52 = vpack.c.bf16 %v197_v47, %v196_v46  ;;  %v1193_v44 = vld [vmem:[%s6970_s23 + $0x249] sm:$0xff]  ;;  %v216_v45 = vld [vmem:[%s6970_s23 + $0x258] sm:$0xff]  ;;  %v217_v46 = vld [vmem:[%s6970_s23 + $0x260] sm:$0xff] }
  0x75   : > { %6400 = vmatprep.mubr.msk.bf16.mxu1 %vm353_vm2, %v230_v53  ;;  %6466 = vmatprep.mubr.msk.bf16.mxu0 %vm353_vm2, %v1208_v54  ;;  %v1218_v53 = vpack.c.bf16 %v1175_v49, %v1174_v48  ;;  %v198_v54 = vld [vmem:[%s6970_s23 + $0x1a0] sm:$0xff] }
  0x76   : > { %v241_v62 = vpack.c.bf16 %v199_v55, %v198_v54  ;;  %v1194_v47 = vld [vmem:[%s6970_s23 + $0x259] sm:$0xff]  ;;  %v1195_v48 = vld [vmem:[%s6970_s23 + $0x261] sm:$0xff]  ;;  %v219_v54 = vld [vmem:[%s6970_s23 + $0x270] sm:$0xff] }
  0x77   : > { %v1196_v55 = vld [vmem:[%s6970_s23 + $0x269] sm:$0xff] }
  0x7c   : > { %6401 = vmatmul.mubr.msk.bf16.gmra.mxu1 %vm353_vm2, %v231_v63  ;;  %6467 = vmatmul.mubr.msk.bf16.gmra.mxu0 %vm353_vm2, %v1209_v0  ;;  %v1219_v63 = vpack.c.bf16 %v1177_v57, %v1176_v56  ;;  %v242_v0 = vpack.c.bf16 %v201_v59, %v200_v58  ;;  %v1197_v56 = vld [vmem:[%s6970_s23 + $0x271] sm:$0xff] }
  0x7d   : > { %6404 = vmatprep.mubr.msk.bf16.mxu1 %vm353_vm2, %v232_v1  ;;  %6470 = vmatprep.mubr.msk.bf16.mxu0 %vm353_vm2, %v1210_v2  ;;  %v1220_v1 = vpack.c.bf16 %v1179_v61, %v1178_v60  ;;  %v202_v2 = vld [vmem:[%s6970_s23 + $0x1c8] sm:$0xff]  ;;  %v5426_v57 = vld [vmem:[%s6970_s23 + $0xa50] sm:$0xff]  ;;  %v5427_v58 = vld [vmem:[%s6970_s23 + $0xa58] sm:$0xff] }
  0x7e   : > { %v243_v12 = vpack.c.bf16 %v203_v3, %v202_v2  ;;  %v5523_v59 = vld [vmem:[%s6970_s23 + $0xf78] sm:$0xff]  ;;  %v5524_v60 = vld [vmem:[%s6970_s23 + $0xf80] sm:$0xff]  ;;  %v5429_v2 = vld [vmem:[%s6970_s23 + $0xa68] sm:$0xff] }
  0x7f   : > { %v5525_v3 = vld [vmem:[%s6970_s23 + $0xf88] sm:$0xff] }
  0x84   : > { %6405 = vmatmul.mubr.msk.bf16.gmra.mxu1 %vm353_vm2, %v233_v29  ;;  %6471 = vmatmul.mubr.msk.bf16.gmra.mxu0 %vm353_vm2, %v1211_v13  ;;  %v1221_v29 = vpack.c.bf16 %v1181_v6, %v1180_v4  ;;  %v244_v13 = vpack.c.bf16 %v205_v8, %v204_v7  ;;  %v5526_v4 = vld [vmem:[%s6970_s23 + $0xf90] sm:$0xff]  ;;  %v5430_v6 = vld [vmem:[%s6970_s23 + $0xa78] sm:$0xff]  ;;  %v5431_v7 = vld [vmem:[%s6970_s23 + $0xa80] sm:$0xff] }
  0x85   : > { %6408 = vmatprep.mubr.msk.bf16.mxu1 %vm353_vm2, %v234_v14  ;;  %6474 = vmatprep.mubr.msk.bf16.mxu0 %vm353_vm2, %v1212_v15  ;;  %v1222_v14 = vpack.c.bf16 %v1183_v11, %v1182_v9  ;;  %v206_v15 = vld [vmem:[%s6970_s23 + $0x1f0] sm:$0xff]  ;;  %v5527_v8 = vld [vmem:[%s6970_s23 + $0xfa0] sm:$0xff]  ;;  %v5528_v9 = vld [vmem:[%s6970_s23 + $0xfa8] sm:$0xff] }
  0x86   : > { %v245_v23 = vpack.c.bf16 %v207_v16, %v206_v15  ;;  %v5432_v16 = vld [vmem:[%s6970_s23 + $0xa88] sm:$0xff] }
  0x8c   : > { %6409 = vmatmul.mubr.msk.bf16.gmra.mxu1 %vm353_vm2, %v235_v24  ;;  %6475 = vmatmul.mubr.msk.bf16.gmra.mxu0 %vm353_vm2, %v1213_v25  ;;  %v1223_v24 = vpack.c.bf16 %v1185_v18, %v1184_v17  ;;  %v246_v25 = vpack.c.bf16 %v209_v20, %v208_v19  ;;  %v5433_v17 = vld [vmem:[%s6970_s23 + $0xa90] sm:$0xff]  ;;  %v5530_v19 = vld [vmem:[%s6970_s23 + $0xfb8] sm:$0xff]  ;;  %v5434_v20 = vld [vmem:[%s6970_s23 + $0xaa0] sm:$0xff] }
  0x8d   : > { %6412 = vmatprep.mubr.msk.bf16.mxu1 %vm353_vm2, %v236_v26  ;;  %6478 = vmatprep.mubr.msk.bf16.mxu0 %vm353_vm2, %v1214_v27  ;;  %v1224_v26 = vpack.c.bf16 %v1187_v22, %v1186_v21  ;;  %v210_v27 = vld [vmem:[%s6970_s23 + $0x218] sm:$0xff]  ;;  %v5529_v18 = vld [vmem:[%s6970_s23 + $0xfb0] sm:$0xff] }
  0x8e   : > { %v247_v37 = vpack.c.bf16 %v211_v28, %v210_v27  ;;  %v1753_v27 = vpack.c.bf16 %v5433_v17, %v5432_v16  ;;  %v2305_v28 = vpack.c.bf16 %v5530_v19, %v5529_v18  ;;  %v5444_v18 = vld [vmem:[%s6970_s23 + $0xb00] sm:$0xff]  ;;  %v5445_v19 = vld [vmem:[%s6970_s23 + $0xb08] sm:$0xff] }
  0x94   : > { %6413 = vmatmul.mubr.msk.bf16.gmra.mxu1 %vm353_vm2, %v237_v38  ;;  %6479 = vmatmul.mubr.msk.bf16.gmra.mxu0 %vm353_vm2, %v1215_v39  ;;  %v1225_v38 = vpack.c.bf16 %v1189_v32, %v1188_v31  ;;  %v248_v39 = vpack.c.bf16 %v213_v34, %v212_v33  ;;  %v5979_v34 = vld [vmem:[%s8863_s1 + $0x10] sm:$0x3] }
  0x95   : > { %6416 = vmatprep.mubr.msk.bf16.mxu1 %vm353_vm2, %v238_v40  ;;  %6482 = vmatprep.mubr.msk.bf16.mxu0 %vm353_vm2, %v1216_v41  ;;  %v1226_v40 = vpack.c.bf16 %v1191_v36, %v1190_v35  ;;  %v214_v41 = vld [vmem:[%s6970_s23 + $0x240] sm:$0xff] }
  0x96   : > { %v249_v49 = vpack.c.bf16 %v215_v42, %v214_v41  ;;  %v5437_v41 = vld [vmem:[%s6970_s23 + $0xab8] sm:$0xff] }
  0x97   : > { %v5533_v42 = vld [vmem:[%s6970_s23 + $0xfd8] sm:$0xff] }
  0x9c   : > { %6417 = vmatmul.mubr.msk.bf16.gmra.mxu1 %vm353_vm2, %v239_v50  ;;  %6483 = vmatmul.mubr.msk.bf16.gmra.mxu0 %vm353_vm2, %v1217_v51  ;;  %v1227_v50 = vpack.c.bf16 %v1193_v44, %v1192_v43  ;;  %v250_v51 = vpack.c.bf16 %v217_v46, %v216_v45  ;;  %v5534_v43 = vld [vmem:[%s6970_s23 + $0xfe0] sm:$0xff]  ;;  %v5438_v44 = vld [vmem:[%s6970_s23 + $0xac8] sm:$0xff]  ;;  %v5439_v46 = vld [vmem:[%s6970_s23 + $0xad0] sm:$0xff] }
  0x9d   : > { %6420 = vmatprep.mubr.msk.bf16.mxu1 %vm353_vm2, %v240_v52  ;;  %6486 = vmatprep.mubr.msk.bf16.mxu0 %vm353_vm2, %v1218_v53  ;;  %v1228_v52 = vpack.c.bf16 %v1195_v48, %v1194_v47  ;;  %v218_v53 = vld [vmem:[%s6970_s23 + $0x268] sm:$0xff]  ;;  %v5535_v47 = vld [vmem:[%s6970_s23 + $0xff0] sm:$0xff]  ;;  %v5536_v48 = vld [vmem:[%s6970_s23 + $0xff8] sm:$0xff] }
  0x9e   : > { %v251_v61 = vpack.c.bf16 %v219_v54, %v218_v53  ;;  %v1756_v53 = vpack.c.bf16 %v5439_v46, %v5438_v44  ;;  %v2308_v54 = vpack.c.bf16 %v5536_v48, %v5535_v47 }
  0xa4   : > { %6421 = vmatmul.mubr.msk.bf16.gmra.mxu1 %vm353_vm2, %v241_v62  ;;  %6487 = vmatmul.mubr.msk.bf16.gmra.mxu0 %vm353_vm2, %v1219_v63  ;;  %v1229_v62 = vpack.c.bf16 %v1197_v56, %v1196_v55  ;;  %v1750_v63 = vpack.c.bf16 %v5427_v58, %v5426_v57 }
  0xa5   : > { %6424 = vmatprep.mubr.msk.bf16.mxu1 %vm353_vm2, %v242_v0  ;;  %6490 = vmatprep.mubr.msk.bf16.mxu0 %vm353_vm2, %v1220_v1  ;;  %v2302_v0 = vpack.c.bf16 %v5524_v60, %v5523_v59  ;;  %v5428_v1 = vld [vmem:[%s6970_s23 + $0xa60] sm:$0xff]  ;;  %v5440_v59 = vld [vmem:[%s6970_s23 + $0xad8] sm:$0xff] }
  0xa6   : > { %v1751_v11 = vpack.c.bf16 %v5429_v2, %v5428_v1  ;;  %v5441_v60 = vld [vmem:[%s6970_s23 + $0xae0] sm:$0xff]  ;;  %v5443_v2 = vld [vmem:[%s6970_s23 + $0xaf8] sm:$0xff] }
  0xac   : > { %6425 = vmatmul.mubr.msk.bf16.gmra.mxu1 %vm353_vm2, %v243_v12  ;;  %6491 = vmatmul.mubr.msk.bf16.gmra.mxu0 %vm353_vm2, %v1221_v29  ;;  %v2303_v12 = vpack.c.bf16 %v5526_v4, %v5525_v3  ;;  %v1752_v29 = vpack.c.bf16 %v5431_v7, %v5430_v6  ;;  %v5539_v3 = vld [vmem:[%s6970_s23 + $0x1018] sm:$0xff]  ;;  %v5540_v4 = vld [vmem:[%s6970_s23 + $0x1020] sm:$0xff] }
  0xad   : > { %6428 = vmatprep.mubr.msk.bf16.mxu1 %vm353_vm2, %v244_v13  ;;  %6494 = vmatprep.mubr.msk.bf16.mxu0 %vm353_vm2, %v1222_v14  ;;  %v2304_v13 = vpack.c.bf16 %v5528_v9, %v5527_v8  ;;  %v1757_v8 = vpack.c.bf16 %v5441_v60, %v5440_v59  ;;  %v5450_v59 = vld [vmem:[%s6970_s23 + $0xb40] sm:$0xff] }
  0xb4   : > { %6429 = vmatmul.mubr.msk.bf16.gmra.mxu1 %vm353_vm2, %v245_v23  ;;  %6495 = vmatmul.mubr.msk.bf16.gmra.mxu0 %vm353_vm2, %v1223_v24  ;;  %v5435_v23 = vld [vmem:[%s6970_s23 + $0xaa8] sm:$0xff] }
  0xb5   : > { %6432 = vmatprep.mubr.msk.bf16.mxu1 %vm353_vm2, %v246_v25  ;;  %6498 = vmatprep.mubr.msk.bf16.mxu0 %vm353_vm2, %v1224_v26  ;;  %v5531_v24 = vld [vmem:[%s6970_s23 + $0xfc8] sm:$0xff]  ;;  %v5532_v25 = vld [vmem:[%s6970_s23 + $0xfd0] sm:$0xff]  ;;  %v1754_v32 = vpack.c.bf16 %v5435_v23, %v5434_v20 }
  0xb6   : > { %v2306_v33 = vpack.c.bf16 %v5532_v25, %v5531_v24  ;;  %v5541_v20 = vld [vmem:[%s6970_s23 + $0x1028] sm:$0xff]  ;;  %v5542_v23 = vld [vmem:[%s6970_s23 + $0x1030] sm:$0xff]  ;;  %v5446_v24 = vld [vmem:[%s6970_s23 + $0xb18] sm:$0xff] }
  0xbc   : > { %6433 = vmatmul.mubr.msk.bf16.gmra.mxu1 %vm353_vm2, %v247_v37  ;;  %6499 = vmatmul.mubr.msk.bf16.gmra.mxu0 %vm353_vm2, %v1225_v38  ;;  %v7348_v37 = vand.u32 %v5979_v34, %v6965_v5 }
  0xbd   : > { %6436 = vmatprep.mubr.msk.bf16.mxu1 %vm353_vm2, %v248_v39  ;;  %6502 = vmatprep.mubr.msk.bf16.mxu0 %vm353_vm2, %v1226_v40  ;;  %v5436_v40 = vld [vmem:[%s6970_s23 + $0xab0] sm:$0xff] }
  0xc4   : > { %6437 = vmatmul.mubr.msk.bf16.gmra.mxu1 %vm353_vm2, %v249_v49  ;;  %6503 = vmatmul.mubr.msk.bf16.gmra.mxu0 %vm353_vm2, %v1227_v50 }
  0xc5   : > { %6440 = vmatprep.mubr.msk.bf16.mxu1 %vm353_vm2, %v250_v51  ;;  %6506 = vmatprep.mubr.msk.bf16.mxu0 %vm353_vm2, %v1228_v52  ;;  %v1755_v51 = vpack.c.bf16 %v5437_v41, %v5436_v40  ;;  %v2307_v52 = vpack.c.bf16 %v5534_v43, %v5533_v42  ;;  %v1759_v40 = vpack.c.bf16 %v5445_v19, %v5444_v18 }
  0xc6   : > { %v2311_v41 = vpack.c.bf16 %v5542_v23, %v5541_v20 }
  0xcc   : > { %6441 = vmatmul.mubr.msk.bf16.gmra.mxu1 %vm353_vm2, %v251_v61  ;;  %6507 = vmatmul.mubr.msk.bf16.gmra.mxu0 %vm353_vm2, %v1229_v62  ;;  %v5537_v61 = vld [vmem:[%s6970_s23 + $0x1000] sm:$0xff]  ;;  %v5538_v62 = vld [vmem:[%s6970_s23 + $0x1008] sm:$0xff] }
  0xcd   : > { %6512 = vmatprep.mubr.msk.bf16.mxu1 %vm353_vm2, %v1750_v63  ;;  %6578 = vmatprep.mubr.msk.bf16.mxu0 %vm353_vm2, %v2302_v0  ;;  %v5442_v63 = vld [vmem:[%s6970_s23 + $0xaf0] sm:$0xff]  ;;  %v2309_v9 = vpack.c.bf16 %v5538_v62, %v5537_v61  ;;  %v5451_v62 = vld [vmem:[%s6970_s23 + $0xb48] sm:$0xff] }
  0xd4   : > { %v7307_v14 = vpop.f32.mrf.mxu0  ;;  %v7309_v15 = vpop.f32.mrf.mxu1  ;;  %6513 = vmatmul.mubr.msk.bf16.vlgmr.msra.gmra.mxu1 %vm353_vm2, %v1751_v11  ;;  %6579 = vmatmul.mubr.msk.bf16.vlgmr.msra.gmra.mxu0 %vm353_vm2, %v2303_v12  ;;  %v1758_v11 = vpack.c.bf16 %v5443_v2, %v5442_v63  ;;  %v2310_v12 = vpack.c.bf16 %v5540_v4, %v5539_v3  ;;  %v5547_v63 = vld [vmem:[%s6970_s23 + $0x1068] sm:$0xff]  ;;  %v5548_v2 = vld [vmem:[%s6970_s23 + $0x1070] sm:$0xff] }
  0xd5   : > { %6643 = vmatpush3.bf16.msra.mxu1 %v7113_v10  ;;  %6709 = vmatpush3.bf16.msra.mxu0 %v7124_v30  ;;  %v5882_v10 = vld [vmem:[%s8863_s1 + $0xe] sm:$0x3] }
  0xd6   : > { %v7320_v21 = vpop.f32.mrf.mxu0  ;;  %v7322_v22 = vpop.f32.mrf.mxu1  ;;  %6516 = vmatprep.mubr.msk.bf16.mxu1 %vm353_vm2, %v1752_v29  ;;  %6582 = vmatprep.mubr.msk.bf16.mxu0 %vm353_vm2, %v2304_v13  ;;  %v7337_v31 = vand.u32 %v5882_v10, %v6965_v5 }
  0xd7   : > { %6840 = vmatprep.subr.bf16.mxu0 %v7348_v37 }
  0xd8   : > { %v7332_v26 = vpop.f32.mrf.mxu0  ;;  %v7334_v30 = vpop.f32.mrf.mxu1  ;;  %6774 = vmatprep.subr.bf16.mxu1 %v7337_v31 }
  0xda   : > { %v7342_v35 = vpop.f32.mrf.mxu0  ;;  %v7344_v36 = vpop.f32.mrf.mxu1 }
  0xdc   : > { %v7350_v38 = vpop.f32.mrf.mxu0  ;;  %v7352_v39 = vpop.f32.mrf.mxu1  ;;  %6517 = vmatmul.mubr.msk.bf16.gmra.mxu1 %vm353_vm2, %v1753_v27  ;;  %6583 = vmatmul.mubr.msk.bf16.gmra.mxu0 %vm353_vm2, %v2305_v28  ;;  %v5447_v27 = vld [vmem:[%s6970_s23 + $0xb20] sm:$0xff] }
  0xdd   : > { %6520 = vmatprep.mubr.msk.bf16.mxu1 %vm353_vm2, %v1754_v32  ;;  %6586 = vmatprep.mubr.msk.bf16.mxu0 %vm353_vm2, %v2306_v33  ;;  %v5543_v28 = vld [vmem:[%s6970_s23 + $0x1040] sm:$0xff]  ;;  %v5544_v32 = vld [vmem:[%s6970_s23 + $0x1048] sm:$0xff]  ;;  %v1760_v42 = vpack.c.bf16 %v5447_v27, %v5446_v24  ;;  %v5452_v24 = vld [vmem:[%s6970_s23 + $0xb50] sm:$0xff] }
  0xde   : > { %v7363_v5 = vpop.f32.mrf.mxu0  ;;  %v7365_v45 = vpop.f32.mrf.mxu1  ;;  %v2312_v43 = vpack.c.bf16 %v5544_v32, %v5543_v28  ;;  %v5453_v27 = vld [vmem:[%s6970_s23 + $0xb58] sm:$0xff]  ;;  %v5550_v32 = vld [vmem:[%s6970_s23 + $0x1080] sm:$0xff] }
  0xdf   : > { %v5549_v28 = vld [vmem:[%s6970_s23 + $0x1078] sm:$0xff] }
  0xe0   : > { %v7371_v49 = vpop.f32.mrf.mxu0  ;;  %v7373_v50 = vpop.f32.mrf.mxu1 }
  0xe2   : > { %v7375_v55 = vpop.f32.mrf.mxu0  ;;  %v7377_v56 = vpop.f32.mrf.mxu1 }
  0xe4   : > { %v7379_v57 = vpop.f32.mrf.mxu0  ;;  %v7381_v58 = vpop.f32.mrf.mxu1  ;;  %6521 = vmatmul.mubr.msk.bf16.gmra.mxu1 %vm353_vm2, %v1755_v51  ;;  %6587 = vmatmul.mubr.msk.bf16.gmra.mxu0 %vm353_vm2, %v2307_v52  ;;  %v5448_v51 = vld [vmem:[%s6970_s23 + $0xb28] sm:$0xff]  ;;  %v5449_v52 = vld [vmem:[%s6970_s23 + $0xb30] sm:$0xff] }
  0xe5   : > { %8866 = vst [vmem:[#allocation2_spill] sm:$0xff] %v7381_v58  ;;  %6524 = vmatprep.mubr.msk.bf16.mxu1 %vm353_vm2, %v1756_v53  ;;  %6590 = vmatprep.mubr.msk.bf16.mxu0 %vm353_vm2, %v2308_v54  ;;  %v5545_v53 = vld [vmem:[%s6970_s23 + $0x1050] sm:$0xff]  ;;  %v5546_v54 = vld [vmem:[%s6970_s23 + $0x1058] sm:$0xff] }
  0xe6   : > { %v7392_v0 = vpop.f32.mrf.mxu0  ;;  %v7394_v1 = vpop.f32.mrf.mxu1 }
  0xe7   : > { %8867 = vst [vmem:[#allocation3_spill] sm:$0xff] %v7394_v1 }
  0xe8   : > { %v7399_v6 = vpop.f32.mrf.mxu0  ;;  %v7401_v7 = vpop.f32.mrf.mxu1 }
  0xe9   : > { %8868 = vst [vmem:[#allocation4_spill] sm:$0xff] %v7401_v7 }
  0xea   : > { %v7403_v29 = vpop.f32.mrf.mxu0  ;;  %v7405_v13 = vpop.f32.mrf.mxu1 }
  0xeb   : > { %8869 = vst [vmem:[#allocation5_spill] sm:$0xff] %v7405_v13 }
  0xec   : > { %v7407_v16 = vpop.f32.mrf.mxu0  ;;  %v7409_v17 = vpop.f32.mrf.mxu1  ;;  %6525 = vmatmul.mubr.msk.bf16.gmra.mxu1 %vm353_vm2, %v1757_v8  ;;  %6591 = vmatmul.mubr.msk.bf16.gmra.mxu0 %vm353_vm2, %v2309_v9  ;;  %v1761_v8 = vpack.c.bf16 %v5449_v52, %v5448_v51  ;;  %v2313_v9 = vpack.c.bf16 %v5546_v54, %v5545_v53  ;;  %v5551_v51 = vld [vmem:[%s6970_s23 + $0x1090] sm:$0xff]  ;;  %v5552_v52 = vld [vmem:[%s6970_s23 + $0x1098] sm:$0xff] }
  0xed   : > { %8870 = vst [vmem:[#allocation6_spill] sm:$0xff] %v7409_v17  ;;  %6528 = vmatprep.mubr.msk.bf16.mxu1 %vm353_vm2, %v1758_v11  ;;  %6594 = vmatprep.mubr.msk.bf16.mxu0 %vm353_vm2, %v2310_v12  ;;  %v1762_v11 = vpack.c.bf16 %v5451_v62, %v5450_v59  ;;  %v2314_v12 = vpack.c.bf16 %v5548_v2, %v5547_v63 }
  0xee   : > { %v7420_v25 = vpop.f32.mrf.mxu0  ;;  %v7422_v10 = vpop.f32.mrf.mxu1  ;;  %v1763_v59 = vpack.c.bf16 %v5453_v27, %v5452_v24  ;;  %v2315_v62 = vpack.c.bf16 %v5550_v32, %v5549_v28  ;;  %v2316_v2 = vpack.c.bf16 %v5552_v52, %v5551_v51  ;;  %v5456_v24 = vld [vmem:[%s6970_s23 + $0xb78] sm:$0xff]  ;;  %v5457_v27 = vld [vmem:[%s6970_s23 + $0xb80] sm:$0xff]  ;;  %v5554_v32 = vld [vmem:[%s6970_s23 + $0x10a8] sm:$0xff] }
  0xef   : > { %8871 = vst [vmem:[#allocation7_spill] sm:$0xff] %v7422_v10  ;;  %v5553_v28 = vld [vmem:[%s6970_s23 + $0x10a0] sm:$0xff]  ;;  %v5459_v52 = vld [vmem:[%s6970_s23 + $0xb98] sm:$0xff]  ;;  %v5564_v10 = vld [vmem:[%s6970_s23 + $0x1110] sm:$0xff] }
  0xf0   : > { %v7427_v33 = vpop.f32.mrf.mxu0  ;;  %v7429_v34 = vpop.f32.mrf.mxu1 }
  0xf1   : > { %8872 = vst [vmem:[#allocation8_spill] sm:$0xff] %v7429_v34 }
  0xf2   : > { %v7431_v44 = vpop.f32.mrf.mxu0  ;;  %v7433_v46 = vpop.f32.mrf.mxu1 }
  0xf3   : > { %8873 = vst [vmem:[#allocation9_spill] sm:$0xff] %v7433_v46 }
  0xf4   : > { %v7435_v47 = vpop.f32.mrf.mxu0  ;;  %v7437_v48 = vpop.f32.mrf.mxu1  ;;  %6529 = vmatmul.mubr.msk.bf16.gmra.mxu1 %vm353_vm2, %v1759_v40  ;;  %6595 = vmatmul.mubr.msk.bf16.gmra.mxu0 %vm353_vm2, %v2311_v41  ;;  %v5454_v40 = vld [vmem:[%s6970_s23 + $0xb68] sm:$0xff] }
  0xf5   : > { %8874 = vst [vmem:[#allocation10_spill] sm:$0xff] %v7437_v48  ;;  %6532 = vmatprep.mubr.msk.bf16.mxu1 %vm353_vm2, %v1760_v42  ;;  %6598 = vmatprep.mubr.msk.bf16.mxu0 %vm353_vm2, %v2312_v43  ;;  %v5455_v43 = vld [vmem:[%s6970_s23 + $0xb70] sm:$0xff] }
  0xf6   : > { %v7448_v60 = vpop.f32.mrf.mxu0  ;;  %v7450_v61 = vpop.f32.mrf.mxu1  ;;  %v1764_v63 = vpack.c.bf16 %v5455_v43, %v5454_v40  ;;  %v5458_v40 = vld [vmem:[%s6970_s23 + $0xb90] sm:$0xff] }
  0xf7   : > { %8875 = vst [vmem:[#allocation11_spill] sm:$0xff] %v7450_v61 }
  0xf8   : > { %v7455_v3 = vpop.f32.mrf.mxu0  ;;  %v7457_v4 = vpop.f32.mrf.mxu1 }
  0xf9   : > { %8876 = vst [vmem:[#allocation12_spill] sm:$0xff] %v7457_v4 }
  0xfa   : > { %v7459_v18 = vpop.f32.mrf.mxu0  ;;  %v7461_v19 = vpop.f32.mrf.mxu1 }
  0xfb   : > { %8877 = vst [vmem:[#allocation13_spill] sm:$0xff] %v7461_v19 }
  0xfc   : > { %v7463_v20 = vpop.f32.mrf.mxu0  ;;  %v7465_v23 = vpop.f32.mrf.mxu1  ;;  %6533 = vmatmul.mubr.msk.bf16.gmra.mxu1 %vm353_vm2, %v1761_v8  ;;  %6599 = vmatmul.mubr.msk.bf16.gmra.mxu0 %vm353_vm2, %v2313_v9 }
  0xfd   : > { %8878 = vst [vmem:[#allocation14_spill] sm:$0xff] %v7465_v23  ;;  %6536 = vmatprep.mubr.msk.bf16.mxu1 %vm353_vm2, %v1762_v11  ;;  %6602 = vmatprep.mubr.msk.bf16.mxu0 %vm353_vm2, %v2314_v12 }
  0xfe   : > { %v7476_v41 = vpop.f32.mrf.mxu0  ;;  %v7478_v42 = vpop.f32.mrf.mxu1 }
  0xff   : > { %8879 = vst [vmem:[#allocation15_spill] sm:$0xff] %v7478_v42 }
 0x100   : > { %v7483_v53 = vpop.f32.mrf.mxu0  ;;  %v7485_v54 = vpop.f32.mrf.mxu1 }
 0x101   : > { %8880 = vst [vmem:[#allocation16_spill] sm:$0xff] %v7485_v54  ;;  %v1766_v54 = vpack.c.bf16 %v5459_v52, %v5458_v40 }
 0x102   : > { %v7487_v8 = vpop.f32.mrf.mxu0  ;;  %v7489_v9 = vpop.f32.mrf.mxu1 }
 0x103   : > { %8881 = vst [vmem:[#allocation17_spill] sm:$0xff] %v7489_v9 }
 0x104   : > { %v7491_v11 = vpop.f32.mrf.mxu0  ;;  %v7493_v12 = vpop.f32.mrf.mxu1  ;;  %6537 = vmatmul.mubr.msk.bf16.gmra.mxu1 %vm353_vm2, %v1763_v59  ;;  %6603 = vmatmul.mubr.msk.bf16.gmra.mxu0 %vm353_vm2, %v2315_v62  ;;  %v5556_v59 = vld [vmem:[%s6970_s23 + $0x10c0] sm:$0xff] }
 0x105   : > { %8882 = vst [vmem:[#allocation18_spill] sm:$0xff] %v7493_v12  ;;  %6540 = vmatprep.mubr.msk.bf16.mxu1 %vm353_vm2, %v1764_v63  ;;  %6606 = vmatprep.mubr.msk.bf16.mxu0 %vm353_vm2, %v2316_v2  ;;  %v5555_v12 = vld [vmem:[%s6970_s23 + $0x10b8] sm:$0xff]  ;;  %v1765_v63 = vpack.c.bf16 %v5457_v27, %v5456_v24  ;;  %v2317_v2 = vpack.c.bf16 %v5554_v32, %v5553_v28  ;;  %v5460_v24 = vld [vmem:[%s6970_s23 + $0xba0] sm:$0xff]  ;;  %v5461_v27 = vld [vmem:[%s6970_s23 + $0xba8] sm:$0xff] }
 0x106   : > { %v7504_v43 = vpop.f32.mrf.mxu0  ;;  %v7506_v51 = vpop.f32.mrf.mxu1  ;;  %v2318_v42 = vpack.c.bf16 %v5556_v59, %v5555_v12  ;;  %v5557_v12 = vld [vmem:[%s6970_s23 + $0x10c8] sm:$0xff]  ;;  %v5558_v28 = vld [vmem:[%s6970_s23 + $0x10d0] sm:$0xff]  ;;  %v5462_v32 = vld [vmem:[%s6970_s23 + $0xbb8] sm:$0xff] }
 0x107   : > { %8883 = vst [vmem:[#allocation19_spill] sm:$0xff] %v7506_v51  ;;  %v5463_v59 = vld [vmem:[%s6970_s23 + $0xbc0] sm:$0xff] }
 0x108   : > { %v7511_v9 = vpop.f32.mrf.mxu0  ;;  %v7513_v62 = vpop.f32.mrf.mxu1 }
 0x109   : > { %8884 = vst [vmem:[#allocation20_spill] sm:$0xff] %v7513_v62  ;;  %v1768_v62 = vpack.c.bf16 %v5463_v59, %v5462_v32 }
 0x10a   : > { %v7515_v23 = vpop.f32.mrf.mxu0  ;;  %v7517_v51 = vpop.f32.mrf.mxu1 }
 0x10b   : > { %8885 = vst [vmem:[#allocation21_spill] sm:$0xff] %v7517_v51 }
 0x10c   : > { %v7519_v19 = vpop.f32.mrf.mxu0  ;;  %v7521_v4 = vpop.f32.mrf.mxu1  ;;  %6541 = vmatmul.mubr.msk.bf16.gmra.mxu1 %vm353_vm2, %v1765_v63  ;;  %6607 = vmatmul.mubr.msk.bf16.gmra.mxu0 %vm353_vm2, %v2317_v2  ;;  %v5560_v63 = vld [vmem:[%s6970_s23 + $0x10e8] sm:$0xff] }
 0x10d   : > { %8886 = vst [vmem:[#allocation22_spill] sm:$0xff] %v7521_v4  ;;  %6544 = vmatprep.mubr.msk.bf16.mxu1 %vm353_vm2, %v1766_v54  ;;  %6610 = vmatprep.mubr.msk.bf16.mxu0 %vm353_vm2, %v2318_v42  ;;  %v5559_v4 = vld [vmem:[%s6970_s23 + $0x10e0] sm:$0xff]  ;;  %v1767_v54 = vpack.c.bf16 %v5461_v27, %v5460_v24  ;;  %v2319_v42 = vpack.c.bf16 %v5558_v28, %v5557_v12  ;;  %v5465_v24 = vld [vmem:[%s6970_s23 + $0xbd0] sm:$0xff]  ;;  %v5562_v12 = vld [vmem:[%s6970_s23 + $0x10f8] sm:$0xff] }
 0x10e   : > { %v7532_v40 = vpop.f32.mrf.mxu0  ;;  %v7534_v52 = vpop.f32.mrf.mxu1  ;;  %v2320_v61 = vpack.c.bf16 %v5560_v63, %v5559_v4  ;;  %v5561_v4 = vld [vmem:[%s6970_s23 + $0x10f0] sm:$0xff]  ;;  %v5466_v28 = vld [vmem:[%s6970_s23 + $0xbe0] sm:$0xff]  ;;  %v5467_v63 = vld [vmem:[%s6970_s23 + $0xbe8] sm:$0xff] }
 0x10f   : > { %8887 = vst [vmem:[#allocation23_spill] sm:$0xff] %v7534_v52  ;;  %v1770_v7 = vpack.c.bf16 %v5467_v63, %v5466_v28  ;;  %v5471_v28 = vld [vmem:[%s6970_s23 + $0xc10] sm:$0xff]  ;;  %v5568_v63 = vld [vmem:[%s6970_s23 + $0x1138] sm:$0xff] }
 0x110   : > { %v7539_v51 = vpop.f32.mrf.mxu0  ;;  %v7541_v2 = vpop.f32.mrf.mxu1 }
 0x111   : > { %8888 = vst [vmem:[#allocation24_spill] sm:$0xff] %v7541_v2  ;;  %v5464_v2 = vld [vmem:[%s6970_s23 + $0xbc8] sm:$0xff] }
 0x112   : > { %v7543_v48 = vpop.f32.mrf.mxu0  ;;  %v7545_v52 = vpop.f32.mrf.mxu1 }
 0x113   : > { %8889 = vst [vmem:[#allocation25_spill] sm:$0xff] %v7545_v52  ;;  %v5563_v52 = vld [vmem:[%s6970_s23 + $0x1108] sm:$0xff] }
 0x114   : > { %v6382_v46 = vpop.f32.mrf.mxu1  ;;  %v6448_v34 = vpop.f32.mrf.mxu0  ;;  %6545 = vmatmul.mubr.msk.bf16.gmra.mxu1 %vm353_vm2, %v1767_v54  ;;  %6611 = vmatmul.mubr.msk.bf16.gmra.mxu0 %vm353_vm2, %v2319_v42  ;;  %v2322_v1 = vpack.c.bf16 %v5564_v10, %v5563_v52 }
 0x115   : > { %v888_v27 = vadd.f32 %v6382_v46, %v7307_v14  ;;  %6548 = vmatprep.mubr.msk.bf16.mxu1 %vm353_vm2, %v1768_v62  ;;  %6614 = vmatprep.mubr.msk.bf16.mxu0 %vm353_vm2, %v2320_v61  ;;  %v1769_v14 = vpack.c.bf16 %v5465_v24, %v5464_v2  ;;  %v2321_v46 = vpack.c.bf16 %v5562_v12, %v5561_v4  ;;  %v5469_v24 = vld [vmem:[%s6970_s23 + $0xbf8] sm:$0xff] }
 0x116   : > { %v879_v32 = vpop.f32.mrf.mxu1  ;;  %v1365_v59 = vpop.f32.mrf.mxu0 }
 0x117   : > { %v7560_v17 = vadd.f32 %v6448_v34, %v888_v27  ;;  %v880_v54 = vadd.f32 %v879_v32, %v7320_v21 }
 0x118   : > { %v6383_v42 = vpop.f32.mrf.mxu1  ;;  %v6449_v13 = vpop.f32.mrf.mxu0 }
 0x119   : > { %v7563_v62 = vadd.f32 %v1365_v59, %v880_v54  ;;  %v891_v61 = vadd.f32 %v6383_v42, %v7332_v26  ;;  %v5468_v26 = vld [vmem:[%s6970_s23 + $0xbf0] sm:$0xff] }
 0x11a   : > { %v882_v58 = vpop.f32.mrf.mxu1  ;;  %v1368_v34 = vpop.f32.mrf.mxu0  ;;  %v5567_v59 = vld [vmem:[%s6970_s23 + $0x1130] sm:$0xff] }
 0x11b   : > { %v7566_v27 = vadd.f32 %v6449_v13, %v891_v61  ;;  %v883_v21 = vadd.f32 %v882_v58, %v7342_v35  ;;  %v5565_v35 = vld [vmem:[%s6970_s23 + $0x1118] sm:$0xff]  ;;  %v5566_v58 = vld [vmem:[%s6970_s23 + $0x1120] sm:$0xff]  ;;  %v5470_v13 = vld [vmem:[%s6970_s23 + $0xc08] sm:$0xff] }
 0x11c   : > { %v6386_v32 = vpop.f32.mrf.mxu1  ;;  %v6452_v2 = vpop.f32.mrf.mxu0  ;;  %6549 = vmatmul.mubr.msk.bf16.gmra.mxu1 %vm353_vm2, %v1769_v14  ;;  %6615 = vmatmul.mubr.msk.bf16.gmra.mxu0 %vm353_vm2, %v2321_v46 }
 0x11d   : > { %v7573_v10 = vadd.f32 %v1368_v34, %v883_v21  ;;  %v904_v52 = vadd.f32 %v6386_v32, %v7350_v38  ;;  %6552 = vmatprep.mubr.msk.bf16.mxu1 %vm353_vm2, %v1770_v7  ;;  %6618 = vmatprep.mubr.msk.bf16.mxu0 %vm353_vm2, %v2322_v1  ;;  %v1771_v38 = vpack.c.bf16 %v5469_v24, %v5468_v26  ;;  %v5473_v24 = vld [vmem:[%s6970_s23 + $0xc20] sm:$0xff] }
 0x11e   : > { %v895_v4 = vpop.f32.mrf.mxu1  ;;  %v1381_v12 = vpop.f32.mrf.mxu0  ;;  %v2323_v7 = vpack.c.bf16 %v5566_v58, %v5565_v35  ;;  %v1772_v34 = vpack.c.bf16 %v5471_v28, %v5470_v13  ;;  %v2324_v21 = vpack.c.bf16 %v5568_v63, %v5567_v59  ;;  %v5570_v13 = vld [vmem:[%s6970_s23 + $0x1148] sm:$0xff]  ;;  %v5475_v63 = vld [vmem:[%s6970_s23 + $0xc38] sm:$0xff] }
 0x11f   : > { %v7584_v54 = vadd.f32 %v6452_v2, %v904_v52  ;;  %v896_v42 = vadd.f32 %v895_v4, %v7363_v5 }
 0x120   : > { %v6387_v14 = vpop.f32.mrf.mxu1  ;;  %v6453_v46 = vpop.f32.mrf.mxu0 }
 0x121   : > { %v7587_v61 = vadd.f32 %v1381_v12, %v896_v42  ;;  %v907_v1 = vadd.f32 %v6387_v14, %v7371_v49  ;;  %v5472_v49 = vld [vmem:[%s6970_s23 + $0xc18] sm:$0xff]  ;;  %v5474_v12 = vld [vmem:[%s6970_s23 + $0xc30] sm:$0xff]  ;;  %v5572_v14 = vld [vmem:[%s6970_s23 + $0x1160] sm:$0xff] }
 0x122   : > { %v898_v32 = vpop.f32.mrf.mxu1  ;;  %v1384_v2 = vpop.f32.mrf.mxu0  ;;  %v5571_v42 = vld [vmem:[%s6970_s23 + $0x1158] sm:$0xff] }
 0x123   : > { %v7590_v52 = vadd.f32 %v6453_v46, %v907_v1  ;;  %v899_v5 = vadd.f32 %v898_v32, %v7375_v55  ;;  %v5569_v55 = vld [vmem:[%s6970_s23 + $0x1140] sm:$0xff] }
 0x124   : > { %v6390_v4 = vpop.f32.mrf.mxu1  ;;  %v6456_v26 = vpop.f32.mrf.mxu0  ;;  %6553 = vmatmul.mubr.msk.bf16.gmra.mxu1 %vm353_vm2, %v1771_v38  ;;  %6619 = vmatmul.mubr.msk.bf16.gmra.mxu0 %vm353_vm2, %v2323_v7 }
 0x125   : > { %v7597_v35 = vadd.f32 %v1384_v2, %v899_v5  ;;  %v920_v58 = vadd.f32 %v6390_v4, %v7379_v57  ;;  %6556 = vmatprep.mubr.msk.bf16.mxu1 %vm353_vm2, %v1772_v34  ;;  %6622 = vmatprep.mubr.msk.bf16.mxu0 %vm353_vm2, %v2324_v21  ;;  %v1773_v57 = vpack.c.bf16 %v5473_v24, %v5472_v49  ;;  %v5477_v24 = vld [vmem:[%s6970_s23 + $0xc48] sm:$0xff] }
 0x126   : > { %v911_v28 = vpop.f32.mrf.mxu1  ;;  %v1397_v59 = vpop.f32.mrf.mxu0  ;;  %v2325_v34 = vpack.c.bf16 %v5570_v13, %v5569_v55  ;;  %v1774_v2 = vpack.c.bf16 %v5475_v63, %v5474_v12  ;;  %v2326_v5 = vpack.c.bf16 %v5572_v14, %v5571_v42  ;;  %v5574_v12 = vld [vmem:[%s6970_s23 + $0x1170] sm:$0xff]  ;;  %v5479_v14 = vld [vmem:[%s6970_s23 + $0xc60] sm:$0xff] }
 0x127   : > { %v7608_v46 = vadd.f32 %v6456_v26, %v920_v58  ;;  %v912_v38 = vadd.f32 %v911_v28, %v7392_v0 }
 0x128   : > { %v6391_v7 = vpop.f32.mrf.mxu1  ;;  %v6457_v1 = vpop.f32.mrf.mxu0 }
 0x129   : > { %v7611_v32 = vadd.f32 %v1397_v59, %v912_v38  ;;  %v923_v21 = vadd.f32 %v6391_v7, %v7399_v6  ;;  %v5476_v6 = vld [vmem:[%s6970_s23 + $0xc40] sm:$0xff]  ;;  %v5478_v59 = vld [vmem:[%s6970_s23 + $0xc58] sm:$0xff]  ;;  %v5576_v7 = vld [vmem:[%s6970_s23 + $0x1188] sm:$0xff] }
 0x12a   : > { %v914_v4 = vpop.f32.mrf.mxu1  ;;  %v1400_v26 = vpop.f32.mrf.mxu0  ;;  %v5575_v38 = vld [vmem:[%s6970_s23 + $0x1180] sm:$0xff] }
 0x12b   : > { %v7614_v58 = vadd.f32 %v6457_v1, %v923_v21  ;;  %v915_v0 = vadd.f32 %v914_v4, %v7403_v29  ;;  %v5573_v29 = vld [vmem:[%s6970_s23 + $0x1168] sm:$0xff] }
 0x12c   : > { %v6394_v28 = vpop.f32.mrf.mxu1  ;;  %v6460_v49 = vpop.f32.mrf.mxu0  ;;  %6557 = vmatmul.mubr.msk.bf16.gmra.mxu1 %vm353_vm2, %v1773_v57  ;;  %6623 = vmatmul.mubr.msk.bf16.gmra.mxu0 %vm353_vm2, %v2325_v34 }
 0x12d   : > { %v7621_v55 = vadd.f32 %v1400_v26, %v915_v0  ;;  %v936_v13 = vadd.f32 %v6394_v28, %v7407_v16  ;;  %6560 = vmatprep.mubr.msk.bf16.mxu1 %vm353_vm2, %v1774_v2  ;;  %6626 = vmatprep.mubr.msk.bf16.mxu0 %vm353_vm2, %v2326_v5  ;;  %v1775_v16 = vpack.c.bf16 %v5477_v24, %v5476_v6  ;;  %v5481_v24 = vld [vmem:[%s6970_s23 + $0xc70] sm:$0xff] }
 0x12e   : > { %v927_v63 = vpop.f32.mrf.mxu1  ;;  %v1413_v42 = vpop.f32.mrf.mxu0  ;;  %v2327_v2 = vpack.c.bf16 %v5574_v12, %v5573_v29  ;;  %v1776_v26 = vpack.c.bf16 %v5479_v14, %v5478_v59  ;;  %v2328_v0 = vpack.c.bf16 %v5576_v7, %v5575_v38  ;;  %v5578_v59 = vld [vmem:[%s6970_s23 + $0x1198] sm:$0xff]  ;;  %v5483_v7 = vld [vmem:[%s6970_s23 + $0xc88] sm:$0xff] }
 0x12f   : > { %v7632_v1 = vadd.f32 %v6460_v49, %v936_v13  ;;  %v928_v57 = vadd.f32 %v927_v63, %v7420_v25 }
 0x130   : > { %v6395_v34 = vpop.f32.mrf.mxu1  ;;  %v6461_v21 = vpop.f32.mrf.mxu0 }
 0x131   : > { %v7635_v4 = vadd.f32 %v1413_v42, %v928_v57  ;;  %v939_v5 = vadd.f32 %v6395_v34, %v7427_v33  ;;  %v5480_v33 = vld [vmem:[%s6970_s23 + $0xc68] sm:$0xff]  ;;  %v5482_v42 = vld [vmem:[%s6970_s23 + $0xc80] sm:$0xff]  ;;  %v5580_v34 = vld [vmem:[%s6970_s23 + $0x11b0] sm:$0xff] }
 0x132   : > { %v930_v28 = vpop.f32.mrf.mxu1  ;;  %v1416_v49 = vpop.f32.mrf.mxu0  ;;  %v5579_v57 = vld [vmem:[%s6970_s23 + $0x11a8] sm:$0xff] }
 0x133   : > { %v7638_v13 = vadd.f32 %v6461_v21, %v939_v5  ;;  %v931_v25 = vadd.f32 %v930_v28, %v7431_v44  ;;  %v5577_v44 = vld [vmem:[%s6970_s23 + $0x1190] sm:$0xff] }
 0x134   : > { %v6398_v63 = vpop.f32.mrf.mxu1  ;;  %v6464_v6 = vpop.f32.mrf.mxu0  ;;  %6561 = vmatmul.mubr.msk.bf16.gmra.mxu1 %vm353_vm2, %v1775_v16  ;;  %6627 = vmatmul.mubr.msk.bf16.gmra.mxu0 %vm353_vm2, %v2327_v2 }
 0x135   : > { %v7645_v29 = vadd.f32 %v1416_v49, %v931_v25  ;;  %v952_v12 = vadd.f32 %v6398_v63, %v7435_v47  ;;  %6564 = vmatprep.mubr.msk.bf16.mxu1 %vm353_vm2, %v1776_v26  ;;  %6630 = vmatprep.mubr.msk.bf16.mxu0 %vm353_vm2, %v2328_v0  ;;  %v1777_v47 = vpack.c.bf16 %v5481_v24, %v5480_v33  ;;  %v5485_v24 = vld [vmem:[%s6970_s23 + $0xc98] sm:$0xff] }
 0x136   : > { %v943_v14 = vpop.f32.mrf.mxu1  ;;  %v1429_v38 = vpop.f32.mrf.mxu0  ;;  %v2329_v26 = vpack.c.bf16 %v5578_v59, %v5577_v44  ;;  %v1778_v49 = vpack.c.bf16 %v5483_v7, %v5482_v42  ;;  %v2330_v25 = vpack.c.bf16 %v5580_v34, %v5579_v57  ;;  %v5582_v42 = vld [vmem:[%s6970_s23 + $0x11c0] sm:$0xff]  ;;  %v5487_v34 = vld [vmem:[%s6970_s23 + $0xcb0] sm:$0xff] }
 0x137   : > { %v7656_v21 = vadd.f32 %v6464_v6, %v952_v12  ;;  %v944_v16 = vadd.f32 %v943_v14, %v7448_v60 }
 0x138   : > { %v6399_v2 = vpop.f32.mrf.mxu1  ;;  %v6465_v5 = vpop.f32.mrf.mxu0 }
 0x139   : > { %v7659_v28 = vadd.f32 %v1429_v38, %v944_v16  ;;  %v955_v0 = vadd.f32 %v6399_v2, %v7455_v3  ;;  %v5484_v3 = vld [vmem:[%s6970_s23 + $0xc90] sm:$0xff]  ;;  %v5486_v38 = vld [vmem:[%s6970_s23 + $0xca8] sm:$0xff]  ;;  %v5584_v2 = vld [vmem:[%s6970_s23 + $0x11d8] sm:$0xff] }
 0x13a   : > { %v946_v63 = vpop.f32.mrf.mxu1  ;;  %v1432_v6 = vpop.f32.mrf.mxu0  ;;  %v5583_v16 = vld [vmem:[%s6970_s23 + $0x11d0] sm:$0xff] }
 0x13b   : > { %v7662_v12 = vadd.f32 %v6465_v5, %v955_v0  ;;  %v947_v60 = vadd.f32 %v946_v63, %v7459_v18  ;;  %v5581_v18 = vld [vmem:[%s6970_s23 + $0x11b8] sm:$0xff] }
 0x13c   : > { %v6402_v14 = vpop.f32.mrf.mxu1  ;;  %v6468_v33 = vpop.f32.mrf.mxu0  ;;  %6565 = vmatmul.mubr.msk.bf16.gmra.mxu1 %vm353_vm2, %v1777_v47  ;;  %6631 = vmatmul.mubr.msk.bf16.gmra.mxu0 %vm353_vm2, %v2329_v26 }
 0x13d   : > { %v7669_v44 = vadd.f32 %v1432_v6, %v947_v60  ;;  %v968_v59 = vadd.f32 %v6402_v14, %v7463_v20  ;;  %6568 = vmatprep.mubr.msk.bf16.mxu1 %vm353_vm2, %v1778_v49  ;;  %6634 = vmatprep.mubr.msk.bf16.mxu0 %vm353_vm2, %v2330_v25  ;;  %v1779_v20 = vpack.c.bf16 %v5485_v24, %v5484_v3  ;;  %v5489_v24 = vld [vmem:[%s6970_s23 + $0xcc0] sm:$0xff] }
 0x13e   : > { %v959_v7 = vpop.f32.mrf.mxu1  ;;  %v1445_v57 = vpop.f32.mrf.mxu0  ;;  %v2331_v49 = vpack.c.bf16 %v5582_v42, %v5581_v18  ;;  %v1780_v6 = vpack.c.bf16 %v5487_v34, %v5486_v38  ;;  %v2332_v60 = vpack.c.bf16 %v5584_v2, %v5583_v16  ;;  %v5586_v38 = vld [vmem:[%s6970_s23 + $0x11e8] sm:$0xff]  ;;  %v5621_v2 = vld [vmem:[%s6970_s23 + $0xa59] sm:$0xff] }
 0x13f   : > { %v7680_v5 = vadd.f32 %v6468_v33, %v968_v59  ;;  %v960_v47 = vadd.f32 %v959_v7, %v7476_v41 }
 0x140   : > { %v6403_v26 = vpop.f32.mrf.mxu1  ;;  %v6469_v0 = vpop.f32.mrf.mxu0 }
 0x141   : > { %v7683_v63 = vadd.f32 %v1445_v57, %v960_v47  ;;  %v971_v25 = vadd.f32 %v6403_v26, %v7483_v53  ;;  %v5488_v53 = vld [vmem:[%s6970_s23 + $0xcb8] sm:$0xff]  ;;  %v5719_v47 = vld [vmem:[%s6970_s23 + $0x28] sm:$0xff]  ;;  %v5720_v26 = vld [vmem:[%s6970_s23 + $0x30] sm:$0xff] }
 0x142   : > { %v962_v14 = vpop.f32.mrf.mxu1  ;;  %v1448_v33 = vpop.f32.mrf.mxu0  ;;  %v5620_v57 = vld [vmem:[%s6970_s23 + $0xa51] sm:$0xff] }
 0x143   : > { %v7686_v59 = vadd.f32 %v6469_v0, %v971_v25  ;;  %v963_v41 = vadd.f32 %v962_v14, %v7487_v8  ;;  %v5585_v8 = vld [vmem:[%s6970_s23 + $0x11e0] sm:$0xff] }
 0x144   : > { %v6406_v7 = vpop.f32.mrf.mxu1  ;;  %v6472_v3 = vpop.f32.mrf.mxu0  ;;  %6569 = vmatmul.mubr.msk.bf16.gmra.mxu1 %vm353_vm2, %v1779_v20  ;;  %6635 = vmatmul.mubr.msk.bf16.gmra.mxu0 %vm353_vm2, %v2331_v49  ;;  %v2333_v14 = vpack.c.bf16 %v5586_v38, %v5585_v8  ;;  %v5623_v8 = vld [vmem:[%s6970_s23 + $0xa69] sm:$0xff]  ;;  %v5722_v38 = vld [vmem:[%s6970_s23 + $0x40] sm:$0xff] }
 0x145   : > { %v7693_v18 = vadd.f32 %v1448_v33, %v963_v41  ;;  %v984_v42 = vadd.f32 %v6406_v7, %v7491_v11  ;;  %6572 = vmatprep.mubr.msk.bf16.mxu1 %vm353_vm2, %v1780_v6  ;;  %6638 = vmatprep.mubr.msk.bf16.mxu0 %vm353_vm2, %v2332_v60  ;;  %v1781_v11 = vpack.c.bf16 %v5489_v24, %v5488_v53 }
 0x146   : > { %v975_v34 = vpop.f32.mrf.mxu1  ;;  %v1461_v16 = vpop.f32.mrf.mxu0  ;;  %v2852_v33 = vpack.c.bf16 %v5621_v2, %v5620_v57  ;;  %v3405_v41 = vpack.c.bf16 %v5720_v26, %v5719_v47  ;;  %v5624_v2 = vld [vmem:[%s6970_s23 + $0xa79] sm:$0xff] }
 0x147   : > { %8890 = vst [vmem:[#allocation26_spill] sm:$0xff] %v7693_v18  ;;  %v7704_v0 = vadd.f32 %v6472_v3, %v984_v42  ;;  %v976_v20 = vadd.f32 %v975_v34, %v7504_v43 }
 0x148   : > { %v6407_v49 = vpop.f32.mrf.mxu1  ;;  %v6473_v25 = vpop.f32.mrf.mxu0 }
 0x149   : > { %v7707_v6 = vadd.f32 %v1461_v16, %v976_v20  ;;  %v987_v60 = vadd.f32 %v6407_v49, %v7511_v9  ;;  %v5622_v9 = vld [vmem:[%s6970_s23 + $0xa61] sm:$0xff]  ;;  %v5723_v49 = vld [vmem:[%s6970_s23 + $0x50] sm:$0xff] }
 0x14a   : > { %v978_v7 = vpop.f32.mrf.mxu1  ;;  %v1464_v18 = vpop.f32.mrf.mxu0  ;;  %v5625_v20 = vld [vmem:[%s6970_s23 + $0xa81] sm:$0xff] }
 0x14b   : > { %v7710_v3 = vadd.f32 %v6473_v25, %v987_v60  ;;  %v979_v43 = vadd.f32 %v978_v7, %v7515_v23  ;;  %v5721_v23 = vld [vmem:[%s6970_s23 + $0x38] sm:$0xff] }
 0x14c   : > { %v6410_v42 = vpop.f32.mrf.mxu1  ;;  %v6476_v34 = vpop.f32.mrf.mxu0  ;;  %6573 = vmatmul.mubr.msk.bf16.gmra.mxu1 %vm353_vm2, %v1781_v11  ;;  %6639 = vmatmul.mubr.msk.bf16.gmra.mxu0 %vm353_vm2, %v2333_v14  ;;  %v2853_v11 = vpack.c.bf16 %v5623_v8, %v5622_v9  ;;  %v3406_v14 = vpack.c.bf16 %v5722_v38, %v5721_v23  ;;  %v5627_v9 = vld [vmem:[%s6970_s23 + $0xa91] sm:$0xff]  ;;  %v5726_v38 = vld [vmem:[%s6970_s23 + $0x68] sm:$0xff] }
 0x14d   : > { %v7716_v53 = vadd.f32 %v1464_v18, %v979_v43  ;;  %v1000_v24 = vadd.f32 %v6410_v42, %v7519_v19  ;;  %6644 = vmatprep.mubr.msk.bf16.mxu1 %vm353_vm2, %v2852_v33  ;;  %6710 = vmatprep.mubr.msk.bf16.mxu0 %vm353_vm2, %v3405_v41  ;;  %v5724_v18 = vld [vmem:[%s6970_s23 + $0x58] sm:$0xff]  ;;  %v2854_v43 = vpack.c.bf16 %v5625_v20, %v5624_v2  ;;  %v5629_v20 = vld [vmem:[%s6970_s23 + $0xaa9] sm:$0xff] }
 0x14e   : > { %v991_v57 = vpop.f32.mrf.mxu1  ;;  %v1477_v16 = vpop.f32.mrf.mxu0 }
 0x14f   : > { %v7725_v47 = vadd.f32 %v6476_v34, %v1000_v24  ;;  %v992_v26 = vadd.f32 %v991_v57, %v7532_v40  ;;  %v3407_v40 = vpack.c.bf16 %v5724_v18, %v5723_v49  ;;  %v5727_v49 = vld [vmem:[%s6970_s23 + $0x78] sm:$0xff]  ;;  %v5728_v18 = vld [vmem:[%s6970_s23 + $0x80] sm:$0xff] }
 0x150   : > { %v6411_v25 = vpop.f32.mrf.mxu1  ;;  %v6477_v19 = vpop.f32.mrf.mxu0 }
 0x151   : > { %v7731_v60 = vadd.f32 %v1477_v16, %v992_v26  ;;  %v1003_v33 = vadd.f32 %v6411_v25, %v7539_v51  ;;  %v5626_v51 = vld [vmem:[%s6970_s23 + $0xa89] sm:$0xff]  ;;  %v5628_v16 = vld [vmem:[%s6970_s23 + $0xaa1] sm:$0xff] }
 0x152   : > { %v994_v41 = vpop.f32.mrf.mxu1  ;;  %v1480_v7 = vpop.f32.mrf.mxu0 }
 0x153   : > { %v7734_v42 = vadd.f32 %v6477_v19, %v1003_v33  ;;  %v995_v34 = vadd.f32 %v994_v41, %v7543_v48  ;;  %v5725_v48 = vld [vmem:[%s6970_s23 + $0x60] sm:$0xff]  ;;  %v2856_v41 = vpack.c.bf16 %v5629_v20, %v5628_v16 }
 0x154   : > { %v6414_v24 = vpop.f32.mrf.mxu1  ;;  %v6480_v57 = vpop.f32.mrf.mxu0  ;;  %6645 = vmatmul.mubr.msk.bf16.vlgmr.msra.gmra.mxu1 %vm353_vm2, %v2853_v11  ;;  %6711 = vmatmul.mubr.msk.bf16.vlgmr.msra.gmra.mxu0 %vm353_vm2, %v3406_v14  ;;  %v3408_v11 = vpack.c.bf16 %v5726_v38, %v5725_v48  ;;  %v5730_v48 = vld [vmem:[%s6970_s23 + $0x90] sm:$0xff]  ;;  %v5731_v20 = vld [vmem:[%s6970_s23 + $0xa0] sm:$0xff] }
 0x155   : > { %v7741_v8 = vadd.f32 %v1480_v7, %v995_v34  ;;  %v1016_v23 = vadd.f32 %v6414_v24, %v7309_v15  ;;  %6775 = vmatpush3.bf16.msra.mxu1 %v7337_v31  ;;  %6841 = vmatpush3.bf16.msra.mxu0 %v7348_v37  ;;  %v2855_v37 = vpack.c.bf16 %v5627_v9, %v5626_v51  ;;  %v5631_v51 = vld [vmem:[%s6970_s23 + $0xab9] sm:$0xff]  ;;  %v5632_v38 = vld [vmem:[%s6970_s23 + $0xac9] sm:$0xff] }
 0x156   : > { %v1007_v2 = vpop.f32.mrf.mxu1  ;;  %v1493_v26 = vpop.f32.mrf.mxu0  ;;  %6648 = vmatprep.mubr.msk.bf16.mxu1 %vm353_vm2, %v2854_v43  ;;  %6714 = vmatprep.mubr.msk.bf16.mxu0 %vm353_vm2, %v3407_v40  ;;  %v3409_v7 = vpack.c.bf16 %v5728_v18, %v5727_v49  ;;  %v5732_v49 = vld [vmem:[%s6970_s23 + $0xa8] sm:$0xff] }
 0x157   : > { %v7754_v25 = vadd.f32 %v6480_v57, %v1016_v23  ;;  %v1008_v15 = vadd.f32 %v1007_v2, %v7322_v22 }
 0x158   : > { %v6415_v19 = vpop.f32.mrf.mxu1  ;;  %v6481_v31 = vpop.f32.mrf.mxu0 }
 0x159   : > { %v7757_v14 = vadd.f32 %v1493_v26, %v1008_v15  ;;  %v1019_v33 = vadd.f32 %v6415_v19, %v7334_v30  ;;  %v5630_v30 = vld [vmem:[%s6970_s23 + $0xab1] sm:$0xff] }
 0x15a   : > { %v1010_v43 = vpop.f32.mrf.mxu1  ;;  %v1496_v40 = vpop.f32.mrf.mxu0  ;;  %v5633_v26 = vld [vmem:[%s6970_s23 + $0xad1] sm:$0xff] }
 0x15b   : > { %v7760_v34 = vadd.f32 %v6481_v31, %v1019_v33  ;;  %v1011_v22 = vadd.f32 %v1010_v43, %v7344_v36  ;;  %v5729_v36 = vld [vmem:[%s6970_s23 + $0x88] sm:$0xff] }
 0x15c   : > { %v6418_v24 = vpop.f32.mrf.mxu1  ;;  %v6484_v57 = vpop.f32.mrf.mxu0  ;;  %6649 = vmatmul.mubr.msk.bf16.gmra.mxu1 %vm353_vm2, %v2855_v37  ;;  %6715 = vmatmul.mubr.msk.bf16.gmra.mxu0 %vm353_vm2, %v3408_v11  ;;  %v3410_v37 = vpack.c.bf16 %v5730_v48, %v5729_v36  ;;  %v5734_v48 = vld [vmem:[%s6970_s23 + $0xb8] sm:$0xff] }
 0x15d   : > { %v7767_v9 = vadd.f32 %v1496_v40, %v1011_v22  ;;  %v1032_v23 = vadd.f32 %v6418_v24, %v7352_v39  ;;  %6652 = vmatprep.mubr.msk.bf16.mxu1 %vm353_vm2, %v2856_v41  ;;  %6718 = vmatprep.mubr.msk.bf16.mxu0 %vm353_vm2, %v3409_v7  ;;  %v2857_v39 = vpack.c.bf16 %v5631_v51, %v5630_v30  ;;  %v5635_v30 = vld [vmem:[%s6970_s23 + $0xae1] sm:$0xff] }
 0x15e   : > { %v1023_v16 = vpop.f32.mrf.mxu1  ;;  %v1509_v2 = vpop.f32.mrf.mxu0  ;;  %v2858_v41 = vpack.c.bf16 %v5633_v26, %v5632_v38  ;;  %v3411_v7 = vpack.c.bf16 %v5732_v49, %v5731_v20  ;;  %v5636_v38 = vld [vmem:[%s6970_s23 + $0xaf1] sm:$0xff]  ;;  %v5637_v26 = vld [vmem:[%s6970_s23 + $0xaf9] sm:$0xff]  ;;  %v5735_v20 = vld [vmem:[%s6970_s23 + $0xc8] sm:$0xff] }
 0x15f   : > { %v7778_v18 = vadd.f32 %v6484_v57, %v1032_v23  ;;  %v1024_v15 = vadd.f32 %v1023_v16, %v7365_v45  ;;  %v8891_v23 = vld [vmem:[#allocation2_spill] sm:$0xff]  ;;  %v5736_v49 = vld [vmem:[%s6970_s23 + $0xd0] sm:$0xff] }
 0x160   : > { %v6419_v19 = vpop.f32.mrf.mxu1  ;;  %v6485_v31 = vpop.f32.mrf.mxu0 }
 0x161   : > { %v7781_v11 = vadd.f32 %v1509_v2, %v1024_v15  ;;  %v1035_v33 = vadd.f32 %v6419_v19, %v7373_v50  ;;  %v5634_v50 = vld [vmem:[%s6970_s23 + $0xad9] sm:$0xff]  ;;  %v8893_v19 = vld [vmem:[#allocation3_spill] sm:$0xff] }
 0x162   : > { %v1026_v43 = vpop.f32.mrf.mxu1  ;;  %v1512_v40 = vpop.f32.mrf.mxu0 }
 0x163   : > { %v7784_v22 = vadd.f32 %v6485_v31, %v1035_v33  ;;  %v1027_v45 = vadd.f32 %v1026_v43, %v7377_v56  ;;  %v5733_v56 = vld [vmem:[%s6970_s23 + $0xb0] sm:$0xff]  ;;  %v2859_v33 = vpack.c.bf16 %v5635_v30, %v5634_v50  ;;  %v5638_v30 = vld [vmem:[%s6970_s23 + $0xb01] sm:$0xff] }
 0x164   : > { %v6422_v24 = vpop.f32.mrf.mxu1  ;;  %v6488_v57 = vpop.f32.mrf.mxu0  ;;  %6653 = vmatmul.mubr.msk.bf16.gmra.mxu1 %vm353_vm2, %v2857_v39  ;;  %6719 = vmatmul.mubr.msk.bf16.gmra.mxu0 %vm353_vm2, %v3410_v37 }
 0x165   : > { %v7791_v51 = vadd.f32 %v1512_v40, %v1027_v45  ;;  %v1048_v36 = vadd.f32 %v6422_v24, %v8891_v23  ;;  %6656 = vmatprep.mubr.msk.bf16.mxu1 %vm353_vm2, %v2858_v41  ;;  %6722 = vmatprep.mubr.msk.bf16.mxu0 %vm353_vm2, %v3411_v7  ;;  %v3412_v41 = vpack.c.bf16 %v5734_v48, %v5733_v56  ;;  %v8895_v7 = vld [vmem:[#allocation4_spill] sm:$0xff] }
 0x166   : > { %v1039_v16 = vpop.f32.mrf.mxu1  ;;  %v1525_v2 = vpop.f32.mrf.mxu0  ;;  %v2860_v45 = vpack.c.bf16 %v5637_v26, %v5636_v38  ;;  %v3413_v24 = vpack.c.bf16 %v5736_v49, %v5735_v20  ;;  %v5639_v56 = vld [vmem:[%s6970_s23 + $0xb09] sm:$0xff]  ;;  %v8899_v38 = vld [vmem:[#allocation6_spill] sm:$0xff]  ;;  %v5737_v26 = vld [vmem:[%s6970_s23 + $0xd8] sm:$0xff] }
 0x167   : > { %v7802_v15 = vadd.f32 %v6488_v57, %v1048_v36  ;;  %v1040_v31 = vadd.f32 %v1039_v16, %v8893_v19  ;;  %v8897_v16 = vld [vmem:[#allocation5_spill] sm:$0xff]  ;;  %v5738_v20 = vld [vmem:[%s6970_s23 + $0xe0] sm:$0xff] }
 0x168   : > { %v6423_v39 = vpop.f32.mrf.mxu1  ;;  %v6489_v37 = vpop.f32.mrf.mxu0  ;;  %v5640_v49 = vld [vmem:[%s6970_s23 + $0xb19] sm:$0xff] }
 0x169   : > { %8892 = vst [vmem:[#allocation2_spill] sm:$0xff] %v7802_v15  ;;  %v7805_v43 = vadd.f32 %v1525_v2, %v1040_v31  ;;  %v1051_v40 = vadd.f32 %v6423_v39, %v8895_v7  ;;  %v5739_v7 = vld [vmem:[%s6970_s23 + $0xf0] sm:$0xff] }
 0x16a   : > { %v1042_v23 = vpop.f32.mrf.mxu1  ;;  %v1528_v57 = vpop.f32.mrf.mxu0 }
 0x16b   : > { %8894 = vst [vmem:[#allocation3_spill] sm:$0xff] %v7805_v43  ;;  %v7808_v36 = vadd.f32 %v6489_v37, %v1051_v40  ;;  %v1043_v19 = vadd.f32 %v1042_v23, %v8897_v16  ;;  %v5641_v37 = vld [vmem:[%s6970_s23 + $0xb21] sm:$0xff] }
 0x16c   : > { %v6426_v15 = vpop.f32.mrf.mxu1  ;;  %v6492_v50 = vpop.f32.mrf.mxu0  ;;  %6657 = vmatmul.mubr.msk.bf16.gmra.mxu1 %vm353_vm2, %v2859_v33  ;;  %6723 = vmatmul.mubr.msk.bf16.gmra.mxu0 %vm353_vm2, %v3412_v41  ;;  %v5740_v33 = vld [vmem:[%s6970_s23 + $0xf8] sm:$0xff]  ;;  %v8901_v41 = vld [vmem:[#allocation7_spill] sm:$0xff] }
 0x16d   : > { %8896 = vst [vmem:[#allocation4_spill] sm:$0xff] %v7808_v36  ;;  %v7815_v48 = vadd.f32 %v1528_v57, %v1043_v19  ;;  %v1064_v2 = vadd.f32 %v6426_v15, %v8899_v38  ;;  %6660 = vmatprep.mubr.msk.bf16.mxu1 %vm353_vm2, %v2860_v45  ;;  %6726 = vmatprep.mubr.msk.bf16.mxu0 %vm353_vm2, %v3413_v24  ;;  %v8903_v24 = vld [vmem:[#allocation8_spill] sm:$0xff] }
 0x16e   : > { %v1055_v31 = vpop.f32.mrf.mxu1  ;;  %v1541_v39 = vpop.f32.mrf.mxu0  ;;  %v2861_v15 = vpack.c.bf16 %v5639_v56, %v5638_v30  ;;  %v3414_v45 = vpack.c.bf16 %v5738_v20, %v5737_v26  ;;  %v3415_v36 = vpack.c.bf16 %v5740_v33, %v5739_v7  ;;  %v5642_v56 = vld [vmem:[%s6970_s23 + $0xb29] sm:$0xff]  ;;  %v5643_v26 = vld [vmem:[%s6970_s23 + $0xb31] sm:$0xff]  ;;  %v5644_v7 = vld [vmem:[%s6970_s23 + $0xb41] sm:$0xff] }
 0x16f   : > { %8898 = vst [vmem:[#allocation5_spill] sm:$0xff] %v7815_v48  ;;  %v7826_v40 = vadd.f32 %v6492_v50, %v1064_v2  ;;  %v1056_v23 = vadd.f32 %v1055_v31, %v8901_v41  ;;  %v2862_v48 = vpack.c.bf16 %v5641_v37, %v5640_v49  ;;  %v8905_v31 = vld [vmem:[#allocation9_spill] sm:$0xff]  ;;  %v8907_v49 = vld [vmem:[#allocation10_spill] sm:$0xff]  ;;  %v5742_v37 = vld [vmem:[%s6970_s23 + $0x108] sm:$0xff] }
 0x170   : > { %v6427_v57 = vpop.f32.mrf.mxu1  ;;  %v6493_v16 = vpop.f32.mrf.mxu0 }
 0x171   : > { %8900 = vst [vmem:[#allocation6_spill] sm:$0xff] %v7826_v40  ;;  %v7829_v19 = vadd.f32 %v1541_v39, %v1056_v23  ;;  %v1067_v38 = vadd.f32 %v6427_v57, %v8903_v24  ;;  %v5645_v57 = vld [vmem:[%s6970_s23 + $0xb49] sm:$0xff] }
 0x172   : > { %v1058_v43 = vpop.f32.mrf.mxu1  ;;  %v1544_v50 = vpop.f32.mrf.mxu0 }
 0x173   : > { %8902 = vst [vmem:[#allocation7_spill] sm:$0xff] %v7829_v19  ;;  %v7832_v2 = vadd.f32 %v6493_v16, %v1067_v38  ;;  %v1059_v41 = vadd.f32 %v1058_v43, %v8905_v31  ;;  %v5741_v43 = vld [vmem:[%s6970_s23 + $0x100] sm:$0xff]  ;;  %v5743_v16 = vld [vmem:[%s6970_s23 + $0x118] sm:$0xff] }
 0x174   : > { %v6430_v40 = vpop.f32.mrf.mxu1  ;;  %v6496_v30 = vpop.f32.mrf.mxu0  ;;  %6661 = vmatmul.mubr.msk.bf16.gmra.mxu1 %vm353_vm2, %v2861_v15  ;;  %6727 = vmatmul.mubr.msk.bf16.gmra.mxu0 %vm353_vm2, %v3414_v45  ;;  %v5744_v15 = vld [vmem:[%s6970_s23 + $0x120] sm:$0xff]  ;;  %v8909_v45 = vld [vmem:[#allocation11_spill] sm:$0xff] }
 0x175   : > { %8904 = vst [vmem:[#allocation8_spill] sm:$0xff] %v7832_v2  ;;  %v7839_v20 = vadd.f32 %v1544_v50, %v1059_v41  ;;  %v1080_v39 = vadd.f32 %v6430_v40, %v8907_v49  ;;  %6664 = vmatprep.mubr.msk.bf16.mxu1 %vm353_vm2, %v2862_v48  ;;  %6730 = vmatprep.mubr.msk.bf16.mxu0 %vm353_vm2, %v3415_v36  ;;  %v8911_v36 = vld [vmem:[#allocation12_spill] sm:$0xff] }
 0x176   : > { %v1071_v33 = vpop.f32.mrf.mxu1  ;;  %v1557_v23 = vpop.f32.mrf.mxu0  ;;  %v2863_v40 = vpack.c.bf16 %v5643_v26, %v5642_v56  ;;  %v3416_v48 = vpack.c.bf16 %v5742_v37, %v5741_v43  ;;  %v3417_v2 = vpack.c.bf16 %v5744_v15, %v5743_v16  ;;  %v5646_v26 = vld [vmem:[%s6970_s23 + $0xb51] sm:$0xff]  ;;  %v5647_v43 = vld [vmem:[%s6970_s23 + $0xb59] sm:$0xff]  ;;  %v5648_v16 = vld [vmem:[%s6970_s23 + $0xb69] sm:$0xff] }
 0x177   : > { %8906 = vst [vmem:[#allocation9_spill] sm:$0xff] %v7839_v20  ;;  %v7850_v24 = vadd.f32 %v6496_v30, %v1080_v39  ;;  %v1072_v38 = vadd.f32 %v1071_v33, %v8909_v45  ;;  %v2864_v20 = vpack.c.bf16 %v5645_v57, %v5644_v7  ;;  %v8913_v33 = vld [vmem:[#allocation13_spill] sm:$0xff]  ;;  %v8915_v7 = vld [vmem:[#allocation14_spill] sm:$0xff]  ;;  %v5746_v57 = vld [vmem:[%s6970_s23 + $0x130] sm:$0xff] }
 0x178   : > { %v6431_v50 = vpop.f32.mrf.mxu1  ;;  %v6497_v31 = vpop.f32.mrf.mxu0 }
 0x179   : > { %8908 = vst [vmem:[#allocation10_spill] sm:$0xff] %v7850_v24  ;;  %v7853_v41 = vadd.f32 %v1557_v23, %v1072_v38  ;;  %v1083_v49 = vadd.f32 %v6431_v50, %v8911_v36  ;;  %v5649_v50 = vld [vmem:[%s6970_s23 + $0xb71] sm:$0xff] }
 0x17a   : > { %v1074_v19 = vpop.f32.mrf.mxu1  ;;  %v1560_v30 = vpop.f32.mrf.mxu0 }
 0x17b   : > { %8910 = vst [vmem:[#allocation11_spill] sm:$0xff] %v7853_v41  ;;  %v7856_v39 = vadd.f32 %v6497_v31, %v1083_v49  ;;  %v1075_v45 = vadd.f32 %v1074_v19, %v8913_v33  ;;  %v5745_v19 = vld [vmem:[%s6970_s23 + $0x128] sm:$0xff]  ;;  %v5747_v31 = vld [vmem:[%s6970_s23 + $0x140] sm:$0xff] }
 0x17c   : > { %v6434_v24 = vpop.f32.mrf.mxu1  ;;  %v6500_v56 = vpop.f32.mrf.mxu0  ;;  %6665 = vmatmul.mubr.msk.bf16.gmra.mxu1 %vm353_vm2, %v2863_v40  ;;  %6731 = vmatmul.mubr.msk.bf16.gmra.mxu0 %vm353_vm2, %v3416_v48  ;;  %v5748_v40 = vld [vmem:[%s6970_s23 + $0x148] sm:$0xff] }
 0x17d   : > { %8912 = vst [vmem:[#allocation12_spill] sm:$0xff] %v7856_v39  ;;  %v7863_v37 = vadd.f32 %v1560_v30, %v1075_v45  ;;  %v1096_v23 = vadd.f32 %v6434_v24, %v8915_v7  ;;  %6668 = vmatprep.mubr.msk.bf16.mxu1 %vm353_vm2, %v2864_v20  ;;  %6734 = vmatprep.mubr.msk.bf16.mxu0 %vm353_vm2, %v3417_v2  ;;  %v8917_v48 = vld [vmem:[#allocation15_spill] sm:$0xff]  ;;  %v8919_v2 = vld [vmem:[#allocation16_spill] sm:$0xff] }
 0x17e   : > { %v1087_v15 = vpop.f32.mrf.mxu1  ;;  %v1573_v38 = vpop.f32.mrf.mxu0  ;;  %v2865_v24 = vpack.c.bf16 %v5647_v43, %v5646_v26  ;;  %v3418_v20 = vpack.c.bf16 %v5746_v57, %v5745_v19  ;;  %v3419_v39 = vpack.c.bf16 %v5748_v40, %v5747_v31  ;;  %v5650_v43 = vld [vmem:[%s6970_s23 + $0xb79] sm:$0xff]  ;;  %v5651_v19 = vld [vmem:[%s6970_s23 + $0xb81] sm:$0xff]  ;;  %v5652_v31 = vld [vmem:[%s6970_s23 + $0xb91] sm:$0xff] }
 0x17f   : > { %8914 = vst [vmem:[#allocation13_spill] sm:$0xff] %v7863_v37  ;;  %v7874_v36 = vadd.f32 %v6500_v56, %v1096_v23  ;;  %v1088_v49 = vadd.f32 %v1087_v15, %v8917_v48  ;;  %v2866_v37 = vpack.c.bf16 %v5649_v50, %v5648_v16  ;;  %v8921_v15 = vld [vmem:[#allocation17_spill] sm:$0xff]  ;;  %v8923_v16 = vld [vmem:[#allocation18_spill] sm:$0xff] }
 0x180   : > { %v6435_v30 = vpop.f32.mrf.mxu1  ;;  %v6501_v33 = vpop.f32.mrf.mxu0  ;;  %v5750_v50 = vld [vmem:[%s6970_s23 + $0x158] sm:$0xff] }
 0x181   : > { %8916 = vst [vmem:[#allocation14_spill] sm:$0xff] %v7874_v36  ;;  %v7877_v45 = vadd.f32 %v1573_v38, %v1088_v49  ;;  %v1099_v7 = vadd.f32 %v6435_v30, %v8919_v2  ;;  %v5653_v30 = vld [vmem:[%s6970_s23 + $0xb99] sm:$0xff] }
 0x182   : > { %v1090_v41 = vpop.f32.mrf.mxu1  ;;  %v1576_v56 = vpop.f32.mrf.mxu0 }
 0x183   : > { %8918 = vst [vmem:[#allocation15_spill] sm:$0xff] %v7877_v45  ;;  %v7880_v23 = vadd.f32 %v6501_v33, %v1099_v7  ;;  %v1091_v48 = vadd.f32 %v1090_v41, %v8921_v15  ;;  %v5749_v41 = vld [vmem:[%s6970_s23 + $0x150] sm:$0xff]  ;;  %v5751_v33 = vld [vmem:[%s6970_s23 + $0x168] sm:$0xff] }
 0x184   : > { %v6438_v36 = vpop.f32.mrf.mxu1  ;;  %v6504_v26 = vpop.f32.mrf.mxu0  ;;  %6669 = vmatmul.mubr.msk.bf16.gmra.mxu1 %vm353_vm2, %v2865_v24  ;;  %6735 = vmatmul.mubr.msk.bf16.gmra.mxu0 %vm353_vm2, %v3418_v20  ;;  %v5752_v24 = vld [vmem:[%s6970_s23 + $0x170] sm:$0xff]  ;;  %v8925_v20 = vld [vmem:[#allocation19_spill] sm:$0xff] }
 0x185   : > { %8920 = vst [vmem:[#allocation16_spill] sm:$0xff] %v7880_v23  ;;  %v7887_v57 = vadd.f32 %v1576_v56, %v1091_v48  ;;  %v1112_v38 = vadd.f32 %v6438_v36, %v8923_v16  ;;  %6672 = vmatprep.mubr.msk.bf16.mxu1 %vm353_vm2, %v2866_v37  ;;  %6738 = vmatprep.mubr.msk.bf16.mxu0 %vm353_vm2, %v3419_v39  ;;  %v8927_v39 = vld [vmem:[#allocation20_spill] sm:$0xff] }
 0x186   : > { %v1103_v40 = vpop.f32.mrf.mxu1  ;;  %v1589_v49 = vpop.f32.mrf.mxu0  ;;  %v2867_v36 = vpack.c.bf16 %v5651_v19, %v5650_v43  ;;  %v3420_v37 = vpack.c.bf16 %v5750_v50, %v5749_v41  ;;  %v3421_v23 = vpack.c.bf16 %v5752_v24, %v5751_v33  ;;  %v5654_v19 = vld [vmem:[%s6970_s23 + $0xba1] sm:$0xff]  ;;  %v5655_v41 = vld [vmem:[%s6970_s23 + $0xba9] sm:$0xff]  ;;  %v5656_v33 = vld [vmem:[%s6970_s23 + $0xbb9] sm:$0xff] }
 0x187   : > { %8922 = vst [vmem:[#allocation17_spill] sm:$0xff] %v7887_v57  ;;  %v7898_v2 = vadd.f32 %v6504_v26, %v1112_v38  ;;  %v1104_v7 = vadd.f32 %v1103_v40, %v8925_v20  ;;  %v2868_v57 = vpack.c.bf16 %v5653_v30, %v5652_v31  ;;  %v8929_v40 = vld [vmem:[#allocation21_spill] sm:$0xff]  ;;  %v8931_v31 = vld [vmem:[#allocation22_spill] sm:$0xff] }
 0x188   : > { %v6439_v56 = vpop.f32.mrf.mxu1  ;;  %v6505_v15 = vpop.f32.mrf.mxu0  ;;  %v5754_v30 = vld [vmem:[%s6970_s23 + $0x180] sm:$0xff] }
 0x189   : > { %8924 = vst [vmem:[#allocation18_spill] sm:$0xff] %v7898_v2  ;;  %v7901_v48 = vadd.f32 %v1589_v49, %v1104_v7  ;;  %v1115_v16 = vadd.f32 %v6439_v56, %v8927_v39  ;;  %v5657_v56 = vld [vmem:[%s6970_s23 + $0xbc1] sm:$0xff] }
 0x18a   : > { %v1106_v45 = vpop.f32.mrf.mxu1  ;;  %v1592_v26 = vpop.f32.mrf.mxu0 }
 0x18b   : > { %8926 = vst [vmem:[#allocation19_spill] sm:$0xff] %v7901_v48  ;;  %v7904_v38 = vadd.f32 %v6505_v15, %v1115_v16  ;;  %v1107_v20 = vadd.f32 %v1106_v45, %v8929_v40  ;;  %v5753_v45 = vld [vmem:[%s6970_s23 + $0x178] sm:$0xff]  ;;  %v5755_v15 = vld [vmem:[%s6970_s23 + $0x190] sm:$0xff] }
 0x18c   : > { %v6442_v2 = vpop.f32.mrf.mxu1  ;;  %v6508_v43 = vpop.f32.mrf.mxu0  ;;  %6673 = vmatmul.mubr.msk.bf16.gmra.mxu1 %vm353_vm2, %v2867_v36  ;;  %6739 = vmatmul.mubr.msk.bf16.gmra.mxu0 %vm353_vm2, %v3420_v37  ;;  %v5756_v36 = vld [vmem:[%s6970_s23 + $0x198] sm:$0xff]  ;;  %v8933_v37 = vld [vmem:[#allocation23_spill] sm:$0xff] }
 0x18d   : > { %8928 = vst [vmem:[#allocation20_spill] sm:$0xff] %v7904_v38  ;;  %v7911_v50 = vadd.f32 %v1592_v26, %v1107_v20  ;;  %v1128_v49 = vadd.f32 %v6442_v2, %v8931_v31  ;;  %6676 = vmatprep.mubr.msk.bf16.mxu1 %vm353_vm2, %v2868_v57  ;;  %6742 = vmatprep.mubr.msk.bf16.mxu0 %vm353_vm2, %v3421_v23  ;;  %v8934_v23 = vld [vmem:[#allocation24_spill] sm:$0xff] }
 0x18e   : > { %v1119_v24 = vpop.f32.mrf.mxu1  ;;  %v1605_v7 = vpop.f32.mrf.mxu0  ;;  %v2869_v2 = vpack.c.bf16 %v5655_v41, %v5654_v19  ;;  %v3422_v57 = vpack.c.bf16 %v5754_v30, %v5753_v45  ;;  %v3423_v38 = vpack.c.bf16 %v5756_v36, %v5755_v15  ;;  %v5658_v41 = vld [vmem:[%s6970_s23 + $0xbc9] sm:$0xff]  ;;  %v5659_v45 = vld [vmem:[%s6970_s23 + $0xbd1] sm:$0xff] }
 0x18f   : > { %8930 = vst [vmem:[#allocation21_spill] sm:$0xff] %v7911_v50  ;;  %v7922_v39 = vadd.f32 %v6508_v43, %v1128_v49  ;;  %v1120_v16 = vadd.f32 %v1119_v24, %v8933_v37  ;;  %v2870_v50 = vpack.c.bf16 %v5657_v56, %v5656_v33  ;;  %v8935_v24 = vld [vmem:[#allocation25_spill] sm:$0xff]  ;;  %v5660_v56 = vld [vmem:[%s6970_s23 + $0xbe1] sm:$0xff] }
 0x190   : > { %v6443_v26 = vpop.f32.mrf.mxu1  ;;  %v6509_v40 = vpop.f32.mrf.mxu0 }
 0x191   : > { %8932 = vst [vmem:[#allocation22_spill] sm:$0xff] %v7922_v39  ;;  %v7925_v20 = vadd.f32 %v1605_v7, %v1120_v16  ;;  %v1131_v31 = vadd.f32 %v6443_v26, %v8934_v23  ;;  %v5758_v7 = vld [vmem:[%s6970_s23 + $0x1a8] sm:$0xff]  ;;  %v5759_v26 = vld [vmem:[%s6970_s23 + $0x1b8] sm:$0xff] }
 0x192   : > { %v1122_v48 = vpop.f32.mrf.mxu1  ;;  %v1608_v43 = vpop.f32.mrf.mxu0  ;;  %v5661_v16 = vld [vmem:[%s6970_s23 + $0xbe9] sm:$0xff] }
 0x193   : > { %v7928_v49 = vadd.f32 %v6509_v40, %v1131_v31  ;;  %v1123_v37 = vadd.f32 %v1122_v48, %v8935_v24  ;;  %v5757_v48 = vld [vmem:[%s6970_s23 + $0x1a0] sm:$0xff] }
 0x194   : > { %v6514_v39 = vpop.f32.mrf.mxu1  ;;  %v6580_v19 = vpop.f32.mrf.mxu0  ;;  %6677 = vmatmul.mubr.msk.bf16.gmra.mxu1 %vm353_vm2, %v2869_v2  ;;  %6743 = vmatmul.mubr.msk.bf16.gmra.mxu0 %vm353_vm2, %v3422_v57  ;;  %v5760_v40 = vld [vmem:[%s6970_s23 + $0x1c0] sm:$0xff] }
 0x195   : > { %v7935_v30 = vadd.f32 %v1608_v43, %v1123_v37  ;;  %v2174_v33 = vadd.f32 %v6514_v39, %v7560_v17  ;;  %6680 = vmatprep.mubr.msk.bf16.mxu1 %vm353_vm2, %v2870_v50  ;;  %6746 = vmatprep.mubr.msk.bf16.mxu0 %vm353_vm2, %v3423_v38  ;;  %v2871_v17 = vpack.c.bf16 %v5659_v45, %v5658_v41  ;;  %v5663_v45 = vld [vmem:[%s6970_s23 + $0xbf9] sm:$0xff] }
 0x196   : > { %v1917_v15 = vpop.f32.mrf.mxu1  ;;  %v2469_v36 = vpop.f32.mrf.mxu0  ;;  %v3424_v50 = vpack.c.bf16 %v5758_v7, %v5757_v48  ;;  %v2872_v43 = vpack.c.bf16 %v5661_v16, %v5660_v56  ;;  %v3425_v24 = vpack.c.bf16 %v5760_v40, %v5759_v26  ;;  %v5762_v56 = vld [vmem:[%s6970_s23 + $0x1d0] sm:$0xff] }
 0x197   : > { %v7946_v2 = vadd.f32 %v6580_v19, %v2174_v33  ;;  %v2172_v57 = vadd.f32 %v1917_v15, %v7563_v62  ;;  %v5665_v40 = vld [vmem:[%s6970_s23 + $0xc11] sm:$0xff] }
 0x198   : > { %v6515_v23 = vpop.f32.mrf.mxu1  ;;  %v6581_v31 = vpop.f32.mrf.mxu0 }
 0x199   : > { %v7949_v39 = vadd.f32 %v2469_v36, %v2172_v57  ;;  %v2175_v38 = vadd.f32 %v6515_v23, %v7566_v27  ;;  %v5662_v27 = vld [vmem:[%s6970_s23 + $0xbf1] sm:$0xff]  ;;  %v5664_v36 = vld [vmem:[%s6970_s23 + $0xc09] sm:$0xff]  ;;  %v5763_v57 = vld [vmem:[%s6970_s23 + $0x1e0] sm:$0xff] }
 0x19a   : > { %v1920_v37 = vpop.f32.mrf.mxu1  ;;  %v2472_v19 = vpop.f32.mrf.mxu0  ;;  %v5764_v23 = vld [vmem:[%s6970_s23 + $0x1e8] sm:$0xff] }
 0x19b   : > { %v7952_v33 = vadd.f32 %v6581_v31, %v2175_v38  ;;  %v2173_v62 = vadd.f32 %v1920_v37, %v7573_v10  ;;  %v5761_v10 = vld [vmem:[%s6970_s23 + $0x1c8] sm:$0xff] }
 0x19c   : > { %v6518_v15 = vpop.f32.mrf.mxu1  ;;  %v6584_v41 = vpop.f32.mrf.mxu0  ;;  %6681 = vmatmul.mubr.msk.bf16.gmra.mxu1 %vm353_vm2, %v2871_v17  ;;  %6747 = vmatmul.mubr.msk.bf16.gmra.mxu0 %vm353_vm2, %v3424_v50 }
 0x19d   : > { %v7959_v48 = vadd.f32 %v2472_v19, %v2173_v62  ;;  %v2178_v7 = vadd.f32 %v6518_v15, %v7584_v54  ;;  %6684 = vmatprep.mubr.msk.bf16.mxu1 %vm353_vm2, %v2872_v43  ;;  %6750 = vmatprep.mubr.msk.bf16.mxu0 %vm353_vm2, %v3425_v24  ;;  %v2873_v54 = vpack.c.bf16 %v5663_v45, %v5662_v27  ;;  %v5667_v45 = vld [vmem:[%s6970_s23 + $0xc21] sm:$0xff] }
 0x19e   : > { %v1933_v16 = vpop.f32.mrf.mxu1  ;;  %v2485_v26 = vpop.f32.mrf.mxu0  ;;  %v3426_v43 = vpack.c.bf16 %v5762_v56, %v5761_v10  ;;  %v2874_v19 = vpack.c.bf16 %v5665_v40, %v5664_v36  ;;  %v3427_v62 = vpack.c.bf16 %v5764_v23, %v5763_v57  ;;  %v5766_v36 = vld [vmem:[%s6970_s23 + $0x1f8] sm:$0xff] }
 0x19f   : > { %v7970_v31 = vadd.f32 %v6584_v41, %v2178_v7  ;;  %v2176_v17 = vadd.f32 %v1933_v16, %v7587_v61  ;;  %v5669_v23 = vld [vmem:[%s6970_s23 + $0xc39] sm:$0xff] }
 0x1a0   : > { %v6519_v50 = vpop.f32.mrf.mxu1  ;;  %v6585_v38 = vpop.f32.mrf.mxu0 }
 0x1a1   : > { %v7973_v37 = vadd.f32 %v2485_v26, %v2176_v17  ;;  %v2179_v24 = vadd.f32 %v6519_v50, %v7590_v52  ;;  %v5666_v52 = vld [vmem:[%s6970_s23 + $0xc19] sm:$0xff]  ;;  %v5668_v26 = vld [vmem:[%s6970_s23 + $0xc31] sm:$0xff]  ;;  %v5767_v17 = vld [vmem:[%s6970_s23 + $0x208] sm:$0xff] }
 0x1a2   : > { %v1936_v15 = vpop.f32.mrf.mxu1  ;;  %v2488_v41 = vpop.f32.mrf.mxu0  ;;  %v5768_v50 = vld [vmem:[%s6970_s23 + $0x210] sm:$0xff] }
 0x1a3   : > { %v7976_v7 = vadd.f32 %v6585_v38, %v2179_v24  ;;  %v2177_v61 = vadd.f32 %v1936_v15, %v7597_v35  ;;  %v5765_v35 = vld [vmem:[%s6970_s23 + $0x1f0] sm:$0xff] }
 0x1a4   : > { %v6522_v16 = vpop.f32.mrf.mxu1  ;;  %v6588_v27 = vpop.f32.mrf.mxu0  ;;  %6685 = vmatmul.mubr.msk.bf16.gmra.mxu1 %vm353_vm2, %v2873_v54  ;;  %6751 = vmatmul.mubr.msk.bf16.gmra.mxu0 %vm353_vm2, %v3426_v43 }
 0x1a5   : > { %v7983_v10 = vadd.f32 %v2488_v41, %v2177_v61  ;;  %v2182_v56 = vadd.f32 %v6522_v16, %v7608_v46  ;;  %6688 = vmatprep.mubr.msk.bf16.mxu1 %vm353_vm2, %v2874_v19  ;;  %6754 = vmatprep.mubr.msk.bf16.mxu0 %vm353_vm2, %v3427_v62  ;;  %v2875_v46 = vpack.c.bf16 %v5667_v45, %v5666_v52  ;;  %v5671_v45 = vld [vmem:[%s6970_s23 + $0xc49] sm:$0xff] }
 0x1a6   : > { %v1949_v40 = vpop.f32.mrf.mxu1  ;;  %v2501_v57 = vpop.f32.mrf.mxu0  ;;  %v3428_v19 = vpack.c.bf16 %v5766_v36, %v5765_v35  ;;  %v2876_v41 = vpack.c.bf16 %v5669_v23, %v5668_v26  ;;  %v3429_v61 = vpack.c.bf16 %v5768_v50, %v5767_v17  ;;  %v5770_v26 = vld [vmem:[%s6970_s23 + $0x220] sm:$0xff] }
 0x1a7   : > { %v7994_v38 = vadd.f32 %v6588_v27, %v2182_v56  ;;  %v2180_v54 = vadd.f32 %v1949_v40, %v7611_v32  ;;  %v5673_v50 = vld [vmem:[%s6970_s23 + $0xc61] sm:$0xff] }
 0x1a8   : > { %v6523_v43 = vpop.f32.mrf.mxu1  ;;  %v6589_v24 = vpop.f32.mrf.mxu0 }
 0x1a9   : > { %v7997_v15 = vadd.f32 %v2501_v57, %v2180_v54  ;;  %v2183_v62 = vadd.f32 %v6523_v43, %v7614_v58  ;;  %v5670_v58 = vld [vmem:[%s6970_s23 + $0xc41] sm:$0xff]  ;;  %v5672_v57 = vld [vmem:[%s6970_s23 + $0xc59] sm:$0xff]  ;;  %v5771_v54 = vld [vmem:[%s6970_s23 + $0x230] sm:$0xff] }
 0x1aa   : > { %v1952_v16 = vpop.f32.mrf.mxu1  ;;  %v2504_v27 = vpop.f32.mrf.mxu0  ;;  %v5772_v43 = vld [vmem:[%s6970_s23 + $0x238] sm:$0xff] }
 0x1ab   : > { %v8000_v56 = vadd.f32 %v6589_v24, %v2183_v62  ;;  %v2181_v32 = vadd.f32 %v1952_v16, %v7621_v55  ;;  %v5769_v55 = vld [vmem:[%s6970_s23 + $0x218] sm:$0xff] }
 0x1ac   : > { %v6526_v40 = vpop.f32.mrf.mxu1  ;;  %v6592_v52 = vpop.f32.mrf.mxu0  ;;  %6689 = vmatmul.mubr.msk.bf16.gmra.mxu1 %vm353_vm2, %v2875_v46  ;;  %6755 = vmatmul.mubr.msk.bf16.gmra.mxu0 %vm353_vm2, %v3428_v19 }
 0x1ad   : > { %v8007_v35 = vadd.f32 %v2504_v27, %v2181_v32  ;;  %v2186_v36 = vadd.f32 %v6526_v40, %v7632_v1  ;;  %6692 = vmatprep.mubr.msk.bf16.mxu1 %vm353_vm2, %v2876_v41  ;;  %6758 = vmatprep.mubr.msk.bf16.mxu0 %vm353_vm2, %v3429_v61  ;;  %v2877_v1 = vpack.c.bf16 %v5671_v45, %v5670_v58  ;;  %v5675_v45 = vld [vmem:[%s6970_s23 + $0xc71] sm:$0xff] }
 0x1ae   : > { %v1965_v23 = vpop.f32.mrf.mxu1  ;;  %v2517_v17 = vpop.f32.mrf.mxu0  ;;  %v3430_v41 = vpack.c.bf16 %v5770_v26, %v5769_v55  ;;  %v2878_v27 = vpack.c.bf16 %v5673_v50, %v5672_v57  ;;  %v3431_v32 = vpack.c.bf16 %v5772_v43, %v5771_v54  ;;  %v5774_v57 = vld [vmem:[%s6970_s23 + $0x248] sm:$0xff] }
 0x1af   : > { %v8018_v24 = vadd.f32 %v6592_v52, %v2186_v36  ;;  %v2184_v46 = vadd.f32 %v1965_v23, %v7635_v4  ;;  %v5677_v43 = vld [vmem:[%s6970_s23 + $0xc89] sm:$0xff] }
 0x1b0   : > { %v6527_v19 = vpop.f32.mrf.mxu1  ;;  %v6593_v62 = vpop.f32.mrf.mxu0 }
 0x1b1   : > { %v8021_v16 = vadd.f32 %v2517_v17, %v2184_v46  ;;  %v2187_v61 = vadd.f32 %v6527_v19, %v7638_v13  ;;  %v5674_v13 = vld [vmem:[%s6970_s23 + $0xc69] sm:$0xff]  ;;  %v5676_v17 = vld [vmem:[%s6970_s23 + $0xc81] sm:$0xff]  ;;  %v5775_v46 = vld [vmem:[%s6970_s23 + $0x258] sm:$0xff] }
 0x1b2   : > { %v1968_v40 = vpop.f32.mrf.mxu1  ;;  %v2520_v52 = vpop.f32.mrf.mxu0  ;;  %v5776_v19 = vld [vmem:[%s6970_s23 + $0x260] sm:$0xff] }
 0x1b3   : > { %v8024_v36 = vadd.f32 %v6593_v62, %v2187_v61  ;;  %v2185_v4 = vadd.f32 %v1968_v40, %v7645_v29  ;;  %v5773_v29 = vld [vmem:[%s6970_s23 + $0x240] sm:$0xff] }
 0x1b4   : > { %v6530_v23 = vpop.f32.mrf.mxu1  ;;  %v6596_v58 = vpop.f32.mrf.mxu0  ;;  %6693 = vmatmul.mubr.msk.bf16.gmra.mxu1 %vm353_vm2, %v2877_v1  ;;  %6759 = vmatmul.mubr.msk.bf16.gmra.mxu0 %vm353_vm2, %v3430_v41 }
 0x1b5   : > { %v8031_v55 = vadd.f32 %v2520_v52, %v2185_v4  ;;  %v2190_v26 = vadd.f32 %v6530_v23, %v7656_v21  ;;  %6696 = vmatprep.mubr.msk.bf16.mxu1 %vm353_vm2, %v2878_v27  ;;  %6762 = vmatprep.mubr.msk.bf16.mxu0 %vm353_vm2, %v3431_v32  ;;  %v2879_v21 = vpack.c.bf16 %v5675_v45, %v5674_v13  ;;  %v5679_v45 = vld [vmem:[%s6970_s23 + $0xc99] sm:$0xff] }
 0x1b6   : > { %v1981_v50 = vpop.f32.mrf.mxu1  ;;  %v2533_v54 = vpop.f32.mrf.mxu0  ;;  %v3432_v27 = vpack.c.bf16 %v5774_v57, %v5773_v29  ;;  %v2880_v52 = vpack.c.bf16 %v5677_v43, %v5676_v17  ;;  %v3433_v4 = vpack.c.bf16 %v5776_v19, %v5775_v46  ;;  %v5778_v17 = vld [vmem:[%s6970_s23 + $0x270] sm:$0xff] }
 0x1b7   : > { %v8042_v62 = vadd.f32 %v6596_v58, %v2190_v26  ;;  %v2188_v1 = vadd.f32 %v1981_v50, %v7659_v28  ;;  %v5681_v19 = vld [vmem:[%s6970_s23 + $0xcb1] sm:$0xff] }
 0x1b8   : > { %v6531_v41 = vpop.f32.mrf.mxu1  ;;  %v6597_v61 = vpop.f32.mrf.mxu0 }
 0x1b9   : > { %v8045_v40 = vadd.f32 %v2533_v54, %v2188_v1  ;;  %v2191_v32 = vadd.f32 %v6531_v41, %v7662_v12  ;;  %v5678_v12 = vld [vmem:[%s6970_s23 + $0xc91] sm:$0xff]  ;;  %v5680_v54 = vld [vmem:[%s6970_s23 + $0xca9] sm:$0xff]  ;;  %v5779_v1 = vld [vmem:[%s6970_s23 + $0x280] sm:$0xff] }
 0x1ba   : > { %v1984_v23 = vpop.f32.mrf.mxu1  ;;  %v2536_v58 = vpop.f32.mrf.mxu0  ;;  %v5780_v41 = vld [vmem:[%s6970_s23 + $0x288] sm:$0xff] }
 0x1bb   : > { %v8048_v26 = vadd.f32 %v6597_v61, %v2191_v32  ;;  %v2189_v28 = vadd.f32 %v1984_v23, %v7669_v44  ;;  %v5777_v44 = vld [vmem:[%s6970_s23 + $0x268] sm:$0xff] }
 0x1bc   : > { %v6534_v50 = vpop.f32.mrf.mxu1  ;;  %v6600_v13 = vpop.f32.mrf.mxu0  ;;  %6697 = vmatmul.mubr.msk.bf16.gmra.mxu1 %vm353_vm2, %v2879_v21  ;;  %6763 = vmatmul.mubr.msk.bf16.gmra.mxu0 %vm353_vm2, %v3432_v27 }
 0x1bd   : > { %v8055_v29 = vadd.f32 %v2536_v58, %v2189_v28  ;;  %v2194_v57 = vadd.f32 %v6534_v50, %v7680_v5  ;;  %6700 = vmatprep.mubr.msk.bf16.mxu1 %vm353_vm2, %v2880_v52  ;;  %6766 = vmatprep.mubr.msk.bf16.mxu0 %vm353_vm2, %v3433_v4  ;;  %v2881_v5 = vpack.c.bf16 %v5679_v45, %v5678_v12  ;;  %v5683_v45 = vld [vmem:[%s6970_s23 + $0xcc1] sm:$0xff] }
 0x1be   : > { %v1997_v43 = vpop.f32.mrf.mxu1  ;;  %v2549_v46 = vpop.f32.mrf.mxu0  ;;  %v3434_v52 = vpack.c.bf16 %v5778_v17, %v5777_v44  ;;  %v2882_v58 = vpack.c.bf16 %v5681_v19, %v5680_v54  ;;  %v3435_v28 = vpack.c.bf16 %v5780_v41, %v5779_v1  ;;  %v5781_v54 = vld [vmem:[%s6970_s23 + $0x290] sm:$0xff] }
 0x1bf   : > { %v8066_v61 = vadd.f32 %v6600_v13, %v2194_v57  ;;  %v2192_v21 = vadd.f32 %v1997_v43, %v7683_v63  ;;  %v8937_v63 = vld [vmem:[#allocation26_spill] sm:$0xff]  ;;  %v5818_v19 = vld [vmem:[%s6970_s23 + $0x550] sm:$0xff] }
 0x1c0   : > { %v6535_v27 = vpop.f32.mrf.mxu1  ;;  %v6601_v32 = vpop.f32.mrf.mxu0 }
 0x1c1   : > { %8936 = vst [vmem:[#allocation23_spill] sm:$0xff] %v8066_v61  ;;  %v8069_v23 = vadd.f32 %v2549_v46, %v2192_v21  ;;  %v2195_v4 = vadd.f32 %v6535_v27, %v7686_v59  ;;  %v5682_v59 = vld [vmem:[%s6970_s23 + $0xcb9] sm:$0xff]  ;;  %v5915_v27 = vld [vmem:[%s6970_s23 + $0x29] sm:$0xff] }
 0x1c2   : > { %v2000_v50 = vpop.f32.mrf.mxu1  ;;  %v2552_v13 = vpop.f32.mrf.mxu0  ;;  %v5782_v46 = vld [vmem:[%s6970_s23 + $0x298] sm:$0xff] }
 0x1c3   : > { %v8072_v57 = vadd.f32 %v6601_v32, %v2195_v4  ;;  %v2193_v43 = vadd.f32 %v2000_v50, %v8937_v63  ;;  %v5819_v21 = vld [vmem:[%s6970_s23 + $0x558] sm:$0xff] }
 0x1c4   : > { %v6538_v61 = vpop.f32.mrf.mxu1  ;;  %v6604_v12 = vpop.f32.mrf.mxu0  ;;  %6701 = vmatmul.mubr.msk.bf16.gmra.mxu1 %vm353_vm2, %v2881_v5  ;;  %6767 = vmatmul.mubr.msk.bf16.gmra.mxu0 %vm353_vm2, %v3434_v52  ;;  %v5916_v32 = vld [vmem:[%s6970_s23 + $0x31] sm:$0xff] }
 0x1c5   : > { %v8079_v44 = vadd.f32 %v2552_v13, %v2193_v43  ;;  %v2198_v17 = vadd.f32 %v6538_v61, %v7704_v0  ;;  %6704 = vmatprep.mubr.msk.bf16.mxu1 %vm353_vm2, %v2882_v58  ;;  %6770 = vmatprep.mubr.msk.bf16.mxu0 %vm353_vm2, %v3435_v28  ;;  %v2883_v0 = vpack.c.bf16 %v5683_v45, %v5682_v59  ;;  %v5821_v45 = vld [vmem:[%s6970_s23 + $0x568] sm:$0xff] }
 0x1c6   : > { %v2013_v1 = vpop.f32.mrf.mxu1  ;;  %v2565_v41 = vpop.f32.mrf.mxu0  ;;  %v3436_v61 = vpack.c.bf16 %v5782_v46, %v5781_v54  ;;  %v3957_v13 = vpack.c.bf16 %v5819_v21, %v5818_v19  ;;  %v4507_v63 = vpack.c.bf16 %v5916_v32, %v5915_v27  ;;  %v5918_v19 = vld [vmem:[%s6970_s23 + $0x41] sm:$0xff] }
 0x1c7   : > { %v8090_v5 = vadd.f32 %v6604_v12, %v2198_v17  ;;  %v2196_v52 = vadd.f32 %v2013_v1, %v7707_v6  ;;  %v5823_v32 = vld [vmem:[%s6970_s23 + $0x580] sm:$0xff] }
 0x1c8   : > { %v6539_v4 = vpop.f32.mrf.mxu1  ;;  %v6605_v50 = vpop.f32.mrf.mxu0 }
 0x1c9   : > { %v8093_v58 = vadd.f32 %v2565_v41, %v2196_v52  ;;  %v2199_v28 = vadd.f32 %v6539_v4, %v7710_v3  ;;  %v5820_v3 = vld [vmem:[%s6970_s23 + $0x560] sm:$0xff]  ;;  %v5822_v41 = vld [vmem:[%s6970_s23 + $0x578] sm:$0xff] }
 0x1ca   : > { %v2016_v43 = vpop.f32.mrf.mxu1  ;;  %v2568_v12 = vpop.f32.mrf.mxu0  ;;  %v5919_v52 = vld [vmem:[%s6970_s23 + $0x51] sm:$0xff]  ;;  %v5920_v4 = vld [vmem:[%s6970_s23 + $0x59] sm:$0xff] }
 0x1cb   : > { %v8096_v17 = vadd.f32 %v6605_v50, %v2199_v28  ;;  %v2197_v6 = vadd.f32 %v2016_v43, %v7716_v53  ;;  %v5917_v53 = vld [vmem:[%s6970_s23 + $0x39] sm:$0xff] }
 0x1cc   : > { %v6542_v1 = vpop.f32.mrf.mxu1  ;;  %v6608_v59 = vpop.f32.mrf.mxu0  ;;  %6705 = vmatmul.mubr.msk.bf16.gmra.mxu1 %vm353_vm2, %v2883_v0  ;;  %6771 = vmatmul.mubr.msk.bf16.gmra.mxu0 %vm353_vm2, %v3436_v61 }
 0x1cd   : > { %v8103_v54 = vadd.f32 %v2568_v12, %v2197_v6  ;;  %v2202_v46 = vadd.f32 %v6542_v1, %v7725_v47  ;;  %6776 = vmatprep.mubr.msk.bf16.mxu1 %vm353_vm2, %v3957_v13  ;;  %6842 = vmatprep.mubr.msk.bf16.mxu0 %vm353_vm2, %v4507_v63  ;;  %v3958_v47 = vpack.c.bf16 %v5821_v45, %v5820_v3  ;;  %v5825_v45 = vld [vmem:[%s6970_s23 + $0x590] sm:$0xff] }
 0x1ce   : > { %v2029_v21 = vpop.f32.mrf.mxu1  ;;  %v2581_v27 = vpop.f32.mrf.mxu0  ;;  %v4508_v13 = vpack.c.bf16 %v5918_v19, %v5917_v53  ;;  %v3959_v12 = vpack.c.bf16 %v5823_v32, %v5822_v41  ;;  %v4509_v6 = vpack.c.bf16 %v5920_v4, %v5919_v52  ;;  %v5922_v41 = vld [vmem:[%s6970_s23 + $0x69] sm:$0xff] }
 0x1cf   : > { %v8114_v50 = vadd.f32 %v6608_v59, %v2202_v46  ;;  %v2200_v0 = vadd.f32 %v2029_v21, %v7731_v60  ;;  %v5827_v4 = vld [vmem:[%s6970_s23 + $0x5a8] sm:$0xff] }
 0x1d0   : > { %v6543_v61 = vpop.f32.mrf.mxu1  ;;  %v6609_v28 = vpop.f32.mrf.mxu0 }
 0x1d1   : > { %v8117_v43 = vadd.f32 %v2581_v27, %v2200_v0  ;;  %v2203_v63 = vadd.f32 %v6543_v61, %v7734_v42  ;;  %v5824_v42 = vld [vmem:[%s6970_s23 + $0x588] sm:$0xff]  ;;  %v5826_v27 = vld [vmem:[%s6970_s23 + $0x5a0] sm:$0xff] }
 0x1d2   : > { %v2032_v1 = vpop.f32.mrf.mxu1  ;;  %v2584_v59 = vpop.f32.mrf.mxu0  ;;  %v5923_v0 = vld [vmem:[%s6970_s23 + $0x79] sm:$0xff]  ;;  %v5924_v61 = vld [vmem:[%s6970_s23 + $0x81] sm:$0xff] }
 0x1d3   : > { %v8120_v46 = vadd.f32 %v6609_v28, %v2203_v63  ;;  %v2201_v60 = vadd.f32 %v2032_v1, %v7741_v8  ;;  %v5921_v8 = vld [vmem:[%s6970_s23 + $0x61] sm:$0xff] }
 0x1d4   : > { %v6546_v21 = vpop.f32.mrf.mxu1  ;;  %v6612_v3 = vpop.f32.mrf.mxu0  ;;  %6777 = vmatmul.mubr.msk.bf16.vlgmr.msra.gmra.mxu1 %vm353_vm2, %v3958_v47  ;;  %6843 = vmatmul.mubr.msk.bf16.vlgmr.msra.gmra.mxu0 %vm353_vm2, %v4508_v13 }
 0x1d5   : > { %v8127_v53 = vadd.f32 %v2584_v59, %v2201_v60  ;;  %v2206_v19 = vadd.f32 %v6546_v21, %v7754_v25  ;;  %6780 = vmatprep.mubr.msk.bf16.mxu1 %vm353_vm2, %v3959_v12  ;;  %6846 = vmatprep.mubr.msk.bf16.mxu0 %vm353_vm2, %v4509_v6  ;;  %v3960_v25 = vpack.c.bf16 %v5825_v45, %v5824_v42  ;;  %v5829_v45 = vld [vmem:[%s6970_s23 + $0x5b8] sm:$0xff] }
 0x1d6   : > { %v2045_v32 = vpop.f32.mrf.mxu1  ;;  %v2597_v52 = vpop.f32.mrf.mxu0  ;;  %v4510_v12 = vpack.c.bf16 %v5922_v41, %v5921_v8  ;;  %v3961_v59 = vpack.c.bf16 %v5827_v4, %v5826_v27  ;;  %v4511_v60 = vpack.c.bf16 %v5924_v61, %v5923_v0  ;;  %v5926_v27 = vld [vmem:[%s6970_s23 + $0x91] sm:$0xff] }
 0x1d7   : > { %v8138_v28 = vadd.f32 %v6612_v3, %v2206_v19  ;;  %v2204_v47 = vadd.f32 %v2045_v32, %v7757_v14  ;;  %v5831_v61 = vld [vmem:[%s6970_s23 + $0x5d0] sm:$0xff] }
 0x1d8   : > { %v6547_v13 = vpop.f32.mrf.mxu1  ;;  %v6613_v63 = vpop.f32.mrf.mxu0 }
 0x1d9   : > { %v8141_v1 = vadd.f32 %v2597_v52, %v2204_v47  ;;  %v2207_v6 = vadd.f32 %v6547_v13, %v7760_v34  ;;  %v5828_v34 = vld [vmem:[%s6970_s23 + $0x5b0] sm:$0xff]  ;;  %v5830_v52 = vld [vmem:[%s6970_s23 + $0x5c8] sm:$0xff] }
 0x1da   : > { %v2048_v21 = vpop.f32.mrf.mxu1  ;;  %v2600_v3 = vpop.f32.mrf.mxu0  ;;  %v5927_v47 = vld [vmem:[%s6970_s23 + $0xa1] sm:$0xff]  ;;  %v5928_v13 = vld [vmem:[%s6970_s23 + $0xa9] sm:$0xff] }
 0x1db   : > { %v8144_v19 = vadd.f32 %v6613_v63, %v2207_v6  ;;  %v2205_v14 = vadd.f32 %v2048_v21, %v7767_v9  ;;  %v5925_v9 = vld [vmem:[%s6970_s23 + $0x89] sm:$0xff] }
 0x1dc   : > { %v6550_v32 = vpop.f32.mrf.mxu1  ;;  %v6616_v42 = vpop.f32.mrf.mxu0  ;;  %6781 = vmatmul.mubr.msk.bf16.gmra.mxu1 %vm353_vm2, %v3960_v25  ;;  %6847 = vmatmul.mubr.msk.bf16.gmra.mxu0 %vm353_vm2, %v4510_v12 }
 0x1dd   : > { %v8151_v8 = vadd.f32 %v2600_v3, %v2205_v14  ;;  %v2210_v41 = vadd.f32 %v6550_v32, %v7778_v18  ;;  %6784 = vmatprep.mubr.msk.bf16.mxu1 %vm353_vm2, %v3961_v59  ;;  %6850 = vmatprep.mubr.msk.bf16.mxu0 %vm353_vm2, %v4511_v60  ;;  %v3962_v18 = vpack.c.bf16 %v5829_v45, %v5828_v34  ;;  %v5833_v45 = vld [vmem:[%s6970_s23 + $0x5e0] sm:$0xff] }
 0x1de   : > { %v2061_v4 = vpop.f32.mrf.mxu1  ;;  %v2613_v0 = vpop.f32.mrf.mxu0  ;;  %v4512_v59 = vpack.c.bf16 %v5926_v27, %v5925_v9  ;;  %v3963_v3 = vpack.c.bf16 %v5831_v61, %v5830_v52  ;;  %v4513_v14 = vpack.c.bf16 %v5928_v13, %v5927_v47  ;;  %v8941_v27 = vld [vmem:[#allocation2_spill] sm:$0xff]  ;;  %v5834_v61 = vld [vmem:[%s6970_s23 + $0x5f0] sm:$0xff] }
 0x1df   : > { %v8162_v63 = vadd.f32 %v6616_v42, %v2210_v41  ;;  %v2208_v25 = vadd.f32 %v2061_v4, %v7781_v11 }
 0x1e0   : > { %v6551_v12 = vpop.f32.mrf.mxu1  ;;  %v6617_v6 = vpop.f32.mrf.mxu0 }
 0x1e1   : > { %v8165_v21 = vadd.f32 %v2613_v0, %v2208_v25  ;;  %v2211_v60 = vadd.f32 %v6551_v12, %v7784_v22  ;;  %v5832_v22 = vld [vmem:[%s6970_s23 + $0x5d8] sm:$0xff]  ;;  %v5931_v12 = vld [vmem:[%s6970_s23 + $0xc9] sm:$0xff] }
 0x1e2   : > { %v2064_v32 = vpop.f32.mrf.mxu1  ;;  %v2616_v42 = vpop.f32.mrf.mxu0  ;;  %v5930_v0 = vld [vmem:[%s6970_s23 + $0xb9] sm:$0xff] }
 0x1e3   : > { %8938 = vst [vmem:[#allocation24_spill] sm:$0xff] %v8165_v21  ;;  %v8168_v41 = vadd.f32 %v6617_v6, %v2211_v60  ;;  %v2209_v11 = vadd.f32 %v2064_v32, %v7791_v51  ;;  %v5929_v51 = vld [vmem:[%s6970_s23 + $0xb1] sm:$0xff] }
 0x1e4   : > { %v6554_v4 = vpop.f32.mrf.mxu1  ;;  %v6620_v34 = vpop.f32.mrf.mxu0  ;;  %6785 = vmatmul.mubr.msk.bf16.gmra.mxu1 %vm353_vm2, %v3962_v18  ;;  %6851 = vmatmul.mubr.msk.bf16.gmra.mxu0 %vm353_vm2, %v4512_v59  ;;  %v5835_v25 = vld [vmem:[%s6970_s23 + $0x5f8] sm:$0xff]  ;;  %v8943_v59 = vld [vmem:[#allocation3_spill] sm:$0xff] }
 0x1e5   : > { %8939 = vst [vmem:[#allocation25_spill] sm:$0xff] %v8168_v41  ;;  %v8175_v9 = vadd.f32 %v2616_v42, %v2209_v11  ;;  %v2214_v52 = vadd.f32 %v6554_v4, %v8941_v27  ;;  %6788 = vmatprep.mubr.msk.bf16.mxu1 %vm353_vm2, %v3963_v3  ;;  %6854 = vmatprep.mubr.msk.bf16.mxu0 %vm353_vm2, %v4513_v14  ;;  %v5932_v6 = vld [vmem:[%s6970_s23 + $0xd1] sm:$0xff] }
 0x1e6   : > { %v2077_v47 = vpop.f32.mrf.mxu1  ;;  %v2629_v13 = vpop.f32.mrf.mxu0  ;;  %v3964_v11 = vpack.c.bf16 %v5833_v45, %v5832_v22  ;;  %v4514_v3 = vpack.c.bf16 %v5930_v0, %v5929_v51  ;;  %v8945_v14 = vld [vmem:[#allocation4_spill] sm:$0xff]  ;;  %v4515_v41 = vpack.c.bf16 %v5932_v6, %v5931_v12  ;;  %v5836_v45 = vld [vmem:[%s6970_s23 + $0x600] sm:$0xff]  ;;  %v5837_v51 = vld [vmem:[%s6970_s23 + $0x608] sm:$0xff] }
 0x1e7   : > { %8940 = vst [vmem:[#allocation26_spill] sm:$0xff] %v8175_v9  ;;  %v8186_v18 = vadd.f32 %v6620_v34, %v2214_v52  ;;  %v2212_v60 = vadd.f32 %v2077_v47, %v8943_v59  ;;  %v3965_v9 = vpack.c.bf16 %v5835_v25, %v5834_v61  ;;  %v8947_v47 = vld [vmem:[#allocation5_spill] sm:$0xff]  ;;  %v8949_v61 = vld [vmem:[#allocation6_spill] sm:$0xff] }
 0x1e8   : > { %v6555_v32 = vpop.f32.mrf.mxu1  ;;  %v6621_v42 = vpop.f32.mrf.mxu0  ;;  %v5934_v25 = vld [vmem:[%s6970_s23 + $0xe1] sm:$0xff]  ;;  %v5838_v12 = vld [vmem:[%s6970_s23 + $0x618] sm:$0xff] }
 0x1e9   : > { %8942 = vst [vmem:[#allocation2_spill] sm:$0xff] %v8186_v18  ;;  %v8189_v4 = vadd.f32 %v2629_v13, %v2212_v60  ;;  %v2215_v27 = vadd.f32 %v6555_v32, %v8945_v14  ;;  %v5839_v32 = vld [vmem:[%s6970_s23 + $0x620] sm:$0xff] }
 0x1ea   : > { %v2080_v21 = vpop.f32.mrf.mxu1  ;;  %v2632_v34 = vpop.f32.mrf.mxu0 }
 0x1eb   : > { %8944 = vst [vmem:[#allocation3_spill] sm:$0xff] %v8189_v4  ;;  %v8192_v52 = vadd.f32 %v6621_v42, %v2215_v27  ;;  %v2213_v59 = vadd.f32 %v2080_v21, %v8947_v47  ;;  %v5933_v21 = vld [vmem:[%s6970_s23 + $0xd9] sm:$0xff]  ;;  %v5935_v42 = vld [vmem:[%s6970_s23 + $0xf1] sm:$0xff] }
 0x1ec   : > { %v6558_v18 = vpop.f32.mrf.mxu1  ;;  %v6624_v22 = vpop.f32.mrf.mxu0  ;;  %6789 = vmatmul.mubr.msk.bf16.gmra.mxu1 %vm353_vm2, %v3964_v11  ;;  %6855 = vmatmul.mubr.msk.bf16.gmra.mxu0 %vm353_vm2, %v4514_v3  ;;  %v5936_v11 = vld [vmem:[%s6970_s23 + $0xf9] sm:$0xff]  ;;  %v8951_v3 = vld [vmem:[#allocation7_spill] sm:$0xff] }
 0x1ed   : > { %8946 = vst [vmem:[#allocation4_spill] sm:$0xff] %v8192_v52  ;;  %v8199_v0 = vadd.f32 %v2632_v34, %v2213_v59  ;;  %v2218_v13 = vadd.f32 %v6558_v18, %v8949_v61  ;;  %6792 = vmatprep.mubr.msk.bf16.mxu1 %vm353_vm2, %v3965_v9  ;;  %6858 = vmatprep.mubr.msk.bf16.mxu0 %vm353_vm2, %v4515_v41  ;;  %v8953_v41 = vld [vmem:[#allocation8_spill] sm:$0xff] }
 0x1ee   : > { %v2093_v6 = vpop.f32.mrf.mxu1  ;;  %v2645_v60 = vpop.f32.mrf.mxu0  ;;  %v3966_v18 = vpack.c.bf16 %v5837_v51, %v5836_v45  ;;  %v4516_v9 = vpack.c.bf16 %v5934_v25, %v5933_v21  ;;  %v4517_v52 = vpack.c.bf16 %v5936_v11, %v5935_v42  ;;  %v5840_v51 = vld [vmem:[%s6970_s23 + $0x628] sm:$0xff]  ;;  %v5841_v21 = vld [vmem:[%s6970_s23 + $0x630] sm:$0xff]  ;;  %v5842_v42 = vld [vmem:[%s6970_s23 + $0x640] sm:$0xff] }
 0x1ef   : > { %8948 = vst [vmem:[#allocation5_spill] sm:$0xff] %v8199_v0  ;;  %v8210_v14 = vadd.f32 %v6624_v22, %v2218_v13  ;;  %v2216_v27 = vadd.f32 %v2093_v6, %v8951_v3  ;;  %v3967_v0 = vpack.c.bf16 %v5839_v32, %v5838_v12  ;;  %v8955_v6 = vld [vmem:[#allocation9_spill] sm:$0xff]  ;;  %v8957_v12 = vld [vmem:[#allocation10_spill] sm:$0xff]  ;;  %v5938_v32 = vld [vmem:[%s6970_s23 + $0x109] sm:$0xff] }
 0x1f0   : > { %v6559_v34 = vpop.f32.mrf.mxu1  ;;  %v6625_v47 = vpop.f32.mrf.mxu0 }
 0x1f1   : > { %8950 = vst [vmem:[#allocation6_spill] sm:$0xff] %v8210_v14  ;;  %v8213_v59 = vadd.f32 %v2645_v60, %v2216_v27  ;;  %v2219_v61 = vadd.f32 %v6559_v34, %v8953_v41  ;;  %v5843_v34 = vld [vmem:[%s6970_s23 + $0x648] sm:$0xff] }
 0x1f2   : > { %v2096_v4 = vpop.f32.mrf.mxu1  ;;  %v2648_v22 = vpop.f32.mrf.mxu0 }
 0x1f3   : > { %8952 = vst [vmem:[#allocation7_spill] sm:$0xff] %v8213_v59  ;;  %v8216_v13 = vadd.f32 %v6625_v47, %v2219_v61  ;;  %v2217_v3 = vadd.f32 %v2096_v4, %v8955_v6  ;;  %v5937_v4 = vld [vmem:[%s6970_s23 + $0x101] sm:$0xff]  ;;  %v5939_v47 = vld [vmem:[%s6970_s23 + $0x119] sm:$0xff] }
 0x1f4   : > { %v6562_v14 = vpop.f32.mrf.mxu1  ;;  %v6628_v45 = vpop.f32.mrf.mxu0  ;;  %6793 = vmatmul.mubr.msk.bf16.gmra.mxu1 %vm353_vm2, %v3966_v18  ;;  %6859 = vmatmul.mubr.msk.bf16.gmra.mxu0 %vm353_vm2, %v4516_v9  ;;  %v5940_v18 = vld [vmem:[%s6970_s23 + $0x121] sm:$0xff] }
 0x1f5   : > { %8954 = vst [vmem:[#allocation8_spill] sm:$0xff] %v8216_v13  ;;  %v8223_v25 = vadd.f32 %v2648_v22, %v2217_v3  ;;  %v2222_v60 = vadd.f32 %v6562_v14, %v8957_v12  ;;  %6796 = vmatprep.mubr.msk.bf16.mxu1 %vm353_vm2, %v3967_v0  ;;  %6862 = vmatprep.mubr.msk.bf16.mxu0 %vm353_vm2, %v4517_v52  ;;  %v8959_v9 = vld [vmem:[#allocation11_spill] sm:$0xff]  ;;  %v8961_v52 = vld [vmem:[#allocation12_spill] sm:$0xff] }
 0x1f6   : > { %v2109_v11 = vpop.f32.mrf.mxu1  ;;  %v2661_v27 = vpop.f32.mrf.mxu0  ;;  %v3968_v14 = vpack.c.bf16 %v5841_v21, %v5840_v51  ;;  %v4518_v0 = vpack.c.bf16 %v5938_v32, %v5937_v4  ;;  %v4519_v13 = vpack.c.bf16 %v5940_v18, %v5939_v47  ;;  %v5844_v21 = vld [vmem:[%s6970_s23 + $0x650] sm:$0xff]  ;;  %v5845_v4 = vld [vmem:[%s6970_s23 + $0x658] sm:$0xff]  ;;  %v5846_v47 = vld [vmem:[%s6970_s23 + $0x668] sm:$0xff] }
 0x1f7   : > { %8956 = vst [vmem:[#allocation9_spill] sm:$0xff] %v8223_v25  ;;  %v8234_v41 = vadd.f32 %v6628_v45, %v2222_v60  ;;  %v2220_v61 = vadd.f32 %v2109_v11, %v8959_v9  ;;  %v3969_v25 = vpack.c.bf16 %v5843_v34, %v5842_v42  ;;  %v8963_v11 = vld [vmem:[#allocation13_spill] sm:$0xff]  ;;  %v8965_v42 = vld [vmem:[#allocation14_spill] sm:$0xff] }
 0x1f8   : > { %v6563_v22 = vpop.f32.mrf.mxu1  ;;  %v6629_v6 = vpop.f32.mrf.mxu0  ;;  %v5942_v34 = vld [vmem:[%s6970_s23 + $0x131] sm:$0xff] }
 0x1f9   : > { %8958 = vst [vmem:[#allocation10_spill] sm:$0xff] %v8234_v41  ;;  %v8237_v3 = vadd.f32 %v2661_v27, %v2220_v61  ;;  %v2223_v12 = vadd.f32 %v6563_v22, %v8961_v52  ;;  %v5847_v22 = vld [vmem:[%s6970_s23 + $0x670] sm:$0xff] }
 0x1fa   : > { %v2112_v59 = vpop.f32.mrf.mxu1  ;;  %v2664_v45 = vpop.f32.mrf.mxu0 }
 0x1fb   : > { %8960 = vst [vmem:[#allocation11_spill] sm:$0xff] %v8237_v3  ;;  %v8240_v60 = vadd.f32 %v6629_v6, %v2223_v12  ;;  %v2221_v9 = vadd.f32 %v2112_v59, %v8963_v11  ;;  %v5941_v59 = vld [vmem:[%s6970_s23 + $0x129] sm:$0xff]  ;;  %v5943_v6 = vld [vmem:[%s6970_s23 + $0x141] sm:$0xff] }
 0x1fc   : > { %v6566_v41 = vpop.f32.mrf.mxu1  ;;  %v6632_v51 = vpop.f32.mrf.mxu0  ;;  %6797 = vmatmul.mubr.msk.bf16.gmra.mxu1 %vm353_vm2, %v3968_v14  ;;  %6863 = vmatmul.mubr.msk.bf16.gmra.mxu0 %vm353_vm2, %v4518_v0  ;;  %v5944_v14 = vld [vmem:[%s6970_s23 + $0x149] sm:$0xff] }
 0x1fd   : > { %8962 = vst [vmem:[#allocation12_spill] sm:$0xff] %v8240_v60  ;;  %v8247_v32 = vadd.f32 %v2664_v45, %v2221_v9  ;;  %v2226_v27 = vadd.f32 %v6566_v41, %v8965_v42  ;;  %6800 = vmatprep.mubr.msk.bf16.mxu1 %vm353_vm2, %v3969_v25  ;;  %6866 = vmatprep.mubr.msk.bf16.mxu0 %vm353_vm2, %v4519_v13  ;;  %v8967_v0 = vld [vmem:[#allocation15_spill] sm:$0xff]  ;;  %v8969_v13 = vld [vmem:[#allocation16_spill] sm:$0xff] }
 0x1fe   : > { %v2125_v18 = vpop.f32.mrf.mxu1  ;;  %v2677_v61 = vpop.f32.mrf.mxu0  ;;  %v3970_v41 = vpack.c.bf16 %v5845_v4, %v5844_v21  ;;  %v4520_v25 = vpack.c.bf16 %v5942_v34, %v5941_v59  ;;  %v4521_v60 = vpack.c.bf16 %v5944_v14, %v5943_v6  ;;  %v5848_v4 = vld [vmem:[%s6970_s23 + $0x678] sm:$0xff]  ;;  %v5849_v59 = vld [vmem:[%s6970_s23 + $0x680] sm:$0xff]  ;;  %v5850_v6 = vld [vmem:[%s6970_s23 + $0x690] sm:$0xff] }
 0x1ff   : > { %8964 = vst [vmem:[#allocation13_spill] sm:$0xff] %v8247_v32  ;;  %v8258_v52 = vadd.f32 %v6632_v51, %v2226_v27  ;;  %v2224_v12 = vadd.f32 %v2125_v18, %v8967_v0  ;;  %v3971_v32 = vpack.c.bf16 %v5847_v22, %v5846_v47  ;;  %v8971_v18 = vld [vmem:[#allocation17_spill] sm:$0xff]  ;;  %v8973_v47 = vld [vmem:[#allocation18_spill] sm:$0xff] }
 0x200   : > { %v6567_v45 = vpop.f32.mrf.mxu1  ;;  %v6633_v11 = vpop.f32.mrf.mxu0  ;;  %v5946_v22 = vld [vmem:[%s6970_s23 + $0x159] sm:$0xff] }
 0x201   : > { %8966 = vst [vmem:[#allocation14_spill] sm:$0xff] %v8258_v52  ;;  %v8261_v9 = vadd.f32 %v2677_v61, %v2224_v12  ;;  %v2227_v42 = vadd.f32 %v6567_v45, %v8969_v13  ;;  %v5851_v45 = vld [vmem:[%s6970_s23 + $0x698] sm:$0xff] }
 0x202   : > { %v2128_v3 = vpop.f32.mrf.mxu1  ;;  %v2680_v51 = vpop.f32.mrf.mxu0 }
 0x203   : > { %8968 = vst [vmem:[#allocation15_spill] sm:$0xff] %v8261_v9  ;;  %v8264_v27 = vadd.f32 %v6633_v11, %v2227_v42  ;;  %v2225_v0 = vadd.f32 %v2128_v3, %v8971_v18  ;;  %v5945_v3 = vld [vmem:[%s6970_s23 + $0x151] sm:$0xff]  ;;  %v5947_v11 = vld [vmem:[%s6970_s23 + $0x169] sm:$0xff] }
 0x204   : > { %v6570_v52 = vpop.f32.mrf.mxu1  ;;  %v6636_v21 = vpop.f32.mrf.mxu0  ;;  %6801 = vmatmul.mubr.msk.bf16.gmra.mxu1 %vm353_vm2, %v3970_v41  ;;  %6867 = vmatmul.mubr.msk.bf16.gmra.mxu0 %vm353_vm2, %v4520_v25  ;;  %v5948_v41 = vld [vmem:[%s6970_s23 + $0x171] sm:$0xff]  ;;  %v8975_v25 = vld [vmem:[#allocation19_spill] sm:$0xff] }
 0x205   : > { %8970 = vst [vmem:[#allocation16_spill] sm:$0xff] %v8264_v27  ;;  %v8271_v34 = vadd.f32 %v2680_v51, %v2225_v0  ;;  %v2230_v61 = vadd.f32 %v6570_v52, %v8973_v47  ;;  %6804 = vmatprep.mubr.msk.bf16.mxu1 %vm353_vm2, %v3971_v32  ;;  %6870 = vmatprep.mubr.msk.bf16.mxu0 %vm353_vm2, %v4521_v60  ;;  %v8976_v60 = vld [vmem:[#allocation20_spill] sm:$0xff] }
 0x206   : > { %v2141_v14 = vpop.f32.mrf.mxu1  ;;  %v2693_v12 = vpop.f32.mrf.mxu0  ;;  %v3972_v52 = vpack.c.bf16 %v5849_v59, %v5848_v4  ;;  %v4522_v32 = vpack.c.bf16 %v5946_v22, %v5945_v3  ;;  %v4523_v27 = vpack.c.bf16 %v5948_v41, %v5947_v11  ;;  %v5852_v59 = vld [vmem:[%s6970_s23 + $0x6a0] sm:$0xff]  ;;  %v5853_v3 = vld [vmem:[%s6970_s23 + $0x6a8] sm:$0xff]  ;;  %v5854_v11 = vld [vmem:[%s6970_s23 + $0x6b8] sm:$0xff] }
 0x207   : > { %8972 = vst [vmem:[#allocation17_spill] sm:$0xff] %v8271_v34  ;;  %v8282_v13 = vadd.f32 %v6636_v21, %v2230_v61  ;;  %v2228_v42 = vadd.f32 %v2141_v14, %v8975_v25  ;;  %v3973_v34 = vpack.c.bf16 %v5851_v45, %v5850_v6  ;;  %v8977_v14 = vld [vmem:[#allocation21_spill] sm:$0xff]  ;;  %v8979_v6 = vld [vmem:[#allocation22_spill] sm:$0xff] }
 0x208   : > { %v6571_v51 = vpop.f32.mrf.mxu1  ;;  %v6637_v18 = vpop.f32.mrf.mxu0  ;;  %v5950_v45 = vld [vmem:[%s6970_s23 + $0x181] sm:$0xff] }
 0x209   : > { %8974 = vst [vmem:[#allocation18_spill] sm:$0xff] %v8282_v13  ;;  %v8285_v0 = vadd.f32 %v2693_v12, %v2228_v42  ;;  %v2231_v47 = vadd.f32 %v6571_v51, %v8976_v60  ;;  %v5855_v51 = vld [vmem:[%s6970_s23 + $0x6c0] sm:$0xff] }
 0x20a   : > { %v2144_v9 = vpop.f32.mrf.mxu1  ;;  %v2696_v21 = vpop.f32.mrf.mxu0 }
 0x20b   : > { %v8288_v61 = vadd.f32 %v6637_v18, %v2231_v47  ;;  %v2229_v25 = vadd.f32 %v2144_v9, %v8977_v14  ;;  %v5949_v9 = vld [vmem:[%s6970_s23 + $0x179] sm:$0xff]  ;;  %v5951_v18 = vld [vmem:[%s6970_s23 + $0x191] sm:$0xff] }
 0x20c   : > { %v6574_v13 = vpop.f32.mrf.mxu1  ;;  %v6640_v4 = vpop.f32.mrf.mxu0  ;;  %6805 = vmatmul.mubr.msk.bf16.gmra.mxu1 %vm353_vm2, %v3972_v52  ;;  %6871 = vmatmul.mubr.msk.bf16.gmra.mxu0 %vm353_vm2, %v4522_v32  ;;  %v5952_v52 = vld [vmem:[%s6970_s23 + $0x199] sm:$0xff] }
 0x20d   : > { %v8295_v22 = vadd.f32 %v2696_v21, %v2229_v25  ;;  %v2234_v12 = vadd.f32 %v6574_v13, %v8979_v6  ;;  %6808 = vmatprep.mubr.msk.bf16.mxu1 %vm353_vm2, %v3973_v34  ;;  %6874 = vmatprep.mubr.msk.bf16.mxu0 %vm353_vm2, %v4523_v27  ;;  %v3974_v13 = vpack.c.bf16 %v5853_v3, %v5852_v59  ;;  %v5857_v3 = vld [vmem:[%s6970_s23 + $0x6d0] sm:$0xff] }
 0x20e   : > { %v2157_v41 = vpop.f32.mrf.mxu1  ;;  %v2709_v42 = vpop.f32.mrf.mxu0  ;;  %v4524_v34 = vpack.c.bf16 %v5950_v45, %v5949_v9  ;;  %v3975_v25 = vpack.c.bf16 %v5855_v51, %v5854_v11  ;;  %v4525_v6 = vpack.c.bf16 %v5952_v52, %v5951_v18  ;;  %v5858_v11 = vld [vmem:[%s6970_s23 + $0x6e0] sm:$0xff]  ;;  %v5859_v18 = vld [vmem:[%s6970_s23 + $0x6e8] sm:$0xff] }
 0x20f   : > { %8978 = vst [vmem:[#allocation19_spill] sm:$0xff] %v8295_v22  ;;  %v8306_v60 = vadd.f32 %v6640_v4, %v2234_v12  ;;  %v2232_v32 = vadd.f32 %v2157_v41, %v7925_v20  ;;  %v5955_v52 = vld [vmem:[%s6970_s23 + $0x1b9] sm:$0xff] }
 0x210   : > { %v6575_v47 = vpop.f32.mrf.mxu1  ;;  %v6641_v21 = vpop.f32.mrf.mxu0 }
 0x211   : > { %v8309_v14 = vadd.f32 %v2709_v42, %v2232_v32  ;;  %v2235_v27 = vadd.f32 %v6575_v47, %v7928_v49  ;;  %v5856_v49 = vld [vmem:[%s6970_s23 + $0x6c8] sm:$0xff] }
 0x212   : > { %v2160_v22 = vpop.f32.mrf.mxu1  ;;  %v2712_v4 = vpop.f32.mrf.mxu0  ;;  %v5956_v32 = vld [vmem:[%s6970_s23 + $0x1c1] sm:$0xff] }
 0x213   : > { %v8312_v12 = vadd.f32 %v6641_v21, %v2235_v27  ;;  %v2233_v20 = vadd.f32 %v2160_v22, %v7935_v30  ;;  %v5953_v30 = vld [vmem:[%s6970_s23 + $0x1a1] sm:$0xff]  ;;  %v5954_v22 = vld [vmem:[%s6970_s23 + $0x1a9] sm:$0xff] }
 0x214   : > { %v6646_v41 = vpop.f32.mrf.mxu1  ;;  %v6712_v59 = vpop.f32.mrf.mxu0  ;;  %6809 = vmatmul.mubr.msk.bf16.gmra.mxu1 %vm353_vm2, %v3974_v13  ;;  %6875 = vmatmul.mubr.msk.bf16.gmra.mxu0 %vm353_vm2, %v4524_v34  ;;  %v4526_v27 = vpack.c.bf16 %v5954_v22, %v5953_v30 }
 0x215   : > { %v8319_v9 = vadd.f32 %v2712_v4, %v2233_v20  ;;  %v3276_v45 = vadd.f32 %v6646_v41, %v7946_v2  ;;  %6812 = vmatprep.mubr.msk.bf16.mxu1 %vm353_vm2, %v3975_v25  ;;  %6878 = vmatprep.mubr.msk.bf16.mxu0 %vm353_vm2, %v4525_v6  ;;  %v3976_v2 = vpack.c.bf16 %v5857_v3, %v5856_v49  ;;  %v5861_v3 = vld [vmem:[%s6970_s23 + $0x6f8] sm:$0xff] }
 0x216   : > { %v3019_v42 = vpop.f32.mrf.mxu1  ;;  %v3572_v51 = vpop.f32.mrf.mxu0  ;;  %v3977_v4 = vpack.c.bf16 %v5859_v18, %v5858_v11  ;;  %v4527_v20 = vpack.c.bf16 %v5956_v32, %v5955_v52  ;;  %v5958_v11 = vld [vmem:[%s6970_s23 + $0x1d1] sm:$0xff] }
 0x217   : > { %v8330_v47 = vadd.f32 %v6712_v59, %v3276_v45  ;;  %v3274_v21 = vadd.f32 %v3019_v42, %v7949_v39  ;;  %v5863_v32 = vld [vmem:[%s6970_s23 + $0x710] sm:$0xff] }
 0x218   : > { %v6647_v13 = vpop.f32.mrf.mxu1  ;;  %v6713_v34 = vpop.f32.mrf.mxu0 }
 0x219   : > { %v8333_v25 = vadd.f32 %v3572_v51, %v3274_v21  ;;  %v3277_v6 = vadd.f32 %v6647_v13, %v7952_v33  ;;  %v5860_v33 = vld [vmem:[%s6970_s23 + $0x6f0] sm:$0xff]  ;;  %v5862_v51 = vld [vmem:[%s6970_s23 + $0x708] sm:$0xff] }
 0x21a   : > { %v3022_v41 = vpop.f32.mrf.mxu1  ;;  %v3575_v59 = vpop.f32.mrf.mxu0  ;;  %v5959_v21 = vld [vmem:[%s6970_s23 + $0x1e1] sm:$0xff]  ;;  %v5960_v13 = vld [vmem:[%s6970_s23 + $0x1e9] sm:$0xff] }
 0x21b   : > { %v8336_v45 = vadd.f32 %v6713_v34, %v3277_v6  ;;  %v3275_v39 = vadd.f32 %v3022_v41, %v7959_v48  ;;  %v5957_v48 = vld [vmem:[%s6970_s23 + $0x1c9] sm:$0xff] }
 0x21c   : > { %v6650_v42 = vpop.f32.mrf.mxu1  ;;  %v6716_v49 = vpop.f32.mrf.mxu0  ;;  %6813 = vmatmul.mubr.msk.bf16.gmra.mxu1 %vm353_vm2, %v3976_v2  ;;  %6879 = vmatmul.mubr.msk.bf16.gmra.mxu0 %vm353_vm2, %v4526_v27 }
 0x21d   : > { %v8343_v30 = vadd.f32 %v3575_v59, %v3275_v39  ;;  %v3280_v22 = vadd.f32 %v6650_v42, %v7970_v31  ;;  %6816 = vmatprep.mubr.msk.bf16.mxu1 %vm353_vm2, %v3977_v4  ;;  %6882 = vmatprep.mubr.msk.bf16.mxu0 %vm353_vm2, %v4527_v20  ;;  %v3978_v31 = vpack.c.bf16 %v5861_v3, %v5860_v33  ;;  %v5865_v3 = vld [vmem:[%s6970_s23 + $0x720] sm:$0xff] }
 0x21e   : > { %v3035_v18 = vpop.f32.mrf.mxu1  ;;  %v3588_v52 = vpop.f32.mrf.mxu0  ;;  %v4528_v4 = vpack.c.bf16 %v5958_v11, %v5957_v48  ;;  %v3979_v59 = vpack.c.bf16 %v5863_v32, %v5862_v51  ;;  %v4529_v39 = vpack.c.bf16 %v5960_v13, %v5959_v21  ;;  %v5962_v51 = vld [vmem:[%s6970_s23 + $0x1f9] sm:$0xff] }
 0x21f   : > { %v8354_v34 = vadd.f32 %v6716_v49, %v3280_v22  ;;  %v3278_v2 = vadd.f32 %v3035_v18, %v7973_v37  ;;  %v5867_v13 = vld [vmem:[%s6970_s23 + $0x738] sm:$0xff] }
 0x220   : > { %v6651_v27 = vpop.f32.mrf.mxu1  ;;  %v6717_v6 = vpop.f32.mrf.mxu0 }
 0x221   : > { %v8357_v41 = vadd.f32 %v3588_v52, %v3278_v2  ;;  %v3281_v20 = vadd.f32 %v6651_v27, %v7976_v7  ;;  %v5864_v7 = vld [vmem:[%s6970_s23 + $0x718] sm:$0xff]  ;;  %v5866_v52 = vld [vmem:[%s6970_s23 + $0x730] sm:$0xff] }
 0x222   : > { %v3038_v42 = vpop.f32.mrf.mxu1  ;;  %v3591_v49 = vpop.f32.mrf.mxu0  ;;  %v5963_v2 = vld [vmem:[%s6970_s23 + $0x209] sm:$0xff]  ;;  %v5964_v27 = vld [vmem:[%s6970_s23 + $0x211] sm:$0xff] }
 0x223   : > { %v8360_v22 = vadd.f32 %v6717_v6, %v3281_v20  ;;  %v3279_v37 = vadd.f32 %v3038_v42, %v7983_v10  ;;  %v5961_v10 = vld [vmem:[%s6970_s23 + $0x1f1] sm:$0xff] }
 0x224   : > { %v6654_v18 = vpop.f32.mrf.mxu1  ;;  %v6720_v33 = vpop.f32.mrf.mxu0  ;;  %6817 = vmatmul.mubr.msk.bf16.gmra.mxu1 %vm353_vm2, %v3978_v31  ;;  %6883 = vmatmul.mubr.msk.bf16.gmra.mxu0 %vm353_vm2, %v4528_v4 }
 0x225   : > { %v8367_v48 = vadd.f32 %v3591_v49, %v3279_v37  ;;  %v3284_v11 = vadd.f32 %v6654_v18, %v7994_v38  ;;  %6820 = vmatprep.mubr.msk.bf16.mxu1 %vm353_vm2, %v3979_v59  ;;  %6886 = vmatprep.mubr.msk.bf16.mxu0 %vm353_vm2, %v4529_v39  ;;  %v3980_v38 = vpack.c.bf16 %v5865_v3, %v5864_v7  ;;  %v5869_v3 = vld [vmem:[%s6970_s23 + $0x748] sm:$0xff] }
 0x226   : > { %v3051_v32 = vpop.f32.mrf.mxu1  ;;  %v3604_v21 = vpop.f32.mrf.mxu0  ;;  %v4530_v59 = vpack.c.bf16 %v5962_v51, %v5961_v10  ;;  %v3981_v49 = vpack.c.bf16 %v5867_v13, %v5866_v52  ;;  %v4531_v37 = vpack.c.bf16 %v5964_v27, %v5963_v2  ;;  %v5966_v52 = vld [vmem:[%s6970_s23 + $0x221] sm:$0xff] }
 0x227   : > { %v8378_v6 = vadd.f32 %v6720_v33, %v3284_v11  ;;  %v3282_v31 = vadd.f32 %v3051_v32, %v7997_v15  ;;  %v5871_v27 = vld [vmem:[%s6970_s23 + $0x760] sm:$0xff] }
 0x228   : > { %v6655_v4 = vpop.f32.mrf.mxu1  ;;  %v6721_v20 = vpop.f32.mrf.mxu0 }
 0x229   : > { %v8381_v42 = vadd.f32 %v3604_v21, %v3282_v31  ;;  %v3285_v39 = vadd.f32 %v6655_v4, %v8000_v56  ;;  %v5868_v56 = vld [vmem:[%s6970_s23 + $0x740] sm:$0xff]  ;;  %v5870_v21 = vld [vmem:[%s6970_s23 + $0x758] sm:$0xff] }
 0x22a   : > { %v3054_v18 = vpop.f32.mrf.mxu1  ;;  %v3607_v33 = vpop.f32.mrf.mxu0  ;;  %v5967_v31 = vld [vmem:[%s6970_s23 + $0x231] sm:$0xff]  ;;  %v5968_v4 = vld [vmem:[%s6970_s23 + $0x239] sm:$0xff] }
 0x22b   : > { %v8384_v11 = vadd.f32 %v6721_v20, %v3285_v39  ;;  %v3283_v15 = vadd.f32 %v3054_v18, %v8007_v35  ;;  %v5965_v35 = vld [vmem:[%s6970_s23 + $0x219] sm:$0xff] }
 0x22c   : > { %v6658_v32 = vpop.f32.mrf.mxu1  ;;  %v6724_v7 = vpop.f32.mrf.mxu0  ;;  %6821 = vmatmul.mubr.msk.bf16.gmra.mxu1 %vm353_vm2, %v3980_v38  ;;  %6887 = vmatmul.mubr.msk.bf16.gmra.mxu0 %vm353_vm2, %v4530_v59 }
 0x22d   : > { %v8391_v10 = vadd.f32 %v3607_v33, %v3283_v15  ;;  %v3288_v51 = vadd.f32 %v6658_v32, %v8018_v24  ;;  %6824 = vmatprep.mubr.msk.bf16.mxu1 %vm353_vm2, %v3981_v49  ;;  %6890 = vmatprep.mubr.msk.bf16.mxu0 %vm353_vm2, %v4531_v37  ;;  %v3982_v24 = vpack.c.bf16 %v5869_v3, %v5868_v56  ;;  %v5873_v3 = vld [vmem:[%s6970_s23 + $0x770] sm:$0xff] }
 0x22e   : > { %v3067_v13 = vpop.f32.mrf.mxu1  ;;  %v3620_v2 = vpop.f32.mrf.mxu0  ;;  %v4532_v49 = vpack.c.bf16 %v5966_v52, %v5965_v35  ;;  %v3983_v33 = vpack.c.bf16 %v5871_v27, %v5870_v21  ;;  %v4533_v15 = vpack.c.bf16 %v5968_v4, %v5967_v31  ;;  %v5970_v21 = vld [vmem:[%s6970_s23 + $0x249] sm:$0xff] }
 0x22f   : > { %v8402_v20 = vadd.f32 %v6724_v7, %v3288_v51  ;;  %v3286_v38 = vadd.f32 %v3067_v13, %v8021_v16  ;;  %v5875_v4 = vld [vmem:[%s6970_s23 + $0x788] sm:$0xff] }
 0x230   : > { %v6659_v59 = vpop.f32.mrf.mxu1  ;;  %v6725_v39 = vpop.f32.mrf.mxu0 }
 0x231   : > { %v8405_v18 = vadd.f32 %v3620_v2, %v3286_v38  ;;  %v3289_v37 = vadd.f32 %v6659_v59, %v8024_v36  ;;  %v5872_v36 = vld [vmem:[%s6970_s23 + $0x768] sm:$0xff]  ;;  %v5874_v2 = vld [vmem:[%s6970_s23 + $0x780] sm:$0xff] }
 0x232   : > { %v3070_v32 = vpop.f32.mrf.mxu1  ;;  %v3623_v7 = vpop.f32.mrf.mxu0  ;;  %v5971_v38 = vld [vmem:[%s6970_s23 + $0x259] sm:$0xff]  ;;  %v5972_v59 = vld [vmem:[%s6970_s23 + $0x261] sm:$0xff] }
 0x233   : > { %v8408_v51 = vadd.f32 %v6725_v39, %v3289_v37  ;;  %v3287_v16 = vadd.f32 %v3070_v32, %v8031_v55  ;;  %v5969_v55 = vld [vmem:[%s6970_s23 + $0x241] sm:$0xff] }
 0x234   : > { %v6662_v13 = vpop.f32.mrf.mxu1  ;;  %v6728_v56 = vpop.f32.mrf.mxu0  ;;  %6825 = vmatmul.mubr.msk.bf16.gmra.mxu1 %vm353_vm2, %v3982_v24  ;;  %6891 = vmatmul.mubr.msk.bf16.gmra.mxu0 %vm353_vm2, %v4532_v49 }
 0x235   : > { %v8415_v35 = vadd.f32 %v3623_v7, %v3287_v16  ;;  %v3292_v52 = vadd.f32 %v6662_v13, %v8042_v62  ;;  %6828 = vmatprep.mubr.msk.bf16.mxu1 %vm353_vm2, %v3983_v33  ;;  %6894 = vmatprep.mubr.msk.bf16.mxu0 %vm353_vm2, %v4533_v15  ;;  %v3984_v62 = vpack.c.bf16 %v5873_v3, %v5872_v36  ;;  %v5877_v3 = vld [vmem:[%s6970_s23 + $0x798] sm:$0xff] }
 0x236   : > { %v3083_v27 = vpop.f32.mrf.mxu1  ;;  %v3636_v31 = vpop.f32.mrf.mxu0  ;;  %v4534_v33 = vpack.c.bf16 %v5970_v21, %v5969_v55  ;;  %v3985_v7 = vpack.c.bf16 %v5875_v4, %v5874_v2  ;;  %v4535_v16 = vpack.c.bf16 %v5972_v59, %v5971_v38  ;;  %v8982_v21 = vld [vmem:[#allocation23_spill] sm:$0xff] }
 0x237   : > { %v8426_v39 = vadd.f32 %v6728_v56, %v3292_v52  ;;  %v3290_v24 = vadd.f32 %v3083_v27, %v8045_v40  ;;  %v5878_v4 = vld [vmem:[%s6970_s23 + $0x7a8] sm:$0xff] }
 0x238   : > { %v6663_v49 = vpop.f32.mrf.mxu1  ;;  %v6729_v37 = vpop.f32.mrf.mxu0 }
 0x239   : > { %v8429_v32 = vadd.f32 %v3636_v31, %v3290_v24  ;;  %v3293_v15 = vadd.f32 %v6663_v49, %v8048_v26  ;;  %v5876_v26 = vld [vmem:[%s6970_s23 + $0x790] sm:$0xff]  ;;  %v5975_v49 = vld [vmem:[%s6970_s23 + $0x281] sm:$0xff] }
 0x23a   : > { %v3086_v13 = vpop.f32.mrf.mxu1  ;;  %v3639_v56 = vpop.f32.mrf.mxu0  ;;  %v5974_v31 = vld [vmem:[%s6970_s23 + $0x271] sm:$0xff] }
 0x23b   : > { %v8432_v52 = vadd.f32 %v6729_v37, %v3293_v15  ;;  %v3291_v40 = vadd.f32 %v3086_v13, %v8055_v29  ;;  %v5973_v29 = vld [vmem:[%s6970_s23 + $0x269] sm:$0xff] }
 0x23c   : > { %v6666_v27 = vpop.f32.mrf.mxu1  ;;  %v6732_v36 = vpop.f32.mrf.mxu0  ;;  %6829 = vmatmul.mubr.msk.bf16.gmra.mxu1 %vm353_vm2, %v3984_v62  ;;  %6895 = vmatmul.mubr.msk.bf16.gmra.mxu0 %vm353_vm2, %v4534_v33  ;;  %v5879_v24 = vld [vmem:[%s6970_s23 + $0x7b0] sm:$0xff] }
 0x23d   : > { %8980 = vst [vmem:[#allocation20_spill] sm:$0xff] %v8432_v52  ;;  %v8439_v55 = vadd.f32 %v3639_v56, %v3291_v40  ;;  %v3296_v2 = vadd.f32 %v6666_v27, %v8982_v21  ;;  %6832 = vmatprep.mubr.msk.bf16.mxu1 %vm353_vm2, %v3985_v7  ;;  %6898 = vmatprep.mubr.msk.bf16.mxu0 %vm353_vm2, %v4535_v16  ;;  %v5976_v37 = vld [vmem:[%s6970_s23 + $0x289] sm:$0xff] }
 0x23e   : > { %v3099_v38 = vpop.f32.mrf.mxu1  ;;  %v3652_v59 = vpop.f32.mrf.mxu0  ;;  %v3986_v56 = vpack.c.bf16 %v5877_v3, %v5876_v26  ;;  %v4536_v40 = vpack.c.bf16 %v5974_v31, %v5973_v29  ;;  %v3987_v27 = vpack.c.bf16 %v5879_v24, %v5878_v4  ;;  %v4537_v21 = vpack.c.bf16 %v5976_v37, %v5975_v49  ;;  %v5880_v26 = vld [vmem:[%s6970_s23 + $0x7b8] sm:$0xff]  ;;  %v5881_v29 = vld [vmem:[%s6970_s23 + $0x7c0] sm:$0xff] }
 0x23f   : > { %8981 = vst [vmem:[#allocation21_spill] sm:$0xff] %v8439_v55  ;;  %v8450_v62 = vadd.f32 %v6732_v36, %v3296_v2  ;;  %v3294_v33 = vadd.f32 %v3099_v38, %v8069_v23  ;;  %v5977_v31 = vld [vmem:[%s6970_s23 + $0x291] sm:$0xff]  ;;  %v5978_v4 = vld [vmem:[%s6970_s23 + $0x299] sm:$0xff] }
 0x240   : > { %v6667_v15 = vpop.f32.mrf.mxu1  ;;  %v6733_v13 = vpop.f32.mrf.mxu0 }
 0x241   : > { %v8453_v7 = vadd.f32 %v3652_v59, %v3294_v33  ;;  %v3297_v16 = vadd.f32 %v6667_v15, %v8072_v57  ;;  %v3988_v33 = vpack.c.bf16 %v5881_v29, %v5880_v26 }
 0x242   : > { %v3102_v55 = vpop.f32.mrf.mxu1  ;;  %v3655_v52 = vpop.f32.mrf.mxu0 }
 0x243   : > { %v8456_v36 = vadd.f32 %v6733_v13, %v3297_v16  ;;  %v3295_v23 = vadd.f32 %v3102_v55, %v8079_v44 }
 0x244   : > { %v6670_v2 = vpop.f32.mrf.mxu1  ;;  %v6736_v38 = vpop.f32.mrf.mxu0  ;;  %6833 = vmatmul.mubr.msk.bf16.gmra.mxu1 %vm353_vm2, %v3986_v56  ;;  %6899 = vmatmul.mubr.msk.bf16.gmra.mxu0 %vm353_vm2, %v4536_v40 }
 0x245   : > { %v8462_v3 = vadd.f32 %v3655_v52, %v3295_v23  ;;  %v3300_v57 = vadd.f32 %v6670_v2, %v8090_v5  ;;  %6836 = vmatprep.mubr.msk.bf16.mxu1 %vm353_vm2, %v3987_v27  ;;  %6902 = vmatprep.mubr.msk.bf16.mxu0 %vm353_vm2, %v4537_v21  ;;  %v4538_v52 = vpack.c.bf16 %v5978_v4, %v5977_v31 }
 0x246   : > { %v3115_v59 = vpop.f32.mrf.mxu1  ;;  %v3668_v44 = vpop.f32.mrf.mxu0 }
 0x247   : > { %v8470_v55 = vadd.f32 %v6736_v38, %v3300_v57  ;;  %v3298_v24 = vadd.f32 %v3115_v59, %v8093_v58 }
 0x248   : > { %v6671_v49 = vpop.f32.mrf.mxu1  ;;  %v6737_v37 = vpop.f32.mrf.mxu0 }
 0x249   : > { %v8473_v15 = vadd.f32 %v3668_v44, %v3298_v24  ;;  %v3301_v5 = vadd.f32 %v6671_v49, %v8096_v17 }
 0x24a   : > { %v3118_v13 = vpop.f32.mrf.mxu1  ;;  %v3671_v56 = vpop.f32.mrf.mxu0 }
 0x24b   : > { %v8476_v40 = vadd.f32 %v6737_v37, %v3301_v5  ;;  %v3299_v16 = vadd.f32 %v3118_v13, %v8103_v54 }
 0x24c   : > { %v6674_v27 = vpop.f32.mrf.mxu1  ;;  %v6740_v21 = vpop.f32.mrf.mxu0  ;;  %6837 = vmatmul.mubr.msk.bf16.gmra.mxu1 %vm353_vm2, %v3988_v33  ;;  %6903 = vmatmul.mubr.msk.bf16.gmra.mxu0 %vm353_vm2, %v4538_v52 }
 0x24d   : > { %v8481_v58 = vadd.f32 %v3671_v56, %v3299_v16  ;;  %v3304_v23 = vadd.f32 %v6674_v27, %v8114_v50 }
 0x24e   : > { %v3131_v2 = vpop.f32.mrf.mxu1  ;;  %v3684_v38 = vpop.f32.mrf.mxu0 }
 0x24f   : > { %v8484_v26 = vadd.f32 %v6740_v21, %v3304_v23  ;;  %v3302_v17 = vadd.f32 %v3131_v2, %v8117_v43 }
 0x250   : > { %v6675_v57 = vpop.f32.mrf.mxu1  ;;  %v6741_v29 = vpop.f32.mrf.mxu0 }
 0x251   : > { %v8487_v31 = vadd.f32 %v3684_v38, %v3302_v17  ;;  %v3305_v54 = vadd.f32 %v6675_v57, %v8120_v46 }
 0x252   : > { %v3134_v4 = vpop.f32.mrf.mxu1  ;;  %v3687_v59 = vpop.f32.mrf.mxu0 }
 0x253   : > { %v8490_v44 = vadd.f32 %v6741_v29, %v3305_v54  ;;  %v3303_v24 = vadd.f32 %v3134_v4, %v8127_v53  ;;  %v8983_v4 = vld [vmem:[#allocation24_spill] sm:$0xff] }
 0x254   : > { %v6678_v49 = vpop.f32.mrf.mxu1  ;;  %v6744_v50 = vpop.f32.mrf.mxu0 }
 0x255   : > { %v8493_v37 = vadd.f32 %v3687_v59, %v3303_v24  ;;  %v3308_v33 = vadd.f32 %v6678_v49, %v8138_v28 }
 0x256   : > { %v3147_v52 = vpop.f32.mrf.mxu1  ;;  %v3700_v43 = vpop.f32.mrf.mxu0 }
 0x257   : > { %v8496_v5 = vadd.f32 %v6744_v50, %v3308_v33  ;;  %v3306_v13 = vadd.f32 %v3147_v52, %v8141_v1  ;;  %v8984_v50 = vld [vmem:[#allocation25_spill] sm:$0xff] }
 0x258   : > { %v6679_v56 = vpop.f32.mrf.mxu1  ;;  %v6745_v46 = vpop.f32.mrf.mxu0 }
 0x259   : > { %v8499_v16 = vadd.f32 %v3700_v43, %v3306_v13  ;;  %v3309_v27 = vadd.f32 %v6679_v56, %v8144_v19  ;;  %v8985_v13 = vld [vmem:[#allocation26_spill] sm:$0xff] }
 0x25a   : > { %v3150_v21 = vpop.f32.mrf.mxu1  ;;  %v3703_v53 = vpop.f32.mrf.mxu0 }
 0x25b   : > { %v8502_v23 = vadd.f32 %v6745_v46, %v3309_v27  ;;  %v3307_v2 = vadd.f32 %v3150_v21, %v8151_v8  ;;  %v8986_v21 = vld [vmem:[#allocation2_spill] sm:$0xff] }
 0x25c   : > { %v6682_v38 = vpop.f32.mrf.mxu1  ;;  %v6748_v28 = vpop.f32.mrf.mxu0 }
 0x25d   : > { %v8505_v17 = vadd.f32 %v3703_v53, %v3307_v2  ;;  %v3312_v57 = vadd.f32 %v6682_v38, %v8162_v63 }
 0x25e   : > { %v3163_v29 = vpop.f32.mrf.mxu1  ;;  %v3716_v1 = vpop.f32.mrf.mxu0 }
 0x25f   : > { %v8508_v54 = vadd.f32 %v6748_v28, %v3312_v57  ;;  %v3310_v59 = vadd.f32 %v3163_v29, %v8983_v4  ;;  %v8988_v57 = vld [vmem:[#allocation3_spill] sm:$0xff] }
 0x260   : > { %v6683_v24 = vpop.f32.mrf.mxu1  ;;  %v6749_v19 = vpop.f32.mrf.mxu0 }
 0x261   : > { %v8511_v49 = vadd.f32 %v3716_v1, %v3310_v59  ;;  %v3313_v33 = vadd.f32 %v6683_v24, %v8984_v50  ;;  %v8990_v24 = vld [vmem:[#allocation4_spill] sm:$0xff] }
 0x262   : > { %v3166_v52 = vpop.f32.mrf.mxu1  ;;  %v3719_v8 = vpop.f32.mrf.mxu0 }
 0x263   : > { %v8514_v43 = vadd.f32 %v6749_v19, %v3313_v33  ;;  %v3311_v56 = vadd.f32 %v3166_v52, %v8985_v13 }
 0x264   : > { %v6686_v46 = vpop.f32.mrf.mxu1  ;;  %v6752_v63 = vpop.f32.mrf.mxu0 }
 0x265   : > { %v8517_v27 = vadd.f32 %v3719_v8, %v3311_v56  ;;  %v3316_v53 = vadd.f32 %v6686_v46, %v8986_v21  ;;  %v8992_v8 = vld [vmem:[#allocation5_spill] sm:$0xff] }
 0x266   : > { %v3179_v2 = vpop.f32.mrf.mxu1  ;;  %v3732_v38 = vpop.f32.mrf.mxu0 }
 0x267   : > { %v8520_v28 = vadd.f32 %v6752_v63, %v3316_v53  ;;  %v3314_v29 = vadd.f32 %v3179_v2, %v8988_v57  ;;  %v8994_v63 = vld [vmem:[#allocation6_spill] sm:$0xff] }
 0x268   : > { %v6687_v1 = vpop.f32.mrf.mxu1  ;;  %v6753_v4 = vpop.f32.mrf.mxu0 }
 0x269   : > { %8987 = vst [vmem:[#allocation22_spill] sm:$0xff] %v8520_v28  ;;  %v8523_v59 = vadd.f32 %v3732_v38, %v3314_v29  ;;  %v3317_v19 = vadd.f32 %v6687_v1, %v8990_v24  ;;  %v8996_v38 = vld [vmem:[#allocation7_spill] sm:$0xff] }
 0x26a   : > { %v3182_v50 = vpop.f32.mrf.mxu1  ;;  %v3735_v33 = vpop.f32.mrf.mxu0 }
 0x26b   : > { %8989 = vst [vmem:[#allocation23_spill] sm:$0xff] %v8523_v59  ;;  %v8526_v52 = vadd.f32 %v6753_v4, %v3317_v19  ;;  %v3315_v13 = vadd.f32 %v3182_v50, %v8992_v8  ;;  %v8998_v4 = vld [vmem:[#allocation8_spill] sm:$0xff] }
 0x26c   : > { %v6690_v56 = vpop.f32.mrf.mxu1  ;;  %v6756_v46 = vpop.f32.mrf.mxu0 }
 0x26d   : > { %8991 = vst [vmem:[#allocation24_spill] sm:$0xff] %v8526_v52  ;;  %v8529_v21 = vadd.f32 %v3735_v33, %v3315_v13  ;;  %v3320_v53 = vadd.f32 %v6690_v56, %v8994_v63  ;;  %v9000_v33 = vld [vmem:[#allocation9_spill] sm:$0xff] }
 0x26e   : > { %v3195_v28 = vpop.f32.mrf.mxu1  ;;  %v3748_v2 = vpop.f32.mrf.mxu0 }
 0x26f   : > { %8993 = vst [vmem:[#allocation25_spill] sm:$0xff] %v8529_v21  ;;  %v8532_v57 = vadd.f32 %v6756_v46, %v3320_v53  ;;  %v3318_v29 = vadd.f32 %v3195_v28, %v8996_v38  ;;  %v9002_v46 = vld [vmem:[#allocation10_spill] sm:$0xff] }
 0x270   : > { %v6691_v59 = vpop.f32.mrf.mxu1  ;;  %v6757_v1 = vpop.f32.mrf.mxu0 }
 0x271   : > { %8995 = vst [vmem:[#allocation26_spill] sm:$0xff] %v8532_v57  ;;  %v8535_v24 = vadd.f32 %v3748_v2, %v3318_v29  ;;  %v3321_v19 = vadd.f32 %v6691_v59, %v8998_v4  ;;  %v9004_v2 = vld [vmem:[#allocation11_spill] sm:$0xff] }
 0x272   : > { %v3198_v52 = vpop.f32.mrf.mxu1  ;;  %v3751_v50 = vpop.f32.mrf.mxu0 }
 0x273   : > { %8997 = vst [vmem:[#allocation2_spill] sm:$0xff] %v8535_v24  ;;  %v8538_v8 = vadd.f32 %v6757_v1, %v3321_v19  ;;  %v3319_v13 = vadd.f32 %v3198_v52, %v9000_v33  ;;  %v9006_v1 = vld [vmem:[#allocation12_spill] sm:$0xff] }
 0x274   : > { %v6694_v21 = vpop.f32.mrf.mxu1  ;;  %v6760_v56 = vpop.f32.mrf.mxu0 }
 0x275   : > { %8999 = vst [vmem:[#allocation3_spill] sm:$0xff] %v8538_v8  ;;  %v8541_v63 = vadd.f32 %v3751_v50, %v3319_v13  ;;  %v3324_v53 = vadd.f32 %v6694_v21, %v9002_v46  ;;  %v9008_v50 = vld [vmem:[#allocation13_spill] sm:$0xff] }
 0x276   : > { %v3211_v57 = vpop.f32.mrf.mxu1  ;;  %v3764_v28 = vpop.f32.mrf.mxu0 }
 0x277   : > { %9001 = vst [vmem:[#allocation4_spill] sm:$0xff] %v8541_v63  ;;  %v8544_v38 = vadd.f32 %v6760_v56, %v3324_v53  ;;  %v3322_v29 = vadd.f32 %v3211_v57, %v9004_v2  ;;  %v9010_v56 = vld [vmem:[#allocation14_spill] sm:$0xff] }
 0x278   : > { %v6695_v24 = vpop.f32.mrf.mxu1  ;;  %v6761_v59 = vpop.f32.mrf.mxu0 }
 0x279   : > { %9003 = vst [vmem:[#allocation5_spill] sm:$0xff] %v8544_v38  ;;  %v8547_v4 = vadd.f32 %v3764_v28, %v3322_v29  ;;  %v3325_v19 = vadd.f32 %v6695_v24, %v9006_v1  ;;  %v9012_v28 = vld [vmem:[#allocation15_spill] sm:$0xff] }
 0x27a   : > { %v3214_v8 = vpop.f32.mrf.mxu1  ;;  %v3767_v52 = vpop.f32.mrf.mxu0 }
 0x27b   : > { %9005 = vst [vmem:[#allocation6_spill] sm:$0xff] %v8547_v4  ;;  %v8550_v33 = vadd.f32 %v6761_v59, %v3325_v19  ;;  %v3323_v13 = vadd.f32 %v3214_v8, %v9008_v50  ;;  %v9013_v59 = vld [vmem:[#allocation16_spill] sm:$0xff] }
 0x27c   : > { %v6698_v63 = vpop.f32.mrf.mxu1  ;;  %v6764_v21 = vpop.f32.mrf.mxu0 }
 0x27d   : > { %9007 = vst [vmem:[#allocation7_spill] sm:$0xff] %v8550_v33  ;;  %v8553_v46 = vadd.f32 %v3767_v52, %v3323_v13  ;;  %v3328_v53 = vadd.f32 %v6698_v63, %v9010_v56  ;;  %v9014_v52 = vld [vmem:[#allocation17_spill] sm:$0xff] }
 0x27e   : > { %v3227_v38 = vpop.f32.mrf.mxu1  ;;  %v3780_v57 = vpop.f32.mrf.mxu0 }
 0x27f   : > { %9009 = vst [vmem:[#allocation8_spill] sm:$0xff] %v8553_v46  ;;  %v8556_v2 = vadd.f32 %v6764_v21, %v3328_v53  ;;  %v3326_v29 = vadd.f32 %v3227_v38, %v9012_v28  ;;  %v9016_v21 = vld [vmem:[#allocation18_spill] sm:$0xff] }
 0x280   : > { %v6699_v4 = vpop.f32.mrf.mxu1  ;;  %v6765_v24 = vpop.f32.mrf.mxu0 }
 0x281   : > { %9011 = vst [vmem:[#allocation9_spill] sm:$0xff] %v8556_v2  ;;  %v8559_v1 = vadd.f32 %v3780_v57, %v3326_v29  ;;  %v3329_v19 = vadd.f32 %v6699_v4, %v9013_v59 }
 0x282   : > { %v3230_v33 = vpop.f32.mrf.mxu1  ;;  %v3783_v8 = vpop.f32.mrf.mxu0 }
 0x283   : > { %v8562_v50 = vadd.f32 %v6765_v24, %v3329_v19  ;;  %v3327_v13 = vadd.f32 %v3230_v33, %v9014_v52 }
 0x284   : > { %v6702_v46 = vpop.f32.mrf.mxu1  ;;  %v6768_v63 = vpop.f32.mrf.mxu0 }
 0x285   : > { %v8565_v56 = vadd.f32 %v3783_v8, %v3327_v13  ;;  %v3332_v53 = vadd.f32 %v6702_v46, %v9016_v21  ;;  %v9017_v8 = vld [vmem:[#allocation19_spill] sm:$0xff] }
 0x286   : > { %v3243_v38 = vpop.f32.mrf.mxu1  ;;  %v3796_v28 = vpop.f32.mrf.mxu0 }
 0x287   : > { %9015 = vst [vmem:[#allocation10_spill] sm:$0xff] %v8565_v56  ;;  %v8568_v2 = vadd.f32 %v6768_v63, %v3332_v53  ;;  %v3330_v57 = vadd.f32 %v3243_v38, %v8285_v0 }
 0x288   : > { %v6703_v4 = vpop.f32.mrf.mxu1  ;;  %v6769_v29 = vpop.f32.mrf.mxu0 }
 0x289   : > { %v8571_v59 = vadd.f32 %v3796_v28, %v3330_v57  ;;  %v3333_v24 = vadd.f32 %v6703_v4, %v8288_v61 }
 0x28a   : > { %v3246_v33 = vpop.f32.mrf.mxu1  ;;  %v3799_v19 = vpop.f32.mrf.mxu0 }
 0x28b   : > { %v8574_v52 = vadd.f32 %v6769_v29, %v3333_v24  ;;  %v3331_v13 = vadd.f32 %v3246_v33, %v9017_v8 }
 0x28c   : > { %v6706_v56 = vpop.f32.mrf.mxu1  ;;  %v6772_v46 = vpop.f32.mrf.mxu0 }
 0x28d   : > { %v8579_v63 = vadd.f32 %v3799_v19, %v3331_v13  ;;  %v3336_v0 = vadd.f32 %v6706_v56, %v8306_v60 }
 0x28e   : > { %v3259_v21 = vpop.f32.mrf.mxu1  ;;  %v3812_v53 = vpop.f32.mrf.mxu0 }
 0x28f   : > { %v8582_v38 = vadd.f32 %v6772_v46, %v3336_v0  ;;  %v3334_v61 = vadd.f32 %v3259_v21, %v8309_v14  ;;  %v8597_v46 = vld [vmem:[%s8864_s2] ss:$0 sm:$0xff] }
 0x290   : > { %v6707_v28 = vpop.f32.mrf.mxu1  ;;  %v6773_v57 = vpop.f32.mrf.mxu0 }
 0x291   : > { %v8585_v4 = vadd.f32 %v3812_v53, %v3334_v61  ;;  %v3337_v29 = vadd.f32 %v6707_v28, %v8312_v12 }
 0x292   : > { %v3262_v24 = vpop.f32.mrf.mxu1  ;;  %v3815_v33 = vpop.f32.mrf.mxu0 }
 0x293   : > { %v8588_v8 = vadd.f32 %v6773_v57, %v3337_v29  ;;  %v3335_v19 = vadd.f32 %v3262_v24, %v8319_v9 }
 0x294   : > { %v6778_v60 = vpop.f32.mrf.mxu1  ;;  %v6844_v56 = vpop.f32.mrf.mxu0 }
 0x295   : > { %v8591_v13 = vadd.f32 %v3815_v33, %v3335_v19  ;;  %v4381_v14 = vadd.f32 %v6778_v60, %v8330_v47 }
 0x296   : > { %v4124_v0 = vpop.f32.mrf.mxu1  ;;  %v4674_v12 = vpop.f32.mrf.mxu0 }
 0x297   : > { %v4931_v21 = vadd.f32 %v6844_v56, %v4381_v14  ;;  %v4379_v53 = vadd.f32 %v4124_v0, %v8333_v25 }
 0x298   : > { %v6779_v61 = vpop.f32.mrf.mxu1  ;;  %v6845_v9 = vpop.f32.mrf.mxu0 }
 0x299   : > { %v5002_v28 = vadd.f32 %v8597_v46, %v4931_v21  ;;  %v4929_v57 = vadd.f32 %v4674_v12, %v4379_v53  ;;  %v4382_v29 = vadd.f32 %v6779_v61, %v8336_v45 }
 0x29a   : > { %v4127_v47 = vpop.f32.mrf.mxu1  ;;  %v4677_v24 = vpop.f32.mrf.mxu0 }
 0x29b   : > { %v5066_v33 = vmax.f32 %v5002_v28, 0.0  ;;  %v5000_v25 = vadd.f32 %v8597_v46, %v4929_v57  ;;  %v4932_v19 = vadd.f32 %v6845_v9, %v4382_v29  ;;  %v4380_v60 = vadd.f32 %v4127_v47, %v8343_v30 }
 0x29c   : > { %v6782_v56 = vpop.f32.mrf.mxu1  ;;  %v6848_v14 = vpop.f32.mrf.mxu0 }
 0x29d   : > { %5131 = vst.msk [vmem:[%s8605_s16 + $0x10] sm:$0xff] %vm5128_vm3, %v5066_v33  ;;  %v5064_v45 = vmax.f32 %v5000_v25, 0.0  ;;  %v5003_v0 = vadd.f32 %v8597_v46, %v4932_v19  ;;  %v4930_v12 = vadd.f32 %v4677_v24, %v4380_v60  ;;  %v4385_v21 = vadd.f32 %v6782_v56, %v8354_v34 }
 0x29e   : > { %v4140_v53 = vpop.f32.mrf.mxu1  ;;  %v4690_v61 = vpop.f32.mrf.mxu0 }
 0x29f   : > { %5129 = vst.msk [vmem:[%s8605_s16] sm:$0xff] %vm5128_vm3, %v5064_v45  ;;  %v5067_v28 = vmax.f32 %v5003_v0, 0.0  ;;  %v5001_v9 = vadd.f32 %v8597_v46, %v4930_v12  ;;  %v4935_v30 = vadd.f32 %v6848_v14, %v4385_v21  ;;  %v4383_v57 = vadd.f32 %v4140_v53, %v8357_v41 }
 0x2a0   : > { %v6783_v29 = vpop.f32.mrf.mxu1  ;;  %v6849_v47 = vpop.f32.mrf.mxu0 }
 0x2a1   : > { %5132 = vst.msk [vmem:[%s8605_s16 + $0x18] sm:$0xff] %vm5128_vm3, %v5067_v28  ;;  %v5065_v33 = vmax.f32 %v5001_v9, 0.0  ;;  %v5006_v24 = vadd.f32 %v8597_v46, %v4935_v30  ;;  %v4933_v34 = vadd.f32 %v4690_v61, %v4383_v57  ;;  %v4386_v25 = vadd.f32 %v6783_v29, %v8360_v22 }
 0x2a2   : > { %v4143_v19 = vpop.f32.mrf.mxu1  ;;  %v4693_v60 = vpop.f32.mrf.mxu0 }
 0x2a3   : > { %5130 = vst.msk [vmem:[%s8605_s16 + $0x8] sm:$0xff] %vm5128_vm3, %v5065_v33  ;;  %v5070_v56 = vmax.f32 %v5006_v24, 0.0  ;;  %v5004_v14 = vadd.f32 %v8597_v46, %v4933_v34  ;;  %v4936_v41 = vadd.f32 %v6849_v47, %v4386_v25  ;;  %v4384_v45 = vadd.f32 %v4143_v19, %v8367_v48 }
 0x2a4   : > { %v6786_v0 = vpop.f32.mrf.mxu1  ;;  %v6852_v12 = vpop.f32.mrf.mxu0 }
 0x2a5   : > { %5135 = vst.msk [vmem:[%s8605_s16 + $0x30] sm:$0xff] %vm5128_vm3, %v5070_v56  ;;  %v5068_v21 = vmax.f32 %v5004_v14, 0.0  ;;  %v5007_v53 = vadd.f32 %v8597_v46, %v4936_v41  ;;  %v4934_v22 = vadd.f32 %v4693_v60, %v4384_v45  ;;  %v4389_v61 = vadd.f32 %v6786_v0, %v8378_v6 }
 0x2a6   : > { %v4156_v28 = vpop.f32.mrf.mxu1  ;;  %v4706_v9 = vpop.f32.mrf.mxu0 }
 0x2a7   : > { %5133 = vst.msk [vmem:[%s8605_s16 + $0x20] sm:$0xff] %vm5128_vm3, %v5068_v21  ;;  %v5071_v30 = vmax.f32 %v5007_v53, 0.0  ;;  %v5005_v57 = vadd.f32 %v8597_v46, %v4934_v22  ;;  %v4939_v48 = vadd.f32 %v6852_v12, %v4389_v61  ;;  %v4387_v29 = vadd.f32 %v4156_v28, %v8381_v42 }
 0x2a8   : > { %v6787_v47 = vpop.f32.mrf.mxu1  ;;  %v6853_v33 = vpop.f32.mrf.mxu0 }
 0x2a9   : > { %5136 = vst.msk [vmem:[%s8605_s16 + $0x38] sm:$0xff] %vm5128_vm3, %v5071_v30  ;;  %v5069_v24 = vmax.f32 %v5005_v57, 0.0  ;;  %v5010_v34 = vadd.f32 %v8597_v46, %v4939_v48  ;;  %v4937_v6 = vadd.f32 %v4706_v9, %v4387_v29  ;;  %v4390_v25 = vadd.f32 %v6787_v47, %v8384_v11 }
 0x2aa   : > { %v4159_v19 = vpop.f32.mrf.mxu1  ;;  %v4709_v60 = vpop.f32.mrf.mxu0 }
 0x2ab   : > { %5134 = vst.msk [vmem:[%s8605_s16 + $0x28] sm:$0xff] %vm5128_vm3, %v5069_v24  ;;  %v5074_v56 = vmax.f32 %v5010_v34, 0.0  ;;  %v5008_v14 = vadd.f32 %v8597_v46, %v4937_v6  ;;  %v4940_v42 = vadd.f32 %v6853_v33, %v4390_v25  ;;  %v4388_v41 = vadd.f32 %v4159_v19, %v8391_v10 }
 0x2ac   : > { %v6790_v45 = vpop.f32.mrf.mxu1  ;;  %v6856_v0 = vpop.f32.mrf.mxu0 }
 0x2ad   : > { %5139 = vst.msk [vmem:[%s8605_s16 + $0x50] sm:$0xff] %vm5128_vm3, %v5074_v56  ;;  %v5072_v12 = vmax.f32 %v5008_v14, 0.0  ;;  %v5011_v21 = vadd.f32 %v8597_v46, %v4940_v42  ;;  %v4938_v11 = vadd.f32 %v4709_v60, %v4388_v41  ;;  %v4393_v53 = vadd.f32 %v6790_v45, %v8402_v20 }
 0x2ae   : > { %v4172_v22 = vpop.f32.mrf.mxu1  ;;  %v4722_v61 = vpop.f32.mrf.mxu0 }
 0x2af   : > { %5137 = vst.msk [vmem:[%s8605_s16 + $0x40] sm:$0xff] %vm5128_vm3, %v5072_v12  ;;  %v5075_v28 = vmax.f32 %v5011_v21, 0.0  ;;  %v5009_v9 = vadd.f32 %v8597_v46, %v4938_v11  ;;  %v4943_v10 = vadd.f32 %v6856_v0, %v4393_v53  ;;  %v4391_v30 = vadd.f32 %v4172_v22, %v8405_v18 }
 0x2b0   : > { %v6791_v57 = vpop.f32.mrf.mxu1  ;;  %v6857_v48 = vpop.f32.mrf.mxu0 }
 0x2b1   : > { %5140 = vst.msk [vmem:[%s8605_s16 + $0x58] sm:$0xff] %vm5128_vm3, %v5075_v28  ;;  %v5073_v29 = vmax.f32 %v5009_v9, 0.0  ;;  %v5014_v47 = vadd.f32 %v8597_v46, %v4943_v10  ;;  %v4941_v20 = vadd.f32 %v4722_v61, %v4391_v30  ;;  %v4394_v33 = vadd.f32 %v6791_v57, %v8408_v51  ;;  %v9018_v9 = vld [vmem:[#allocation20_spill] sm:$0xff] }
 0x2b2   : > { %v4175_v24 = vpop.f32.mrf.mxu1  ;;  %v4725_v34 = vpop.f32.mrf.mxu0 }
 0x2b3   : > { %5138 = vst.msk [vmem:[%s8605_s16 + $0x48] sm:$0xff] %vm5128_vm3, %v5073_v29  ;;  %v5078_v6 = vmax.f32 %v5014_v47, 0.0  ;;  %v5012_v25 = vadd.f32 %v8597_v46, %v4941_v20  ;;  %v4944_v18 = vadd.f32 %v6857_v48, %v4394_v33  ;;  %v4392_v19 = vadd.f32 %v4175_v24, %v8415_v35  ;;  %v9019_v47 = vld [vmem:[#allocation21_spill] sm:$0xff] }
 0x2b4   : > { %v6794_v60 = vpop.f32.mrf.mxu1  ;;  %v6860_v56 = vpop.f32.mrf.mxu0 }
 0x2b5   : > { %5143 = vst.msk [vmem:[%s8605_s16 + $0x70] sm:$0xff] %vm5128_vm3, %v5078_v6  ;;  %v5076_v14 = vmax.f32 %v5012_v25, 0.0  ;;  %v5015_v42 = vadd.f32 %v8597_v46, %v4944_v18  ;;  %v4942_v51 = vadd.f32 %v4725_v34, %v4392_v19  ;;  %v4397_v41 = vadd.f32 %v6794_v60, %v8426_v39 }
 0x2b6   : > { %v4188_v45 = vpop.f32.mrf.mxu1  ;;  %v4738_v0 = vpop.f32.mrf.mxu0 }
 0x2b7   : > { %5141 = vst.msk [vmem:[%s8605_s16 + $0x60] sm:$0xff] %vm5128_vm3, %v5076_v14  ;;  %v5079_v12 = vmax.f32 %v5015_v42, 0.0  ;;  %v5013_v21 = vadd.f32 %v8597_v46, %v4942_v51  ;;  %v4947_v35 = vadd.f32 %v6860_v56, %v4397_v41  ;;  %v4395_v11 = vadd.f32 %v4188_v45, %v8429_v32 }
 0x2b8   : > { %v6795_v53 = vpop.f32.mrf.mxu1  ;;  %v6861_v22 = vpop.f32.mrf.mxu0 }
 0x2b9   : > { %5144 = vst.msk [vmem:[%s8605_s16 + $0x78] sm:$0xff] %vm5128_vm3, %v5079_v12  ;;  %v5077_v61 = vmax.f32 %v5013_v21, 0.0  ;;  %v5018_v28 = vadd.f32 %v8597_v46, %v4947_v35  ;;  %v4945_v39 = vadd.f32 %v4738_v0, %v4395_v11  ;;  %v4398_v10 = vadd.f32 %v6795_v53, %v9018_v9 }
 0x2ba   : > { %v4191_v30 = vpop.f32.mrf.mxu1  ;;  %v4741_v57 = vpop.f32.mrf.mxu0 }
 0x2bb   : > { %5142 = vst.msk [vmem:[%s8605_s16 + $0x68] sm:$0xff] %vm5128_vm3, %v5077_v61  ;;  %v5082_v48 = vmax.f32 %v5018_v28, 0.0  ;;  %v5016_v29 = vadd.f32 %v8597_v46, %v4945_v39  ;;  %v4948_v32 = vadd.f32 %v6861_v22, %v4398_v10  ;;  %v4396_v20 = vadd.f32 %v4191_v30, %v9019_v47 }
 0x2bc   : > { %v6798_v33 = vpop.f32.mrf.mxu1  ;;  %v6864_v24 = vpop.f32.mrf.mxu0 }
 0x2bd   : > { %5147 = vst.msk [vmem:[%s8605_s16 + $0x90] sm:$0xff] %vm5128_vm3, %v5082_v48  ;;  %v5080_v34 = vmax.f32 %v5016_v29, 0.0  ;;  %v5019_v6 = vadd.f32 %v8597_v46, %v4948_v32  ;;  %v4946_v25 = vadd.f32 %v4741_v57, %v4396_v20  ;;  %v4401_v18 = vadd.f32 %v6798_v33, %v8450_v62 }
 0x2be   : > { %v4204_v19 = vpop.f32.mrf.mxu1  ;;  %v4754_v60 = vpop.f32.mrf.mxu0 }
 0x2bf   : > { %5145 = vst.msk [vmem:[%s8605_s16 + $0x80] sm:$0xff] %vm5128_vm3, %v5080_v34  ;;  %v5083_v56 = vmax.f32 %v5019_v6, 0.0  ;;  %v5017_v14 = vadd.f32 %v8597_v46, %v4946_v25  ;;  %v4951_v42 = vadd.f32 %v6864_v24, %v4401_v18  ;;  %v4399_v51 = vadd.f32 %v4204_v19, %v8453_v7 }
 0x2c0   : > { %v6799_v41 = vpop.f32.mrf.mxu1  ;;  %v6865_v45 = vpop.f32.mrf.mxu0 }
 0x2c1   : > { %5148 = vst.msk [vmem:[%s8605_s16 + $0x98] sm:$0xff] %vm5128_vm3, %v5083_v56  ;;  %v5081_v0 = vmax.f32 %v5017_v14, 0.0  ;;  %v5022_v12 = vadd.f32 %v8597_v46, %v4951_v42  ;;  %v4949_v62 = vadd.f32 %v4754_v60, %v4399_v51  ;;  %v4402_v21 = vadd.f32 %v6799_v41, %v8456_v36 }
 0x2c2   : > { %v4207_v35 = vpop.f32.mrf.mxu1  ;;  %v4757_v11 = vpop.f32.mrf.mxu0 }
 0x2c3   : > { %5146 = vst.msk [vmem:[%s8605_s16 + $0x88] sm:$0xff] %vm5128_vm3, %v5081_v0  ;;  %v5086_v53 = vmax.f32 %v5022_v12, 0.0  ;;  %v5020_v22 = vadd.f32 %v8597_v46, %v4949_v62  ;;  %v4952_v7 = vadd.f32 %v6865_v45, %v4402_v21  ;;  %v4400_v61 = vadd.f32 %v4207_v35, %v8462_v3 }
 0x2c4   : > { %v6802_v28 = vpop.f32.mrf.mxu1  ;;  %v6868_v39 = vpop.f32.mrf.mxu0 }
 0x2c5   : > { %5151 = vst.msk [vmem:[%s8605_s16 + $0xb0] sm:$0xff] %vm5128_vm3, %v5086_v53  ;;  %v5084_v9 = vmax.f32 %v5020_v22, 0.0  ;;  %v5023_v10 = vadd.f32 %v8597_v46, %v4952_v7  ;;  %v4950_v36 = vadd.f32 %v4757_v11, %v4400_v61  ;;  %v4405_v30 = vadd.f32 %v6802_v28, %v8470_v55 }
 0x2c6   : > { %v4220_v57 = vpop.f32.mrf.mxu1  ;;  %v4770_v48 = vpop.f32.mrf.mxu0 }
 0x2c7   : > { %5149 = vst.msk [vmem:[%s8605_s16 + $0xa0] sm:$0xff] %vm5128_vm3, %v5084_v9  ;;  %v5087_v29 = vmax.f32 %v5023_v10, 0.0  ;;  %v5021_v32 = vadd.f32 %v8597_v46, %v4950_v36  ;;  %v4955_v3 = vadd.f32 %v6868_v39, %v4405_v30  ;;  %v4403_v47 = vadd.f32 %v4220_v57, %v8473_v15 }
 0x2c8   : > { %v6803_v20 = vpop.f32.mrf.mxu1  ;;  %v6869_v33 = vpop.f32.mrf.mxu0 }
 0x2c9   : > { %5152 = vst.msk [vmem:[%s8605_s16 + $0xb8] sm:$0xff] %vm5128_vm3, %v5087_v29  ;;  %v5085_v24 = vmax.f32 %v5021_v32, 0.0  ;;  %v5026_v34 = vadd.f32 %v8597_v46, %v4955_v3  ;;  %v4953_v55 = vadd.f32 %v4770_v48, %v4403_v47  ;;  %v4406_v6 = vadd.f32 %v6803_v20, %v8476_v40 }
 0x2ca   : > { %v4223_v25 = vpop.f32.mrf.mxu1  ;;  %v4773_v18 = vpop.f32.mrf.mxu0 }
 0x2cb   : > { %5150 = vst.msk [vmem:[%s8605_s16 + $0xa8] sm:$0xff] %vm5128_vm3, %v5085_v24  ;;  %v5090_v19 = vmax.f32 %v5026_v34, 0.0  ;;  %v5024_v60 = vadd.f32 %v8597_v46, %v4953_v55  ;;  %v4956_v15 = vadd.f32 %v6869_v33, %v4406_v6  ;;  %v4404_v56 = vadd.f32 %v4223_v25, %v8481_v58 }
 0x2cc   : > { %v6806_v14 = vpop.f32.mrf.mxu1  ;;  %v6872_v42 = vpop.f32.mrf.mxu0 }
 0x2cd   : > { %5155 = vst.msk [vmem:[%s8605_s16 + $0xd0] sm:$0xff] %vm5128_vm3, %v5090_v19  ;;  %v5088_v51 = vmax.f32 %v5024_v60, 0.0  ;;  %v5027_v41 = vadd.f32 %v8597_v46, %v4956_v15  ;;  %v4954_v40 = vadd.f32 %v4773_v18, %v4404_v56  ;;  %v4409_v45 = vadd.f32 %v6806_v14, %v8484_v26 }
 0x2ce   : > { %v4236_v0 = vpop.f32.mrf.mxu1  ;;  %v4786_v12 = vpop.f32.mrf.mxu0 }
 0x2cf   : > { %5153 = vst.msk [vmem:[%s8605_s16 + $0xc0] sm:$0xff] %vm5128_vm3, %v5088_v51  ;;  %v5091_v62 = vmax.f32 %v5027_v41, 0.0  ;;  %v5025_v21 = vadd.f32 %v8597_v46, %v4954_v40  ;;  %v4959_v58 = vadd.f32 %v6872_v42, %v4409_v45  ;;  %v4407_v35 = vadd.f32 %v4236_v0, %v8487_v31 }
 0x2d0   : > { %v6807_v11 = vpop.f32.mrf.mxu1  ;;  %v6873_v53 = vpop.f32.mrf.mxu0 }
 0x2d1   : > { %5156 = vst.msk [vmem:[%s8605_s16 + $0xd8] sm:$0xff] %vm5128_vm3, %v5091_v62  ;;  %v5089_v22 = vmax.f32 %v5025_v21, 0.0  ;;  %v5030_v7 = vadd.f32 %v8597_v46, %v4959_v58  ;;  %v4957_v26 = vadd.f32 %v4786_v12, %v4407_v35  ;;  %v4410_v61 = vadd.f32 %v6807_v11, %v8490_v44 }
 0x2d2   : > { %v4239_v28 = vpop.f32.mrf.mxu1  ;;  %v4789_v39 = vpop.f32.mrf.mxu0 }
 0x2d3   : > { %5154 = vst.msk [vmem:[%s8605_s16 + $0xc8] sm:$0xff] %vm5128_vm3, %v5089_v22  ;;  %v5094_v9 = vmax.f32 %v5030_v7, 0.0  ;;  %v5028_v10 = vadd.f32 %v8597_v46, %v4957_v26  ;;  %v4960_v31 = vadd.f32 %v6873_v53, %v4410_v61  ;;  %v4408_v36 = vadd.f32 %v4239_v28, %v8493_v37 }
 0x2d4   : > { %v6810_v30 = vpop.f32.mrf.mxu1  ;;  %v6876_v57 = vpop.f32.mrf.mxu0 }
 0x2d5   : > { %5159 = vst.msk [vmem:[%s8605_s16 + $0xf0] sm:$0xff] %vm5128_vm3, %v5094_v9  ;;  %v5092_v48 = vmax.f32 %v5028_v10, 0.0  ;;  %v5031_v29 = vadd.f32 %v8597_v46, %v4960_v31  ;;  %v4958_v44 = vadd.f32 %v4789_v39, %v4408_v36  ;;  %v4413_v32 = vadd.f32 %v6810_v30, %v8496_v5 }
 0x2d6   : > { %v4252_v3 = vpop.f32.mrf.mxu1  ;;  %v4802_v47 = vpop.f32.mrf.mxu0 }
 0x2d7   : > { %5157 = vst.msk [vmem:[%s8605_s16 + $0xe0] sm:$0xff] %vm5128_vm3, %v5092_v48  ;;  %v5095_v20 = vmax.f32 %v5031_v29, 0.0  ;;  %v5029_v33 = vadd.f32 %v8597_v46, %v4958_v44  ;;  %v4963_v37 = vadd.f32 %v6876_v57, %v4413_v32  ;;  %v4411_v24 = vadd.f32 %v4252_v3, %v8499_v16  ;;  %v9020_v57 = vld [vmem:[#allocation22_spill] sm:$0xff] }
 0x2d8   : > { %v6811_v34 = vpop.f32.mrf.mxu1  ;;  %v6877_v55 = vpop.f32.mrf.mxu0 }
 0x2d9   : > { %5160 = vst.msk [vmem:[%s8605_s16 + $0xf8] sm:$0xff] %vm5128_vm3, %v5095_v20  ;;  %v5093_v6 = vmax.f32 %v5029_v33, 0.0  ;;  %v5034_v25 = vadd.f32 %v8597_v46, %v4963_v37  ;;  %v4961_v5 = vadd.f32 %v4802_v47, %v4411_v24  ;;  %v4414_v18 = vadd.f32 %v6811_v34, %v8502_v23  ;;  %v9021_v47 = vld [vmem:[#allocation23_spill] sm:$0xff] }
 0x2da   : > { %v4255_v19 = vpop.f32.mrf.mxu1  ;;  %v4805_v60 = vpop.f32.mrf.mxu0 }
 0x2db   : > { %5158 = vst.msk [vmem:[%s8605_s16 + $0xe8] sm:$0xff] %vm5128_vm3, %v5093_v6  ;;  %v5098_v15 = vmax.f32 %v5034_v25, 0.0  ;;  %v5032_v56 = vadd.f32 %v8597_v46, %v4961_v5  ;;  %v4964_v16 = vadd.f32 %v6877_v55, %v4414_v18  ;;  %v4412_v14 = vadd.f32 %v4255_v19, %v8505_v17  ;;  %v9022_v6 = vld [vmem:[#allocation24_spill] sm:$0xff] }
 0x2dc   : > { %v6814_v42 = vpop.f32.mrf.mxu1  ;;  %v6880_v51 = vpop.f32.mrf.mxu0 }
 0x2dd   : > { %5163 = vst.msk [vmem:[%s8605_s16 + $0x110] sm:$0xff] %vm5128_vm3, %v5098_v15  ;;  %v5096_v41 = vmax.f32 %v5032_v56, 0.0  ;;  %v5035_v40 = vadd.f32 %v8597_v46, %v4964_v16  ;;  %v4962_v23 = vadd.f32 %v4805_v60, %v4412_v14  ;;  %v4417_v45 = vadd.f32 %v6814_v42, %v8508_v54  ;;  %v9023_v56 = vld [vmem:[#allocation25_spill] sm:$0xff] }
 0x2de   : > { %v4268_v0 = vpop.f32.mrf.mxu1  ;;  %v4818_v12 = vpop.f32.mrf.mxu0 }
 0x2df   : > { %5161 = vst.msk [vmem:[%s8605_s16 + $0x100] sm:$0xff] %vm5128_vm3, %v5096_v41  ;;  %v5099_v62 = vmax.f32 %v5035_v40, 0.0  ;;  %v5033_v21 = vadd.f32 %v8597_v46, %v4962_v23  ;;  %v4967_v17 = vadd.f32 %v6880_v51, %v4417_v45  ;;  %v4415_v58 = vadd.f32 %v4268_v0, %v8511_v49  ;;  %v9024_v23 = vld [vmem:[#allocation26_spill] sm:$0xff] }
 0x2e0   : > { %v6815_v35 = vpop.f32.mrf.mxu1  ;;  %v6881_v11 = vpop.f32.mrf.mxu0 }
 0x2e1   : > { %5164 = vst.msk [vmem:[%s8605_s16 + $0x118] sm:$0xff] %vm5128_vm3, %v5099_v62  ;;  %v5097_v53 = vmax.f32 %v5033_v21, 0.0  ;;  %v5038_v22 = vadd.f32 %v8597_v46, %v4967_v17  ;;  %v4965_v54 = vadd.f32 %v4818_v12, %v4415_v58  ;;  %v4418_v7 = vadd.f32 %v6815_v35, %v8514_v43  ;;  %v9025_v58 = vld [vmem:[#allocation2_spill] sm:$0xff] }
 0x2e2   : > { %v4271_v26 = vpop.f32.mrf.mxu1  ;;  %v4821_v61 = vpop.f32.mrf.mxu0 }
 0x2e3   : > { %5162 = vst.msk [vmem:[%s8605_s16 + $0x108] sm:$0xff] %vm5128_vm3, %v5097_v53  ;;  %v5102_v28 = vmax.f32 %v5038_v22, 0.0  ;;  %v5036_v39 = vadd.f32 %v8597_v46, %v4965_v54  ;;  %v4968_v49 = vadd.f32 %v6881_v11, %v4418_v7  ;;  %v4416_v9 = vadd.f32 %v4271_v26, %v8517_v27  ;;  %v9026_v26 = vld [vmem:[#allocation3_spill] sm:$0xff] }
 0x2e4   : > { %v6818_v10 = vpop.f32.mrf.mxu1  ;;  %v6884_v31 = vpop.f32.mrf.mxu0 }
 0x2e5   : > { %5167 = vst.msk [vmem:[%s8605_s16 + $0x130] sm:$0xff] %vm5128_vm3, %v5102_v28  ;;  %v5100_v36 = vmax.f32 %v5036_v39, 0.0  ;;  %v5039_v30 = vadd.f32 %v8597_v46, %v4968_v49  ;;  %v4966_v43 = vadd.f32 %v4821_v61, %v4416_v9  ;;  %v4421_v48 = vadd.f32 %v6818_v10, %v9020_v57 }
 0x2e6   : > { %v4284_v29 = vpop.f32.mrf.mxu1  ;;  %v4834_v44 = vpop.f32.mrf.mxu0 }
 0x2e7   : > { %5165 = vst.msk [vmem:[%s8605_s16 + $0x120] sm:$0xff] %vm5128_vm3, %v5100_v36  ;;  %v5103_v32 = vmax.f32 %v5039_v30, 0.0  ;;  %v5037_v3 = vadd.f32 %v8597_v46, %v4966_v43  ;;  %v4971_v27 = vadd.f32 %v6884_v31, %v4421_v48  ;;  %v4419_v20 = vadd.f32 %v4284_v29, %v9021_v47  ;;  %v9027_v31 = vld [vmem:[#allocation4_spill] sm:$0xff] }
 0x2e8   : > { %v6819_v33 = vpop.f32.mrf.mxu1  ;;  %v6885_v37 = vpop.f32.mrf.mxu0 }
 0x2e9   : > { %5168 = vst.msk [vmem:[%s8605_s16 + $0x138] sm:$0xff] %vm5128_vm3, %v5103_v32  ;;  %v5101_v24 = vmax.f32 %v5037_v3, 0.0  ;;  %v5042_v34 = vadd.f32 %v8597_v46, %v4971_v27  ;;  %v4969_v55 = vadd.f32 %v4834_v44, %v4419_v20  ;;  %v4422_v25 = vadd.f32 %v6819_v33, %v9022_v6  ;;  %v9028_v44 = vld [vmem:[#allocation5_spill] sm:$0xff] }
 0x2ea   : > { %v4287_v5 = vpop.f32.mrf.mxu1  ;;  %v4837_v18 = vpop.f32.mrf.mxu0 }
 0x2eb   : > { %5166 = vst.msk [vmem:[%s8605_s16 + $0x128] sm:$0xff] %vm5128_vm3, %v5101_v24  ;;  %v5106_v19 = vmax.f32 %v5042_v34, 0.0  ;;  %v5040_v60 = vadd.f32 %v8597_v46, %v4969_v55  ;;  %v4972_v15 = vadd.f32 %v6885_v37, %v4422_v25  ;;  %v4420_v16 = vadd.f32 %v4287_v5, %v9023_v56  ;;  %v9029_v37 = vld [vmem:[#allocation6_spill] sm:$0xff] }
 0x2ec   : > { %v6822_v14 = vpop.f32.mrf.mxu1  ;;  %v6888_v42 = vpop.f32.mrf.mxu0 }
 0x2ed   : > { %5171 = vst.msk [vmem:[%s8605_s16 + $0x150] sm:$0xff] %vm5128_vm3, %v5106_v19  ;;  %v5104_v51 = vmax.f32 %v5040_v60, 0.0  ;;  %v5043_v41 = vadd.f32 %v8597_v46, %v4972_v15  ;;  %v4970_v40 = vadd.f32 %v4837_v18, %v4420_v16  ;;  %v4425_v45 = vadd.f32 %v6822_v14, %v9024_v23  ;;  %v9030_v18 = vld [vmem:[#allocation7_spill] sm:$0xff] }
 0x2ee   : > { %v4300_v0 = vpop.f32.mrf.mxu1  ;;  %v4850_v12 = vpop.f32.mrf.mxu0 }
 0x2ef   : > { %5169 = vst.msk [vmem:[%s8605_s16 + $0x140] sm:$0xff] %vm5128_vm3, %v5104_v51  ;;  %v5107_v62 = vmax.f32 %v5043_v41, 0.0  ;;  %v5041_v21 = vadd.f32 %v8597_v46, %v4970_v40  ;;  %v4975_v17 = vadd.f32 %v6888_v42, %v4425_v45  ;;  %v4423_v35 = vadd.f32 %v4300_v0, %v9025_v58  ;;  %v9031_v42 = vld [vmem:[#allocation8_spill] sm:$0xff] }
 0x2f0   : > { %v6823_v11 = vpop.f32.mrf.mxu1  ;;  %v6889_v53 = vpop.f32.mrf.mxu0 }
 0x2f1   : > { %5172 = vst.msk [vmem:[%s8605_s16 + $0x158] sm:$0xff] %vm5128_vm3, %v5107_v62  ;;  %v5105_v22 = vmax.f32 %v5041_v21, 0.0  ;;  %v5046_v54 = vadd.f32 %v8597_v46, %v4975_v17  ;;  %v4973_v7 = vadd.f32 %v4850_v12, %v4423_v35  ;;  %v4426_v61 = vadd.f32 %v6823_v11, %v9026_v26  ;;  %v9032_v12 = vld [vmem:[#allocation9_spill] sm:$0xff] }
 0x2f2   : > { %v4303_v28 = vpop.f32.mrf.mxu1  ;;  %v4853_v39 = vpop.f32.mrf.mxu0 }
 0x2f3   : > { %5170 = vst.msk [vmem:[%s8605_s16 + $0x148] sm:$0xff] %vm5128_vm3, %v5105_v22  ;;  %v5110_v49 = vmax.f32 %v5046_v54, 0.0  ;;  %v5044_v9 = vadd.f32 %v8597_v46, %v4973_v7  ;;  %v4976_v10 = vadd.f32 %v6889_v53, %v4426_v61  ;;  %v4424_v36 = vadd.f32 %v4303_v28, %v9027_v31  ;;  %v9033_v31 = vld [vmem:[#allocation10_spill] sm:$0xff] }
 0x2f4   : > { %v6826_v30 = vpop.f32.mrf.mxu1  ;;  %v6892_v43 = vpop.f32.mrf.mxu0 }
 0x2f5   : > { %5175 = vst.msk [vmem:[%s8605_s16 + $0x170] sm:$0xff] %vm5128_vm3, %v5110_v49  ;;  %v5108_v57 = vmax.f32 %v5044_v9, 0.0  ;;  %v5047_v48 = vadd.f32 %v8597_v46, %v4976_v10  ;;  %v4974_v29 = vadd.f32 %v4853_v39, %v4424_v36  ;;  %v4429_v32 = vadd.f32 %v6826_v30, %v9028_v44 }
 0x2f6   : > { %v4316_v3 = vpop.f32.mrf.mxu1  ;;  %v4866_v27 = vpop.f32.mrf.mxu0 }
 0x2f7   : > { %5173 = vst.msk [vmem:[%s8605_s16 + $0x160] sm:$0xff] %vm5128_vm3, %v5108_v57  ;;  %v5111_v47 = vmax.f32 %v5047_v48, 0.0  ;;  %v5045_v20 = vadd.f32 %v8597_v46, %v4974_v29  ;;  %v4979_v33 = vadd.f32 %v6892_v43, %v4429_v32  ;;  %v4427_v24 = vadd.f32 %v4316_v3, %v9029_v37 }
 0x2f8   : > { %v6827_v34 = vpop.f32.mrf.mxu1  ;;  %v6893_v55 = vpop.f32.mrf.mxu0 }
 0x2f9   : > { %5176 = vst.msk [vmem:[%s8605_s16 + $0x178] sm:$0xff] %vm5128_vm3, %v5111_v47  ;;  %v5109_v6 = vmax.f32 %v5045_v20, 0.0  ;;  %v5050_v25 = vadd.f32 %v8597_v46, %v4979_v33  ;;  %v4977_v5 = vadd.f32 %v4866_v27, %v4427_v24  ;;  %v4430_v19 = vadd.f32 %v6827_v34, %v9030_v18 }
 0x2fa   : > { %v4319_v60 = vpop.f32.mrf.mxu1  ;;  %v4869_v15 = vpop.f32.mrf.mxu0 }
 0x2fb   : > { %5174 = vst.msk [vmem:[%s8605_s16 + $0x168] sm:$0xff] %vm5128_vm3, %v5109_v6  ;;  %v5114_v56 = vmax.f32 %v5050_v25, 0.0  ;;  %v5048_v16 = vadd.f32 %v8597_v46, %v4977_v5  ;;  %v4980_v14 = vadd.f32 %v6893_v55, %v4430_v19  ;;  %v4428_v51 = vadd.f32 %v4319_v60, %v9031_v42 }
 0x2fc   : > { %v6830_v41 = vpop.f32.mrf.mxu1  ;;  %v6896_v40 = vpop.f32.mrf.mxu0 }
 0x2fd   : > { %5179 = vst.msk [vmem:[%s8605_s16 + $0x190] sm:$0xff] %vm5128_vm3, %v5114_v56  ;;  %v5112_v23 = vmax.f32 %v5048_v16, 0.0  ;;  %v5051_v45 = vadd.f32 %v8597_v46, %v4980_v14  ;;  %v4978_v0 = vadd.f32 %v4869_v15, %v4428_v51  ;;  %v4433_v62 = vadd.f32 %v6830_v41, %v9032_v12 }
 0x2fe   : > { %v4332_v21 = vpop.f32.mrf.mxu1  ;;  %v4882_v17 = vpop.f32.mrf.mxu0 }
 0x2ff   : > { %5177 = vst.msk [vmem:[%s8605_s16 + $0x180] sm:$0xff] %vm5128_vm3, %v5112_v23  ;;  %v5115_v58 = vmax.f32 %v5051_v45, 0.0  ;;  %v5049_v35 = vadd.f32 %v8597_v46, %v4978_v0  ;;  %v4983_v11 = vadd.f32 %v6896_v40, %v4433_v62  ;;  %v4431_v53 = vadd.f32 %v4332_v21, %v8559_v1 }
 0x300   : > { %v6831_v22 = vpop.f32.mrf.mxu1  ;;  %v6897_v54 = vpop.f32.mrf.mxu0 }
 0x301   : > { %5180 = vst.msk [vmem:[%s8605_s16 + $0x198] sm:$0xff] %vm5128_vm3, %v5115_v58  ;;  %v5113_v7 = vmax.f32 %v5049_v35, 0.0  ;;  %v5054_v26 = vadd.f32 %v8597_v46, %v4983_v11  ;;  %v4981_v61 = vadd.f32 %v4882_v17, %v4431_v53  ;;  %v4434_v28 = vadd.f32 %v6831_v22, %v8562_v50 }
 0x302   : > { %v4335_v39 = vpop.f32.mrf.mxu1  ;;  %v4885_v49 = vpop.f32.mrf.mxu0 }
 0x303   : > { %5178 = vst.msk [vmem:[%s8605_s16 + $0x188] sm:$0xff] %vm5128_vm3, %v5113_v7  ;;  %v5118_v9 = vmax.f32 %v5054_v26, 0.0  ;;  %v5052_v10 = vadd.f32 %v8597_v46, %v4981_v61  ;;  %v4984_v1 = vadd.f32 %v6897_v54, %v4434_v28  ;;  %v4432_v36 = vadd.f32 %v4335_v39, %v9033_v31 }
 0x304   : > { %v6834_v30 = vpop.f32.mrf.mxu1  ;;  %v6900_v43 = vpop.f32.mrf.mxu0 }
 0x305   : > { %5183 = vst.msk [vmem:[%s8605_s16 + $0x1b0] sm:$0xff] %vm5128_vm3, %v5118_v9  ;;  %v5116_v57 = vmax.f32 %v5052_v10, 0.0  ;;  %v5055_v48 = vadd.f32 %v8597_v46, %v4984_v1  ;;  %v4982_v50 = vadd.f32 %v4885_v49, %v4432_v36  ;;  %v4437_v29 = vadd.f32 %v6834_v30, %v8568_v2 }
 0x306   : > { %v4348_v44 = vpop.f32.mrf.mxu1  ;;  %v4898_v32 = vpop.f32.mrf.mxu0 }
 0x307   : > { %5181 = vst.msk [vmem:[%s8605_s16 + $0x1a0] sm:$0xff] %vm5128_vm3, %v5116_v57  ;;  %v5119_v3 = vmax.f32 %v5055_v48, 0.0  ;;  %v5053_v27 = vadd.f32 %v8597_v46, %v4982_v50  ;;  %v4987_v47 = vadd.f32 %v6900_v43, %v4437_v29  ;;  %v4435_v20 = vadd.f32 %v4348_v44, %v8571_v59 }
 0x308   : > { %v6835_v33 = vpop.f32.mrf.mxu1  ;;  %v6901_v37 = vpop.f32.mrf.mxu0 }
 0x309   : > { %5184 = vst.msk [vmem:[%s8605_s16 + $0x1b8] sm:$0xff] %vm5128_vm3, %v5119_v3  ;;  %v5117_v24 = vmax.f32 %v5053_v27, 0.0  ;;  %v5058_v34 = vadd.f32 %v8597_v46, %v4987_v47  ;;  %v4985_v2 = vadd.f32 %v4898_v32, %v4435_v20  ;;  %v4438_v55 = vadd.f32 %v6835_v33, %v8574_v52 }
 0x30a   : > { %v4351_v6 = vpop.f32.mrf.mxu1  ;;  %v4901_v25 = vpop.f32.mrf.mxu0 }
 0x30b   : > { %5182 = vst.msk [vmem:[%s8605_s16 + $0x1a8] sm:$0xff] %vm5128_vm3, %v5117_v24  ;;  %v5122_v5 = vmax.f32 %v5058_v34, 0.0  ;;  %v5056_v18 = vadd.f32 %v8597_v46, %v4985_v2  ;;  %v4988_v59 = vadd.f32 %v6901_v37, %v4438_v55  ;;  %v4436_v19 = vadd.f32 %v4351_v6, %v8579_v63 }
 0x30c   : > { %v6838_v60 = vpop.f32.mrf.mxu1  ;;  %v6904_v15 = vpop.f32.mrf.mxu0 }
 0x30d   : > { %5187 = vst.msk [vmem:[%s8605_s16 + $0x1d0] sm:$0xff] %vm5128_vm3, %v5122_v5  ;;  %v5120_v56 = vmax.f32 %v5056_v18, 0.0  ;;  %v5059_v16 = vadd.f32 %v8597_v46, %v4988_v59  ;;  %v4986_v52 = vadd.f32 %v4901_v25, %v4436_v19  ;;  %v4441_v14 = vadd.f32 %v6838_v60, %v8582_v38 }
 0x30e   : > { %v4364_v42 = vpop.f32.mrf.mxu1  ;;  %v4914_v51 = vpop.f32.mrf.mxu0 }
 0x30f   : > { %5185 = vst.msk [vmem:[%s8605_s16 + $0x1c0] sm:$0xff] %vm5128_vm3, %v5120_v56  ;;  %v5123_v41 = vmax.f32 %v5059_v16, 0.0  ;;  %v5057_v40 = vadd.f32 %v8597_v46, %v4986_v52  ;;  %v4991_v63 = vadd.f32 %v6904_v15, %v4441_v14  ;;  %v4439_v23 = vadd.f32 %v4364_v42, %v8585_v4 }
 0x310   : > { %v6839_v45 = vpop.f32.mrf.mxu1  ;;  %v6905_v0 = vpop.f32.mrf.mxu0 }
 0x311   : > { %5188 = vst.msk [vmem:[%s8605_s16 + $0x1d8] sm:$0xff] %vm5128_vm3, %v5123_v41  ;;  %v5121_v12 = vmax.f32 %v5057_v40, 0.0  ;;  %v5062_v38 = vadd.f32 %v8597_v46, %v4991_v63  ;;  %v4989_v62 = vadd.f32 %v4914_v51, %v4439_v23  ;;  %v4442_v21 = vadd.f32 %v6839_v45, %v8588_v8 }
 0x312   : > { %v4367_v17 = vpop.f32.mrf.mxu1  ;;  %v4917_v53 = vpop.f32.mrf.mxu0 }
 0x313   : > { %5186 = vst.msk [vmem:[%s8605_s16 + $0x1c8] sm:$0xff] %vm5128_vm3, %v5121_v12  ;;  %v5126_v58 = vmax.f32 %v5062_v38, 0.0  ;;  %v5060_v35 = vadd.f32 %v8597_v46, %v4989_v62  ;;  %v4992_v4 = vadd.f32 %v6905_v0, %v4442_v21  ;;  %v4440_v11 = vadd.f32 %v4367_v17, %v8591_v13 }
 0x315   : > { %5191 = vst.msk [vmem:[%s8605_s16 + $0x1f0] sm:$0xff] %vm5128_vm3, %v5126_v58  ;;  %v5124_v22 = vmax.f32 %v5060_v35, 0.0  ;;  %v5063_v54 = vadd.f32 %v8597_v46, %v4992_v4  ;;  %v4990_v7 = vadd.f32 %v4917_v53, %v4440_v11 }
 0x317   : > { %5189 = vst.msk [vmem:[%s8605_s16 + $0x1e0] sm:$0xff] %vm5128_vm3, %v5124_v22  ;;  %v5127_v8 = vmax.f32 %v5063_v54, 0.0  ;;  %v5061_v26 = vadd.f32 %v8597_v46, %v4990_v7 }
 0x319   : > { %5192 = vst.msk [vmem:[%s8605_s16 + $0x1f8] sm:$0xff] %vm5128_vm3, %v5127_v8  ;;  %v5125_v61 = vmax.f32 %v5061_v26, 0.0 }
 0x31b   : > { %5190 = vst.msk [vmem:[%s8605_s16 + $0x1e8] sm:$0xff] %vm5128_vm3, %v5125_v61 }
 0x31c PF: > { %s13_s12 = sadd.s32 1, %s6923_s12  }
 0x31d   : > { %p10_p4 = scmp.ge.s32.totalorder %s13_s12, 4  }
 0x31f   :  { %12 = sbr.rel (!%p10_p4) target bundleno = 1 (0x1), region = 73 }

// kernel: _forward_impl.10
= control target key start
LH: loop header
LB: loop body
LE: loop exit
PB: predicated region body
PF: predicated region fallthrough
CT: control target
= control target key end

     0   :  { %s2298_s12 = smov 0   ;;  %s2870_s0 = inlined_call_operand.vmem [shape: f32[4,17,17,16], index: 0, kind: input, shape index: {}]   ;;  %s2871_s1 = inlined_call_operand.vmem [shape: bf16[9,16,32], index: 1, kind: input, shape index: {}]   ;;  %s2872_s2 = inlined_call_operand.vmem [shape: f32[1,32], index: 2, kind: input, shape index: {}]   ;;  %s2873_s3 = inlined_call_operand.vmem [shape: f32[256,32], index: 3, kind: output, shape index: {}]  }
   0x1 LB: > { %s1784_s13 = sadd.s32 4294967295, %s2276_s12   ;;  %p1787_p0 = scmp.ge.s32.totalorder %s2276_s12, 1  ;;  %s2276_s12 = sphi %s2298_s12, %s13_s12  }
   0x2   : > { %p127_p1 = scmp.lt.s32.totalorder %s2276_s12, 3 }
   0x4   : > { %p128_p2 = pnand %p1787_p0, %p127_p1 }
   0x6   : > { %131 = sbr.rel (%p128_p2) target bundleno = 364 (0x16c), region = 32 }
   0xb   : > { %v2261_v0 = vld [vmem:[%s2871_s1 + $0x8] sm:$0xff]   ;;  %s1791_s16 = smul.u32 192, %s1784_s13  ;;  %v2262_v1 = vld [vmem:[%s2871_s1] sm:$0xff]   ;;  %v2263_v2 = vld [vmem:[%s2871_s1 + $0x10] sm:$0xff]   ;;  %vm217_vm0 = vcmask 130048   ;;  %s1788_s9 = sshll.u32 %s1784_s13, 4 }
   0xc   : > { %2089 = vmatprep.subr.bf16.mxu0 %v2261_v0  ;;  %2251 = vmatprep.subr.bf16.mxu1 %v2261_v0  ;;  %v2264_v30 = vld [vmem:[%s2871_s1 + $0x18] sm:$0xff]   ;;  %v2265_v33 = vld [vmem:[%s2871_s1 + $0x20] sm:$0xff]   ;;  %v2407_v52 = vld [vmem:[%s2871_s1 + $0x28] sm:$0xff]   ;;  %p147_p3 = scmp.lt.s32.totalorder %s1788_s9, 31  ;;  %vm1704_vm1 = vcmask 261120  }
   0xd   : > { %s2317_s21 = scalar_lea.vmem %s2870_s0, %s1791_s16  ;;  %2090 = vmatpush3.bf16.msra.mxu0 %v2261_v0  ;;  %2252 = vmatpush3.bf16.msra.mxu1 %v2261_v0  ;;  %v2267_v54 = vld [vmem:[%s2871_s1 + $0x30] sm:$0xff]  }
   0xe   : > { %v1792_v3 = vld [vmem:[%s2317_s21 + $0x198] sm:$0xff]  ;;  %v1793_v4 = vld [vmem:[%s2317_s21 + $0x1a0] sm:$0xff]  ;;  %v1794_v8 = vld [vmem:[%s2317_s21 + $0x1b0] sm:$0xff]  ;;  %2107 = vmatprep.subr.bf16.mxu1 %v2262_v1  ;;  %2125 = vmatprep.subr.bf16.mxu0 %v2263_v2  ;;  %s2913_s9 = smov (!%p147_p3, %s1788_s9), 31 }
   0xf   : > { %v1800_v5 = vld [vmem:[%s2317_s21 + $0x1f8] sm:$0xff]  ;;  %v200_v6 = vpack.c.bf16 %v1793_v4, %v1792_v3  ;;  %v1801_v7 = vld [vmem:[%s2317_s21 + $0x200] sm:$0xff]  ;;  %v1802_v12 = vld [vmem:[%s2317_s21 + $0x210] sm:$0xff]  ;;  %s1789_s13 = sshll.u32 %s2913_s9, 3 }
  0x10   : > { %v1795_v9 = vld [vmem:[%s2317_s21 + $0x1b8] sm:$0xff]  ;;  %v2328_v10 = vpack.c.bf16 %v1801_v7, %v1800_v5  ;;  %v1796_v14 = vld [vmem:[%s2317_s21 + $0x1c8] sm:$0xff]  ;;  %v1797_v16 = vld [vmem:[%s2317_s21 + $0x1d0] sm:$0xff]  ;;  %s2778_s16 = scalar_lea.vmem %s2873_s3, %s1789_s13 }
  0x11   : > { %v2330_v11 = vpack.c.bf16 %v1795_v9, %v1794_v8  ;;  %v1803_v13 = vld [vmem:[%s2317_s21 + $0x218] sm:$0xff]  ;;  %2091 = vmatprep.mubr.msk.bf16.mxu0 %vm217_vm0, %v200_v6  ;;  %v1804_v17 = vld [vmem:[%s2317_s21 + $0x228] sm:$0xff]  ;;  %v1805_v18 = vld [vmem:[%s2317_s21 + $0x230] sm:$0xff]  ;;  %v2345_v19 = vpack.c.bf16 %v1797_v16, %v1796_v14 }
  0x12   : > { %v2336_v15 = vpack.c.bf16 %v1803_v13, %v1802_v12  ;;  %2099 = vmatprep.mubr.msk.bf16.mxu1 %vm217_vm0, %v2328_v10  ;;  %v2347_v20 = vpack.c.bf16 %v1805_v18, %v1804_v17  ;;  %v1798_v21 = vld [vmem:[%s2317_s21 + $0x1e0] sm:$0xff]  ;;  %v1799_v22 = vld [vmem:[%s2317_s21 + $0x1e8] sm:$0xff]  ;;  %v158_v37 = vld [vmem:[%s2317_s21 + $0x18] sm:$0xff] }
  0x13   : > { %2092 = vmatmul.mubr.msk.bf16.vlgmr.msra.gmra.mxu0 %vm217_vm0, %v2330_v11  ;;  %v1806_v23 = vld [vmem:[%s2317_s21 + $0x240] sm:$0xff]  ;;  %v1807_v24 = vld [vmem:[%s2317_s21 + $0x248] sm:$0xff]  ;;  %v2363_v29 = vpack.c.bf16 %v1799_v22, %v1798_v21  ;;  %v160_v39 = vld [vmem:[%s2317_s21 + $0x30] sm:$0xff] }
  0x14   : > { %2100 = vmatmul.mubr.msk.bf16.vlgmr.msra.gmra.mxu1 %vm217_vm0, %v2336_v15  ;;  %2126 = vmatpush3.bf16.msra.mxu0 %v2263_v2  ;;  %v466_v25 = vld [vmem:[%s2317_s21 + $0x1] sm:$0xff]  ;;  %v467_v26 = vld [vmem:[%s2317_s21 + $0x9] sm:$0xff]  ;;  %v2368_v31 = vpack.c.bf16 %v1807_v24, %v1806_v23  ;;  %v468_v35 = vld [vmem:[%s2317_s21 + $0x19] sm:$0xff] }
  0x15   : > { %2108 = vmatpush3.bf16.msra.mxu1 %v2262_v1  ;;  %2095 = vmatprep.mubr.msk.bf16.mxu0 %vm217_vm0, %v2345_v19  ;;  %v156_v27 = vld [vmem:[%s2317_s21] sm:$0xff]  ;;  %v157_v28 = vld [vmem:[%s2317_s21 + $0x8] sm:$0xff]  ;;  %v482_v32 = vpack.c.bf16 %v467_v26, %v466_v25  ;;  %v161_v40 = vld [vmem:[%s2317_s21 + $0x38] sm:$0xff] }
  0x16   : > { %2103 = vmatprep.mubr.msk.bf16.mxu1 %vm217_vm0, %v2347_v20  ;;  %v172_v34 = vpack.c.bf16 %v157_v28, %v156_v27  ;;  %2143 = vmatprep.subr.bf16.mxu1 %v2264_v30  ;;  %v469_v36 = vld [vmem:[%s2317_s21 + $0x21] sm:$0xff]  ;;  %v470_v42 = vld [vmem:[%s2317_s21 + $0x31] sm:$0xff]  ;;  %v471_v43 = vld [vmem:[%s2317_s21 + $0x39] sm:$0xff]  ;;  %v2391_v45 = vpack.c.bf16 %v161_v40, %v160_v39 }
  0x17   : > { %2161 = vmatprep.subr.bf16.mxu0 %v2265_v33  ;;  %v159_v38 = vld [vmem:[%s2317_s21 + $0x20] sm:$0xff]  ;;  %v2385_v41 = vpack.c.bf16 %v469_v36, %v468_v35  ;;  %v2393_v46 = vpack.c.bf16 %v471_v43, %v470_v42  ;;  %v472_v47 = vld [vmem:[%s2317_s21 + $0x49] sm:$0xff]  ;;  %v473_v50 = vld [vmem:[%s2317_s21 + $0x51] sm:$0xff] }
  0x18   : > { %v2389_v44 = vpack.c.bf16 %v159_v38, %v158_v37  ;;  %v162_v48 = vld [vmem:[%s2317_s21 + $0x48] sm:$0xff]  ;;  %v163_v49 = vld [vmem:[%s2317_s21 + $0x50] sm:$0xff]  ;;  %v164_v55 = vld [vmem:[%s2317_s21 + $0x60] sm:$0xff]  ;;  %v2420_v57 = vpack.c.bf16 %v473_v50, %v472_v47 }
  0x19   : > { %v474_v51 = vld [vmem:[%s2317_s21 + $0x61] sm:$0xff]  ;;  %v475_v53 = vld [vmem:[%s2317_s21 + $0x69] sm:$0xff]  ;;  %v2422_v58 = vpack.c.bf16 %v163_v49, %v162_v48  ;;  %v166_v61 = vld [vmem:[%s2317_s21 + $0x78] sm:$0xff] }
  0x1a   : > { %v165_v56 = vld [vmem:[%s2317_s21 + $0x68] sm:$0xff]  ;;  %v2424_v59 = vpack.c.bf16 %v475_v53, %v474_v51  ;;  %v476_v62 = vld [vmem:[%s2317_s21 + $0x79] sm:$0xff]  ;;  %v478_v1 = vld [vmem:[%s2317_s21 + $0x91] sm:$0xff] }
  0x1b   : > { %2096 = vmatmul.mubr.msk.bf16.gmra.mxu0 %vm217_vm0, %v2363_v29  ;;  %v2426_v60 = vpack.c.bf16 %v165_v56, %v164_v55  ;;  %v477_v63 = vld [vmem:[%s2317_s21 + $0x81] sm:$0xff]  ;;  %v479_v2 = vld [vmem:[%s2317_s21 + $0x99] sm:$0xff]  ;;  %v168_v3 = vld [vmem:[%s2317_s21 + $0x90] sm:$0xff] }
  0x1c   : > { %2104 = vmatmul.mubr.msk.bf16.gmra.mxu1 %vm217_vm0, %v2368_v31  ;;  %2127 = vmatprep.mubr.msk.bf16.mxu0 %vm217_vm0, %v482_v32  ;;  %v167_v0 = vld [vmem:[%s2317_s21 + $0x80] sm:$0xff]  ;;  %v169_v4 = vld [vmem:[%s2317_s21 + $0x98] sm:$0xff]  ;;  %v2444_v5 = vpack.c.bf16 %v477_v63, %v476_v62  ;;  %v2448_v7 = vpack.c.bf16 %v479_v2, %v478_v1  ;;  %v170_v9 = vld [vmem:[%s2317_s21 + $0xa8] sm:$0xff] }
  0x1d   : > { %2109 = vmatprep.mubr.msk.bf16.mxu1 %vm217_vm0, %v172_v34  ;;  %v2446_v6 = vpack.c.bf16 %v167_v0, %v166_v61  ;;  %v2450_v8 = vpack.c.bf16 %v169_v4, %v168_v3  ;;  %v480_v12 = vld [vmem:[%s2317_s21 + $0xa9] sm:$0xff]  ;;  %v481_v13 = vld [vmem:[%s2317_s21 + $0xb1] sm:$0xff]  ;;  %v1868_v26 = vld [vmem:[%s2317_s21 + $0x4e0] sm:$0xff] }
  0x1e   : > { %v171_v14 = vld [vmem:[%s2317_s21 + $0xb0] sm:$0xff]  ;;  %v1866_v16 = vld [vmem:[%s2317_s21 + $0x4c8] sm:$0xff]  ;;  %v1840_v21 = vld [vmem:[%s2317_s21 + $0x338] sm:$0xff]  ;;  %v2468_v22 = vpack.c.bf16 %v481_v13, %v480_v12 }
  0x1f   : > { %v1867_v17 = vld [vmem:[%s2317_s21 + $0x4d0] sm:$0xff]  ;;  %v2470_v23 = vpack.c.bf16 %v171_v14, %v170_v9  ;;  %v1869_v27 = vld [vmem:[%s2317_s21 + $0x4e8] sm:$0xff]  ;;  %v1843_v32 = vld [vmem:[%s2317_s21 + $0x360] sm:$0xff] }
  0x20   : > { %v1839_v18 = vld [vmem:[%s2317_s21 + $0x330] sm:$0xff]  ;;  %v826_v24 = vpack.c.bf16 %v1867_v17, %v1866_v16  ;;  %v1841_v28 = vld [vmem:[%s2317_s21 + $0x348] sm:$0xff]  ;;  %v827_v34 = vpack.c.bf16 %v1869_v27, %v1868_v26  ;;  %v1870_v35 = vld [vmem:[%s2317_s21 + $0x4f8] sm:$0xff] }
  0x21   : > { %v654_v25 = vpack.c.bf16 %v1840_v21, %v1839_v18  ;;  %v1871_v36 = vld [vmem:[%s2317_s21 + $0x500] sm:$0xff]  ;;  %v2489_v40 = vld [vmem:[%s2871_s1 + $0x38] sm:$0xff]   ;;  %v1872_v47 = vld [vmem:[%s2317_s21 + $0x510] sm:$0xff] }
  0x22   : > { %v828_v39 = vpack.c.bf16 %v1871_v36, %v1870_v35  ;;  %v2269_v42 = vld [vmem:[%s2871_s1 + $0x40] sm:$0xff]   ;;  %v1845_v43 = vld [vmem:[%s2317_s21 + $0x378] sm:$0xff]  ;;  %v1874_v50 = vld [vmem:[%s2317_s21 + $0x528] sm:$0xff] }
  0x23   : > { %2128 = vmatmul.mubr.msk.bf16.vlgmr.msra.gmra.mxu0 %vm217_vm0, %v2385_v41  ;;  %v1873_v48 = vld [vmem:[%s2317_s21 + $0x518] sm:$0xff]  ;;  %v1846_v49 = vld [vmem:[%s2317_s21 + $0x380] sm:$0xff]  ;;  %v1875_v51 = vld [vmem:[%s2317_s21 + $0x530] sm:$0xff] }
  0x24   : > { %2110 = vmatmul.mubr.msk.bf16.vlgmr.msra.gmra.mxu1 %vm217_vm0, %v2389_v44  ;;  %2162 = vmatpush3.bf16.msra.mxu0 %v2265_v33  ;;  %v1844_v33 = vld [vmem:[%s2317_s21 + $0x368] sm:$0xff]  ;;  %v1847_v53 = vld [vmem:[%s2317_s21 + $0x390] sm:$0xff]  ;;  %v1848_v55 = vld [vmem:[%s2317_s21 + $0x398] sm:$0xff]  ;;  %v830_v56 = vpack.c.bf16 %v1875_v51, %v1874_v50 }
  0x25   : > { %2144 = vmatpush3.bf16.msra.mxu1 %v2264_v30  ;;  %2113 = vmatprep.mubr.msk.bf16.mxu1 %vm217_vm0, %v2391_v45  ;;  %v1842_v30 = vld [vmem:[%s2317_s21 + $0x350] sm:$0xff]  ;;  %v656_v38 = vpack.c.bf16 %v1844_v33, %v1843_v32  ;;  %v658_v61 = vpack.c.bf16 %v1848_v55, %v1847_v53  ;;  %v1849_v62 = vld [vmem:[%s2317_s21 + $0x3a8] sm:$0xff]  ;;  %v1876_v63 = vld [vmem:[%s2317_s21 + $0x540] sm:$0xff] }
  0x26   : > { %2131 = vmatprep.mubr.msk.bf16.mxu0 %vm217_vm0, %v2393_v46  ;;  %2179 = vmatprep.subr.bf16.mxu1 %v2407_v52  ;;  %v655_v37 = vpack.c.bf16 %v1842_v30, %v1841_v28  ;;  %v1877_v0 = vld [vmem:[%s2317_s21 + $0x548] sm:$0xff]  ;;  %v1850_v1 = vld [vmem:[%s2317_s21 + $0x3b0] sm:$0xff]  ;;  %v1878_v2 = vld [vmem:[%s2317_s21 + $0x558] sm:$0xff] }
  0x27   : > { %2197 = vmatprep.subr.bf16.mxu0 %v2267_v54  ;;  %v1879_v3 = vld [vmem:[%s2317_s21 + $0x560] sm:$0xff]  ;;  %v1852_v9 = vld [vmem:[%s2317_s21 + $0x3c8] sm:$0xff]  ;;  %v831_v12 = vpack.c.bf16 %v1877_v0, %v1876_v63  ;;  %v659_v13 = vpack.c.bf16 %v1850_v1, %v1849_v62  ;;  %v1880_v17 = vld [vmem:[%s2317_s21 + $0x570] sm:$0xff] }
  0x28   : > { %v1851_v4 = vld [vmem:[%s2317_s21 + $0x3c0] sm:$0xff]  ;;  %v832_v14 = vpack.c.bf16 %v1879_v3, %v1878_v2  ;;  %v1881_v18 = vld [vmem:[%s2317_s21 + $0x578] sm:$0xff]  ;;  %v1895_v32 = vld [vmem:[%s2317_s21 + $0x349] sm:$0xff] }
  0x29   : > { %v660_v16 = vpack.c.bf16 %v1852_v9, %v1851_v4  ;;  %v1853_v21 = vld [vmem:[%s2317_s21 + $0x3d8] sm:$0xff]  ;;  %v833_v27 = vpack.c.bf16 %v1881_v18, %v1880_v17  ;;  %v1898_v35 = vld [vmem:[%s2317_s21 + $0x369] sm:$0xff]  ;;  %v1908_v53 = vld [vmem:[%s2317_s21 + $0x3e1] sm:$0xff] }
  0x2a   : > { %v1894_v26 = vld [vmem:[%s2317_s21 + $0x339] sm:$0xff]  ;;  %v1896_v33 = vld [vmem:[%s2317_s21 + $0x351] sm:$0xff]  ;;  %v1937_v51 = vld [vmem:[%s2317_s21 + $0xc8] sm:$0xff] }
  0x2b   : > { %2132 = vmatmul.mubr.msk.bf16.gmra.mxu0 %vm217_vm0, %v2420_v57  ;;  %v997_v36 = vpack.c.bf16 %v1896_v33, %v1895_v32 }
  0x2c   : > { %2114 = vmatmul.mubr.msk.bf16.gmra.mxu1 %vm217_vm0, %v2422_v58  ;;  %2135 = vmatprep.mubr.msk.bf16.mxu0 %vm217_vm0, %v2424_v59 }
  0x2d   : > { %2117 = vmatprep.mubr.msk.bf16.mxu1 %vm217_vm0, %v2426_v60 }
  0x33   : > { %2136 = vmatmul.mubr.msk.bf16.gmra.mxu0 %vm217_vm0, %v2444_v5 }
  0x34   : > { %2118 = vmatmul.mubr.msk.bf16.gmra.mxu1 %vm217_vm0, %v2446_v6  ;;  %2139 = vmatprep.mubr.msk.bf16.mxu0 %vm217_vm0, %v2448_v7 }
  0x35   : > { %2121 = vmatprep.mubr.msk.bf16.mxu1 %vm217_vm0, %v2450_v8 }
  0x3b   : > { %2140 = vmatmul.mubr.msk.bf16.gmra.mxu0 %vm217_vm0, %v2468_v22 }
  0x3c   : > { %2122 = vmatmul.mubr.msk.bf16.gmra.mxu1 %vm217_vm0, %v2470_v23  ;;  %2163 = vmatprep.mubr.msk.bf16.mxu0 %vm217_vm0, %v826_v24  ;;  %v1854_v24 = vld [vmem:[%s2317_s21 + $0x3e0] sm:$0xff] }
  0x3d   : > { %2145 = vmatprep.mubr.msk.bf16.mxu1 %vm217_vm0, %v654_v25  ;;  %v1893_v25 = vld [vmem:[%s2317_s21 + $0x331] sm:$0xff]  ;;  %v661_v28 = vpack.c.bf16 %v1854_v24, %v1853_v21 }
  0x3e   : > { %v996_v30 = vpack.c.bf16 %v1894_v26, %v1893_v25 }
  0x43   : > { %2164 = vmatmul.mubr.msk.bf16.vlgmr.msra.gmra.mxu0 %vm217_vm0, %v827_v34  ;;  %v1897_v34 = vld [vmem:[%s2317_s21 + $0x361] sm:$0xff] }
  0x44   : > { %2146 = vmatmul.mubr.msk.bf16.vlgmr.msra.gmra.mxu1 %vm217_vm0, %v655_v37  ;;  %2198 = vmatpush3.bf16.msra.mxu0 %v2267_v54  ;;  %v829_v54 = vpack.c.bf16 %v1873_v48, %v1872_v47  ;;  %v998_v37 = vpack.c.bf16 %v1898_v35, %v1897_v34  ;;  %v1906_v48 = vld [vmem:[%s2317_s21 + $0x3c9] sm:$0xff] }
  0x45   : > { %2180 = vmatpush3.bf16.msra.mxu1 %v2407_v52  ;;  %2149 = vmatprep.mubr.msk.bf16.mxu1 %vm217_vm0, %v656_v38  ;;  %v657_v52 = vpack.c.bf16 %v1846_v49, %v1845_v43  ;;  %v1900_v38 = vld [vmem:[%s2317_s21 + $0x381] sm:$0xff]  ;;  %v1902_v43 = vld [vmem:[%s2317_s21 + $0x399] sm:$0xff] }
  0x46   : > { %2167 = vmatprep.mubr.msk.bf16.mxu0 %vm217_vm0, %v828_v39  ;;  %2215 = vmatprep.subr.bf16.mxu1 %v2489_v40  ;;  %v1901_v39 = vld [vmem:[%s2317_s21 + $0x391] sm:$0xff] }
  0x47   : > { %2233 = vmatprep.subr.bf16.mxu0 %v2269_v42  ;;  %v1000_v47 = vpack.c.bf16 %v1902_v43, %v1901_v39 }
  0x4b   : > { %2168 = vmatmul.mubr.msk.bf16.gmra.mxu0 %vm217_vm0, %v829_v54 }
  0x4c   : > { %2150 = vmatmul.mubr.msk.bf16.gmra.mxu1 %vm217_vm0, %v657_v52  ;;  %2171 = vmatprep.mubr.msk.bf16.mxu0 %vm217_vm0, %v830_v56 }
  0x4d   : > { %2153 = vmatprep.mubr.msk.bf16.mxu1 %vm217_vm0, %v658_v61 }
  0x53   : > { %2172 = vmatmul.mubr.msk.bf16.gmra.mxu0 %vm217_vm0, %v831_v12 }
  0x54   : > { %2154 = vmatmul.mubr.msk.bf16.gmra.mxu1 %vm217_vm0, %v659_v13  ;;  %2175 = vmatprep.mubr.msk.bf16.mxu0 %vm217_vm0, %v832_v14 }
  0x55   : > { %2157 = vmatprep.mubr.msk.bf16.mxu1 %vm217_vm0, %v660_v16 }
  0x5b   : > { %2176 = vmatmul.mubr.msk.bf16.gmra.mxu0 %vm217_vm0, %v833_v27 }
  0x5c   : > { %2158 = vmatmul.mubr.msk.bf16.gmra.mxu1 %vm217_vm0, %v661_v28  ;;  %2199 = vmatprep.mubr.msk.bf16.mxu0 %vm217_vm0, %v2389_v44  ;;  %v1899_v44 = vld [vmem:[%s2317_s21 + $0x379] sm:$0xff] }
  0x5d   : > { %2181 = vmatprep.mubr.msk.bf16.mxu1 %vm217_vm0, %v996_v30 }
  0x63   : > { %2200 = vmatmul.mubr.msk.bf16.vlgmr.msra.gmra.mxu0 %vm217_vm0, %v2391_v45  ;;  %v999_v45 = vpack.c.bf16 %v1900_v38, %v1899_v44 }
  0x64   : > { %2182 = vmatmul.mubr.msk.bf16.vlgmr.msra.gmra.mxu1 %vm217_vm0, %v997_v36  ;;  %2234 = vmatpush3.bf16.msra.mxu0 %v2269_v42  ;;  %v1905_v42 = vld [vmem:[%s2317_s21 + $0x3c1] sm:$0xff] }
  0x65   : > { %2216 = vmatpush3.bf16.msra.mxu1 %v2489_v40  ;;  %2185 = vmatprep.mubr.msk.bf16.mxu1 %vm217_vm0, %v998_v37  ;;  %v1903_v40 = vld [vmem:[%s2317_s21 + $0x3a9] sm:$0xff]  ;;  %v1002_v50 = vpack.c.bf16 %v1906_v48, %v1905_v42 }
  0x66   : > { %2203 = vmatprep.mubr.msk.bf16.mxu0 %vm217_vm0, %v2422_v58  ;;  %v1904_v58 = vld [vmem:[%s2317_s21 + $0x3b1] sm:$0xff] }
  0x67   : > { %v1001_v49 = vpack.c.bf16 %v1904_v58, %v1903_v40 }
  0x6b   : > { %2204 = vmatmul.mubr.msk.bf16.gmra.mxu0 %vm217_vm0, %v2426_v60  ;;  %v1936_v60 = vld [vmem:[%s2317_s21 + $0xc0] sm:$0xff] }
  0x6c   : > { %2186 = vmatmul.mubr.msk.bf16.gmra.mxu1 %vm217_vm0, %v999_v45  ;;  %2207 = vmatprep.mubr.msk.bf16.mxu0 %vm217_vm0, %v2446_v6  ;;  %v1907_v6 = vld [vmem:[%s2317_s21 + $0x3d9] sm:$0xff]  ;;  %v1176_v55 = vpack.c.bf16 %v1937_v51, %v1936_v60 }
  0x6d   : > { %2189 = vmatprep.mubr.msk.bf16.mxu1 %vm217_vm0, %v1000_v47  ;;  %v1003_v54 = vpack.c.bf16 %v1908_v53, %v1907_v6 }
  0x73   : > { %2208 = vmatmul.mubr.msk.bf16.gmra.mxu0 %vm217_vm0, %v2450_v8 }
  0x74   : > { %2190 = vmatmul.mubr.msk.bf16.gmra.mxu1 %vm217_vm0, %v1001_v49  ;;  %2211 = vmatprep.mubr.msk.bf16.mxu0 %vm217_vm0, %v2470_v23 }
  0x75   : > { %2193 = vmatprep.mubr.msk.bf16.mxu1 %vm217_vm0, %v1002_v50 }
  0x7b   : > { %2212 = vmatmul.mubr.msk.bf16.gmra.mxu0 %vm217_vm0, %v1176_v55 }
  0x7c   : > { %2194 = vmatmul.mubr.msk.bf16.gmra.mxu1 %vm217_vm0, %v1003_v54  ;;  %2235 = vmatprep.mubr.msk.bf16.mxu0 %vm217_vm0, %v2385_v41 }
  0x7d   : > { %2217 = vmatprep.mubr.msk.bf16.mxu1 %vm217_vm0, %v2330_v11  ;;  %v1992_v11 = vld [vmem:[%s2317_s21 + $0xc1] sm:$0xff] }
  0x83   : > { %2236 = vmatmul.mubr.msk.bf16.vlgmr.msra.gmra.mxu0 %vm217_vm0, %v2393_v46 }
  0x84   : > { %2218 = vmatmul.mubr.msk.bf16.vlgmr.msra.gmra.mxu1 %vm217_vm0, %v2345_v19  ;;  %2239 = vmatprep.mubr.msk.bf16.mxu0 %vm217_vm0, %v2420_v57  ;;  %v1993_v19 = vld [vmem:[%s2317_s21 + $0xc9] sm:$0xff] }
  0x85   : > { %2221 = vmatprep.mubr.msk.bf16.mxu1 %vm217_vm0, %v2363_v29  ;;  %v1966_v29 = vld [vmem:[%s2317_s21 + $0x260] sm:$0xff]  ;;  %v1518_v41 = vpack.c.bf16 %v1993_v19, %v1992_v11 }
  0x8b   : > { %2240 = vmatmul.mubr.msk.bf16.gmra.mxu0 %vm217_vm0, %v2424_v59 }
  0x8c   : > { %2222 = vmatmul.mubr.msk.bf16.gmra.mxu1 %vm217_vm0, %v2328_v10  ;;  %2243 = vmatprep.mubr.msk.bf16.mxu0 %vm217_vm0, %v2444_v5  ;;  %v1965_v10 = vld [vmem:[%s2317_s21 + $0x258] sm:$0xff] }
  0x8d   : > { %2225 = vmatprep.mubr.msk.bf16.mxu1 %vm217_vm0, %v2336_v15  ;;  %v1348_v46 = vpack.c.bf16 %v1966_v29, %v1965_v10 }
  0x93   : > { %2244 = vmatmul.mubr.msk.bf16.gmra.mxu0 %vm217_vm0, %v2448_v7 }
  0x94   : > { %2226 = vmatmul.mubr.msk.bf16.gmra.mxu1 %vm217_vm0, %v2347_v20  ;;  %2247 = vmatprep.mubr.msk.bf16.mxu0 %vm217_vm0, %v2468_v22 }
  0x95   : > { %2229 = vmatprep.mubr.msk.bf16.mxu1 %vm217_vm0, %v2368_v31 }
  0x9b   : > { %2248 = vmatmul.mubr.msk.bf16.gmra.mxu0 %vm217_vm0, %v1518_v41 }
  0x9c   : > { %2230 = vmatmul.mubr.msk.bf16.gmra.mxu1 %vm217_vm0, %v1348_v46 }
  0xd3   : > { %v2093_v15 = vpop.f32.mrf.mxu0 }
  0xd4   : > { %v2101_v57 = vpop.f32.mrf.mxu1 }
  0xd5   : > { %v276_v59 = vpop.f32.mrf.mxu0 }
  0xd6   : > { %v308_v20 = vpop.f32.mrf.mxu1 }
  0xd7   : > { %v2094_v5 = vpop.f32.mrf.mxu0 }
  0xd8   : > { %v2102_v7 = vpop.f32.mrf.mxu1 }
  0xd9   : > { %v279_v8 = vpop.f32.mrf.mxu0 }
  0xda   : > { %v311_v22 = vpop.f32.mrf.mxu1 }
  0xdb   : > { %v2097_v23 = vpop.f32.mrf.mxu0 }
  0xdc   : > { %v2105_v52 = vpop.f32.mrf.mxu1 }
  0xdd   : > { %v292_v56 = vpop.f32.mrf.mxu0 }
  0xde   : > { %v324_v31 = vpop.f32.mrf.mxu1 }
  0xdf   : > { %v2098_v61 = vpop.f32.mrf.mxu0 }
  0xe0   : > { %v2106_v62 = vpop.f32.mrf.mxu1 }
  0xe1   : > { %v295_v63 = vpop.f32.mrf.mxu0 }
  0xe2   : > { %v2606_v0 = vpop.f32.mrf.mxu1 }
  0xe3   : > { %v2129_v1 = vpop.f32.mrf.mxu0 }
  0xe4   : > { %v2111_v2 = vpop.f32.mrf.mxu1 }
  0xe5   : > { %v412_v3 = vadd.f32 %v2111_v2, %v2093_v15  ;;  %v557_v4 = vpop.f32.mrf.mxu0 }
  0xe6   : > { %v403_v9 = vpop.f32.mrf.mxu1 }
  0xe7   : > { %v2608_v12 = vadd.f32 %v2129_v1, %v412_v3  ;;  %v404_v13 = vadd.f32 %v403_v9, %v276_v59  ;;  %v2130_v14 = vpop.f32.mrf.mxu0 }
  0xe8   : > { %v2112_v16 = vpop.f32.mrf.mxu1 }
  0xe9   : > { %v2610_v17 = vadd.f32 %v557_v4, %v404_v13  ;;  %v415_v18 = vadd.f32 %v2112_v16, %v2094_v5  ;;  %v560_v21 = vpop.f32.mrf.mxu0 }
  0xea   : > { %v406_v24 = vpop.f32.mrf.mxu1 }
  0xeb   : > { %v2612_v25 = vadd.f32 %v2130_v14, %v415_v18  ;;  %v407_v26 = vadd.f32 %v406_v24, %v279_v8  ;;  %v2133_v27 = vpop.f32.mrf.mxu0 }
  0xec   : > { %v2115_v28 = vpop.f32.mrf.mxu1 }
  0xed   : > { %v2614_v30 = vadd.f32 %v560_v21, %v407_v26  ;;  %v428_v32 = vadd.f32 %v2115_v28, %v2097_v23  ;;  %v573_v33 = vpop.f32.mrf.mxu0 }
  0xee   : > { %v419_v34 = vpop.f32.mrf.mxu1 }
  0xef   : > { %v2616_v35 = vadd.f32 %v2133_v27, %v428_v32  ;;  %v420_v36 = vadd.f32 %v419_v34, %v292_v56  ;;  %v2134_v37 = vpop.f32.mrf.mxu0 }
  0xf0   : > { %v2116_v44 = vpop.f32.mrf.mxu1 }
  0xf1   : > { %v2618_v38 = vadd.f32 %v573_v33, %v420_v36  ;;  %v431_v39 = vadd.f32 %v2116_v44, %v2098_v61  ;;  %v576_v43 = vpop.f32.mrf.mxu0 }
  0xf2   : > { %v422_v45 = vpop.f32.mrf.mxu1 }
  0xf3   : > { %v2620_v47 = vadd.f32 %v2134_v37, %v431_v39  ;;  %v423_v40 = vadd.f32 %v422_v45, %v295_v63  ;;  %v2137_v58 = vpop.f32.mrf.mxu0 }
  0xf4   : > { %v2119_v42 = vpop.f32.mrf.mxu1 }
  0xf5   : > { %v2622_v48 = vadd.f32 %v576_v43, %v423_v40  ;;  %v444_v49 = vadd.f32 %v2119_v42, %v2101_v57  ;;  %v589_v50 = vpop.f32.mrf.mxu0 }
  0xf6   : > { %v435_v60 = vpop.f32.mrf.mxu1 }
  0xf7   : > { %v2624_v51 = vadd.f32 %v2137_v58, %v444_v49  ;;  %v436_v6 = vadd.f32 %v435_v60, %v308_v20  ;;  %v2138_v53 = vpop.f32.mrf.mxu0 }
  0xf8   : > { %v2120_v55 = vpop.f32.mrf.mxu1 }
  0xf9   : > { %v2626_v54 = vadd.f32 %v589_v50, %v436_v6  ;;  %v447_v11 = vadd.f32 %v2120_v55, %v2102_v7  ;;  %v592_v19 = vpop.f32.mrf.mxu0 }
  0xfa   : > { %v438_v10 = vpop.f32.mrf.mxu1 }
  0xfb   : > { %v2628_v29 = vadd.f32 %v2138_v53, %v447_v11  ;;  %v439_v41 = vadd.f32 %v438_v10, %v311_v22  ;;  %v2141_v46 = vpop.f32.mrf.mxu0 }
  0xfc   : > { %v2123_v15 = vpop.f32.mrf.mxu1 }
  0xfd   : > { %v2630_v59 = vadd.f32 %v592_v19, %v439_v41  ;;  %v460_v57 = vadd.f32 %v2123_v15, %v2105_v52  ;;  %v605_v5 = vpop.f32.mrf.mxu0 }
  0xfe   : > { %v451_v8 = vpop.f32.mrf.mxu1 }
  0xff   : > { %v2632_v23 = vadd.f32 %v2141_v46, %v460_v57  ;;  %v452_v20 = vadd.f32 %v451_v8, %v324_v31  ;;  %v2142_v56 = vpop.f32.mrf.mxu0 }
 0x100   : > { %v2124_v61 = vpop.f32.mrf.mxu1 }
 0x101   : > { %v2634_v63 = vadd.f32 %v605_v5, %v452_v20  ;;  %v463_v7 = vadd.f32 %v2124_v61, %v2106_v62  ;;  %v608_v1 = vpop.f32.mrf.mxu0 }
 0x102   : > { %v454_v2 = vpop.f32.mrf.mxu1 }
 0x103   : > { %2874 = vst [vmem:[#allocation2_spill] sm:$0xff] %v2634_v63  ;;  %v2636_v3 = vadd.f32 %v2142_v56, %v463_v7  ;;  %v455_v22 = vadd.f32 %v454_v2, %v2606_v0  ;;  %v2165_v4 = vpop.f32.mrf.mxu0 }
 0x104   : > { %v2147_v9 = vpop.f32.mrf.mxu1 }
 0x105   : > { %2875 = vst [vmem:[#allocation3_spill] sm:$0xff] %v2636_v3  ;;  %v2639_v13 = vadd.f32 %v608_v1, %v455_v22  ;;  %v2641_v52 = vpop.f32.mrf.mxu0  ;;  %v794_v3 = vadd.f32 %v2147_v9, %v2608_v12 }
 0x106   : > { %v729_v14 = vpop.f32.mrf.mxu1 }
 0x107   : > { %2876 = vst [vmem:[#allocation4_spill] sm:$0xff] %v2639_v13  ;;  %v2643_v16 = vpop.f32.mrf.mxu0  ;;  %v792_v63 = vadd.f32 %v729_v14, %v2610_v17 }
 0x108   : > { %v2148_v31 = vpop.f32.mrf.mxu1 }
 0x109   : > { %v2645_v18 = vpop.f32.mrf.mxu0  ;;  %v964_v12 = vadd.f32 %v2641_v52, %v792_v63 }
 0x10a   : > { %v732_v21 = vpop.f32.mrf.mxu1 }
 0x10b   : > { %v2647_v62 = vpop.f32.mrf.mxu0  ;;  %v793_v9 = vadd.f32 %v732_v21, %v2614_v30 }
 0x10c   : > { %v2151_v24 = vpop.f32.mrf.mxu1 }
 0x10d   : > { %v2649_v26 = vpop.f32.mrf.mxu0  ;;  %v798_v17 = vadd.f32 %v2151_v24, %v2616_v35  ;;  %v965_v30 = vadd.f32 %v2645_v18, %v793_v9 }
 0x10e   : > { %v2651_v27 = vpop.f32.mrf.mxu1 }
 0x10f   : > { %v2653_v0 = vpop.f32.mrf.mxu0  ;;  %v970_v21 = vadd.f32 %v2647_v62, %v798_v17 }
 0x110   : > { %v2655_v28 = vpop.f32.mrf.mxu1 }
 0x111   : > { %v2657_v32 = vpop.f32.mrf.mxu0 }
 0x112   : > { %v2659_v33 = vpop.f32.mrf.mxu1 }
 0x113   : > { %v2661_v34 = vpop.f32.mrf.mxu0  ;;  %v797_v18 = vadd.f32 %v2659_v33, %v2622_v48 }
 0x114   : > { %v2663_v36 = vpop.f32.mrf.mxu1 }
 0x115   : > { %v2665_v37 = vpop.f32.mrf.mxu0 }
 0x116   : > { %v2667_v44 = vpop.f32.mrf.mxu1 }
 0x117   : > { %v2669_v39 = vpop.f32.mrf.mxu0 }
 0x118   : > { %v2671_v43 = vpop.f32.mrf.mxu1 }
 0x119   : > { %v2673_v45 = vpop.f32.mrf.mxu0 }
 0x11a   : > { %2877 = vst [vmem:[#allocation5_spill] sm:$0xff] %v2673_v45  ;;  %v2675_v40 = vpop.f32.mrf.mxu1 }
 0x11b   : > { %v2677_v58 = vpop.f32.mrf.mxu0 }
 0x11c   : > { %2878 = vst [vmem:[#allocation6_spill] sm:$0xff] %v2677_v58  ;;  %v2679_v42 = vpop.f32.mrf.mxu1 }
 0x11d   : > { %v2681_v49 = vpop.f32.mrf.mxu0 }
 0x11e   : > { %2879 = vst [vmem:[#allocation7_spill] sm:$0xff] %v2681_v49  ;;  %v2683_v50 = vpop.f32.mrf.mxu1 }
 0x11f   : > { %2880 = vst [vmem:[#allocation8_spill] sm:$0xff] %v2683_v50  ;;  %v2685_v60 = vpop.f32.mrf.mxu0 }
 0x120   : > { %2881 = vst [vmem:[#allocation9_spill] sm:$0xff] %v2685_v60  ;;  %v2687_v6 = vpop.f32.mrf.mxu1 }
 0x121   : > { %2882 = vst [vmem:[#allocation10_spill] sm:$0xff] %v2687_v6  ;;  %v2689_v53 = vpop.f32.mrf.mxu0 }
 0x122   : > { %2883 = vst [vmem:[#allocation11_spill] sm:$0xff] %v2689_v53  ;;  %v2691_v55 = vpop.f32.mrf.mxu1 }
 0x123   : > { %2884 = vst [vmem:[#allocation12_spill] sm:$0xff] %v2691_v55  ;;  %v2201_v11 = vpop.f32.mrf.mxu0 }
 0x124   : > { %v2183_v19 = vpop.f32.mrf.mxu1 }
 0x125   : > { %v1244_v10 = vpop.f32.mrf.mxu0 }
 0x126   : > { %v1071_v41 = vpop.f32.mrf.mxu1 }
 0x127   : > { %v2202_v46 = vpop.f32.mrf.mxu0 }
 0x128   : > { %v2184_v15 = vpop.f32.mrf.mxu1 }
 0x129   : > { %v2693_v57 = vpop.f32.mrf.mxu0 }
 0x12a   : > { %v1074_v5 = vpop.f32.mrf.mxu1 }
 0x12b   : > { %v2695_v8 = vpop.f32.mrf.mxu0 }
 0x12c   : > { %v2187_v20 = vpop.f32.mrf.mxu1 }
 0x12d   : > { %v2697_v56 = vpop.f32.mrf.mxu0 }
 0x12e   : > { %v1087_v61 = vpop.f32.mrf.mxu1 }
 0x12f   : > { %v2699_v7 = vpop.f32.mrf.mxu0 }
 0x130   : > { %v2701_v1 = vpop.f32.mrf.mxu1 }
 0x131   : > { %v2703_v2 = vpop.f32.mrf.mxu0 }
 0x132   : > { %v2705_v22 = vpop.f32.mrf.mxu1 }
 0x133   : > { %v2707_v53 = vpop.f32.mrf.mxu0 }
 0x134   : > { %2885 = vst [vmem:[#allocation13_spill] sm:$0xff] %v2707_v53  ;;  %v2709_v60 = vpop.f32.mrf.mxu1 }
 0x135   : > { %v2711_v55 = vpop.f32.mrf.mxu0 }
 0x136   : > { %2886 = vst [vmem:[#allocation14_spill] sm:$0xff] %v2711_v55  ;;  %v2713_v13 = vpop.f32.mrf.mxu1  ;;  %v966_v55 = vadd.f32 %v2165_v4, %v794_v3  ;;  %v1134_v4 = vadd.f32 %v1071_v41, %v964_v12 }
 0x137   : > { %2887 = vst [vmem:[#allocation15_spill] sm:$0xff] %v2713_v13  ;;  %v2715_v49 = vpop.f32.mrf.mxu0  ;;  %v795_v13 = vadd.f32 %v2148_v31, %v2612_v25  ;;  %v796_v31 = vadd.f32 %v2651_v27, %v2618_v38 }
 0x138   : > { %2888 = vst [vmem:[#allocation16_spill] sm:$0xff] %v2715_v49  ;;  %v2717_v6 = vpop.f32.mrf.mxu1  ;;  %v1307_v24 = vadd.f32 %v1244_v10, %v1134_v4 }
 0x139   : > { %2889 = vst [vmem:[#allocation17_spill] sm:$0xff] %v2717_v6  ;;  %v2720_v58 = vpop.f32.mrf.mxu0  ;;  %v967_v3 = vadd.f32 %v2643_v16, %v795_v13  ;;  %v799_v13 = vadd.f32 %v2655_v28, %v2620_v47  ;;  %v968_v27 = vadd.f32 %v2649_v26, %v796_v31  ;;  %v802_v26 = vadd.f32 %v2663_v36, %v2624_v51 }
 0x13a   : > { %2890 = vst [vmem:[#allocation18_spill] sm:$0xff] %v2720_v58  ;;  %v2722_v50 = vpop.f32.mrf.mxu1  ;;  %v1136_v58 = vadd.f32 %v2183_v19, %v966_v55  ;;  %v1135_v55 = vadd.f32 %v1074_v5, %v965_v30 }
 0x13b   : > { %2891 = vst [vmem:[#allocation19_spill] sm:$0xff] %v2722_v50  ;;  %v2725_v45 = vpop.f32.mrf.mxu0  ;;  %v1137_v52 = vadd.f32 %v2184_v15, %v967_v3  ;;  %v971_v15 = vadd.f32 %v2653_v0, %v799_v13  ;;  %v1138_v5 = vadd.f32 %v1087_v61, %v968_v27  ;;  %v800_v3 = vadd.f32 %v2667_v44, %v2626_v54 }
 0x13c   : > { %v2727_v53 = vpop.f32.mrf.mxu1  ;;  %v1309_v63 = vadd.f32 %v2201_v11, %v1136_v58  ;;  %v1140_v58 = vadd.f32 %v2187_v20, %v970_v21  ;;  %v2762_v11 = vld [vmem:[%s2872_s2] ss:$0 sm:$0xff]  ;;  %v1308_v33 = vadd.f32 %v2693_v57, %v1135_v55  ;;  %v974_v30 = vadd.f32 %v2661_v34, %v802_v26 }
 0x13d   : > { %v2732_v49 = vpop.f32.mrf.mxu0  ;;  %v1310_v41 = vadd.f32 %v2202_v46, %v1137_v52  ;;  %v969_v46 = vadd.f32 %v2657_v32, %v797_v18  ;;  %v1141_v4 = vadd.f32 %v2701_v1, %v971_v15  ;;  %v803_v54 = vadd.f32 %v2671_v43, %v2628_v29  ;;  %v2896_v15 = vld [vmem:[#allocation8_spill] sm:$0xff] }
 0x13e   : > { %2892 = vst [vmem:[#allocation20_spill] sm:$0xff] %v2732_v49  ;;  %v2734_v6 = vpop.f32.mrf.mxu1  ;;  %v1313_v0 = vadd.f32 %v2695_v8, %v1140_v58  ;;  %v1311_v44 = vadd.f32 %v2697_v56, %v1138_v5  ;;  %v801_v34 = vadd.f32 %v2675_v40, %v2630_v59  ;;  %v1144_v43 = vadd.f32 %v2709_v60, %v974_v30  ;;  %v2893_v40 = vld [vmem:[#allocation15_spill] sm:$0xff] }
 0x13f   : > { %v2738_v50 = vpop.f32.mrf.mxu0  ;;  %v1139_v8 = vadd.f32 %v2705_v22, %v969_v46  ;;  %v1314_v29 = vadd.f32 %v2699_v7, %v1141_v4  ;;  %v975_v27 = vadd.f32 %v2669_v39, %v803_v54  ;;  %v2895_v39 = vld [vmem:[#allocation2_spill] sm:$0xff] }
 0x140   : > { %v2741_v14 = vpop.f32.mrf.mxu1  ;;  %v804_v26 = vadd.f32 %v2896_v15, %v2895_v39  ;;  %v2899_v46 = vld [vmem:[#allocation6_spill] sm:$0xff] }
 0x141   : > { %v2744_v25 = vpop.f32.mrf.mxu0  ;;  %v1312_v59 = vadd.f32 %v2703_v2, %v1139_v8  ;;  %v2898_v2 = vld [vmem:[#allocation17_spill] sm:$0xff]  ;;  %v2901_v4 = vld [vmem:[#allocation10_spill] sm:$0xff] }
 0x142   : > { %v2748_v49 = vpop.f32.mrf.mxu1  ;;  %v1145_v5 = vadd.f32 %v2898_v2, %v975_v27 }
 0x143   : > { %v2237_v35 = vpop.f32.mrf.mxu0 }
 0x144   : > { %v2219_v16 = vpop.f32.mrf.mxu1 }
 0x145   : > { %v1481_v19 = vadd.f32 %v2219_v16, %v1309_v63  ;;  %v1586_v38 = vpop.f32.mrf.mxu0  ;;  %v972_v16 = vadd.f32 %v2665_v37, %v800_v3  ;;  %v806_v37 = vadd.f32 %v2679_v42, %v2632_v23  ;;  %v2897_v23 = vld [vmem:[#allocation13_spill] sm:$0xff]  ;;  %v2911_v2 = vld [vmem:[#allocation20_spill] sm:$0xff] }
 0x146   : > { %v1416_v62 = vpop.f32.mrf.mxu1  ;;  %v1317_v42 = vadd.f32 %v2897_v23, %v1144_v43 }
 0x147   : > { %v1651_v47 = vadd.f32 %v2237_v35, %v1481_v19  ;;  %v1479_v28 = vadd.f32 %v1416_v62, %v1307_v24  ;;  %v2238_v10 = vpop.f32.mrf.mxu0  ;;  %v1142_v7 = vadd.f32 %v2893_v40, %v972_v16  ;;  %v978_v3 = vadd.f32 %v2899_v46, %v806_v37  ;;  %v2907_v16 = vld [vmem:[#allocation16_spill] sm:$0xff]  ;;  %v2909_v37 = vld [vmem:[#allocation18_spill] sm:$0xff] }
 0x148   : > { %v2220_v48 = vpop.f32.mrf.mxu1 }
 0x149   : > { %v1674_v20 = vadd.f32 %v2762_v11, %v1651_v47  ;;  %v1649_v12 = vadd.f32 %v1586_v38, %v1479_v28  ;;  %v1482_v9 = vadd.f32 %v2220_v48, %v1310_v41  ;;  %v1589_v17 = vpop.f32.mrf.mxu0  ;;  %v2894_v28 = vld [vmem:[#allocation5_spill] sm:$0xff] }
 0x14a   : > { %v1419_v51 = vpop.f32.mrf.mxu1 }
 0x14b   : > { %v1690_v36 = vmax.f32 %v1674_v20, 0.0  ;;  %v1672_v57 = vadd.f32 %v2762_v11, %v1649_v12  ;;  %v1652_v61 = vadd.f32 %v2238_v10, %v1482_v9  ;;  %v1480_v31 = vadd.f32 %v1419_v51, %v1308_v33  ;;  %v2241_v32 = vpop.f32.mrf.mxu0 }
 0x14c   : > { %v2223_v1 = vpop.f32.mrf.mxu1  ;;  %v973_v10 = vadd.f32 %v2894_v28, %v801_v34  ;;  %v1318_v34 = vadd.f32 %v2907_v16, %v1145_v5 }
 0x14d   : > { %1707 = vst.msk [vmem:[%s2778_s16 + $0x10] sm:$0xff] %vm1704_vm1, %v1690_v36  ;;  %v1688_v63 = vmax.f32 %v1672_v57, 0.0  ;;  %v1675_v52 = vadd.f32 %v2762_v11, %v1652_v61  ;;  %v1650_v35 = vadd.f32 %v1589_v17, %v1480_v31  ;;  %v1485_v21 = vadd.f32 %v2223_v1, %v1313_v0  ;;  %v1602_v13 = vpop.f32.mrf.mxu0  ;;  %v2900_v0 = vld [vmem:[#allocation3_spill] sm:$0xff]  ;;  %v2902_v36 = vld [vmem:[#allocation14_spill] sm:$0xff] }
 0x14e   : > { %v1432_v56 = vpop.f32.mrf.mxu1  ;;  %v807_v51 = vadd.f32 %v2901_v4, %v2900_v0  ;;  %v1315_v57 = vadd.f32 %v2902_v36, %v1142_v7  ;;  %v2903_v61 = vld [vmem:[#allocation19_spill] sm:$0xff] }
 0x14f   : > { %1705 = vst.msk [vmem:[%s2778_s16] sm:$0xff] %vm1704_vm1, %v1688_v63  ;;  %v1691_v22 = vmax.f32 %v1675_v52, 0.0  ;;  %v1673_v24 = vadd.f32 %v2762_v11, %v1650_v35  ;;  %v1655_v55 = vadd.f32 %v2241_v32, %v1485_v21  ;;  %v1483_v19 = vadd.f32 %v1432_v56, %v1311_v44  ;;  %v2242_v38 = vpop.f32.mrf.mxu0  ;;  %v2904_v63 = vld [vmem:[#allocation7_spill] sm:$0xff]  ;;  %v2905_v35 = vld [vmem:[#allocation4_spill] sm:$0xff] }
 0x150   : > { %v2224_v60 = vpop.f32.mrf.mxu1  ;;  %v1143_v31 = vadd.f32 %v2903_v61, %v973_v10  ;;  %v976_v52 = vadd.f32 %v2904_v63, %v804_v26  ;;  %v2906_v21 = vld [vmem:[#allocation12_spill] sm:$0xff] }
 0x151   : > { %1708 = vst.msk [vmem:[%s2778_s16 + $0x18] sm:$0xff] %vm1704_vm1, %v1691_v22  ;;  %v1689_v18 = vmax.f32 %v1673_v24, 0.0  ;;  %v1678_v58 = vadd.f32 %v2762_v11, %v1655_v55  ;;  %v1653_v62 = vadd.f32 %v1602_v13, %v1483_v19  ;;  %v1486_v41 = vadd.f32 %v2224_v60, %v1314_v29  ;;  %v1605_v47 = vpop.f32.mrf.mxu0 }
 0x152   : > { %v1435_v48 = vpop.f32.mrf.mxu1  ;;  %v805_v13 = vadd.f32 %v2906_v21, %v2905_v35  ;;  %v1148_v29 = vadd.f32 %v2727_v53, %v978_v3  ;;  %v1146_v40 = vadd.f32 %v2734_v6, %v976_v52 }
 0x153   : > { %1706 = vst.msk [vmem:[%s2778_s16 + $0x8] sm:$0xff] %vm1704_vm1, %v1689_v18  ;;  %v1694_v33 = vmax.f32 %v1678_v58, 0.0  ;;  %v1676_v20 = vadd.f32 %v2762_v11, %v1653_v62  ;;  %v1656_v12 = vadd.f32 %v2242_v38, %v1486_v41  ;;  %v1484_v9 = vadd.f32 %v1435_v48, %v1312_v59  ;;  %v2245_v17 = vpop.f32.mrf.mxu0  ;;  %v2908_v38 = vld [vmem:[#allocation9_spill] sm:$0xff]  ;;  %v2910_v41 = vld [vmem:[#allocation11_spill] sm:$0xff] }
 0x154   : > { %v2227_v32 = vpop.f32.mrf.mxu1  ;;  %v979_v27 = vadd.f32 %v2908_v38, %v807_v51  ;;  %v1316_v59 = vadd.f32 %v2909_v37, %v1143_v31  ;;  %v1321_v28 = vadd.f32 %v2725_v45, %v1148_v29  ;;  %v1319_v5 = vadd.f32 %v2911_v2, %v1146_v40 }
 0x155   : > { %1711 = vst.msk [vmem:[%s2778_s16 + $0x30] sm:$0xff] %vm1704_vm1, %v1694_v33  ;;  %v1692_v30 = vmax.f32 %v1676_v20, 0.0  ;;  %v1679_v54 = vadd.f32 %v2762_v11, %v1656_v12  ;;  %v1654_v44 = vadd.f32 %v1605_v47, %v1484_v9  ;;  %v1489_v8 = vadd.f32 %v2227_v32, %v1317_v42  ;;  %v1618_v1 = vpop.f32.mrf.mxu0 }
 0x156   : > { %v1448_v43 = vpop.f32.mrf.mxu1  ;;  %v977_v47 = vadd.f32 %v2910_v41, %v805_v13  ;;  %v1149_v10 = vadd.f32 %v2741_v14, %v979_v27 }
 0x157   : > { %1709 = vst.msk [vmem:[%s2778_s16 + $0x20] sm:$0xff] %vm1704_vm1, %v1692_v30  ;;  %v1695_v56 = vmax.f32 %v1679_v54, 0.0  ;;  %v1677_v22 = vadd.f32 %v2762_v11, %v1654_v44  ;;  %v1659_v24 = vadd.f32 %v2245_v17, %v1489_v8  ;;  %v1487_v55 = vadd.f32 %v1448_v43, %v1315_v57  ;;  %v2246_v19 = vpop.f32.mrf.mxu0 }
 0x158   : > { %v2228_v7 = vpop.f32.mrf.mxu1  ;;  %v1147_v48 = vadd.f32 %v2748_v49, %v977_v47  ;;  %v1322_v17 = vadd.f32 %v2738_v50, %v1149_v10 }
 0x159   : > { %1712 = vst.msk [vmem:[%s2778_s16 + $0x38] sm:$0xff] %vm1704_vm1, %v1695_v56  ;;  %v1693_v53 = vmax.f32 %v1677_v22, 0.0  ;;  %v1682_v60 = vadd.f32 %v2762_v11, %v1659_v24  ;;  %v1657_v18 = vadd.f32 %v1618_v1, %v1487_v55  ;;  %v1490_v58 = vadd.f32 %v2228_v7, %v1318_v34  ;;  %v1621_v62 = vpop.f32.mrf.mxu0 }
 0x15a   : > { %v1451_v39 = vpop.f32.mrf.mxu1  ;;  %v1320_v51 = vadd.f32 %v2744_v25, %v1147_v48 }
 0x15b   : > { %1710 = vst.msk [vmem:[%s2778_s16 + $0x28] sm:$0xff] %vm1704_vm1, %v1693_v53  ;;  %v1698_v6 = vmax.f32 %v1682_v60, 0.0  ;;  %v1680_v15 = vadd.f32 %v2762_v11, %v1657_v18  ;;  %v1660_v26 = vadd.f32 %v2246_v19, %v1490_v58  ;;  %v1488_v23 = vadd.f32 %v1451_v39, %v1316_v59  ;;  %v2249_v42 = vpop.f32.mrf.mxu0 }
 0x15c   : > { %v2231_v33 = vpop.f32.mrf.mxu1 }
 0x15d   : > { %1715 = vst.msk [vmem:[%s2778_s16 + $0x50] sm:$0xff] %vm1704_vm1, %v1698_v6  ;;  %v1696_v45 = vmax.f32 %v1680_v15, 0.0  ;;  %v1683_v14 = vadd.f32 %v2762_v11, %v1660_v26  ;;  %v1658_v20 = vadd.f32 %v1621_v62, %v1488_v23  ;;  %v1493_v12 = vadd.f32 %v2231_v33, %v1321_v28  ;;  %v1634_v9 = vpop.f32.mrf.mxu0 }
 0x15e   : > { %v1464_v46 = vpop.f32.mrf.mxu1 }
 0x15f   : > { %1713 = vst.msk [vmem:[%s2778_s16 + $0x40] sm:$0xff] %vm1704_vm1, %v1696_v45  ;;  %v1699_v3 = vmax.f32 %v1683_v14, 0.0  ;;  %v1681_v0 = vadd.f32 %v2762_v11, %v1658_v20  ;;  %v1663_v49 = vadd.f32 %v2249_v42, %v1493_v12  ;;  %v1491_v4 = vadd.f32 %v1464_v46, %v1319_v5  ;;  %v2250_v57 = vpop.f32.mrf.mxu0 }
 0x160   : > { %v2232_v36 = vpop.f32.mrf.mxu1 }
 0x161   : > { %1716 = vst.msk [vmem:[%s2778_s16 + $0x58] sm:$0xff] %vm1704_vm1, %v1699_v3  ;;  %v1697_v61 = vmax.f32 %v1681_v0, 0.0  ;;  %v1686_v50 = vadd.f32 %v2762_v11, %v1663_v49  ;;  %v1661_v31 = vadd.f32 %v1634_v9, %v1491_v4  ;;  %v1494_v32 = vadd.f32 %v2232_v36, %v1322_v17  ;;  %v1637_v1 = vpop.f32.mrf.mxu0 }
 0x162   : > { %v1467_v30 = vpop.f32.mrf.mxu1 }
 0x163   : > { %1714 = vst.msk [vmem:[%s2778_s16 + $0x48] sm:$0xff] %vm1704_vm1, %v1697_v61  ;;  %v1702_v54 = vmax.f32 %v1686_v50, 0.0  ;;  %v1684_v44 = vadd.f32 %v2762_v11, %v1661_v31  ;;  %v1664_v8 = vadd.f32 %v2250_v57, %v1494_v32  ;;  %v1492_v25 = vadd.f32 %v1467_v30, %v1320_v51 }
 0x165   : > { %1719 = vst.msk [vmem:[%s2778_s16 + $0x70] sm:$0xff] %vm1704_vm1, %v1702_v54  ;;  %v1700_v63 = vmax.f32 %v1684_v44, 0.0  ;;  %v1687_v52 = vadd.f32 %v2762_v11, %v1664_v8  ;;  %v1662_v35 = vadd.f32 %v1637_v1, %v1492_v25 }
 0x167   : > { %1717 = vst.msk [vmem:[%s2778_s16 + $0x60] sm:$0xff] %vm1704_vm1, %v1700_v63  ;;  %v1703_v21 = vmax.f32 %v1687_v52, 0.0  ;;  %v1685_v13 = vadd.f32 %v2762_v11, %v1662_v35 }
 0x169   : > { %1720 = vst.msk [vmem:[%s2778_s16 + $0x78] sm:$0xff] %vm1704_vm1, %v1703_v21  ;;  %v1701_v16 = vmax.f32 %v1685_v13, 0.0 }
 0x16b   : > { %1718 = vst.msk [vmem:[%s2778_s16 + $0x68] sm:$0xff] %vm1704_vm1, %v1701_v16 }
 0x16c PF: > { %s13_s12 = sadd.s32 1, %s2276_s12  }
 0x16d   : > { %p10_p4 = scmp.ge.s32.totalorder %s13_s12, 4  }
 0x16f   :  { %12 = sbr.rel (!%p10_p4) target bundleno = 1 (0x1), region = 73 }

// kernel: _forward_impl.11
= control target key start
LH: loop header
LB: loop body
LE: loop exit
PB: predicated region body
PF: predicated region fallthrough
CT: control target
= control target key end

     0   :  { %s481_s12 = smov 0   ;;  %s571_s0 = inlined_call_operand.vmem [shape: f32[1,16,16,32], index: 0, kind: input, shape index: {}]   ;;  %s572_s1 = inlined_call_operand.vmem [shape: bf16[1,32,32], index: 1, kind: input, shape index: {}]   ;;  %s573_s2 = inlined_call_operand.vmem [shape: f32[1,32], index: 2, kind: input, shape index: {}]   ;;  %s574_s3 = inlined_call_operand.vmem [shape: f32[256,32], index: 3, kind: output, shape index: {}]  }
   0x1 LB: > { %s387_s13 = sadd.s32 4294967295, %s459_s12   ;;  %p390_p0 = scmp.ge.s32.totalorder %s459_s12, 1  ;;  %s459_s12 = sphi %s481_s12, %s13_s12  }
   0x2   : > { %p127_p1 = scmp.lt.s32.totalorder %s459_s12, 3 }
   0x4   : > { %p128_p2 = pnand %p390_p0, %p127_p1 }
   0x5   : > { %s408_s16 = sshll.u32 (!%p128_p2), %s387_s13, 7  ;;  %s391_s22 = sshll.u32 (!%p128_p2), %s387_s13, 4 }
   0x6   : > { %131 = sbr.rel (%p128_p2) target bundleno = 230 (0xe6), region = 32  ;;  %s500_s21 = scalar_lea.vmem (!%p128_p2), %s571_s0, %s408_s16 }
   0x7   : > { %p147_p3 = scmp.lt.s32.totalorder (!%p128_p2), %s391_s22, 31 }
   0xb   : > { %v451_v0 = vld [vmem:[%s572_s1 + $0x8] sm:$0xff]   ;;  %v452_v1 = vld [vmem:[%s572_s1] sm:$0xff]   ;;  %vm203_vm0 = vcmask 261120   ;;  %v158_v7 = vld [vmem:[%s500_s21 + $0x10] sm:$0xff]  ;;  %s576_s22 = smov (!%p147_p3, %s391_s22), 31 }
   0xc   : > { %419 = vmatprep.subr.bf16.mxu0 %v451_v0  ;;  %439 = vmatprep.subr.bf16.mxu1 %v451_v0  ;;  %v156_v2 = vld [vmem:[%s500_s21] sm:$0xff]  ;;  %v157_v3 = vld [vmem:[%s500_s21 + $0x8] sm:$0xff]  ;;  %v159_v8 = vld [vmem:[%s500_s21 + $0x18] sm:$0xff]  ;;  %s392_s23 = sshll.u32 %s576_s22, 3 }
   0xd   : > { %v164_v4 = vld [vmem:[%s500_s21 + $0x40] sm:$0xff]  ;;  %420 = vmatpush3.bf16.msra.mxu0 %v451_v0  ;;  %441 = vmatpush3.bf16.msra.mxu1 %v451_v0  ;;  %v172_v5 = vpack.c.bf16 %v157_v3, %v156_v2  ;;  %v165_v6 = vld [vmem:[%s500_s21 + $0x48] sm:$0xff]  ;;  %v166_v10 = vld [vmem:[%s500_s21 + $0x50] sm:$0xff]  ;;  %v173_v16 = vpack.c.bf16 %v159_v8, %v158_v7  ;;  %s534_s28 = scalar_lea.vmem %s574_s3, %s392_s23 }
   0xe   : > { %421 = vmatprep.subr.bf16.mxu0 %v452_v1  ;;  %440 = vmatprep.subr.bf16.mxu1 %v452_v1  ;;  %v176_v9 = vpack.c.bf16 %v165_v6, %v164_v4  ;;  %v167_v11 = vld [vmem:[%s500_s21 + $0x58] sm:$0xff]  ;;  %v160_v12 = vld [vmem:[%s500_s21 + $0x20] sm:$0xff]  ;;  %v161_v13 = vld [vmem:[%s500_s21 + $0x28] sm:$0xff] }
   0xf   : > { %423 = vmatprep.mubr.msk.bf16.mxu0 %vm203_vm0, %v172_v5  ;;  %v168_v14 = vld [vmem:[%s500_s21 + $0x60] sm:$0xff]  ;;  %v169_v15 = vld [vmem:[%s500_s21 + $0x68] sm:$0xff]  ;;  %v177_v17 = vpack.c.bf16 %v167_v11, %v166_v10  ;;  %v174_v18 = vpack.c.bf16 %v161_v13, %v160_v12  ;;  %v162_v20 = vld [vmem:[%s500_s21 + $0x30] sm:$0xff] }
  0x10   : > { %431 = vmatprep.mubr.msk.bf16.mxu1 %vm203_vm0, %v176_v9  ;;  %v178_v19 = vpack.c.bf16 %v169_v15, %v168_v14  ;;  %v163_v21 = vld [vmem:[%s500_s21 + $0x38] sm:$0xff]  ;;  %v170_v22 = vld [vmem:[%s500_s21 + $0x70] sm:$0xff]  ;;  %v395_v26 = vld [vmem:[%s573_s2] ss:$0 sm:$0xff] }
  0x11   : > { %422 = vmatpush3.bf16.msra.mxu0 %v452_v1  ;;  %442 = vmatpush3.bf16.msra.mxu1 %v452_v1  ;;  %v171_v23 = vld [vmem:[%s500_s21 + $0x78] sm:$0xff]  ;;  %v175_v24 = vpack.c.bf16 %v163_v21, %v162_v20 }
  0x12   : > { %v179_v25 = vpack.c.bf16 %v171_v23, %v170_v22 }
  0x14   : > { %424 = vmatmul.mubr.msk.bf16.vlgmr.msra.gmra.mxu0 %vm203_vm0, %v173_v16  ;;  %432 = vmatmul.mubr.msk.bf16.vlgmr.msra.gmra.mxu1 %vm203_vm0, %v177_v17 }
  0x15   : > { %427 = vmatprep.mubr.msk.bf16.mxu0 %vm203_vm0, %v174_v18  ;;  %435 = vmatprep.mubr.msk.bf16.mxu1 %vm203_vm0, %v178_v19 }
  0x1c   : > { %428 = vmatmul.mubr.msk.bf16.gmra.mxu0 %vm203_vm0, %v175_v24  ;;  %436 = vmatmul.mubr.msk.bf16.gmra.mxu1 %vm203_vm0, %v179_v25 }
  0xd4   : > { %v425_v27 = vpop.f32.mrf.mxu0  ;;  %v433_v28 = vpop.f32.mrf.mxu1 }
  0xd5   : > { %v271_v29 = vadd.f32 %v425_v27, %v395_v26  ;;  %v303_v30 = vadd.f32 %v433_v28, %v395_v26 }
  0xd6   : > { %v262_v31 = vpop.f32.mrf.mxu0  ;;  %v294_v32 = vpop.f32.mrf.mxu1 }
  0xd7   : > { %327 = vst.msk [vmem:[%s534_s28 + $0x10] sm:$0xff] %vm203_vm0, %v271_v29  ;;  %335 = vst.msk [vmem:[%s534_s28 + $0x50] sm:$0xff] %vm203_vm0, %v303_v30  ;;  %v263_v33 = vadd.f32 %v395_v26, %v262_v31  ;;  %v295_v34 = vadd.f32 %v395_v26, %v294_v32 }
  0xd8   : > { %v426_v35 = vpop.f32.mrf.mxu0  ;;  %v434_v36 = vpop.f32.mrf.mxu1 }
  0xd9   : > { %325 = vst.msk [vmem:[%s534_s28] sm:$0xff] %vm203_vm0, %v263_v33  ;;  %333 = vst.msk [vmem:[%s534_s28 + $0x40] sm:$0xff] %vm203_vm0, %v295_v34  ;;  %v274_v37 = vadd.f32 %v426_v35, %v395_v26  ;;  %v306_v38 = vadd.f32 %v434_v36, %v395_v26 }
  0xda   : > { %v265_v39 = vpop.f32.mrf.mxu0  ;;  %v297_v40 = vpop.f32.mrf.mxu1 }
  0xdb   : > { %328 = vst.msk [vmem:[%s534_s28 + $0x18] sm:$0xff] %vm203_vm0, %v274_v37  ;;  %336 = vst.msk [vmem:[%s534_s28 + $0x58] sm:$0xff] %vm203_vm0, %v306_v38  ;;  %v266_v41 = vadd.f32 %v395_v26, %v265_v39  ;;  %v298_v42 = vadd.f32 %v395_v26, %v297_v40 }
  0xdc   : > { %v429_v43 = vpop.f32.mrf.mxu0  ;;  %v437_v44 = vpop.f32.mrf.mxu1 }
  0xdd   : > { %326 = vst.msk [vmem:[%s534_s28 + $0x8] sm:$0xff] %vm203_vm0, %v266_v41  ;;  %334 = vst.msk [vmem:[%s534_s28 + $0x48] sm:$0xff] %vm203_vm0, %v298_v42  ;;  %v287_v45 = vadd.f32 %v429_v43, %v395_v26  ;;  %v319_v46 = vadd.f32 %v437_v44, %v395_v26 }
  0xde   : > { %v278_v47 = vpop.f32.mrf.mxu0  ;;  %v310_v48 = vpop.f32.mrf.mxu1 }
  0xdf   : > { %331 = vst.msk [vmem:[%s534_s28 + $0x30] sm:$0xff] %vm203_vm0, %v287_v45  ;;  %339 = vst.msk [vmem:[%s534_s28 + $0x70] sm:$0xff] %vm203_vm0, %v319_v46  ;;  %v279_v49 = vadd.f32 %v395_v26, %v278_v47  ;;  %v311_v50 = vadd.f32 %v395_v26, %v310_v48 }
  0xe0   : > { %v430_v51 = vpop.f32.mrf.mxu0  ;;  %v438_v52 = vpop.f32.mrf.mxu1 }
  0xe1   : > { %329 = vst.msk [vmem:[%s534_s28 + $0x20] sm:$0xff] %vm203_vm0, %v279_v49  ;;  %337 = vst.msk [vmem:[%s534_s28 + $0x60] sm:$0xff] %vm203_vm0, %v311_v50  ;;  %v290_v53 = vadd.f32 %v430_v51, %v395_v26  ;;  %v322_v54 = vadd.f32 %v438_v52, %v395_v26 }
  0xe2   : > { %v281_v55 = vpop.f32.mrf.mxu0  ;;  %v313_v56 = vpop.f32.mrf.mxu1 }
  0xe3   : > { %332 = vst.msk [vmem:[%s534_s28 + $0x38] sm:$0xff] %vm203_vm0, %v290_v53  ;;  %340 = vst.msk [vmem:[%s534_s28 + $0x78] sm:$0xff] %vm203_vm0, %v322_v54  ;;  %v282_v57 = vadd.f32 %v395_v26, %v281_v55  ;;  %v314_v58 = vadd.f32 %v395_v26, %v313_v56 }
  0xe5   : > { %330 = vst.msk [vmem:[%s534_s28 + $0x28] sm:$0xff] %vm203_vm0, %v282_v57  ;;  %338 = vst.msk [vmem:[%s534_s28 + $0x68] sm:$0xff] %vm203_vm0, %v314_v58 }
  0xe6 PF: > { %s13_s12 = sadd.s32 1, %s459_s12  }
  0xe7   : > { %p10_p4 = scmp.ge.s32.totalorder %s13_s12, 4  }
  0xe9   :  { %12 = sbr.rel (!%p10_p4) target bundleno = 1 (0x1), region = 60 }

// kernel: _forward_impl.13
= control target key start
LH: loop header
LB: loop body
LE: loop exit
PB: predicated region body
PF: predicated region fallthrough
CT: control target
= control target key end

     0   :  { %s2402_s12 = smov 0   ;;  %s2957_s0 = inlined_call_operand.vmem [shape: f32[1,18,18,32], index: 0, kind: input, shape index: {}]   ;;  %s2958_s1 = inlined_call_operand.vmem [shape: bf16[9,32,32], index: 1, kind: input, shape index: {}]   ;;  %s2959_s2 = inlined_call_operand.vmem [shape: f32[1,32], index: 2, kind: input, shape index: {}]   ;;  %s2960_s3 = inlined_call_operand.vmem [shape: f32[256,32], index: 3, kind: output, shape index: {}]  }
   0x1 LB: > { %s1841_s13 = sadd.s32 4294967295, %s2380_s12   ;;  %p1844_p0 = scmp.ge.s32.totalorder %s2380_s12, 1  ;;  %s2380_s12 = sphi %s2402_s12, %s13_s12  }
   0x2   : > { %p127_p1 = scmp.lt.s32.totalorder %s2380_s12, 3 }
   0x4   : > { %p128_p2 = pnand %p1844_p0, %p127_p1 }
   0x6   : > { %131 = sbr.rel (%p128_p2) target bundleno = 365 (0x16d), region = 32 }
   0xb   : > { %v2356_v0 = vld [vmem:[%s2958_s1 + $0x18] sm:$0xff]   ;;  %s1848_s16 = smul.u32 192, %s1841_s13  ;;  %v2357_v1 = vld [vmem:[%s2958_s1 + $0x10] sm:$0xff]   ;;  %v2358_v2 = vld [vmem:[%s2958_s1 + $0x8] sm:$0xff]   ;;  %vm225_vm0 = vcmask 261120  }
   0xc   : > { %2164 = vmatprep.subr.bf16.mxu0 %v2356_v0  ;;  %2344 = vmatprep.subr.bf16.mxu1 %v2356_v0  ;;  %v2359_v15 = vld [vmem:[%s2958_s1 + $0x28] sm:$0xff]   ;;  %v2360_v25 = vld [vmem:[%s2958_s1] sm:$0xff]   ;;  %v2362_v34 = vld [vmem:[%s2958_s1 + $0x38] sm:$0xff]  }
   0xd   : > { %s2421_s21 = scalar_lea.vmem %s2957_s0, %s1848_s16  ;;  %2165 = vmatpush3.bf16.msra.mxu0 %v2356_v0  ;;  %2346 = vmatpush3.bf16.msra.mxu1 %v2356_v0  ;;  %v2361_v27 = vld [vmem:[%s2958_s1 + $0x20] sm:$0xff]   ;;  %v2363_v37 = vld [vmem:[%s2958_s1 + $0x48] sm:$0xff]   ;;  %v2364_v54 = vld [vmem:[%s2958_s1 + $0x30] sm:$0xff]  }
   0xe   : > { %v184_v3 = vld [vmem:[%s2421_s21 + $0x1] sm:$0xff]  ;;  %v185_v4 = vld [vmem:[%s2421_s21 + $0x9] sm:$0xff]  ;;  %2166 = vmatprep.subr.bf16.mxu0 %v2357_v1  ;;  %2345 = vmatprep.subr.bf16.mxu1 %v2357_v1  ;;  %v186_v8 = vld [vmem:[%s2421_s21 + $0x19] sm:$0xff] }
   0xf   : > { %v192_v5 = vld [vmem:[%s2421_s21 + $0x61] sm:$0xff]  ;;  %v200_v6 = vpack.c.bf16 %v185_v4, %v184_v3  ;;  %v193_v7 = vld [vmem:[%s2421_s21 + $0x69] sm:$0xff]  ;;  %v194_v11 = vld [vmem:[%s2421_s21 + $0x79] sm:$0xff] }
  0x10   : > { %v187_v9 = vld [vmem:[%s2421_s21 + $0x21] sm:$0xff]  ;;  %v2432_v10 = vpack.c.bf16 %v193_v7, %v192_v5  ;;  %v188_v16 = vld [vmem:[%s2421_s21 + $0x31] sm:$0xff]  ;;  %v189_v17 = vld [vmem:[%s2421_s21 + $0x39] sm:$0xff] }
  0x11   : > { %v195_v12 = vld [vmem:[%s2421_s21 + $0x81] sm:$0xff]  ;;  %2168 = vmatprep.mubr.msk.bf16.mxu0 %vm225_vm0, %v200_v6  ;;  %v2437_v13 = vpack.c.bf16 %v187_v9, %v186_v8  ;;  %2167 = vmatpush3.bf16.msra.mxu0 %v2357_v1  ;;  %v196_v18 = vld [vmem:[%s2421_s21 + $0x91] sm:$0xff]  ;;  %v197_v19 = vld [vmem:[%s2421_s21 + $0x99] sm:$0xff]  ;;  %v2450_v20 = vpack.c.bf16 %v189_v17, %v188_v16 }
  0x12   : > { %v2439_v14 = vpack.c.bf16 %v195_v12, %v194_v11  ;;  %2347 = vmatpush3.bf16.msra.mxu1 %v2357_v1  ;;  %2176 = vmatprep.mubr.msk.bf16.mxu1 %vm225_vm0, %v2432_v10  ;;  %v2452_v21 = vpack.c.bf16 %v197_v19, %v196_v18  ;;  %v190_v22 = vld [vmem:[%s2421_s21 + $0x49] sm:$0xff]  ;;  %v191_v23 = vld [vmem:[%s2421_s21 + $0x51] sm:$0xff]  ;;  %v156_v28 = vld [vmem:[%s2421_s21] sm:$0xff] }
  0x13   : > { %2184 = vmatprep.subr.bf16.mxu1 %v2358_v2  ;;  %2204 = vmatprep.subr.bf16.mxu0 %v2359_v15  ;;  %v198_v24 = vld [vmem:[%s2421_s21 + $0xa9] sm:$0xff]  ;;  %v199_v26 = vld [vmem:[%s2421_s21 + $0xb1] sm:$0xff]  ;;  %v2476_v32 = vpack.c.bf16 %v191_v23, %v190_v22  ;;  %v159_v39 = vld [vmem:[%s2421_s21 + $0x20] sm:$0xff] }
  0x14   : > { %2169 = vmatmul.mubr.msk.bf16.vlgmr.msra.gmra.mxu0 %vm225_vm0, %v2437_v13  ;;  %v157_v29 = vld [vmem:[%s2421_s21 + $0x8] sm:$0xff]  ;;  %v2478_v33 = vpack.c.bf16 %v199_v26, %v198_v24  ;;  %v158_v38 = vld [vmem:[%s2421_s21 + $0x18] sm:$0xff]  ;;  %v160_v42 = vld [vmem:[%s2421_s21 + $0x30] sm:$0xff] }
  0x15   : > { %2177 = vmatmul.mubr.msk.bf16.vlgmr.msra.gmra.mxu1 %vm225_vm0, %v2439_v14  ;;  %2205 = vmatpush3.bf16.msra.mxu0 %v2359_v15  ;;  %v480_v30 = vld [vmem:[%s2421_s21 + $0x2] sm:$0xff]  ;;  %v481_v31 = vld [vmem:[%s2421_s21 + $0xa] sm:$0xff]  ;;  %v172_v35 = vpack.c.bf16 %v157_v29, %v156_v28  ;;  %v482_v40 = vld [vmem:[%s2421_s21 + $0x1a] sm:$0xff]  ;;  %v173_v46 = vpack.c.bf16 %v159_v39, %v158_v38 }
  0x16   : > { %2185 = vmatpush3.bf16.msra.mxu1 %v2358_v2  ;;  %2172 = vmatprep.mubr.msk.bf16.mxu0 %vm225_vm0, %v2450_v20  ;;  %v496_v36 = vpack.c.bf16 %v481_v31, %v480_v30  ;;  %v483_v41 = vld [vmem:[%s2421_s21 + $0x22] sm:$0xff]  ;;  %v161_v43 = vld [vmem:[%s2421_s21 + $0x38] sm:$0xff]  ;;  %v163_v51 = vld [vmem:[%s2421_s21 + $0x50] sm:$0xff] }
  0x17   : > { %2180 = vmatprep.mubr.msk.bf16.mxu1 %vm225_vm0, %v2452_v21  ;;  %2186 = vmatprep.subr.bf16.mxu1 %v2360_v25  ;;  %v484_v44 = vld [vmem:[%s2421_s21 + $0x32] sm:$0xff]  ;;  %v485_v45 = vld [vmem:[%s2421_s21 + $0x3a] sm:$0xff]  ;;  %v2500_v47 = vpack.c.bf16 %v483_v41, %v482_v40  ;;  %v2502_v48 = vpack.c.bf16 %v161_v43, %v160_v42  ;;  %v162_v50 = vld [vmem:[%s2421_s21 + $0x48] sm:$0xff] }
  0x18   : > { %2206 = vmatprep.subr.bf16.mxu0 %v2361_v27  ;;  %v2504_v49 = vpack.c.bf16 %v485_v45, %v484_v44  ;;  %v486_v52 = vld [vmem:[%s2421_s21 + $0x4a] sm:$0xff]  ;;  %v487_v53 = vld [vmem:[%s2421_s21 + $0x52] sm:$0xff]  ;;  %v2365_v55 = vld [vmem:[%s2958_s1 + $0x40] sm:$0xff]   ;;  %v2533_v62 = vpack.c.bf16 %v163_v51, %v162_v50 }
  0x19   : > { %2207 = vmatpush3.bf16.msra.mxu0 %v2361_v27  ;;  %v164_v56 = vld [vmem:[%s2421_s21 + $0x60] sm:$0xff]  ;;  %v165_v57 = vld [vmem:[%s2421_s21 + $0x68] sm:$0xff]  ;;  %v2366_v60 = vld [vmem:[%s2958_s1 + $0x58] sm:$0xff]   ;;  %v2535_v63 = vpack.c.bf16 %v487_v53, %v486_v52 }
  0x1a   : > { %2187 = vmatpush3.bf16.msra.mxu1 %v2360_v25  ;;  %2244 = vmatprep.subr.bf16.mxu0 %v2363_v37  ;;  %v488_v58 = vld [vmem:[%s2421_s21 + $0x62] sm:$0xff]  ;;  %v489_v59 = vld [vmem:[%s2421_s21 + $0x6a] sm:$0xff]  ;;  %v2537_v0 = vpack.c.bf16 %v165_v57, %v164_v56  ;;  %v166_v2 = vld [vmem:[%s2421_s21 + $0x78] sm:$0xff] }
  0x1b   : > { %2224 = vmatprep.subr.bf16.mxu1 %v2362_v34  ;;  %v2367_v61 = vld [vmem:[%s2958_s1 + $0x68] sm:$0xff]   ;;  %v2539_v1 = vpack.c.bf16 %v489_v59, %v488_v58  ;;  %v167_v3 = vld [vmem:[%s2421_s21 + $0x80] sm:$0xff]  ;;  %v168_v6 = vld [vmem:[%s2421_s21 + $0x90] sm:$0xff] }
  0x1c   : > { %2173 = vmatmul.mubr.msk.bf16.gmra.mxu0 %vm225_vm0, %v2476_v32  ;;  %v490_v4 = vld [vmem:[%s2421_s21 + $0x7a] sm:$0xff]  ;;  %v491_v5 = vld [vmem:[%s2421_s21 + $0x82] sm:$0xff]  ;;  %v492_v8 = vld [vmem:[%s2421_s21 + $0x92] sm:$0xff]  ;;  %v2557_v11 = vpack.c.bf16 %v167_v3, %v166_v2 }
  0x1d   : > { %2181 = vmatmul.mubr.msk.bf16.gmra.mxu1 %vm225_vm0, %v2478_v33  ;;  %2208 = vmatprep.mubr.msk.bf16.mxu0 %vm225_vm0, %v496_v36  ;;  %v169_v7 = vld [vmem:[%s2421_s21 + $0x98] sm:$0xff]  ;;  %v2559_v12 = vpack.c.bf16 %v491_v5, %v490_v4  ;;  %v170_v17 = vld [vmem:[%s2421_s21 + $0xa8] sm:$0xff]  ;;  %v171_v18 = vld [vmem:[%s2421_s21 + $0xb0] sm:$0xff] }
  0x1e   : > { %2188 = vmatprep.mubr.msk.bf16.mxu1 %vm225_vm0, %v172_v35  ;;  %v493_v9 = vld [vmem:[%s2421_s21 + $0x9a] sm:$0xff]  ;;  %v2561_v15 = vpack.c.bf16 %v169_v7, %v168_v6  ;;  %v494_v19 = vld [vmem:[%s2421_s21 + $0xaa] sm:$0xff]  ;;  %v495_v22 = vld [vmem:[%s2421_s21 + $0xb2] sm:$0xff]  ;;  %v179_v23 = vpack.c.bf16 %v171_v18, %v170_v17 }
  0x1f   : > { %v2563_v16 = vpack.c.bf16 %v493_v9, %v492_v8  ;;  %v2577_v24 = vpack.c.bf16 %v495_v22, %v494_v19  ;;  %v2368_v25 = vld [vmem:[%s2958_s1 + $0x50] sm:$0xff]   ;;  %v2369_v26 = vld [vmem:[%s2958_s1 + $0x60] sm:$0xff]   ;;  %v2371_v27 = vld [vmem:[%s2958_s1 + $0x88] sm:$0xff]  }
  0x20   : > { %v1903_v28 = vld [vmem:[%s2421_s21 + $0xc0] sm:$0xff]  ;;  %v1904_v29 = vld [vmem:[%s2421_s21 + $0xc8] sm:$0xff]  ;;  %v2372_v36 = vld [vmem:[%s2958_s1 + $0x70] sm:$0xff]  }
  0x21   : > { %v1933_v30 = vld [vmem:[%s2421_s21 + $0xc1] sm:$0xff]  ;;  %v1934_v31 = vld [vmem:[%s2421_s21 + $0xc9] sm:$0xff]  ;;  %v1995_v40 = vld [vmem:[%s2421_s21 + $0xd8] sm:$0xff] }
  0x22   : > { %v862_v35 = vpack.c.bf16 %v1934_v31, %v1933_v30  ;;  %v1963_v38 = vld [vmem:[%s2421_s21 + $0xc2] sm:$0xff]  ;;  %v1964_v39 = vld [vmem:[%s2421_s21 + $0xca] sm:$0xff] }
  0x23   : > { %v1996_v41 = vld [vmem:[%s2421_s21 + $0xe0] sm:$0xff]  ;;  %v1040_v42 = vpack.c.bf16 %v1964_v39, %v1963_v38 }
  0x24   : > { %2209 = vmatmul.mubr.msk.bf16.vlgmr.msra.gmra.mxu0 %vm225_vm0, %v2500_v47  ;;  %v1221_v43 = vpack.c.bf16 %v1996_v41, %v1995_v40 }
  0x25   : > { %2189 = vmatmul.mubr.msk.bf16.vlgmr.msra.gmra.mxu1 %vm225_vm0, %v173_v46  ;;  %2245 = vmatpush3.bf16.msra.mxu0 %v2363_v37  ;;  %v2373_v37 = vld [vmem:[%s2958_s1 + $0x80] sm:$0xff]  }
  0x26   : > { %2225 = vmatpush3.bf16.msra.mxu1 %v2362_v34  ;;  %2192 = vmatprep.mubr.msk.bf16.mxu1 %vm225_vm0, %v2502_v48  ;;  %v684_v34 = vpack.c.bf16 %v1904_v29, %v1903_v28 }
  0x27   : > { %2212 = vmatprep.mubr.msk.bf16.mxu0 %vm225_vm0, %v2504_v49  ;;  %2226 = vmatprep.subr.bf16.mxu1 %v2364_v54 }
  0x28   : > { %2246 = vmatprep.subr.bf16.mxu0 %v2365_v55 }
  0x29   : > { %2247 = vmatpush3.bf16.msra.mxu0 %v2365_v55 }
  0x2a   : > { %2227 = vmatpush3.bf16.msra.mxu1 %v2364_v54  ;;  %2284 = vmatprep.subr.bf16.mxu0 %v2367_v61 }
  0x2b   : > { %2264 = vmatprep.subr.bf16.mxu1 %v2366_v60 }
  0x2c   : > { %2213 = vmatmul.mubr.msk.bf16.gmra.mxu0 %vm225_vm0, %v2535_v63 }
  0x2d   : > { %2193 = vmatmul.mubr.msk.bf16.gmra.mxu1 %vm225_vm0, %v2533_v62  ;;  %2216 = vmatprep.mubr.msk.bf16.mxu0 %vm225_vm0, %v2539_v1 }
  0x2e   : > { %2196 = vmatprep.mubr.msk.bf16.mxu1 %vm225_vm0, %v2537_v0 }
  0x34   : > { %2217 = vmatmul.mubr.msk.bf16.gmra.mxu0 %vm225_vm0, %v2559_v12 }
  0x35   : > { %2197 = vmatmul.mubr.msk.bf16.gmra.mxu1 %vm225_vm0, %v2557_v11  ;;  %2220 = vmatprep.mubr.msk.bf16.mxu0 %vm225_vm0, %v2563_v16 }
  0x36   : > { %2200 = vmatprep.mubr.msk.bf16.mxu1 %vm225_vm0, %v2561_v15 }
  0x3c   : > { %2221 = vmatmul.mubr.msk.bf16.gmra.mxu0 %vm225_vm0, %v2577_v24 }
  0x3d   : > { %2201 = vmatmul.mubr.msk.bf16.gmra.mxu1 %vm225_vm0, %v179_v23  ;;  %2248 = vmatprep.mubr.msk.bf16.mxu0 %vm225_vm0, %v2437_v13  ;;  %v2370_v13 = vld [vmem:[%s2958_s1 + $0x78] sm:$0xff]  }
  0x3e   : > { %2228 = vmatprep.mubr.msk.bf16.mxu1 %vm225_vm0, %v173_v46 }
  0x44   : > { %2249 = vmatmul.mubr.msk.bf16.vlgmr.msra.gmra.mxu0 %vm225_vm0, %v2450_v20 }
  0x45   : > { %2229 = vmatmul.mubr.msk.bf16.vlgmr.msra.gmra.mxu1 %vm225_vm0, %v2502_v48  ;;  %2285 = vmatpush3.bf16.msra.mxu0 %v2367_v61 }
  0x46   : > { %2265 = vmatpush3.bf16.msra.mxu1 %v2366_v60  ;;  %2232 = vmatprep.mubr.msk.bf16.mxu1 %vm225_vm0, %v2533_v62 }
  0x47   : > { %2252 = vmatprep.mubr.msk.bf16.mxu0 %vm225_vm0, %v2476_v32  ;;  %2266 = vmatprep.subr.bf16.mxu1 %v2368_v25 }
  0x48   : > { %2286 = vmatprep.subr.bf16.mxu0 %v2369_v26 }
  0x49   : > { %2287 = vmatpush3.bf16.msra.mxu0 %v2369_v26 }
  0x4a   : > { %2267 = vmatpush3.bf16.msra.mxu1 %v2368_v25  ;;  %2324 = vmatprep.subr.bf16.mxu0 %v2371_v27 }
  0x4b   : > { %2304 = vmatprep.subr.bf16.mxu1 %v2370_v13 }
  0x4c   : > { %2253 = vmatmul.mubr.msk.bf16.gmra.mxu0 %vm225_vm0, %v2432_v10 }
  0x4d   : > { %2233 = vmatmul.mubr.msk.bf16.gmra.mxu1 %vm225_vm0, %v2537_v0  ;;  %2256 = vmatprep.mubr.msk.bf16.mxu0 %vm225_vm0, %v2439_v14 }
  0x4e   : > { %2236 = vmatprep.mubr.msk.bf16.mxu1 %vm225_vm0, %v2557_v11 }
  0x54   : > { %2257 = vmatmul.mubr.msk.bf16.gmra.mxu0 %vm225_vm0, %v2452_v21 }
  0x55   : > { %2237 = vmatmul.mubr.msk.bf16.gmra.mxu1 %vm225_vm0, %v2561_v15  ;;  %2260 = vmatprep.mubr.msk.bf16.mxu0 %vm225_vm0, %v2478_v33 }
  0x56   : > { %2240 = vmatprep.mubr.msk.bf16.mxu1 %vm225_vm0, %v179_v23 }
  0x5c   : > { %2261 = vmatmul.mubr.msk.bf16.gmra.mxu0 %vm225_vm0, %v862_v35 }
  0x5d   : > { %2241 = vmatmul.mubr.msk.bf16.gmra.mxu1 %vm225_vm0, %v684_v34  ;;  %2288 = vmatprep.mubr.msk.bf16.mxu0 %vm225_vm0, %v2502_v48 }
  0x5e   : > { %2268 = vmatprep.mubr.msk.bf16.mxu1 %vm225_vm0, %v2500_v47 }
  0x64   : > { %2289 = vmatmul.mubr.msk.bf16.vlgmr.msra.gmra.mxu0 %vm225_vm0, %v2533_v62 }
  0x65   : > { %2269 = vmatmul.mubr.msk.bf16.vlgmr.msra.gmra.mxu1 %vm225_vm0, %v2504_v49  ;;  %2325 = vmatpush3.bf16.msra.mxu0 %v2371_v27 }
  0x66   : > { %2305 = vmatpush3.bf16.msra.mxu1 %v2370_v13  ;;  %2272 = vmatprep.mubr.msk.bf16.mxu1 %vm225_vm0, %v2535_v63 }
  0x67   : > { %2292 = vmatprep.mubr.msk.bf16.mxu0 %vm225_vm0, %v2537_v0  ;;  %2306 = vmatprep.subr.bf16.mxu1 %v2372_v36 }
  0x68   : > { %2326 = vmatprep.subr.bf16.mxu0 %v2373_v37 }
  0x69   : > { %2327 = vmatpush3.bf16.msra.mxu0 %v2373_v37 }
  0x6a   : > { %2307 = vmatpush3.bf16.msra.mxu1 %v2372_v36 }
  0x6c   : > { %2293 = vmatmul.mubr.msk.bf16.gmra.mxu0 %vm225_vm0, %v2557_v11 }
  0x6d   : > { %2273 = vmatmul.mubr.msk.bf16.gmra.mxu1 %vm225_vm0, %v2539_v1  ;;  %2296 = vmatprep.mubr.msk.bf16.mxu0 %vm225_vm0, %v2561_v15 }
  0x6e   : > { %2276 = vmatprep.mubr.msk.bf16.mxu1 %vm225_vm0, %v2559_v12 }
  0x74   : > { %2297 = vmatmul.mubr.msk.bf16.gmra.mxu0 %vm225_vm0, %v179_v23 }
  0x75   : > { %2277 = vmatmul.mubr.msk.bf16.gmra.mxu1 %vm225_vm0, %v2563_v16  ;;  %2300 = vmatprep.mubr.msk.bf16.mxu0 %vm225_vm0, %v684_v34 }
  0x76   : > { %2280 = vmatprep.mubr.msk.bf16.mxu1 %vm225_vm0, %v2577_v24 }
  0x7c   : > { %2301 = vmatmul.mubr.msk.bf16.gmra.mxu0 %vm225_vm0, %v1221_v43 }
  0x7d   : > { %2281 = vmatmul.mubr.msk.bf16.gmra.mxu1 %vm225_vm0, %v1040_v42  ;;  %2328 = vmatprep.mubr.msk.bf16.mxu0 %vm225_vm0, %v2504_v49 }
  0x7e   : > { %2308 = vmatprep.mubr.msk.bf16.mxu1 %vm225_vm0, %v2450_v20  ;;  %v2055_v20 = vld [vmem:[%s2421_s21 + $0xda] sm:$0xff] }
  0x84   : > { %2329 = vmatmul.mubr.msk.bf16.vlgmr.msra.gmra.mxu0 %vm225_vm0, %v2535_v63 }
  0x85   : > { %2309 = vmatmul.mubr.msk.bf16.vlgmr.msra.gmra.mxu1 %vm225_vm0, %v2476_v32  ;;  %2332 = vmatprep.mubr.msk.bf16.mxu0 %vm225_vm0, %v2539_v1  ;;  %v2056_v32 = vld [vmem:[%s2421_s21 + $0xe2] sm:$0xff] }
  0x86   : > { %2312 = vmatprep.mubr.msk.bf16.mxu1 %vm225_vm0, %v2432_v10  ;;  %v2025_v10 = vld [vmem:[%s2421_s21 + $0xd9] sm:$0xff]  ;;  %v1577_v45 = vpack.c.bf16 %v2056_v32, %v2055_v20 }
  0x8c   : > { %2333 = vmatmul.mubr.msk.bf16.gmra.mxu0 %vm225_vm0, %v2559_v12 }
  0x8d   : > { %2313 = vmatmul.mubr.msk.bf16.gmra.mxu1 %vm225_vm0, %v2439_v14  ;;  %2336 = vmatprep.mubr.msk.bf16.mxu0 %vm225_vm0, %v2563_v16  ;;  %v2026_v14 = vld [vmem:[%s2421_s21 + $0xe1] sm:$0xff]  ;;  %s1845_s21 = sshll.u32 %s1841_s13, 4 }
  0x8e   : > { %2316 = vmatprep.mubr.msk.bf16.mxu1 %vm225_vm0, %v2452_v21  ;;  %v1399_v44 = vpack.c.bf16 %v2026_v14, %v2025_v10  ;;  %p147_p3 = scmp.lt.s32.totalorder %s1845_s21, 31 }
  0x90   : > { %s3000_s21 = smov (!%p147_p3, %s1845_s21), 31 }
  0x91   : > { %s1846_s4 = sshll.u32 %s3000_s21, 3 }
  0x92   : > { %s2865_s7 = scalar_lea.vmem %s2960_s3, %s1846_s4 }
  0x94   : > { %2337 = vmatmul.mubr.msk.bf16.gmra.mxu0 %vm225_vm0, %v2577_v24 }
  0x95   : > { %2317 = vmatmul.mubr.msk.bf16.gmra.mxu1 %vm225_vm0, %v2478_v33  ;;  %2340 = vmatprep.mubr.msk.bf16.mxu0 %vm225_vm0, %v1040_v42 }
  0x96   : > { %2320 = vmatprep.mubr.msk.bf16.mxu1 %vm225_vm0, %v862_v35 }
  0x9c   : > { %2341 = vmatmul.mubr.msk.bf16.gmra.mxu0 %vm225_vm0, %v1577_v45 }
  0x9d   : > { %2321 = vmatmul.mubr.msk.bf16.gmra.mxu1 %vm225_vm0, %v1399_v44 }
  0xd4   : > { %v2170_v21 = vpop.f32.mrf.mxu0 }
  0xd5   : > { %v2178_v46 = vpop.f32.mrf.mxu1 }
  0xd6   : > { %v284_v33 = vpop.f32.mrf.mxu0 }
  0xd7   : > { %v316_v47 = vpop.f32.mrf.mxu1 }
  0xd8   : > { %v2171_v48 = vpop.f32.mrf.mxu0 }
  0xd9   : > { %v2179_v49 = vpop.f32.mrf.mxu1 }
  0xda   : > { %v287_v50 = vpop.f32.mrf.mxu0 }
  0xdb   : > { %v319_v51 = vpop.f32.mrf.mxu1 }
  0xdc   : > { %v2174_v52 = vpop.f32.mrf.mxu0 }
  0xdd   : > { %v2182_v53 = vpop.f32.mrf.mxu1 }
  0xde   : > { %v300_v54 = vpop.f32.mrf.mxu0 }
  0xdf   : > { %v332_v55 = vpop.f32.mrf.mxu1 }
  0xe0   : > { %v2175_v56 = vpop.f32.mrf.mxu0 }
  0xe1   : > { %v2183_v57 = vpop.f32.mrf.mxu1 }
  0xe2   : > { %v303_v58 = vpop.f32.mrf.mxu0 }
  0xe3   : > { %v2696_v59 = vpop.f32.mrf.mxu1 }
  0xe4   : > { %v2210_v61 = vpop.f32.mrf.mxu0 }
  0xe5   : > { %v2190_v60 = vpop.f32.mrf.mxu1 }
  0xe6   : > { %v426_v62 = vadd.f32 %v2190_v60, %v2170_v21  ;;  %v579_v0 = vpop.f32.mrf.mxu0 }
  0xe7   : > { %v417_v63 = vpop.f32.mrf.mxu1 }
  0xe8   : > { %v2698_v1 = vadd.f32 %v2210_v61, %v426_v62  ;;  %v418_v2 = vadd.f32 %v417_v63, %v284_v33  ;;  %v2211_v4 = vpop.f32.mrf.mxu0 }
  0xe9   : > { %v2191_v3 = vpop.f32.mrf.mxu1 }
  0xea   : > { %v2700_v5 = vadd.f32 %v579_v0, %v418_v2  ;;  %v429_v6 = vadd.f32 %v2191_v3, %v2171_v48  ;;  %v582_v8 = vpop.f32.mrf.mxu0 }
  0xeb   : > { %v420_v7 = vpop.f32.mrf.mxu1 }
  0xec   : > { %v2702_v9 = vadd.f32 %v2211_v4, %v429_v6  ;;  %v421_v11 = vadd.f32 %v420_v7, %v287_v50  ;;  %v2214_v15 = vpop.f32.mrf.mxu0 }
  0xed   : > { %v2194_v12 = vpop.f32.mrf.mxu1 }
  0xee   : > { %v2704_v16 = vadd.f32 %v582_v8, %v421_v11  ;;  %v442_v17 = vadd.f32 %v2194_v12, %v2174_v52  ;;  %v595_v19 = vpop.f32.mrf.mxu0 }
  0xef   : > { %v433_v18 = vpop.f32.mrf.mxu1 }
  0xf0   : > { %v2706_v22 = vadd.f32 %v2214_v15, %v442_v17  ;;  %v434_v23 = vadd.f32 %v433_v18, %v300_v54  ;;  %v2215_v25 = vpop.f32.mrf.mxu0 }
  0xf1   : > { %v2195_v24 = vpop.f32.mrf.mxu1 }
  0xf2   : > { %v2708_v26 = vadd.f32 %v595_v19, %v434_v23  ;;  %v445_v13 = vadd.f32 %v2195_v24, %v2175_v56  ;;  %v598_v28 = vpop.f32.mrf.mxu0 }
  0xf3   : > { %v436_v27 = vpop.f32.mrf.mxu1 }
  0xf4   : > { %v2710_v29 = vadd.f32 %v2215_v25, %v445_v13  ;;  %v437_v30 = vadd.f32 %v436_v27, %v303_v58  ;;  %v2218_v34 = vpop.f32.mrf.mxu0 }
  0xf5   : > { %v2198_v31 = vpop.f32.mrf.mxu1 }
  0xf6   : > { %v2712_v35 = vadd.f32 %v598_v28, %v437_v30  ;;  %v458_v36 = vadd.f32 %v2198_v31, %v2178_v46  ;;  %v611_v38 = vpop.f32.mrf.mxu0 }
  0xf7   : > { %v449_v37 = vpop.f32.mrf.mxu1 }
  0xf8   : > { %v2714_v39 = vadd.f32 %v2218_v34, %v458_v36  ;;  %v450_v40 = vadd.f32 %v449_v37, %v316_v47  ;;  %v2219_v42 = vpop.f32.mrf.mxu0 }
  0xf9   : > { %v2199_v41 = vpop.f32.mrf.mxu1 }
  0xfa   : > { %v2716_v43 = vadd.f32 %v611_v38, %v450_v40  ;;  %v461_v10 = vadd.f32 %v2199_v41, %v2179_v49  ;;  %v614_v20 = vpop.f32.mrf.mxu0 }
  0xfb   : > { %v452_v14 = vpop.f32.mrf.mxu1 }
  0xfc   : > { %v2718_v32 = vadd.f32 %v2219_v42, %v461_v10  ;;  %v453_v44 = vadd.f32 %v452_v14, %v319_v51  ;;  %v2222_v21 = vpop.f32.mrf.mxu0 }
  0xfd   : > { %v2202_v45 = vpop.f32.mrf.mxu1 }
  0xfe   : > { %v2720_v33 = vadd.f32 %v614_v20, %v453_v44  ;;  %v474_v46 = vadd.f32 %v2202_v45, %v2182_v53  ;;  %v627_v50 = vpop.f32.mrf.mxu0 }
  0xff   : > { %v465_v48 = vpop.f32.mrf.mxu1 }
 0x100   : > { %v2722_v52 = vadd.f32 %v2222_v21, %v474_v46  ;;  %v466_v47 = vadd.f32 %v465_v48, %v332_v55  ;;  %v2223_v56 = vpop.f32.mrf.mxu0 }
 0x101   : > { %v2203_v54 = vpop.f32.mrf.mxu1 }
 0x102   : > { %v2724_v58 = vadd.f32 %v627_v50, %v466_v47  ;;  %v477_v49 = vadd.f32 %v2203_v54, %v2183_v57  ;;  %v630_v61 = vpop.f32.mrf.mxu0 }
 0x103   : > { %v468_v60 = vpop.f32.mrf.mxu1 }
 0x104   : > { %2961 = vst [vmem:[#allocation2_spill] sm:$0xff] %v2724_v58  ;;  %v2726_v62 = vadd.f32 %v2223_v56, %v477_v49  ;;  %v469_v51 = vadd.f32 %v468_v60, %v2696_v59  ;;  %v2250_v0 = vpop.f32.mrf.mxu0 }
 0x105   : > { %v2230_v63 = vpop.f32.mrf.mxu1 }
 0x106   : > { %2962 = vst [vmem:[#allocation3_spill] sm:$0xff] %v2726_v62  ;;  %v2729_v2 = vadd.f32 %v630_v61, %v469_v51  ;;  %v938_v3 = vpop.f32.mrf.mxu0  ;;  %v825_v62 = vadd.f32 %v2230_v63, %v2698_v1 }
 0x107   : > { %v760_v53 = vpop.f32.mrf.mxu1 }
 0x108   : > { %2963 = vst [vmem:[#allocation4_spill] sm:$0xff] %v2729_v2  ;;  %v2731_v6 = vpop.f32.mrf.mxu0  ;;  %v823_v58 = vadd.f32 %v760_v53, %v2700_v5 }
 0x109   : > { %v2231_v4 = vpop.f32.mrf.mxu1 }
 0x10a   : > { %v2733_v7 = vpop.f32.mrf.mxu0  ;;  %v1001_v1 = vadd.f32 %v938_v3, %v823_v58 }
 0x10b   : > { %v763_v55 = vpop.f32.mrf.mxu1 }
 0x10c   : > { %v2735_v57 = vpop.f32.mrf.mxu0  ;;  %v824_v63 = vadd.f32 %v763_v55, %v2704_v16 }
 0x10d   : > { %v2234_v8 = vpop.f32.mrf.mxu1 }
 0x10e   : > { %v2739_v12 = vpop.f32.mrf.mxu0  ;;  %v829_v5 = vadd.f32 %v2234_v8, %v2706_v22  ;;  %v1002_v16 = vadd.f32 %v2733_v7, %v824_v63 }
 0x10f   : > { %v2737_v11 = vpop.f32.mrf.mxu1 }
 0x110   : > { %v2743_v15 = vpop.f32.mrf.mxu0  ;;  %v1007_v22 = vadd.f32 %v2735_v57, %v829_v5 }
 0x111   : > { %v2741_v59 = vpop.f32.mrf.mxu1 }
 0x112   : > { %v2747_v18 = vpop.f32.mrf.mxu0 }
 0x113   : > { %v2745_v17 = vpop.f32.mrf.mxu1 }
 0x114   : > { %v2751_v23 = vpop.f32.mrf.mxu0  ;;  %v828_v7 = vadd.f32 %v2745_v17, %v2712_v35 }
 0x115   : > { %v2749_v19 = vpop.f32.mrf.mxu1 }
 0x116   : > { %v2755_v25 = vpop.f32.mrf.mxu0  ;;  %v1006_v63 = vadd.f32 %v2747_v18, %v828_v7 }
 0x117   : > { %v2753_v24 = vpop.f32.mrf.mxu1 }
 0x118   : > { %v2759_v27 = vpop.f32.mrf.mxu0 }
 0x119   : > { %v2757_v13 = vpop.f32.mrf.mxu1 }
 0x11a   : > { %v2763_v30 = vpop.f32.mrf.mxu0 }
 0x11b   : > { %v2761_v28 = vpop.f32.mrf.mxu1  ;;  %2964 = vst [vmem:[#allocation5_spill] sm:$0xff] %v2763_v30 }
 0x11c   : > { %v2767_v34 = vpop.f32.mrf.mxu0 }
 0x11d   : > { %v2765_v31 = vpop.f32.mrf.mxu1  ;;  %2965 = vst [vmem:[#allocation6_spill] sm:$0xff] %v2767_v34 }
 0x11e   : > { %v2771_v37 = vpop.f32.mrf.mxu0 }
 0x11f   : > { %v2769_v36 = vpop.f32.mrf.mxu1  ;;  %2967 = vst [vmem:[#allocation8_spill] sm:$0xff] %v2771_v37 }
 0x120   : > { %2966 = vst [vmem:[#allocation7_spill] sm:$0xff] %v2769_v36  ;;  %v2775_v40 = vpop.f32.mrf.mxu0 }
 0x121   : > { %v2773_v38 = vpop.f32.mrf.mxu1  ;;  %2969 = vst [vmem:[#allocation10_spill] sm:$0xff] %v2775_v40 }
 0x122   : > { %2968 = vst [vmem:[#allocation9_spill] sm:$0xff] %v2773_v38  ;;  %v2779_v42 = vpop.f32.mrf.mxu0 }
 0x123   : > { %v2777_v41 = vpop.f32.mrf.mxu1  ;;  %2971 = vst [vmem:[#allocation12_spill] sm:$0xff] %v2779_v42 }
 0x124   : > { %2970 = vst [vmem:[#allocation11_spill] sm:$0xff] %v2777_v41  ;;  %v2290_v14 = vpop.f32.mrf.mxu0 }
 0x125   : > { %v2270_v10 = vpop.f32.mrf.mxu1 }
 0x126   : > { %v1297_v44 = vpop.f32.mrf.mxu0 }
 0x127   : > { %v1116_v20 = vpop.f32.mrf.mxu1 }
 0x128   : > { %v2291_v21 = vpop.f32.mrf.mxu0 }
 0x129   : > { %v2271_v45 = vpop.f32.mrf.mxu1 }
 0x12a   : > { %v2781_v48 = vpop.f32.mrf.mxu0 }
 0x12b   : > { %v1119_v46 = vpop.f32.mrf.mxu1 }
 0x12c   : > { %v2783_v47 = vpop.f32.mrf.mxu0 }
 0x12d   : > { %v2274_v50 = vpop.f32.mrf.mxu1 }
 0x12e   : > { %v2785_v56 = vpop.f32.mrf.mxu0 }
 0x12f   : > { %v1132_v54 = vpop.f32.mrf.mxu1 }
 0x130   : > { %v2789_v60 = vpop.f32.mrf.mxu0 }
 0x131   : > { %v2787_v49 = vpop.f32.mrf.mxu1 }
 0x132   : > { %v2793_v51 = vpop.f32.mrf.mxu0 }
 0x133   : > { %v2791_v61 = vpop.f32.mrf.mxu1  ;;  %2972 = vst [vmem:[#allocation13_spill] sm:$0xff] %v2793_v51 }
 0x134   : > { %v2797_v40 = vpop.f32.mrf.mxu0 }
 0x135   : > { %v2795_v42 = vpop.f32.mrf.mxu1  ;;  %2973 = vst [vmem:[#allocation14_spill] sm:$0xff] %v2797_v40  ;;  %v1003_v40 = vadd.f32 %v2250_v0, %v825_v62  ;;  %v1179_v62 = vadd.f32 %v1116_v20, %v1001_v1 }
 0x136   : > { %v2801_v2 = vpop.f32.mrf.mxu0 }
 0x137   : > { %v2799_v41 = vpop.f32.mrf.mxu1  ;;  %2974 = vst [vmem:[#allocation15_spill] sm:$0xff] %v2801_v2  ;;  %v826_v2 = vadd.f32 %v2231_v4, %v2702_v9  ;;  %v827_v9 = vadd.f32 %v2737_v11, %v2708_v26  ;;  %v1360_v8 = vadd.f32 %v1297_v44, %v1179_v62  ;;  %v1180_v26 = vadd.f32 %v1119_v46, %v1002_v16 }
 0x138   : > { %v2805_v38 = vpop.f32.mrf.mxu0 }
 0x139   : > { %v2803_v37 = vpop.f32.mrf.mxu1  ;;  %2976 = vst [vmem:[#allocation17_spill] sm:$0xff] %v2805_v38  ;;  %v1361_v17 = vadd.f32 %v2781_v48, %v1180_v26 }
 0x13a   : > { %2975 = vst [vmem:[#allocation16_spill] sm:$0xff] %v2803_v37  ;;  %v2810_v36 = vpop.f32.mrf.mxu0 }
 0x13b   : > { %v2808_v34 = vpop.f32.mrf.mxu1  ;;  %2978 = vst [vmem:[#allocation19_spill] sm:$0xff] %v2810_v36 }
 0x13c   : > { %2977 = vst [vmem:[#allocation18_spill] sm:$0xff] %v2808_v34  ;;  %v2815_v51 = vpop.f32.mrf.mxu0  ;;  %v1181_v34 = vadd.f32 %v2270_v10, %v1003_v40  ;;  %v1005_v40 = vadd.f32 %v2739_v12, %v827_v9  ;;  %v2849_v10 = vld [vmem:[%s2959_s2] ss:$0 sm:$0xff]  ;;  %v833_v12 = vadd.f32 %v2749_v19, %v2714_v39 }
 0x13d   : > { %v2813_v30 = vpop.f32.mrf.mxu1  ;;  %2979 = vst [vmem:[#allocation20_spill] sm:$0xff] %v2815_v51  ;;  %v1004_v51 = vadd.f32 %v2731_v6, %v826_v2  ;;  %v830_v2 = vadd.f32 %v2741_v59, %v2710_v29 }
 0x13e   : > { %v2822_v38 = vpop.f32.mrf.mxu0  ;;  %v1362_v58 = vadd.f32 %v2290_v14, %v1181_v34  ;;  %v1185_v34 = vadd.f32 %v2274_v50, %v1007_v22  ;;  %v1011_v9 = vadd.f32 %v2751_v23, %v833_v12  ;;  %v832_v23 = vadd.f32 %v2761_v28, %v2720_v33  ;;  %v2980_v33 = vld [vmem:[#allocation13_spill] sm:$0xff] }
 0x13f   : > { %v2820_v37 = vpop.f32.mrf.mxu1  ;;  %v1182_v3 = vadd.f32 %v2271_v45, %v1004_v51  ;;  %v1008_v44 = vadd.f32 %v2743_v15, %v830_v2  ;;  %v1183_v45 = vadd.f32 %v1132_v54, %v1005_v40 }
 0x140   : > { %v2828_v36 = vpop.f32.mrf.mxu0  ;;  %v1366_v5 = vadd.f32 %v2783_v47, %v1185_v34  ;;  %v1184_v47 = vadd.f32 %v2791_v61, %v1006_v63  ;;  %v2986_v63 = vld [vmem:[#allocation6_spill] sm:$0xff] }
 0x141   : > { %v2826_v53 = vpop.f32.mrf.mxu1  ;;  %v1363_v20 = vadd.f32 %v2291_v21, %v1182_v3  ;;  %v831_v21 = vadd.f32 %v2753_v24, %v2716_v43  ;;  %v1186_v15 = vadd.f32 %v2787_v49, %v1008_v44  ;;  %v834_v43 = vadd.f32 %v2757_v13, %v2718_v32  ;;  %v2983_v44 = vld [vmem:[#allocation7_spill] sm:$0xff] }
 0x142   : > { %v2835_v4 = vpop.f32.mrf.mxu0  ;;  %v1364_v24 = vadd.f32 %v2785_v56, %v1183_v45  ;;  %v1189_v13 = vadd.f32 %v2795_v42, %v1011_v9  ;;  %v1365_v28 = vadd.f32 %v2980_v33, %v1184_v47  ;;  %v2985_v45 = vld [vmem:[#allocation16_spill] sm:$0xff] }
 0x143   : > { %v2833_v0 = vpop.f32.mrf.mxu1  ;;  %v1367_v32 = vadd.f32 %v2789_v60, %v1186_v15  ;;  %v1012_v40 = vadd.f32 %v2759_v27, %v834_v43  ;;  %v2982_v27 = vld [vmem:[#allocation2_spill] sm:$0xff]  ;;  %v2988_v15 = vld [vmem:[#allocation9_spill] sm:$0xff] }
 0x144   : > { %v2330_v55 = vpop.f32.mrf.mxu0  ;;  %v835_v12 = vadd.f32 %v2983_v44, %v2982_v27 }
 0x145   : > { %v2310_v6 = vpop.f32.mrf.mxu1 }
 0x146   : > { %v1540_v11 = vadd.f32 %v2310_v6, %v1362_v58  ;;  %v1653_v14 = vpop.f32.mrf.mxu0  ;;  %v1009_v6 = vadd.f32 %v2755_v25, %v831_v21  ;;  %v837_v25 = vadd.f32 %v2765_v31, %v2722_v52  ;;  %v2984_v52 = vld [vmem:[#allocation14_spill] sm:$0xff] }
 0x147   : > { %v1475_v57 = vpop.f32.mrf.mxu1  ;;  %v1370_v31 = vadd.f32 %v2984_v52, %v1189_v13 }
 0x148   : > { %v1718_v29 = vadd.f32 %v2330_v55, %v1540_v11  ;;  %v1538_v59 = vadd.f32 %v1475_v57, %v1360_v8  ;;  %v2331_v35 = vpop.f32.mrf.mxu0  ;;  %v1187_v60 = vadd.f32 %v2799_v41, %v1009_v6  ;;  %v1015_v21 = vadd.f32 %v2986_v63, %v837_v25  ;;  %v2994_v6 = vld [vmem:[#allocation17_spill] sm:$0xff]  ;;  %v2996_v25 = vld [vmem:[#allocation19_spill] sm:$0xff] }
 0x149   : > { %v2311_v46 = vpop.f32.mrf.mxu1 }
 0x14a   : > { %v1741_v50 = vadd.f32 %v2849_v10, %v1718_v29  ;;  %v1716_v51 = vadd.f32 %v1653_v14, %v1538_v59  ;;  %v1541_v1 = vadd.f32 %v2311_v46, %v1363_v20  ;;  %v1656_v19 = vpop.f32.mrf.mxu0  ;;  %v2981_v29 = vld [vmem:[#allocation5_spill] sm:$0xff]  ;;  %v1190_v46 = vadd.f32 %v2985_v45, %v1012_v40 }
 0x14b   : > { %v1478_v39 = vpop.f32.mrf.mxu1  ;;  %v1010_v59 = vadd.f32 %v2981_v29, %v832_v23  ;;  %v2998_v29 = vld [vmem:[#allocation20_spill] sm:$0xff] }
 0x14c   : > { %v1757_v48 = vmax.f32 %v1741_v50, 0.0  ;;  %v1739_v54 = vadd.f32 %v2849_v10, %v1716_v51  ;;  %v1719_v62 = vadd.f32 %v2331_v35, %v1541_v1  ;;  %v1539_v18 = vadd.f32 %v1478_v39, %v1361_v17  ;;  %v2334_v16 = vpop.f32.mrf.mxu0 }
 0x14d   : > { %v2314_v49 = vpop.f32.mrf.mxu1  ;;  %v1371_v23 = vadd.f32 %v2994_v6, %v1190_v46 }
 0x14e   : > { %1773 = vst.msk [vmem:[%s2865_s7 + $0x10] sm:$0xff] %vm225_vm0, %v1757_v48  ;;  %v1755_v58 = vmax.f32 %v1739_v54, 0.0  ;;  %v1742_v3 = vadd.f32 %v2849_v10, %v1719_v62  ;;  %v1717_v22 = vadd.f32 %v1656_v19, %v1539_v18  ;;  %v1544_v2 = vadd.f32 %v2314_v49, %v1366_v5  ;;  %v1669_v61 = vpop.f32.mrf.mxu0  ;;  %v2987_v5 = vld [vmem:[#allocation3_spill] sm:$0xff]  ;;  %v2990_v54 = vld [vmem:[#allocation18_spill] sm:$0xff] }
 0x14f   : > { %v1491_v56 = vpop.f32.mrf.mxu1  ;;  %v838_v39 = vadd.f32 %v2988_v15, %v2987_v5  ;;  %v2989_v19 = vld [vmem:[#allocation15_spill] sm:$0xff]  ;;  %v1188_v62 = vadd.f32 %v2990_v54, %v1010_v59 }
 0x150   : > { %1771 = vst.msk [vmem:[%s2865_s7] sm:$0xff] %vm225_vm0, %v1755_v58  ;;  %v1758_v55 = vmax.f32 %v1742_v3, 0.0  ;;  %v1740_v8 = vadd.f32 %v2849_v10, %v1717_v22  ;;  %v1722_v26 = vadd.f32 %v2334_v16, %v1544_v2  ;;  %v1542_v11 = vadd.f32 %v1491_v56, %v1364_v24  ;;  %v2335_v7 = vpop.f32.mrf.mxu0  ;;  %v2991_v16 = vld [vmem:[#allocation8_spill] sm:$0xff]  ;;  %v2993_v22 = vld [vmem:[#allocation11_spill] sm:$0xff] }
 0x151   : > { %v2315_v42 = vpop.f32.mrf.mxu1  ;;  %v1368_v48 = vadd.f32 %v2989_v19, %v1187_v60  ;;  %v1013_v58 = vadd.f32 %v2991_v16, %v835_v12  ;;  %v2992_v3 = vld [vmem:[#allocation4_spill] sm:$0xff]  ;;  %v1369_v33 = vadd.f32 %v2996_v25, %v1188_v62 }
 0x152   : > { %1774 = vst.msk [vmem:[%s2865_s7 + $0x18] sm:$0xff] %vm225_vm0, %v1758_v55  ;;  %v1756_v34 = vmax.f32 %v1740_v8, 0.0  ;;  %v1745_v57 = vadd.f32 %v2849_v10, %v1722_v26  ;;  %v1720_v14 = vadd.f32 %v1669_v61, %v1542_v11  ;;  %v1545_v20 = vadd.f32 %v2315_v42, %v1367_v32  ;;  %v1672_v35 = vpop.f32.mrf.mxu0  ;;  %v2995_v11 = vld [vmem:[#allocation10_spill] sm:$0xff] }
 0x153   : > { %v1494_v41 = vpop.f32.mrf.mxu1  ;;  %v836_v2 = vadd.f32 %v2993_v22, %v2992_v3  ;;  %v1193_v32 = vadd.f32 %v2813_v30, %v1015_v21  ;;  %v1016_v40 = vadd.f32 %v2995_v11, %v838_v39 }
 0x154   : > { %1772 = vst.msk [vmem:[%s2865_s7 + $0x8] sm:$0xff] %vm225_vm0, %v1756_v34  ;;  %v1761_v17 = vmax.f32 %v1745_v57, 0.0  ;;  %v1743_v50 = vadd.f32 %v2849_v10, %v1720_v14  ;;  %v1723_v51 = vadd.f32 %v2335_v7, %v1545_v20  ;;  %v1543_v1 = vadd.f32 %v1494_v41, %v1365_v28  ;;  %v2338_v9 = vpop.f32.mrf.mxu0  ;;  %v2997_v14 = vld [vmem:[#allocation12_spill] sm:$0xff] }
 0x155   : > { %v2318_v18 = vpop.f32.mrf.mxu1  ;;  %v1191_v28 = vadd.f32 %v2820_v37, %v1013_v58  ;;  %v1014_v20 = vadd.f32 %v2997_v14, %v836_v2  ;;  %v1374_v59 = vadd.f32 %v2998_v29, %v1193_v32  ;;  %v1194_v27 = vadd.f32 %v2826_v53, %v1016_v40 }
 0x156   : > { %1777 = vst.msk [vmem:[%s2865_s7 + $0x30] sm:$0xff] %vm225_vm0, %v1761_v17  ;;  %v1759_v43 = vmax.f32 %v1743_v50, 0.0  ;;  %v1746_v24 = vadd.f32 %v2849_v10, %v1723_v51  ;;  %v1721_v47 = vadd.f32 %v1672_v35, %v1543_v1  ;;  %v1548_v49 = vadd.f32 %v2318_v18, %v1370_v31  ;;  %v1685_v56 = vpop.f32.mrf.mxu0 }
 0x157   : > { %v1507_v13 = vpop.f32.mrf.mxu1  ;;  %v1372_v46 = vadd.f32 %v2822_v38, %v1191_v28  ;;  %v1192_v41 = vadd.f32 %v2833_v0, %v1014_v20  ;;  %v1375_v63 = vadd.f32 %v2828_v36, %v1194_v27 }
 0x158   : > { %1775 = vst.msk [vmem:[%s2865_s7 + $0x20] sm:$0xff] %vm225_vm0, %v1759_v43  ;;  %v1762_v61 = vmax.f32 %v1746_v24, 0.0  ;;  %v1744_v55 = vadd.f32 %v2849_v10, %v1721_v47  ;;  %v1726_v8 = vadd.f32 %v2338_v9, %v1548_v49  ;;  %v1546_v26 = vadd.f32 %v1507_v13, %v1368_v48  ;;  %v2339_v42 = vpop.f32.mrf.mxu0 }
 0x159   : > { %v2319_v60 = vpop.f32.mrf.mxu1  ;;  %v1373_v19 = vadd.f32 %v2835_v4, %v1192_v41 }
 0x15a   : > { %1778 = vst.msk [vmem:[%s2865_s7 + $0x38] sm:$0xff] %vm225_vm0, %v1762_v61  ;;  %v1760_v30 = vmax.f32 %v1744_v55, 0.0  ;;  %v1749_v7 = vadd.f32 %v2849_v10, %v1726_v8  ;;  %v1724_v34 = vadd.f32 %v1685_v56, %v1546_v26  ;;  %v1549_v57 = vadd.f32 %v2319_v60, %v1371_v23  ;;  %v1688_v12 = vpop.f32.mrf.mxu0 }
 0x15b   : > { %v1510_v44 = vpop.f32.mrf.mxu1 }
 0x15c   : > { %1776 = vst.msk [vmem:[%s2865_s7 + $0x28] sm:$0xff] %vm225_vm0, %v1760_v30  ;;  %v1765_v37 = vmax.f32 %v1749_v7, 0.0  ;;  %v1747_v52 = vadd.f32 %v2849_v10, %v1724_v34  ;;  %v1727_v31 = vadd.f32 %v2339_v42, %v1549_v57  ;;  %v1547_v45 = vadd.f32 %v1510_v44, %v1369_v33  ;;  %v2342_v17 = vpop.f32.mrf.mxu0 }
 0x15d   : > { %v2322_v35 = vpop.f32.mrf.mxu1 }
 0x15e   : > { %1781 = vst.msk [vmem:[%s2865_s7 + $0x50] sm:$0xff] %vm225_vm0, %v1765_v37  ;;  %v1763_v53 = vmax.f32 %v1747_v52, 0.0  ;;  %v1750_v50 = vadd.f32 %v2849_v10, %v1727_v31  ;;  %v1725_v51 = vadd.f32 %v1688_v12, %v1547_v45  ;;  %v1552_v1 = vadd.f32 %v2322_v35, %v1374_v59  ;;  %v1701_v5 = vpop.f32.mrf.mxu0 }
 0x15f   : > { %v1523_v21 = vpop.f32.mrf.mxu1 }
 0x160   : > { %1779 = vst.msk [vmem:[%s2865_s7 + $0x40] sm:$0xff] %vm225_vm0, %v1763_v53  ;;  %v1766_v38 = vmax.f32 %v1750_v50, 0.0  ;;  %v1748_v0 = vadd.f32 %v2849_v10, %v1725_v51  ;;  %v1730_v15 = vadd.f32 %v2342_v17, %v1552_v1  ;;  %v1550_v39 = vadd.f32 %v1523_v21, %v1372_v46  ;;  %v2343_v54 = vpop.f32.mrf.mxu0 }
 0x161   : > { %v2323_v48 = vpop.f32.mrf.mxu1 }
 0x162   : > { %1782 = vst.msk [vmem:[%s2865_s7 + $0x58] sm:$0xff] %vm225_vm0, %v1766_v38  ;;  %v1764_v62 = vmax.f32 %v1748_v0, 0.0  ;;  %v1753_v36 = vadd.f32 %v2849_v10, %v1730_v15  ;;  %v1728_v18 = vadd.f32 %v1701_v5, %v1550_v39  ;;  %v1553_v9 = vadd.f32 %v2323_v48, %v1375_v63  ;;  %v1704_v16 = vpop.f32.mrf.mxu0 }
 0x163   : > { %v1526_v43 = vpop.f32.mrf.mxu1 }
 0x164   : > { %1780 = vst.msk [vmem:[%s2865_s7 + $0x48] sm:$0xff] %vm225_vm0, %v1764_v62  ;;  %v1769_v24 = vmax.f32 %v1753_v36, 0.0  ;;  %v1751_v47 = vadd.f32 %v2849_v10, %v1728_v18  ;;  %v1731_v49 = vadd.f32 %v2343_v54, %v1553_v9  ;;  %v1551_v4 = vadd.f32 %v1526_v43, %v1373_v19 }
 0x166   : > { %1785 = vst.msk [vmem:[%s2865_s7 + $0x70] sm:$0xff] %vm225_vm0, %v1769_v24  ;;  %v1767_v58 = vmax.f32 %v1751_v47, 0.0  ;;  %v1754_v3 = vadd.f32 %v2849_v10, %v1731_v49  ;;  %v1729_v22 = vadd.f32 %v1704_v16, %v1551_v4 }
 0x168   : > { %1783 = vst.msk [vmem:[%s2865_s7 + $0x60] sm:$0xff] %vm225_vm0, %v1767_v58  ;;  %v1770_v2 = vmax.f32 %v1754_v3, 0.0  ;;  %v1752_v6 = vadd.f32 %v2849_v10, %v1729_v22 }
 0x16a   : > { %1786 = vst.msk [vmem:[%s2865_s7 + $0x78] sm:$0xff] %vm225_vm0, %v1770_v2  ;;  %v1768_v23 = vmax.f32 %v1752_v6, 0.0 }
 0x16c   : > { %1784 = vst.msk [vmem:[%s2865_s7 + $0x68] sm:$0xff] %vm225_vm0, %v1768_v23 }
 0x16d PF: > { %s13_s12 = sadd.s32 1, %s2380_s12  }
 0x16e   : > { %p10_p4 = scmp.ge.s32.totalorder %s13_s12, 4  }
 0x170   :  { %12 = sbr.rel (!%p10_p4) target bundleno = 1 (0x1), region = 70 }

// kernel: _forward_impl.12
= control target key start
LH: loop header
LB: loop body
LE: loop exit
PB: predicated region body
PF: predicated region fallthrough
CT: control target
= control target key end

     0   :  { %s2386_s12 = smov 0   ;;  %s2941_s0 = inlined_call_operand.vmem [shape: f32[1,18,18,32], index: 0, kind: input, shape index: {}]   ;;  %s2942_s1 = inlined_call_operand.vmem [shape: bf16[9,32,32], index: 1, kind: input, shape index: {}]   ;;  %s2943_s2 = inlined_call_operand.vmem [shape: f32[1,32], index: 2, kind: input, shape index: {}]   ;;  %s2944_s3 = inlined_call_operand.vmem [shape: f32[256,32], index: 3, kind: output, shape index: {}]  }
   0x1 LB: > { %s1825_s13 = sadd.s32 4294967295, %s2364_s12   ;;  %p1828_p0 = scmp.ge.s32.totalorder %s2364_s12, 1  ;;  %s2364_s12 = sphi %s2386_s12, %s13_s12  }
   0x2   : > { %p127_p1 = scmp.lt.s32.totalorder %s2364_s12, 3 }
   0x4   : > { %p128_p2 = pnand %p1828_p0, %p127_p1 }
   0x6   : > { %131 = sbr.rel (%p128_p2) target bundleno = 363 (0x16b), region = 32 }
   0xb   : > { %v2340_v0 = vld [vmem:[%s2942_s1 + $0x18] sm:$0xff]   ;;  %s1832_s16 = smul.u32 192, %s1825_s13  ;;  %v2341_v1 = vld [vmem:[%s2942_s1 + $0x10] sm:$0xff]   ;;  %v2342_v2 = vld [vmem:[%s2942_s1 + $0x8] sm:$0xff]   ;;  %vm225_vm0 = vcmask 261120  }
   0xc   : > { %2148 = vmatprep.subr.bf16.mxu0 %v2340_v0  ;;  %2328 = vmatprep.subr.bf16.mxu1 %v2340_v0  ;;  %v2343_v15 = vld [vmem:[%s2942_s1 + $0x28] sm:$0xff]   ;;  %v2344_v25 = vld [vmem:[%s2942_s1] sm:$0xff]   ;;  %v2346_v34 = vld [vmem:[%s2942_s1 + $0x38] sm:$0xff]  }
   0xd   : > { %s2405_s21 = scalar_lea.vmem %s2941_s0, %s1832_s16  ;;  %2149 = vmatpush3.bf16.msra.mxu0 %v2340_v0  ;;  %2330 = vmatpush3.bf16.msra.mxu1 %v2340_v0  ;;  %v2345_v27 = vld [vmem:[%s2942_s1 + $0x20] sm:$0xff]   ;;  %v2347_v37 = vld [vmem:[%s2942_s1 + $0x48] sm:$0xff]   ;;  %v2348_v54 = vld [vmem:[%s2942_s1 + $0x30] sm:$0xff]  }
   0xe   : > { %v184_v3 = vld [vmem:[%s2405_s21 + $0x1] sm:$0xff]  ;;  %v185_v4 = vld [vmem:[%s2405_s21 + $0x9] sm:$0xff]  ;;  %2150 = vmatprep.subr.bf16.mxu0 %v2341_v1  ;;  %2329 = vmatprep.subr.bf16.mxu1 %v2341_v1  ;;  %v186_v8 = vld [vmem:[%s2405_s21 + $0x19] sm:$0xff] }
   0xf   : > { %v192_v5 = vld [vmem:[%s2405_s21 + $0x61] sm:$0xff]  ;;  %v200_v6 = vpack.c.bf16 %v185_v4, %v184_v3  ;;  %v193_v7 = vld [vmem:[%s2405_s21 + $0x69] sm:$0xff]  ;;  %v194_v11 = vld [vmem:[%s2405_s21 + $0x79] sm:$0xff] }
  0x10   : > { %v187_v9 = vld [vmem:[%s2405_s21 + $0x21] sm:$0xff]  ;;  %v2416_v10 = vpack.c.bf16 %v193_v7, %v192_v5  ;;  %v188_v16 = vld [vmem:[%s2405_s21 + $0x31] sm:$0xff]  ;;  %v189_v17 = vld [vmem:[%s2405_s21 + $0x39] sm:$0xff] }
  0x11   : > { %v195_v12 = vld [vmem:[%s2405_s21 + $0x81] sm:$0xff]  ;;  %2152 = vmatprep.mubr.msk.bf16.mxu0 %vm225_vm0, %v200_v6  ;;  %v2421_v13 = vpack.c.bf16 %v187_v9, %v186_v8  ;;  %2151 = vmatpush3.bf16.msra.mxu0 %v2341_v1  ;;  %v196_v18 = vld [vmem:[%s2405_s21 + $0x91] sm:$0xff]  ;;  %v197_v19 = vld [vmem:[%s2405_s21 + $0x99] sm:$0xff]  ;;  %v2434_v20 = vpack.c.bf16 %v189_v17, %v188_v16 }
  0x12   : > { %v2423_v14 = vpack.c.bf16 %v195_v12, %v194_v11  ;;  %2331 = vmatpush3.bf16.msra.mxu1 %v2341_v1  ;;  %2160 = vmatprep.mubr.msk.bf16.mxu1 %vm225_vm0, %v2416_v10  ;;  %v2436_v21 = vpack.c.bf16 %v197_v19, %v196_v18  ;;  %v190_v22 = vld [vmem:[%s2405_s21 + $0x49] sm:$0xff]  ;;  %v191_v23 = vld [vmem:[%s2405_s21 + $0x51] sm:$0xff]  ;;  %v156_v28 = vld [vmem:[%s2405_s21] sm:$0xff] }
  0x13   : > { %2168 = vmatprep.subr.bf16.mxu1 %v2342_v2  ;;  %2188 = vmatprep.subr.bf16.mxu0 %v2343_v15  ;;  %v198_v24 = vld [vmem:[%s2405_s21 + $0xa9] sm:$0xff]  ;;  %v199_v26 = vld [vmem:[%s2405_s21 + $0xb1] sm:$0xff]  ;;  %v2460_v32 = vpack.c.bf16 %v191_v23, %v190_v22  ;;  %v159_v39 = vld [vmem:[%s2405_s21 + $0x20] sm:$0xff] }
  0x14   : > { %2153 = vmatmul.mubr.msk.bf16.vlgmr.msra.gmra.mxu0 %vm225_vm0, %v2421_v13  ;;  %v157_v29 = vld [vmem:[%s2405_s21 + $0x8] sm:$0xff]  ;;  %v2462_v33 = vpack.c.bf16 %v199_v26, %v198_v24  ;;  %v158_v38 = vld [vmem:[%s2405_s21 + $0x18] sm:$0xff]  ;;  %v160_v42 = vld [vmem:[%s2405_s21 + $0x30] sm:$0xff] }
  0x15   : > { %2161 = vmatmul.mubr.msk.bf16.vlgmr.msra.gmra.mxu1 %vm225_vm0, %v2423_v14  ;;  %2189 = vmatpush3.bf16.msra.mxu0 %v2343_v15  ;;  %v480_v30 = vld [vmem:[%s2405_s21 + $0x2] sm:$0xff]  ;;  %v481_v31 = vld [vmem:[%s2405_s21 + $0xa] sm:$0xff]  ;;  %v172_v35 = vpack.c.bf16 %v157_v29, %v156_v28  ;;  %v482_v40 = vld [vmem:[%s2405_s21 + $0x1a] sm:$0xff]  ;;  %v173_v46 = vpack.c.bf16 %v159_v39, %v158_v38 }
  0x16   : > { %2169 = vmatpush3.bf16.msra.mxu1 %v2342_v2  ;;  %2156 = vmatprep.mubr.msk.bf16.mxu0 %vm225_vm0, %v2434_v20  ;;  %v496_v36 = vpack.c.bf16 %v481_v31, %v480_v30  ;;  %v483_v41 = vld [vmem:[%s2405_s21 + $0x22] sm:$0xff]  ;;  %v161_v43 = vld [vmem:[%s2405_s21 + $0x38] sm:$0xff]  ;;  %v163_v51 = vld [vmem:[%s2405_s21 + $0x50] sm:$0xff] }
  0x17   : > { %2164 = vmatprep.mubr.msk.bf16.mxu1 %vm225_vm0, %v2436_v21  ;;  %2170 = vmatprep.subr.bf16.mxu1 %v2344_v25  ;;  %v484_v44 = vld [vmem:[%s2405_s21 + $0x32] sm:$0xff]  ;;  %v485_v45 = vld [vmem:[%s2405_s21 + $0x3a] sm:$0xff]  ;;  %v2484_v47 = vpack.c.bf16 %v483_v41, %v482_v40  ;;  %v2486_v48 = vpack.c.bf16 %v161_v43, %v160_v42  ;;  %v162_v50 = vld [vmem:[%s2405_s21 + $0x48] sm:$0xff] }
  0x18   : > { %2190 = vmatprep.subr.bf16.mxu0 %v2345_v27  ;;  %v2488_v49 = vpack.c.bf16 %v485_v45, %v484_v44  ;;  %v486_v52 = vld [vmem:[%s2405_s21 + $0x4a] sm:$0xff]  ;;  %v487_v53 = vld [vmem:[%s2405_s21 + $0x52] sm:$0xff]  ;;  %v2349_v55 = vld [vmem:[%s2942_s1 + $0x40] sm:$0xff]   ;;  %v2517_v62 = vpack.c.bf16 %v163_v51, %v162_v50 }
  0x19   : > { %2191 = vmatpush3.bf16.msra.mxu0 %v2345_v27  ;;  %v164_v56 = vld [vmem:[%s2405_s21 + $0x60] sm:$0xff]  ;;  %v165_v57 = vld [vmem:[%s2405_s21 + $0x68] sm:$0xff]  ;;  %v2350_v60 = vld [vmem:[%s2942_s1 + $0x58] sm:$0xff]   ;;  %v2519_v63 = vpack.c.bf16 %v487_v53, %v486_v52 }
  0x1a   : > { %2171 = vmatpush3.bf16.msra.mxu1 %v2344_v25  ;;  %2228 = vmatprep.subr.bf16.mxu0 %v2347_v37  ;;  %v488_v58 = vld [vmem:[%s2405_s21 + $0x62] sm:$0xff]  ;;  %v489_v59 = vld [vmem:[%s2405_s21 + $0x6a] sm:$0xff]  ;;  %v2521_v0 = vpack.c.bf16 %v165_v57, %v164_v56  ;;  %v166_v2 = vld [vmem:[%s2405_s21 + $0x78] sm:$0xff] }
  0x1b   : > { %2208 = vmatprep.subr.bf16.mxu1 %v2346_v34  ;;  %v2351_v61 = vld [vmem:[%s2942_s1 + $0x68] sm:$0xff]   ;;  %v2523_v1 = vpack.c.bf16 %v489_v59, %v488_v58  ;;  %v167_v3 = vld [vmem:[%s2405_s21 + $0x80] sm:$0xff]  ;;  %v168_v6 = vld [vmem:[%s2405_s21 + $0x90] sm:$0xff] }
  0x1c   : > { %2157 = vmatmul.mubr.msk.bf16.gmra.mxu0 %vm225_vm0, %v2460_v32  ;;  %v490_v4 = vld [vmem:[%s2405_s21 + $0x7a] sm:$0xff]  ;;  %v491_v5 = vld [vmem:[%s2405_s21 + $0x82] sm:$0xff]  ;;  %v492_v8 = vld [vmem:[%s2405_s21 + $0x92] sm:$0xff]  ;;  %v2541_v11 = vpack.c.bf16 %v167_v3, %v166_v2 }
  0x1d   : > { %2165 = vmatmul.mubr.msk.bf16.gmra.mxu1 %vm225_vm0, %v2462_v33  ;;  %2192 = vmatprep.mubr.msk.bf16.mxu0 %vm225_vm0, %v496_v36  ;;  %v169_v7 = vld [vmem:[%s2405_s21 + $0x98] sm:$0xff]  ;;  %v2543_v12 = vpack.c.bf16 %v491_v5, %v490_v4  ;;  %v170_v17 = vld [vmem:[%s2405_s21 + $0xa8] sm:$0xff]  ;;  %v171_v18 = vld [vmem:[%s2405_s21 + $0xb0] sm:$0xff] }
  0x1e   : > { %2172 = vmatprep.mubr.msk.bf16.mxu1 %vm225_vm0, %v172_v35  ;;  %v493_v9 = vld [vmem:[%s2405_s21 + $0x9a] sm:$0xff]  ;;  %v2545_v15 = vpack.c.bf16 %v169_v7, %v168_v6  ;;  %v494_v19 = vld [vmem:[%s2405_s21 + $0xaa] sm:$0xff]  ;;  %v495_v22 = vld [vmem:[%s2405_s21 + $0xb2] sm:$0xff]  ;;  %v179_v23 = vpack.c.bf16 %v171_v18, %v170_v17 }
  0x1f   : > { %v2547_v16 = vpack.c.bf16 %v493_v9, %v492_v8  ;;  %v2561_v24 = vpack.c.bf16 %v495_v22, %v494_v19  ;;  %v2352_v25 = vld [vmem:[%s2942_s1 + $0x50] sm:$0xff]   ;;  %v2353_v26 = vld [vmem:[%s2942_s1 + $0x60] sm:$0xff]   ;;  %v2355_v27 = vld [vmem:[%s2942_s1 + $0x88] sm:$0xff]  }
  0x20   : > { %v1887_v28 = vld [vmem:[%s2405_s21 + $0xc0] sm:$0xff]  ;;  %v1888_v29 = vld [vmem:[%s2405_s21 + $0xc8] sm:$0xff]  ;;  %v2356_v36 = vld [vmem:[%s2942_s1 + $0x70] sm:$0xff]  }
  0x21   : > { %v1917_v30 = vld [vmem:[%s2405_s21 + $0xc1] sm:$0xff]  ;;  %v1918_v31 = vld [vmem:[%s2405_s21 + $0xc9] sm:$0xff]  ;;  %v1979_v40 = vld [vmem:[%s2405_s21 + $0xd8] sm:$0xff] }
  0x22   : > { %v862_v35 = vpack.c.bf16 %v1918_v31, %v1917_v30  ;;  %v1947_v38 = vld [vmem:[%s2405_s21 + $0xc2] sm:$0xff]  ;;  %v1948_v39 = vld [vmem:[%s2405_s21 + $0xca] sm:$0xff] }
  0x23   : > { %v1980_v41 = vld [vmem:[%s2405_s21 + $0xe0] sm:$0xff]  ;;  %v1040_v42 = vpack.c.bf16 %v1948_v39, %v1947_v38 }
  0x24   : > { %2193 = vmatmul.mubr.msk.bf16.vlgmr.msra.gmra.mxu0 %vm225_vm0, %v2484_v47  ;;  %v1221_v43 = vpack.c.bf16 %v1980_v41, %v1979_v40 }
  0x25   : > { %2173 = vmatmul.mubr.msk.bf16.vlgmr.msra.gmra.mxu1 %vm225_vm0, %v173_v46  ;;  %2229 = vmatpush3.bf16.msra.mxu0 %v2347_v37  ;;  %v2357_v37 = vld [vmem:[%s2942_s1 + $0x80] sm:$0xff]  }
  0x26   : > { %2209 = vmatpush3.bf16.msra.mxu1 %v2346_v34  ;;  %2176 = vmatprep.mubr.msk.bf16.mxu1 %vm225_vm0, %v2486_v48  ;;  %v684_v34 = vpack.c.bf16 %v1888_v29, %v1887_v28 }
  0x27   : > { %2196 = vmatprep.mubr.msk.bf16.mxu0 %vm225_vm0, %v2488_v49  ;;  %2210 = vmatprep.subr.bf16.mxu1 %v2348_v54 }
  0x28   : > { %2230 = vmatprep.subr.bf16.mxu0 %v2349_v55 }
  0x29   : > { %2231 = vmatpush3.bf16.msra.mxu0 %v2349_v55 }
  0x2a   : > { %2211 = vmatpush3.bf16.msra.mxu1 %v2348_v54  ;;  %2268 = vmatprep.subr.bf16.mxu0 %v2351_v61 }
  0x2b   : > { %2248 = vmatprep.subr.bf16.mxu1 %v2350_v60 }
  0x2c   : > { %2197 = vmatmul.mubr.msk.bf16.gmra.mxu0 %vm225_vm0, %v2519_v63 }
  0x2d   : > { %2177 = vmatmul.mubr.msk.bf16.gmra.mxu1 %vm225_vm0, %v2517_v62  ;;  %2200 = vmatprep.mubr.msk.bf16.mxu0 %vm225_vm0, %v2523_v1 }
  0x2e   : > { %2180 = vmatprep.mubr.msk.bf16.mxu1 %vm225_vm0, %v2521_v0 }
  0x34   : > { %2201 = vmatmul.mubr.msk.bf16.gmra.mxu0 %vm225_vm0, %v2543_v12 }
  0x35   : > { %2181 = vmatmul.mubr.msk.bf16.gmra.mxu1 %vm225_vm0, %v2541_v11  ;;  %2204 = vmatprep.mubr.msk.bf16.mxu0 %vm225_vm0, %v2547_v16 }
  0x36   : > { %2184 = vmatprep.mubr.msk.bf16.mxu1 %vm225_vm0, %v2545_v15 }
  0x3c   : > { %2205 = vmatmul.mubr.msk.bf16.gmra.mxu0 %vm225_vm0, %v2561_v24 }
  0x3d   : > { %2185 = vmatmul.mubr.msk.bf16.gmra.mxu1 %vm225_vm0, %v179_v23  ;;  %2232 = vmatprep.mubr.msk.bf16.mxu0 %vm225_vm0, %v2421_v13  ;;  %v2354_v13 = vld [vmem:[%s2942_s1 + $0x78] sm:$0xff]  }
  0x3e   : > { %2212 = vmatprep.mubr.msk.bf16.mxu1 %vm225_vm0, %v173_v46 }
  0x44   : > { %2233 = vmatmul.mubr.msk.bf16.vlgmr.msra.gmra.mxu0 %vm225_vm0, %v2434_v20 }
  0x45   : > { %2213 = vmatmul.mubr.msk.bf16.vlgmr.msra.gmra.mxu1 %vm225_vm0, %v2486_v48  ;;  %2269 = vmatpush3.bf16.msra.mxu0 %v2351_v61 }
  0x46   : > { %2249 = vmatpush3.bf16.msra.mxu1 %v2350_v60  ;;  %2216 = vmatprep.mubr.msk.bf16.mxu1 %vm225_vm0, %v2517_v62 }
  0x47   : > { %2236 = vmatprep.mubr.msk.bf16.mxu0 %vm225_vm0, %v2460_v32  ;;  %2250 = vmatprep.subr.bf16.mxu1 %v2352_v25 }
  0x48   : > { %2270 = vmatprep.subr.bf16.mxu0 %v2353_v26 }
  0x49   : > { %2271 = vmatpush3.bf16.msra.mxu0 %v2353_v26 }
  0x4a   : > { %2251 = vmatpush3.bf16.msra.mxu1 %v2352_v25  ;;  %2308 = vmatprep.subr.bf16.mxu0 %v2355_v27 }
  0x4b   : > { %2288 = vmatprep.subr.bf16.mxu1 %v2354_v13 }
  0x4c   : > { %2237 = vmatmul.mubr.msk.bf16.gmra.mxu0 %vm225_vm0, %v2416_v10 }
  0x4d   : > { %2217 = vmatmul.mubr.msk.bf16.gmra.mxu1 %vm225_vm0, %v2521_v0  ;;  %2240 = vmatprep.mubr.msk.bf16.mxu0 %vm225_vm0, %v2423_v14 }
  0x4e   : > { %2220 = vmatprep.mubr.msk.bf16.mxu1 %vm225_vm0, %v2541_v11 }
  0x54   : > { %2241 = vmatmul.mubr.msk.bf16.gmra.mxu0 %vm225_vm0, %v2436_v21 }
  0x55   : > { %2221 = vmatmul.mubr.msk.bf16.gmra.mxu1 %vm225_vm0, %v2545_v15  ;;  %2244 = vmatprep.mubr.msk.bf16.mxu0 %vm225_vm0, %v2462_v33 }
  0x56   : > { %2224 = vmatprep.mubr.msk.bf16.mxu1 %vm225_vm0, %v179_v23 }
  0x5c   : > { %2245 = vmatmul.mubr.msk.bf16.gmra.mxu0 %vm225_vm0, %v862_v35 }
  0x5d   : > { %2225 = vmatmul.mubr.msk.bf16.gmra.mxu1 %vm225_vm0, %v684_v34  ;;  %2272 = vmatprep.mubr.msk.bf16.mxu0 %vm225_vm0, %v2486_v48 }
  0x5e   : > { %2252 = vmatprep.mubr.msk.bf16.mxu1 %vm225_vm0, %v2484_v47 }
  0x64   : > { %2273 = vmatmul.mubr.msk.bf16.vlgmr.msra.gmra.mxu0 %vm225_vm0, %v2517_v62 }
  0x65   : > { %2253 = vmatmul.mubr.msk.bf16.vlgmr.msra.gmra.mxu1 %vm225_vm0, %v2488_v49  ;;  %2309 = vmatpush3.bf16.msra.mxu0 %v2355_v27 }
  0x66   : > { %2289 = vmatpush3.bf16.msra.mxu1 %v2354_v13  ;;  %2256 = vmatprep.mubr.msk.bf16.mxu1 %vm225_vm0, %v2519_v63 }
  0x67   : > { %2276 = vmatprep.mubr.msk.bf16.mxu0 %vm225_vm0, %v2521_v0  ;;  %2290 = vmatprep.subr.bf16.mxu1 %v2356_v36 }
  0x68   : > { %2310 = vmatprep.subr.bf16.mxu0 %v2357_v37 }
  0x69   : > { %2311 = vmatpush3.bf16.msra.mxu0 %v2357_v37 }
  0x6a   : > { %2291 = vmatpush3.bf16.msra.mxu1 %v2356_v36 }
  0x6c   : > { %2277 = vmatmul.mubr.msk.bf16.gmra.mxu0 %vm225_vm0, %v2541_v11 }
  0x6d   : > { %2257 = vmatmul.mubr.msk.bf16.gmra.mxu1 %vm225_vm0, %v2523_v1  ;;  %2280 = vmatprep.mubr.msk.bf16.mxu0 %vm225_vm0, %v2545_v15 }
  0x6e   : > { %2260 = vmatprep.mubr.msk.bf16.mxu1 %vm225_vm0, %v2543_v12 }
  0x74   : > { %2281 = vmatmul.mubr.msk.bf16.gmra.mxu0 %vm225_vm0, %v179_v23 }
  0x75   : > { %2261 = vmatmul.mubr.msk.bf16.gmra.mxu1 %vm225_vm0, %v2547_v16  ;;  %2284 = vmatprep.mubr.msk.bf16.mxu0 %vm225_vm0, %v684_v34 }
  0x76   : > { %2264 = vmatprep.mubr.msk.bf16.mxu1 %vm225_vm0, %v2561_v24 }
  0x7c   : > { %2285 = vmatmul.mubr.msk.bf16.gmra.mxu0 %vm225_vm0, %v1221_v43 }
  0x7d   : > { %2265 = vmatmul.mubr.msk.bf16.gmra.mxu1 %vm225_vm0, %v1040_v42  ;;  %2312 = vmatprep.mubr.msk.bf16.mxu0 %vm225_vm0, %v2488_v49 }
  0x7e   : > { %2292 = vmatprep.mubr.msk.bf16.mxu1 %vm225_vm0, %v2434_v20  ;;  %v2039_v20 = vld [vmem:[%s2405_s21 + $0xda] sm:$0xff] }
  0x84   : > { %2313 = vmatmul.mubr.msk.bf16.vlgmr.msra.gmra.mxu0 %vm225_vm0, %v2519_v63 }
  0x85   : > { %2293 = vmatmul.mubr.msk.bf16.vlgmr.msra.gmra.mxu1 %vm225_vm0, %v2460_v32  ;;  %2316 = vmatprep.mubr.msk.bf16.mxu0 %vm225_vm0, %v2523_v1  ;;  %v2040_v32 = vld [vmem:[%s2405_s21 + $0xe2] sm:$0xff] }
  0x86   : > { %2296 = vmatprep.mubr.msk.bf16.mxu1 %vm225_vm0, %v2416_v10  ;;  %v2009_v10 = vld [vmem:[%s2405_s21 + $0xd9] sm:$0xff]  ;;  %v1577_v45 = vpack.c.bf16 %v2040_v32, %v2039_v20 }
  0x8c   : > { %2317 = vmatmul.mubr.msk.bf16.gmra.mxu0 %vm225_vm0, %v2543_v12 }
  0x8d   : > { %2297 = vmatmul.mubr.msk.bf16.gmra.mxu1 %vm225_vm0, %v2423_v14  ;;  %2320 = vmatprep.mubr.msk.bf16.mxu0 %vm225_vm0, %v2547_v16  ;;  %v2010_v14 = vld [vmem:[%s2405_s21 + $0xe1] sm:$0xff]  ;;  %s1829_s21 = sshll.u32 %s1825_s13, 4 }
  0x8e   : > { %2300 = vmatprep.mubr.msk.bf16.mxu1 %vm225_vm0, %v2436_v21  ;;  %v1399_v44 = vpack.c.bf16 %v2010_v14, %v2009_v10  ;;  %p147_p3 = scmp.lt.s32.totalorder %s1829_s21, 31 }
  0x90   : > { %s2984_s21 = smov (!%p147_p3, %s1829_s21), 31 }
  0x91   : > { %s1830_s13 = sshll.u32 %s2984_s21, 3 }
  0x92   : > { %s2842_s7 = scalar_lea.vmem %s2944_s3, %s1830_s13 }
  0x94   : > { %2321 = vmatmul.mubr.msk.bf16.gmra.mxu0 %vm225_vm0, %v2561_v24 }
  0x95   : > { %2301 = vmatmul.mubr.msk.bf16.gmra.mxu1 %vm225_vm0, %v2462_v33  ;;  %2324 = vmatprep.mubr.msk.bf16.mxu0 %vm225_vm0, %v1040_v42 }
  0x96   : > { %2304 = vmatprep.mubr.msk.bf16.mxu1 %vm225_vm0, %v862_v35 }
  0x9c   : > { %2325 = vmatmul.mubr.msk.bf16.gmra.mxu0 %vm225_vm0, %v1577_v45 }
  0x9d   : > { %2305 = vmatmul.mubr.msk.bf16.gmra.mxu1 %vm225_vm0, %v1399_v44 }
  0xd4   : > { %v2154_v21 = vpop.f32.mrf.mxu0 }
  0xd5   : > { %v2162_v46 = vpop.f32.mrf.mxu1 }
  0xd6   : > { %v284_v33 = vpop.f32.mrf.mxu0 }
  0xd7   : > { %v316_v47 = vpop.f32.mrf.mxu1 }
  0xd8   : > { %v2155_v48 = vpop.f32.mrf.mxu0 }
  0xd9   : > { %v2163_v49 = vpop.f32.mrf.mxu1 }
  0xda   : > { %v287_v50 = vpop.f32.mrf.mxu0 }
  0xdb   : > { %v319_v51 = vpop.f32.mrf.mxu1 }
  0xdc   : > { %v2158_v52 = vpop.f32.mrf.mxu0 }
  0xdd   : > { %v2166_v53 = vpop.f32.mrf.mxu1 }
  0xde   : > { %v300_v54 = vpop.f32.mrf.mxu0 }
  0xdf   : > { %v332_v55 = vpop.f32.mrf.mxu1 }
  0xe0   : > { %v2159_v56 = vpop.f32.mrf.mxu0 }
  0xe1   : > { %v2167_v57 = vpop.f32.mrf.mxu1 }
  0xe2   : > { %v303_v58 = vpop.f32.mrf.mxu0 }
  0xe3   : > { %v2680_v59 = vpop.f32.mrf.mxu1 }
  0xe4   : > { %v2194_v61 = vpop.f32.mrf.mxu0 }
  0xe5   : > { %v2174_v60 = vpop.f32.mrf.mxu1 }
  0xe6   : > { %v426_v62 = vadd.f32 %v2174_v60, %v2154_v21  ;;  %v579_v0 = vpop.f32.mrf.mxu0 }
  0xe7   : > { %v417_v63 = vpop.f32.mrf.mxu1 }
  0xe8   : > { %v2682_v1 = vadd.f32 %v2194_v61, %v426_v62  ;;  %v418_v2 = vadd.f32 %v417_v63, %v284_v33  ;;  %v2195_v4 = vpop.f32.mrf.mxu0 }
  0xe9   : > { %v2175_v3 = vpop.f32.mrf.mxu1 }
  0xea   : > { %v2684_v5 = vadd.f32 %v579_v0, %v418_v2  ;;  %v429_v6 = vadd.f32 %v2175_v3, %v2155_v48  ;;  %v582_v8 = vpop.f32.mrf.mxu0 }
  0xeb   : > { %v420_v7 = vpop.f32.mrf.mxu1 }
  0xec   : > { %v2686_v9 = vadd.f32 %v2195_v4, %v429_v6  ;;  %v421_v11 = vadd.f32 %v420_v7, %v287_v50  ;;  %v2198_v15 = vpop.f32.mrf.mxu0 }
  0xed   : > { %v2178_v12 = vpop.f32.mrf.mxu1 }
  0xee   : > { %v2688_v16 = vadd.f32 %v582_v8, %v421_v11  ;;  %v442_v17 = vadd.f32 %v2178_v12, %v2158_v52  ;;  %v595_v19 = vpop.f32.mrf.mxu0 }
  0xef   : > { %v433_v18 = vpop.f32.mrf.mxu1 }
  0xf0   : > { %v2690_v22 = vadd.f32 %v2198_v15, %v442_v17  ;;  %v434_v23 = vadd.f32 %v433_v18, %v300_v54  ;;  %v2199_v25 = vpop.f32.mrf.mxu0 }
  0xf1   : > { %v2179_v24 = vpop.f32.mrf.mxu1 }
  0xf2   : > { %v2692_v26 = vadd.f32 %v595_v19, %v434_v23  ;;  %v445_v13 = vadd.f32 %v2179_v24, %v2159_v56  ;;  %v598_v28 = vpop.f32.mrf.mxu0 }
  0xf3   : > { %v436_v27 = vpop.f32.mrf.mxu1 }
  0xf4   : > { %v2694_v29 = vadd.f32 %v2199_v25, %v445_v13  ;;  %v437_v30 = vadd.f32 %v436_v27, %v303_v58  ;;  %v2202_v34 = vpop.f32.mrf.mxu0 }
  0xf5   : > { %v2182_v31 = vpop.f32.mrf.mxu1 }
  0xf6   : > { %v2696_v35 = vadd.f32 %v598_v28, %v437_v30  ;;  %v458_v36 = vadd.f32 %v2182_v31, %v2162_v46  ;;  %v611_v38 = vpop.f32.mrf.mxu0 }
  0xf7   : > { %v449_v37 = vpop.f32.mrf.mxu1 }
  0xf8   : > { %v2698_v39 = vadd.f32 %v2202_v34, %v458_v36  ;;  %v450_v40 = vadd.f32 %v449_v37, %v316_v47  ;;  %v2203_v42 = vpop.f32.mrf.mxu0 }
  0xf9   : > { %v2183_v41 = vpop.f32.mrf.mxu1 }
  0xfa   : > { %v2700_v43 = vadd.f32 %v611_v38, %v450_v40  ;;  %v461_v10 = vadd.f32 %v2183_v41, %v2163_v49  ;;  %v614_v20 = vpop.f32.mrf.mxu0 }
  0xfb   : > { %v452_v14 = vpop.f32.mrf.mxu1 }
  0xfc   : > { %v2702_v32 = vadd.f32 %v2203_v42, %v461_v10  ;;  %v453_v44 = vadd.f32 %v452_v14, %v319_v51  ;;  %v2206_v21 = vpop.f32.mrf.mxu0 }
  0xfd   : > { %v2186_v45 = vpop.f32.mrf.mxu1 }
  0xfe   : > { %v2704_v33 = vadd.f32 %v614_v20, %v453_v44  ;;  %v474_v46 = vadd.f32 %v2186_v45, %v2166_v53  ;;  %v627_v50 = vpop.f32.mrf.mxu0 }
  0xff   : > { %v465_v48 = vpop.f32.mrf.mxu1 }
 0x100   : > { %v2706_v52 = vadd.f32 %v2206_v21, %v474_v46  ;;  %v466_v47 = vadd.f32 %v465_v48, %v332_v55  ;;  %v2207_v56 = vpop.f32.mrf.mxu0 }
 0x101   : > { %v2187_v54 = vpop.f32.mrf.mxu1 }
 0x102   : > { %v2708_v58 = vadd.f32 %v627_v50, %v466_v47  ;;  %v477_v49 = vadd.f32 %v2187_v54, %v2167_v57  ;;  %v630_v61 = vpop.f32.mrf.mxu0 }
 0x103   : > { %v468_v60 = vpop.f32.mrf.mxu1 }
 0x104   : > { %2945 = vst [vmem:[#allocation2_spill] sm:$0xff] %v2708_v58  ;;  %v2710_v62 = vadd.f32 %v2207_v56, %v477_v49  ;;  %v469_v51 = vadd.f32 %v468_v60, %v2680_v59  ;;  %v2234_v0 = vpop.f32.mrf.mxu0 }
 0x105   : > { %v2214_v63 = vpop.f32.mrf.mxu1 }
 0x106   : > { %2946 = vst [vmem:[#allocation3_spill] sm:$0xff] %v2710_v62  ;;  %v2713_v2 = vadd.f32 %v630_v61, %v469_v51  ;;  %v2715_v3 = vpop.f32.mrf.mxu0  ;;  %v825_v62 = vadd.f32 %v2214_v63, %v2682_v1 }
 0x107   : > { %v760_v53 = vpop.f32.mrf.mxu1 }
 0x108   : > { %2947 = vst [vmem:[#allocation4_spill] sm:$0xff] %v2713_v2  ;;  %v2717_v55 = vpop.f32.mrf.mxu0  ;;  %v823_v58 = vadd.f32 %v760_v53, %v2684_v5 }
 0x109   : > { %v2215_v4 = vpop.f32.mrf.mxu1 }
 0x10a   : > { %v2719_v7 = vpop.f32.mrf.mxu0  ;;  %v1001_v1 = vadd.f32 %v2715_v3, %v823_v58 }
 0x10b   : > { %v763_v6 = vpop.f32.mrf.mxu1 }
 0x10c   : > { %v2721_v8 = vpop.f32.mrf.mxu0  ;;  %v824_v63 = vadd.f32 %v763_v6, %v2688_v16 }
 0x10d   : > { %v2218_v57 = vpop.f32.mrf.mxu1 }
 0x10e   : > { %v2725_v12 = vpop.f32.mrf.mxu0  ;;  %v1002_v16 = vadd.f32 %v2719_v7, %v824_v63  ;;  %v2834_v7 = vld [vmem:[%s2943_s2] ss:$0 sm:$0xff] }
 0x10f   : > { %v2723_v11 = vpop.f32.mrf.mxu1 }
 0x110   : > { %v2729_v15 = vpop.f32.mrf.mxu0 }
 0x111   : > { %v2727_v59 = vpop.f32.mrf.mxu1 }
 0x112   : > { %v2733_v18 = vpop.f32.mrf.mxu0  ;;  %v830_v6 = vadd.f32 %v2727_v59, %v2694_v29 }
 0x113   : > { %v2731_v17 = vpop.f32.mrf.mxu1 }
 0x114   : > { %v2737_v23 = vpop.f32.mrf.mxu0 }
 0x115   : > { %v2735_v19 = vpop.f32.mrf.mxu1 }
 0x116   : > { %v2741_v25 = vpop.f32.mrf.mxu0 }
 0x117   : > { %v2739_v24 = vpop.f32.mrf.mxu1 }
 0x118   : > { %v2745_v27 = vpop.f32.mrf.mxu0 }
 0x119   : > { %v2743_v13 = vpop.f32.mrf.mxu1 }
 0x11a   : > { %v2749_v30 = vpop.f32.mrf.mxu0 }
 0x11b   : > { %v2747_v28 = vpop.f32.mrf.mxu1  ;;  %2948 = vst [vmem:[#allocation5_spill] sm:$0xff] %v2749_v30 }
 0x11c   : > { %v2753_v34 = vpop.f32.mrf.mxu0 }
 0x11d   : > { %v2751_v31 = vpop.f32.mrf.mxu1  ;;  %2949 = vst [vmem:[#allocation6_spill] sm:$0xff] %v2753_v34 }
 0x11e   : > { %v2757_v37 = vpop.f32.mrf.mxu0 }
 0x11f   : > { %v2755_v36 = vpop.f32.mrf.mxu1  ;;  %2951 = vst [vmem:[#allocation8_spill] sm:$0xff] %v2757_v37 }
 0x120   : > { %2950 = vst [vmem:[#allocation7_spill] sm:$0xff] %v2755_v36  ;;  %v2761_v40 = vpop.f32.mrf.mxu0 }
 0x121   : > { %v2759_v38 = vpop.f32.mrf.mxu1  ;;  %2953 = vst [vmem:[#allocation10_spill] sm:$0xff] %v2761_v40 }
 0x122   : > { %2952 = vst [vmem:[#allocation9_spill] sm:$0xff] %v2759_v38  ;;  %v2765_v42 = vpop.f32.mrf.mxu0 }
 0x123   : > { %v2763_v41 = vpop.f32.mrf.mxu1  ;;  %2955 = vst [vmem:[#allocation12_spill] sm:$0xff] %v2765_v42 }
 0x124   : > { %2954 = vst [vmem:[#allocation11_spill] sm:$0xff] %v2763_v41  ;;  %v2274_v14 = vpop.f32.mrf.mxu0 }
 0x125   : > { %v2254_v10 = vpop.f32.mrf.mxu1 }
 0x126   : > { %v1297_v44 = vpop.f32.mrf.mxu0 }
 0x127   : > { %v1116_v20 = vpop.f32.mrf.mxu1 }
 0x128   : > { %v2275_v21 = vpop.f32.mrf.mxu0 }
 0x129   : > { %v2255_v45 = vpop.f32.mrf.mxu1 }
 0x12a   : > { %v2767_v48 = vpop.f32.mrf.mxu0 }
 0x12b   : > { %v1119_v46 = vpop.f32.mrf.mxu1 }
 0x12c   : > { %v2769_v47 = vpop.f32.mrf.mxu0 }
 0x12d   : > { %v2258_v50 = vpop.f32.mrf.mxu1 }
 0x12e   : > { %v2771_v56 = vpop.f32.mrf.mxu0 }
 0x12f   : > { %v1132_v54 = vpop.f32.mrf.mxu1 }
 0x130   : > { %v2775_v60 = vpop.f32.mrf.mxu0 }
 0x131   : > { %v2773_v49 = vpop.f32.mrf.mxu1 }
 0x132   : > { %v2779_v51 = vpop.f32.mrf.mxu0 }
 0x133   : > { %v2777_v61 = vpop.f32.mrf.mxu1  ;;  %2956 = vst [vmem:[#allocation13_spill] sm:$0xff] %v2779_v51  ;;  %v1003_v51 = vadd.f32 %v2234_v0, %v825_v62  ;;  %v1179_v0 = vadd.f32 %v1116_v20, %v1001_v1 }
 0x134   : > { %v2783_v40 = vpop.f32.mrf.mxu0 }
 0x135   : > { %v2781_v42 = vpop.f32.mrf.mxu1  ;;  %2957 = vst [vmem:[#allocation14_spill] sm:$0xff] %v2783_v40 }
 0x136   : > { %v2787_v2 = vpop.f32.mrf.mxu0 }
 0x137   : > { %v2785_v41 = vpop.f32.mrf.mxu1  ;;  %2958 = vst [vmem:[#allocation15_spill] sm:$0xff] %v2787_v2  ;;  %v826_v2 = vadd.f32 %v2215_v4, %v2686_v9  ;;  %v827_v9 = vadd.f32 %v2723_v11, %v2692_v26  ;;  %v828_v11 = vadd.f32 %v2731_v17, %v2696_v35 }
 0x138   : > { %v2791_v38 = vpop.f32.mrf.mxu0 }
 0x139   : > { %v2789_v37 = vpop.f32.mrf.mxu1  ;;  %2960 = vst [vmem:[#allocation17_spill] sm:$0xff] %v2791_v38  ;;  %v1004_v62 = vadd.f32 %v2717_v55, %v826_v2  ;;  %v1360_v55 = vadd.f32 %v1297_v44, %v1179_v0  ;;  %v1005_v26 = vadd.f32 %v2725_v12, %v827_v9  ;;  %v833_v44 = vadd.f32 %v2735_v19, %v2698_v39 }
 0x13a   : > { %2959 = vst [vmem:[#allocation16_spill] sm:$0xff] %v2789_v37  ;;  %v2796_v36 = vpop.f32.mrf.mxu0  ;;  %v831_v39 = vadd.f32 %v2739_v24, %v2700_v43 }
 0x13b   : > { %v2794_v34 = vpop.f32.mrf.mxu1  ;;  %2962 = vst [vmem:[#allocation19_spill] sm:$0xff] %v2796_v36  ;;  %v1181_v36 = vadd.f32 %v2254_v10, %v1003_v51  ;;  %v1182_v3 = vadd.f32 %v2255_v45, %v1004_v62  ;;  %v1180_v10 = vadd.f32 %v1119_v46, %v1002_v16  ;;  %v1183_v12 = vadd.f32 %v1132_v54, %v1005_v26 }
 0x13c   : > { %2961 = vst [vmem:[#allocation18_spill] sm:$0xff] %v2794_v34  ;;  %v2803_v40 = vpop.f32.mrf.mxu0  ;;  %v829_v34 = vadd.f32 %v2218_v57, %v2690_v22  ;;  %v1011_v9 = vadd.f32 %v2737_v23, %v833_v44  ;;  %v832_v23 = vadd.f32 %v2747_v28, %v2704_v33 }
 0x13d   : > { %v2801_v30 = vpop.f32.mrf.mxu1  ;;  %v1362_v58 = vadd.f32 %v2274_v14, %v1181_v36  ;;  %v1363_v29 = vadd.f32 %v2275_v21, %v1182_v3  ;;  %v1008_v14 = vadd.f32 %v2729_v15, %v830_v6  ;;  %v1361_v45 = vadd.f32 %v2767_v48, %v1180_v10  ;;  %v2964_v10 = vld [vmem:[#allocation13_spill] sm:$0xff] }
 0x13e   : > { %v2808_v38 = vpop.f32.mrf.mxu0  ;;  %v1007_v22 = vadd.f32 %v2721_v8, %v829_v34  ;;  %v1006_v15 = vadd.f32 %v2733_v18, %v828_v11  ;;  %v834_v18 = vadd.f32 %v2743_v13, %v2702_v32  ;;  %v1364_v43 = vadd.f32 %v2771_v56, %v1183_v12 }
 0x13f   : > { %v2806_v37 = vpop.f32.mrf.mxu1  ;;  %2963 = vst [vmem:[#allocation20_spill] sm:$0xff] %v2808_v38  ;;  %v1186_v63 = vadd.f32 %v2773_v49, %v1008_v14  ;;  %v1189_v32 = vadd.f32 %v2781_v42, %v1011_v9  ;;  %v2975_v9 = vld [vmem:[#allocation8_spill] sm:$0xff] }
 0x140   : > { %v2815_v53 = vpop.f32.mrf.mxu0  ;;  %v1185_v51 = vadd.f32 %v2258_v50, %v1007_v22  ;;  %v1184_v16 = vadd.f32 %v2777_v61, %v1006_v15  ;;  %v1009_v22 = vadd.f32 %v2741_v25, %v831_v39  ;;  %v837_v25 = vadd.f32 %v2751_v31, %v2706_v52  ;;  %v2973_v15 = vld [vmem:[#allocation15_spill] sm:$0xff] }
 0x141   : > { %v2813_v5 = vpop.f32.mrf.mxu1  ;;  %v1367_v6 = vadd.f32 %v2775_v60, %v1186_v63 }
 0x142   : > { %v2822_v38 = vpop.f32.mrf.mxu0  ;;  %v1366_v19 = vadd.f32 %v2769_v47, %v1185_v51  ;;  %v1187_v33 = vadd.f32 %v2785_v41, %v1009_v22  ;;  %v2965_v51 = vld [vmem:[#allocation5_spill] sm:$0xff] }
 0x143   : > { %v2820_v4 = vpop.f32.mrf.mxu1 }
 0x144   : > { %v2314_v2 = vpop.f32.mrf.mxu0  ;;  %v1368_v39 = vadd.f32 %v2973_v15, %v1187_v33 }
 0x145   : > { %v2294_v57 = vpop.f32.mrf.mxu1 }
 0x146   : > { %v1540_v20 = vadd.f32 %v2294_v57, %v1362_v58  ;;  %v1653_v34 = vpop.f32.mrf.mxu0 }
 0x147   : > { %v1475_v8 = vpop.f32.mrf.mxu1 }
 0x148   : > { %v1718_v59 = vadd.f32 %v2314_v2, %v1540_v20  ;;  %v1538_v36 = vadd.f32 %v1475_v8, %v1360_v55  ;;  %v2315_v17 = vpop.f32.mrf.mxu0  ;;  %v1012_v55 = vadd.f32 %v2745_v27, %v834_v18  ;;  %v1365_v20 = vadd.f32 %v2964_v10, %v1184_v16  ;;  %v2967_v27 = vld [vmem:[#allocation7_spill] sm:$0xff] }
 0x149   : > { %v2295_v35 = vpop.f32.mrf.mxu1  ;;  %v1010_v8 = vadd.f32 %v2965_v51, %v832_v23 }
 0x14a   : > { %v1741_v21 = vadd.f32 %v2834_v7, %v1718_v59  ;;  %v1716_v46 = vadd.f32 %v1653_v34, %v1538_v36  ;;  %v1541_v50 = vadd.f32 %v2295_v35, %v1363_v29  ;;  %v1656_v1 = vpop.f32.mrf.mxu0  ;;  %v2966_v34 = vld [vmem:[#allocation2_spill] sm:$0xff]  ;;  %v2969_v36 = vld [vmem:[#allocation16_spill] sm:$0xff] }
 0x14b   : > { %v1478_v54 = vpop.f32.mrf.mxu1  ;;  %v835_v29 = vadd.f32 %v2967_v27, %v2966_v34  ;;  %v2968_v59 = vld [vmem:[#allocation14_spill] sm:$0xff]  ;;  %v1190_v14 = vadd.f32 %v2969_v36, %v1012_v55  ;;  %v2980_v55 = vld [vmem:[#allocation19_spill] sm:$0xff]  ;;  %v2982_v34 = vld [vmem:[#allocation20_spill] sm:$0xff] }
 0x14c   : > { %1757 = vst.msk [vmem:[%s2842_s7 + $0x10] sm:$0xff] %vm225_vm0, %v1741_v21  ;;  %v1739_v48 = vadd.f32 %v2834_v7, %v1716_v46  ;;  %v1719_v62 = vadd.f32 %v2315_v17, %v1541_v50  ;;  %v1539_v0 = vadd.f32 %v1478_v54, %v1361_v45  ;;  %v2318_v47 = vpop.f32.mrf.mxu0  ;;  %v1370_v52 = vadd.f32 %v2968_v59, %v1189_v32  ;;  %v2970_v17 = vld [vmem:[#allocation6_spill] sm:$0xff]  ;;  %v2971_v21 = vld [vmem:[#allocation3_spill] sm:$0xff]  ;;  %v2972_v46 = vld [vmem:[#allocation9_spill] sm:$0xff] }
 0x14d   : > { %v2298_v24 = vpop.f32.mrf.mxu1  ;;  %v1015_v45 = vadd.f32 %v2970_v17, %v837_v25  ;;  %v838_v50 = vadd.f32 %v2972_v46, %v2971_v21  ;;  %v1013_v18 = vadd.f32 %v2975_v9, %v835_v29 }
 0x14e   : > { %1755 = vst.msk [vmem:[%s2842_s7] sm:$0xff] %vm225_vm0, %v1739_v48  ;;  %v1742_v49 = vadd.f32 %v2834_v7, %v1719_v62  ;;  %v1717_v58 = vadd.f32 %v1656_v1, %v1539_v0  ;;  %v1544_v3 = vadd.f32 %v2298_v24, %v1366_v19  ;;  %v1669_v56 = vpop.f32.mrf.mxu0  ;;  %v2974_v1 = vld [vmem:[#allocation18_spill] sm:$0xff]  ;;  %v2977_v24 = vld [vmem:[#allocation11_spill] sm:$0xff] }
 0x14f   : > { %v1491_v13 = vpop.f32.mrf.mxu1  ;;  %v1188_v63 = vadd.f32 %v2974_v1, %v1010_v8  ;;  %v1193_v16 = vadd.f32 %v2801_v30, %v1015_v45 }
 0x150   : > { %1758 = vst.msk [vmem:[%s2842_s7 + $0x18] sm:$0xff] %vm225_vm0, %v1742_v49  ;;  %v1740_v61 = vadd.f32 %v2834_v7, %v1717_v58  ;;  %v1722_v57 = vadd.f32 %v2318_v47, %v1544_v3  ;;  %v1542_v2 = vadd.f32 %v1491_v13, %v1364_v43  ;;  %v2319_v42 = vpop.f32.mrf.mxu0  ;;  %v2976_v43 = vld [vmem:[#allocation4_spill] sm:$0xff]  ;;  %v2978_v3 = vld [vmem:[#allocation17_spill] sm:$0xff] }
 0x151   : > { %v2299_v28 = vpop.f32.mrf.mxu1  ;;  %v836_v47 = vadd.f32 %v2977_v24, %v2976_v43  ;;  %v1371_v22 = vadd.f32 %v2978_v3, %v1190_v14  ;;  %v1369_v25 = vadd.f32 %v2980_v55, %v1188_v63 }
 0x152   : > { %1756 = vst.msk [vmem:[%s2842_s7 + $0x8] sm:$0xff] %vm225_vm0, %v1740_v61  ;;  %v1745_v60 = vadd.f32 %v2834_v7, %v1722_v57  ;;  %v1720_v26 = vadd.f32 %v1669_v56, %v1542_v2  ;;  %v1545_v11 = vadd.f32 %v2299_v28, %v1367_v6  ;;  %v1672_v41 = vpop.f32.mrf.mxu0  ;;  %v2979_v56 = vld [vmem:[#allocation10_spill] sm:$0xff]  ;;  %v1191_v61 = vadd.f32 %v2806_v37, %v1013_v18 }
 0x153   : > { %v1494_v31 = vpop.f32.mrf.mxu1  ;;  %v1016_v6 = vadd.f32 %v2979_v56, %v838_v50 }
 0x154   : > { %1761 = vst.msk [vmem:[%s2842_s7 + $0x30] sm:$0xff] %vm225_vm0, %v1745_v60  ;;  %v1743_v44 = vadd.f32 %v2834_v7, %v1720_v26  ;;  %v1723_v12 = vadd.f32 %v2319_v42, %v1545_v11  ;;  %v1543_v35 = vadd.f32 %v1494_v31, %v1365_v20  ;;  %v2322_v54 = vpop.f32.mrf.mxu0  ;;  %v2981_v42 = vld [vmem:[#allocation12_spill] sm:$0xff]  ;;  %v1374_v20 = vadd.f32 %v2803_v40, %v1193_v16 }
 0x155   : > { %v2302_v19 = vpop.f32.mrf.mxu1  ;;  %v1014_v10 = vadd.f32 %v2981_v42, %v836_v47  ;;  %v1194_v11 = vadd.f32 %v2813_v5, %v1016_v6  ;;  %v1372_v27 = vadd.f32 %v2982_v34, %v1191_v61 }
 0x156   : > { %1759 = vst.msk [vmem:[%s2842_s7 + $0x20] sm:$0xff] %vm225_vm0, %v1743_v44  ;;  %v1746_v48 = vadd.f32 %v2834_v7, %v1723_v12  ;;  %v1721_v62 = vadd.f32 %v1672_v41, %v1543_v35  ;;  %v1548_v0 = vadd.f32 %v2302_v19, %v1370_v52  ;;  %v1685_v58 = vpop.f32.mrf.mxu0 }
 0x157   : > { %v1507_v49 = vpop.f32.mrf.mxu1  ;;  %v1192_v52 = vadd.f32 %v2820_v4, %v1014_v10  ;;  %v1375_v14 = vadd.f32 %v2815_v53, %v1194_v11 }
 0x158   : > { %1762 = vst.msk [vmem:[%s2842_s7 + $0x38] sm:$0xff] %vm225_vm0, %v1746_v48  ;;  %v1744_v23 = vadd.f32 %v2834_v7, %v1721_v62  ;;  %v1726_v32 = vadd.f32 %v2322_v54, %v1548_v0  ;;  %v1546_v13 = vadd.f32 %v1507_v49, %v1368_v39  ;;  %v2323_v2 = vpop.f32.mrf.mxu0 }
 0x159   : > { %v2303_v57 = vpop.f32.mrf.mxu1  ;;  %v1373_v45 = vadd.f32 %v2822_v38, %v1192_v52 }
 0x15a   : > { %1760 = vst.msk [vmem:[%s2842_s7 + $0x28] sm:$0xff] %vm225_vm0, %v1744_v23  ;;  %v1749_v30 = vadd.f32 %v2834_v7, %v1726_v32  ;;  %v1724_v33 = vadd.f32 %v1685_v58, %v1546_v13  ;;  %v1549_v28 = vadd.f32 %v2303_v57, %v1371_v22  ;;  %v1688_v26 = vpop.f32.mrf.mxu0 }
 0x15b   : > { %v1510_v60 = vpop.f32.mrf.mxu1 }
 0x15c   : > { %1765 = vst.msk [vmem:[%s2842_s7 + $0x50] sm:$0xff] %vm225_vm0, %v1749_v30  ;;  %v1747_v37 = vadd.f32 %v2834_v7, %v1724_v33  ;;  %v1727_v51 = vadd.f32 %v2323_v2, %v1549_v28  ;;  %v1547_v8 = vadd.f32 %v1510_v60, %v1369_v25  ;;  %v2326_v59 = vpop.f32.mrf.mxu0 }
 0x15d   : > { %v2306_v29 = vpop.f32.mrf.mxu1 }
 0x15e   : > { %1763 = vst.msk [vmem:[%s2842_s7 + $0x40] sm:$0xff] %vm225_vm0, %v1747_v37  ;;  %v1750_v40 = vadd.f32 %v2834_v7, %v1727_v51  ;;  %v1725_v31 = vadd.f32 %v1688_v26, %v1547_v8  ;;  %v1552_v5 = vadd.f32 %v2306_v29, %v1374_v20  ;;  %v1701_v36 = vpop.f32.mrf.mxu0 }
 0x15f   : > { %v1523_v41 = vpop.f32.mrf.mxu1 }
 0x160   : > { %1766 = vst.msk [vmem:[%s2842_s7 + $0x58] sm:$0xff] %vm225_vm0, %v1750_v40  ;;  %v1748_v44 = vadd.f32 %v2834_v7, %v1725_v31  ;;  %v1730_v12 = vadd.f32 %v2326_v59, %v1552_v5  ;;  %v1550_v35 = vadd.f32 %v1523_v41, %v1372_v27  ;;  %v2327_v4 = vpop.f32.mrf.mxu0 }
 0x161   : > { %v2307_v17 = vpop.f32.mrf.mxu1 }
 0x162   : > { %1764 = vst.msk [vmem:[%s2842_s7 + $0x48] sm:$0xff] %vm225_vm0, %v1748_v44  ;;  %v1753_v21 = vadd.f32 %v2834_v7, %v1730_v12  ;;  %v1728_v46 = vadd.f32 %v1701_v36, %v1550_v35  ;;  %v1553_v50 = vadd.f32 %v2307_v17, %v1375_v14  ;;  %v1704_v54 = vpop.f32.mrf.mxu0 }
 0x163   : > { %v1526_v53 = vpop.f32.mrf.mxu1 }
 0x164   : > { %1769 = vst.msk [vmem:[%s2842_s7 + $0x70] sm:$0xff] %vm225_vm0, %v1753_v21  ;;  %v1751_v15 = vadd.f32 %v2834_v7, %v1728_v46  ;;  %v1731_v39 = vadd.f32 %v2327_v4, %v1553_v50  ;;  %v1551_v19 = vadd.f32 %v1526_v53, %v1373_v45 }
 0x166   : > { %1767 = vst.msk [vmem:[%s2842_s7 + $0x60] sm:$0xff] %vm225_vm0, %v1751_v15  ;;  %v1754_v1 = vadd.f32 %v2834_v7, %v1731_v39  ;;  %v1729_v38 = vadd.f32 %v1704_v54, %v1551_v19 }
 0x168   : > { %1770 = vst.msk [vmem:[%s2842_s7 + $0x78] sm:$0xff] %vm225_vm0, %v1754_v1  ;;  %v1752_v63 = vadd.f32 %v2834_v7, %v1729_v38 }
 0x16a   : > { %1768 = vst.msk [vmem:[%s2842_s7 + $0x68] sm:$0xff] %vm225_vm0, %v1752_v63 }
 0x16b PF: > { %s13_s12 = sadd.s32 1, %s2364_s12  }
 0x16c   : > { %p10_p4 = scmp.ge.s32.totalorder %s13_s12, 4  }
 0x16e   :  { %12 = sbr.rel (!%p10_p4) target bundleno = 1 (0x1), region = 70 }

// kernel: _forward_impl.14
= control target key start
LH: loop header
LB: loop body
LE: loop exit
PB: predicated region body
PF: predicated region fallthrough
CT: control target
= control target key end

     0   :  { %s482_s12 = smov 0   ;;  %s572_s0 = inlined_call_operand.vmem [shape: f32[1,16,16,32], index: 0, kind: input, shape index: {}]   ;;  %s573_s1 = inlined_call_operand.vmem [shape: bf16[1,32,15], index: 1, kind: input, shape index: {}]   ;;  %s574_s2 = inlined_call_operand.vmem [shape: f32[1,15], index: 2, kind: input, shape index: {}]   ;;  %s575_s3 = inlined_call_operand.vmem [shape: f32[256,15], index: 3, kind: output, shape index: {}]  }
   0x1 LB: > { %s388_s13 = sadd.s32 4294967295, %s460_s12   ;;  %p391_p0 = scmp.ge.s32.totalorder %s460_s12, 1  ;;  %s460_s12 = sphi %s482_s12, %s13_s12  }
   0x2   : > { %p127_p1 = scmp.lt.s32.totalorder %s460_s12, 3 }
   0x4   : > { %p128_p2 = pnand %p391_p0, %p127_p1 }
   0x5   : > { %s409_s16 = sshll.u32 (!%p128_p2), %s388_s13, 7  ;;  %s392_s22 = sshll.u32 (!%p128_p2), %s388_s13, 4 }
   0x6   : > { %131 = sbr.rel (%p128_p2) target bundleno = 230 (0xe6), region = 32  ;;  %s501_s21 = scalar_lea.vmem (!%p128_p2), %s572_s0, %s409_s16 }
   0x7   : > { %p147_p3 = scmp.lt.s32.totalorder (!%p128_p2), %s392_s22, 31 }
   0xb   : > { %v452_v0 = vld [vmem:[%s573_s1 + $0x8] sm:$0xff]   ;;  %v453_v1 = vld [vmem:[%s573_s1] sm:$0xff]   ;;  %vm203_vm0 = vcmask 261120   ;;  %v158_v7 = vld [vmem:[%s501_s21 + $0x10] sm:$0xff]  ;;  %s577_s22 = smov (!%p147_p3, %s392_s22), 31  ;;  %vm325_vm1 = vcmask 121856  }
   0xc   : > { %420 = vmatprep.subr.bf16.mxu0 %v452_v0  ;;  %440 = vmatprep.subr.bf16.mxu1 %v452_v0  ;;  %v156_v2 = vld [vmem:[%s501_s21] sm:$0xff]  ;;  %v157_v3 = vld [vmem:[%s501_s21 + $0x8] sm:$0xff]  ;;  %v159_v8 = vld [vmem:[%s501_s21 + $0x18] sm:$0xff]  ;;  %s393_s23 = sshll.u32 %s577_s22, 3 }
   0xd   : > { %v164_v4 = vld [vmem:[%s501_s21 + $0x40] sm:$0xff]  ;;  %421 = vmatpush3.bf16.msra.mxu0 %v452_v0  ;;  %442 = vmatpush3.bf16.msra.mxu1 %v452_v0  ;;  %v172_v5 = vpack.c.bf16 %v157_v3, %v156_v2  ;;  %v165_v6 = vld [vmem:[%s501_s21 + $0x48] sm:$0xff]  ;;  %v166_v10 = vld [vmem:[%s501_s21 + $0x50] sm:$0xff]  ;;  %v173_v16 = vpack.c.bf16 %v159_v8, %v158_v7  ;;  %s535_s28 = scalar_lea.vmem %s575_s3, %s393_s23 }
   0xe   : > { %422 = vmatprep.subr.bf16.mxu0 %v453_v1  ;;  %441 = vmatprep.subr.bf16.mxu1 %v453_v1  ;;  %v176_v9 = vpack.c.bf16 %v165_v6, %v164_v4  ;;  %v167_v11 = vld [vmem:[%s501_s21 + $0x58] sm:$0xff]  ;;  %v160_v12 = vld [vmem:[%s501_s21 + $0x20] sm:$0xff]  ;;  %v161_v13 = vld [vmem:[%s501_s21 + $0x28] sm:$0xff] }
   0xf   : > { %424 = vmatprep.mubr.msk.bf16.mxu0 %vm203_vm0, %v172_v5  ;;  %v168_v14 = vld [vmem:[%s501_s21 + $0x60] sm:$0xff]  ;;  %v169_v15 = vld [vmem:[%s501_s21 + $0x68] sm:$0xff]  ;;  %v177_v17 = vpack.c.bf16 %v167_v11, %v166_v10  ;;  %v174_v18 = vpack.c.bf16 %v161_v13, %v160_v12  ;;  %v162_v20 = vld [vmem:[%s501_s21 + $0x30] sm:$0xff] }
  0x10   : > { %432 = vmatprep.mubr.msk.bf16.mxu1 %vm203_vm0, %v176_v9  ;;  %v178_v19 = vpack.c.bf16 %v169_v15, %v168_v14  ;;  %v163_v21 = vld [vmem:[%s501_s21 + $0x38] sm:$0xff]  ;;  %v170_v22 = vld [vmem:[%s501_s21 + $0x70] sm:$0xff]  ;;  %v396_v26 = vld [vmem:[%s574_s2] ss:$0 sm:$0xff] }
  0x11   : > { %423 = vmatpush3.bf16.msra.mxu0 %v453_v1  ;;  %443 = vmatpush3.bf16.msra.mxu1 %v453_v1  ;;  %v171_v23 = vld [vmem:[%s501_s21 + $0x78] sm:$0xff]  ;;  %v175_v24 = vpack.c.bf16 %v163_v21, %v162_v20 }
  0x12   : > { %v179_v25 = vpack.c.bf16 %v171_v23, %v170_v22 }
  0x14   : > { %425 = vmatmul.mubr.msk.bf16.vlgmr.msra.gmra.mxu0 %vm203_vm0, %v173_v16  ;;  %433 = vmatmul.mubr.msk.bf16.vlgmr.msra.gmra.mxu1 %vm203_vm0, %v177_v17 }
  0x15   : > { %428 = vmatprep.mubr.msk.bf16.mxu0 %vm203_vm0, %v174_v18  ;;  %436 = vmatprep.mubr.msk.bf16.mxu1 %vm203_vm0, %v178_v19 }
  0x1c   : > { %429 = vmatmul.mubr.msk.bf16.gmra.mxu0 %vm203_vm0, %v175_v24  ;;  %437 = vmatmul.mubr.msk.bf16.gmra.mxu1 %vm203_vm0, %v179_v25 }
  0xd4   : > { %v426_v27 = vpop.f32.mrf.mxu0  ;;  %v434_v28 = vpop.f32.mrf.mxu1 }
  0xd5   : > { %v271_v29 = vadd.f32 %v426_v27, %v396_v26  ;;  %v303_v30 = vadd.f32 %v434_v28, %v396_v26 }
  0xd6   : > { %v262_v31 = vpop.f32.mrf.mxu0  ;;  %v294_v32 = vpop.f32.mrf.mxu1 }
  0xd7   : > { %328 = vst.msk [vmem:[%s535_s28 + $0x10] sm:$0xff] %vm325_vm1, %v271_v29  ;;  %336 = vst.msk [vmem:[%s535_s28 + $0x50] sm:$0xff] %vm325_vm1, %v303_v30  ;;  %v263_v33 = vadd.f32 %v396_v26, %v262_v31  ;;  %v295_v34 = vadd.f32 %v396_v26, %v294_v32 }
  0xd8   : > { %v427_v35 = vpop.f32.mrf.mxu0  ;;  %v435_v36 = vpop.f32.mrf.mxu1 }
  0xd9   : > { %326 = vst.msk [vmem:[%s535_s28] sm:$0xff] %vm325_vm1, %v263_v33  ;;  %334 = vst.msk [vmem:[%s535_s28 + $0x40] sm:$0xff] %vm325_vm1, %v295_v34  ;;  %v274_v37 = vadd.f32 %v427_v35, %v396_v26  ;;  %v306_v38 = vadd.f32 %v435_v36, %v396_v26 }
  0xda   : > { %v265_v39 = vpop.f32.mrf.mxu0  ;;  %v297_v40 = vpop.f32.mrf.mxu1 }
  0xdb   : > { %329 = vst.msk [vmem:[%s535_s28 + $0x18] sm:$0xff] %vm325_vm1, %v274_v37  ;;  %337 = vst.msk [vmem:[%s535_s28 + $0x58] sm:$0xff] %vm325_vm1, %v306_v38  ;;  %v266_v41 = vadd.f32 %v396_v26, %v265_v39  ;;  %v298_v42 = vadd.f32 %v396_v26, %v297_v40 }
  0xdc   : > { %v430_v43 = vpop.f32.mrf.mxu0  ;;  %v438_v44 = vpop.f32.mrf.mxu1 }
  0xdd   : > { %327 = vst.msk [vmem:[%s535_s28 + $0x8] sm:$0xff] %vm325_vm1, %v266_v41  ;;  %335 = vst.msk [vmem:[%s535_s28 + $0x48] sm:$0xff] %vm325_vm1, %v298_v42  ;;  %v287_v45 = vadd.f32 %v430_v43, %v396_v26  ;;  %v319_v46 = vadd.f32 %v438_v44, %v396_v26 }
  0xde   : > { %v278_v47 = vpop.f32.mrf.mxu0  ;;  %v310_v48 = vpop.f32.mrf.mxu1 }
  0xdf   : > { %332 = vst.msk [vmem:[%s535_s28 + $0x30] sm:$0xff] %vm325_vm1, %v287_v45  ;;  %340 = vst.msk [vmem:[%s535_s28 + $0x70] sm:$0xff] %vm325_vm1, %v319_v46  ;;  %v279_v49 = vadd.f32 %v396_v26, %v278_v47  ;;  %v311_v50 = vadd.f32 %v396_v26, %v310_v48 }
  0xe0   : > { %v431_v51 = vpop.f32.mrf.mxu0  ;;  %v439_v52 = vpop.f32.mrf.mxu1 }
  0xe1   : > { %330 = vst.msk [vmem:[%s535_s28 + $0x20] sm:$0xff] %vm325_vm1, %v279_v49  ;;  %338 = vst.msk [vmem:[%s535_s28 + $0x60] sm:$0xff] %vm325_vm1, %v311_v50  ;;  %v290_v53 = vadd.f32 %v431_v51, %v396_v26  ;;  %v322_v54 = vadd.f32 %v439_v52, %v396_v26 }
  0xe2   : > { %v281_v55 = vpop.f32.mrf.mxu0  ;;  %v313_v56 = vpop.f32.mrf.mxu1 }
  0xe3   : > { %333 = vst.msk [vmem:[%s535_s28 + $0x38] sm:$0xff] %vm325_vm1, %v290_v53  ;;  %341 = vst.msk [vmem:[%s535_s28 + $0x78] sm:$0xff] %vm325_vm1, %v322_v54  ;;  %v282_v57 = vadd.f32 %v396_v26, %v281_v55  ;;  %v314_v58 = vadd.f32 %v396_v26, %v313_v56 }
  0xe5   : > { %331 = vst.msk [vmem:[%s535_s28 + $0x28] sm:$0xff] %vm325_vm1, %v282_v57  ;;  %339 = vst.msk [vmem:[%s535_s28 + $0x68] sm:$0xff] %vm325_vm1, %v314_v58 }
  0xe6 PF: > { %s13_s12 = sadd.s32 1, %s460_s12  }
  0xe7   : > { %p10_p4 = scmp.ge.s32.totalorder %s13_s12, 4  }
  0xe9   :  { %12 = sbr.rel (!%p10_p4) target bundleno = 1 (0x1), region = 60 }

// kernel: _forward_impl.15
= control target key start
LH: loop header
LB: loop body
LE: loop exit
PB: predicated region body
PF: predicated region fallthrough
CT: control target
= control target key end

     0   :  { %v1089_v39 = vmov 0.0   ;;  %vm1090_vm0 = vmmov 0   ;;  %vm802_vm1 = vcmask 580608   ;;  %s1387_s1 = inlined_call_operand.vmem [shape: bf16[512,128], index: 1, kind: input, shape index: {}]   ;;  %s1388_s0 = inlined_call_operand.vmem [shape: f32[8,512], index: 0, kind: input, shape index: {}]   ;;  %s1389_s3 = inlined_call_operand.vmem [shape: bf16[128,128], index: 3, kind: input, shape index: {}]   ;;  %s1390_s5 = inlined_call_operand.vmem [shape: bf16[128,455], index: 5, kind: input, shape index: {}]   ;;  %s1391_s2 = inlined_call_operand.vmem [shape: f32[1,128], index: 2, kind: input, shape index: {}]   ;;  %s1392_s4 = inlined_call_operand.vmem [shape: f32[1,128], index: 4, kind: input, shape index: {}]   ;;  %s1393_s6 = inlined_call_operand.vmem [shape: f32[1,455], index: 6, kind: input, shape index: {}]   ;;  %s1394_s7 = inlined_call_operand.vmem [shape: f32[8,455], index: 7, kind: output, shape index: {}]  }
   0x1   :  { %v995_v0 = vld [vmem:[%s1387_s1 + $0x78] sm:$0xff]   ;;  %v999_v4 = vld [vmem:[%s1387_s1 + $0x70] sm:$0xff]   ;;  %v1003_v8 = vld [vmem:[%s1387_s1 + $0x68] sm:$0xff]  }
   0x2   :  { %v996_v1 = vld [vmem:[%s1387_s1 + $0xf8] sm:$0xff]   ;;  %918 = vmatprep.subr.bf16.mxu0 %v995_v0  ;;  %v1000_v5 = vld [vmem:[%s1387_s1 + $0xf0] sm:$0xff]   ;;  %v1004_v9 = vld [vmem:[%s1387_s1 + $0xe8] sm:$0xff]  }
   0x3   :  { %v997_v2 = vld [vmem:[%s1387_s1 + $0x38] sm:$0xff]   ;;  %940 = vmatprep.subr.bf16.mxu1 %v996_v1  ;;  %v1001_v6 = vld [vmem:[%s1387_s1 + $0x30] sm:$0xff]   ;;  %v1005_v10 = vld [vmem:[%s1387_s1 + $0x28] sm:$0xff]  }
   0x4   :  { %v998_v3 = vld [vmem:[%s1387_s1 + $0xb8] sm:$0xff]   ;;  %919 = vmatpush3.bf16.msra.mxu0 %v997_v2  ;;  %v1002_v7 = vld [vmem:[%s1387_s1 + $0xb0] sm:$0xff]   ;;  %v1006_v11 = vld [vmem:[%s1387_s1 + $0xa8] sm:$0xff]  }
   0x5   :  { %941 = vmatpush3.bf16.msra.mxu1 %v998_v3  ;;  %920 = vmatprep.subr.bf16.mxu0 %v999_v4  ;;  %v1007_v12 = vld [vmem:[%s1387_s1 + $0x60] sm:$0xff]   ;;  %v1011_v16 = vld [vmem:[%s1387_s1 + $0x58] sm:$0xff]   ;;  %v1015_v20 = vld [vmem:[%s1387_s1 + $0x50] sm:$0xff]  }
   0x6   :  { %942 = vmatprep.subr.bf16.mxu1 %v1000_v5  ;;  %v1008_v13 = vld [vmem:[%s1387_s1 + $0xe0] sm:$0xff]   ;;  %v1012_v17 = vld [vmem:[%s1387_s1 + $0xd8] sm:$0xff]   ;;  %v1016_v21 = vld [vmem:[%s1387_s1 + $0xd0] sm:$0xff]  }
   0x7   :  { %v1009_v14 = vld [vmem:[%s1387_s1 + $0x20] sm:$0xff]   ;;  %v1013_v18 = vld [vmem:[%s1387_s1 + $0x18] sm:$0xff]   ;;  %v1017_v22 = vld [vmem:[%s1387_s1 + $0x10] sm:$0xff]  }
   0x8   :  { %921 = vmatpush3.bf16.msra.mxu0 %v1001_v6  ;;  %v1010_v15 = vld [vmem:[%s1387_s1 + $0xa0] sm:$0xff]   ;;  %v1014_v19 = vld [vmem:[%s1387_s1 + $0x98] sm:$0xff]   ;;  %v1018_v23 = vld [vmem:[%s1387_s1 + $0x90] sm:$0xff]  }
   0x9   :  { %943 = vmatpush3.bf16.msra.mxu1 %v1002_v7  ;;  %922 = vmatprep.subr.bf16.mxu0 %v1003_v8  ;;  %v1019_v24 = vld [vmem:[%s1387_s1 + $0x48] sm:$0xff]   ;;  %v1023_v28 = vld [vmem:[%s1387_s1 + $0x40] sm:$0xff]   ;;  %v30_v33 = vld [vmem:[%s1388_s0 + $0x18] sm:$0xff] }
   0xa   :  { %944 = vmatprep.subr.bf16.mxu1 %v1004_v9  ;;  %v1020_v25 = vld [vmem:[%s1387_s1 + $0xc8] sm:$0xff]   ;;  %v1024_v29 = vld [vmem:[%s1387_s1 + $0xc0] sm:$0xff]   ;;  %v34_v36 = vpack.c.bf16 %v30_v33, %v30_v33  ;;  %v29_v38 = vld [vmem:[%s1388_s0 + $0x10] sm:$0xff] }
   0xb   :  { %v1021_v26 = vld [vmem:[%s1387_s1 + $0x8] sm:$0xff]   ;;  %v1025_v30 = vld [vmem:[%s1387_s1] sm:$0xff]   ;;  %v33_v40 = vpack.c.bf16 %v29_v38, %v29_v38  ;;  %v1027_v41 = vld [vmem:[%s1389_s3 + $0x38] sm:$0xff]  }
   0xc   :  { %923 = vmatpush3.bf16.msra.mxu0 %v1005_v10  ;;  %v1022_v27 = vld [vmem:[%s1387_s1 + $0x88] sm:$0xff]   ;;  %v1026_v31 = vld [vmem:[%s1387_s1 + $0x80] sm:$0xff]   ;;  %370 = vmatprep.mubr.bf16.mxu1 %v34_v36  ;;  %v1028_v42 = vld [vmem:[%s1389_s3 + $0x30] sm:$0xff]  }
   0xd   :  { %945 = vmatpush3.bf16.msra.mxu1 %v1006_v11  ;;  %924 = vmatprep.subr.bf16.mxu0 %v1007_v12  ;;  %v28_v32 = vld [vmem:[%s1388_s0 + $0x8] sm:$0xff]  ;;  %v27_v34 = vld [vmem:[%s1388_s0] sm:$0xff]  ;;  %v1031_v45 = vld [vmem:[%s1389_s3 + $0x18] sm:$0xff]  }
   0xe   :  { %946 = vmatprep.subr.bf16.mxu1 %v1008_v13  ;;  %v32_v35 = vpack.c.bf16 %v28_v32, %v28_v32  ;;  %v31_v37 = vpack.c.bf16 %v27_v34, %v27_v34  ;;  %v1029_v43 = vld [vmem:[%s1389_s3 + $0x28] sm:$0xff]   ;;  %v1030_v44 = vld [vmem:[%s1389_s3 + $0x20] sm:$0xff]   ;;  %v1032_v46 = vld [vmem:[%s1389_s3 + $0x10] sm:$0xff]   ;;  %v1091_v32 = vmov 0  }
   0xf   :  { %v1033_v47 = vld [vmem:[%s1389_s3 + $0x8] sm:$0xff]   ;;  %v1034_v48 = vld [vmem:[%s1389_s3] sm:$0xff]  }
  0x10   :  { %925 = vmatpush3.bf16.msra.mxu0 %v1009_v14  ;;  %330 = vmatprep.mubr.bf16.mxu0 %v32_v35  ;;  %v1035_v49 = vld [vmem:[%s1390_s5 + $0xe0] ss:$16 sps:$4 sm:$0xff]   ;;  %v1037_v50 = vld [vmem:[%s1390_s5 + $0xe4] ss:$16 sps:$4 sm:$0xff]   ;;  %v1040_v51 = vld [vmem:[%s1390_s5 + $0xec] ss:$16 sps:$4 sm:$0xff]  }
  0x11   :  { %947 = vmatpush3.bf16.msra.mxu1 %v1010_v15  ;;  %926 = vmatprep.subr.bf16.mxu0 %v1011_v16  ;;  %v1043_v52 = vld [vmem:[%s1390_s5 + $0xc4] ss:$16 sps:$4 sm:$0xff]   ;;  %v1041_v53 = vld [vmem:[%s1390_s5 + $0xc0] ss:$16 sps:$4 sm:$0xff]   ;;  %v1038_v14 = vld [vmem:[%s1390_s5 + $0xe8] ss:$16 sps:$4 sm:$0xff]  }
  0x12   :  { %948 = vmatprep.subr.bf16.mxu1 %v1012_v17  ;;  %v1049_v54 = vld [vmem:[%s1390_s5 + $0xa4] ss:$16 sps:$4 sm:$0xff]   ;;  %v1047_v55 = vld [vmem:[%s1390_s5 + $0xa0] ss:$16 sps:$4 sm:$0xff]   ;;  %v1046_v16 = vld [vmem:[%s1390_s5 + $0xcc] ss:$16 sps:$4 sm:$0xff]  }
  0x13   :  { %v1055_v56 = vld [vmem:[%s1390_s5 + $0x84] ss:$16 sps:$4 sm:$0xff]   ;;  %v1053_v57 = vld [vmem:[%s1390_s5 + $0x80] ss:$16 sps:$4 sm:$0xff]   ;;  %v1044_v17 = vld [vmem:[%s1390_s5 + $0xc8] ss:$16 sps:$4 sm:$0xff]  }
  0x14   :  { %927 = vmatpush3.bf16.msra.mxu0 %v1013_v18  ;;  %v1061_v58 = vld [vmem:[%s1390_s5 + $0x64] ss:$16 sps:$4 sm:$0xff]   ;;  %v1059_v59 = vld [vmem:[%s1390_s5 + $0x60] ss:$16 sps:$4 sm:$0xff]   ;;  %v1052_v18 = vld [vmem:[%s1390_s5 + $0xac] ss:$16 sps:$4 sm:$0xff]  }
  0x15   :  { %949 = vmatpush3.bf16.msra.mxu1 %v1014_v19  ;;  %928 = vmatprep.subr.bf16.mxu0 %v1015_v20  ;;  %v1067_v60 = vld [vmem:[%s1390_s5 + $0x44] ss:$16 sps:$4 sm:$0xff]   ;;  %v1065_v61 = vld [vmem:[%s1390_s5 + $0x40] ss:$16 sps:$4 sm:$0xff]   ;;  %v1050_v19 = vld [vmem:[%s1390_s5 + $0xa8] ss:$16 sps:$4 sm:$0xff]  }
  0x16   :  { %950 = vmatprep.subr.bf16.mxu1 %v1016_v21  ;;  %v1073_v62 = vld [vmem:[%s1390_s5 + $0x24] ss:$16 sps:$4 sm:$0xff]   ;;  %v1071_v63 = vld [vmem:[%s1390_s5 + $0x20] ss:$16 sps:$4 sm:$0xff]   ;;  %v1058_v20 = vld [vmem:[%s1390_s5 + $0x8c] ss:$16 sps:$4 sm:$0xff]  }
  0x17   :  { %v844_v2 = vld [vmem:[%s1391_s2] ss:$0 sm:$0xff]  ;;  %v1056_v21 = vld [vmem:[%s1390_s5 + $0x88] ss:$16 sps:$4 sm:$0xff]  }
  0x18   :  { %929 = vmatpush3.bf16.msra.mxu0 %v1017_v22  ;;  %v1064_v22 = vld [vmem:[%s1390_s5 + $0x6c] ss:$16 sps:$4 sm:$0xff]   ;;  %v877_v33 = vld [vmem:[%s1392_s4] ss:$0 sm:$0xff] }
  0x19   :  { %951 = vmatpush3.bf16.msra.mxu1 %v1018_v23  ;;  %930 = vmatprep.subr.bf16.mxu0 %v1019_v24  ;;  %v1062_v23 = vld [vmem:[%s1390_s5 + $0x68] ss:$16 sps:$4 sm:$0xff]   ;;  %v1070_v24 = vld [vmem:[%s1390_s5 + $0x4c] ss:$16 sps:$4 sm:$0xff]  }
  0x1a   :  { %952 = vmatprep.subr.bf16.mxu1 %v1020_v25  ;;  %v1068_v25 = vld [vmem:[%s1390_s5 + $0x48] ss:$16 sps:$4 sm:$0xff]  }
  0x1c   :  { %931 = vmatpush3.bf16.msra.mxu0 %v1021_v26  ;;  %v1076_v26 = vld [vmem:[%s1390_s5 + $0x2c] ss:$16 sps:$4 sm:$0xff]  }
  0x1d   :  { %953 = vmatpush3.bf16.msra.mxu1 %v1022_v27  ;;  %932 = vmatprep.subr.bf16.mxu0 %v1023_v28  ;;  %v1074_v27 = vld [vmem:[%s1390_s5 + $0x28] ss:$16 sps:$4 sm:$0xff]   ;;  %v1079_v28 = vld [vmem:[%s1390_s5 + $0x4] ss:$16 sps:$4 sm:$0xff]  }
  0x1e   :  { %954 = vmatprep.subr.bf16.mxu1 %v1024_v29  ;;  %v1082_v29 = vld [vmem:[%s1390_s5 + $0xc] ss:$16 sps:$4 sm:$0xff]  }
  0x20   :  { %933 = vmatpush3.bf16.msra.mxu0 %v1025_v30  ;;  %v1077_v30 = vld [vmem:[%s1390_s5] ss:$16 sps:$4 sm:$0xff]  }
  0x21   :  { %955 = vmatpush3.bf16.msra.mxu1 %v1026_v31  ;;  %971 = vmatprep.subr.bf16.mxu0 %v1089_v39  ;;  %v1080_v31 = vld [vmem:[%s1390_s5 + $0x8] ss:$16 sps:$4 sm:$0xff]  }
  0x22   :  { %707 = vmatprep.subr.bf16.mxu1 %v1037_v50 }
  0x23   :  { %331 = vmatmul.mubr.bf16.vlgmr.msra.gmra.mxu0 %v31_v37 }
  0x24   :  { %371 = vmatmul.mubr.bf16.vlgmr.msra.gmra.mxu1 %v33_v40  ;;  %972 = vmatpush3.bf16.msra.mxu0 %v1027_v41  ;;  %v527_v41 = vlaneseq }
  0x25   :  { %973 = vmatprep.subr.bf16.mxu0 %v1089_v39  ;;  %987 = vmatprep.mubr.msk.bf16.mxu0 %vm1090_vm0, %v1089_v39 }
  0x26   :  { %708 = vmatpush1.bf16.msra.mxu1 %v1035_v49  ;;  %739 = vmatprep.mubr.bf16.mxu1 %v1091_v32 }
  0x27   :  { %709 = vmatprep.subr.bf16.mxu1 %v1043_v52 }
  0x28   :  { %974 = vmatpush3.bf16.msra.mxu0 %v1028_v42  ;;  %v528_v42 = vshrl.u32 %v527_v41, 7 }
  0x29   :  { %975 = vmatprep.subr.bf16.mxu0 %v1089_v39 }
  0x2a   :  { %710 = vmatpush1.bf16.msra.mxu1 %v1041_v53  ;;  %v1092_v53 = vmov -inf  }
  0x2b   :  { %711 = vmatprep.subr.bf16.mxu1 %v1049_v54  ;;  %v803_v54 = vsel %vm802_vm1, -1e+30, %v1092_v53 }
  0x2c   :  { %976 = vmatpush3.bf16.msra.mxu0 %v1029_v43  ;;  %v529_v43 = vsub.s32 0, %v528_v42 }
  0x2d   :  { %977 = vmatprep.subr.bf16.mxu0 %v1089_v39 }
  0x2e   :  { %712 = vmatpush1.bf16.msra.mxu1 %v1047_v55 }
  0x2f   :  { %713 = vmatprep.subr.bf16.mxu1 %v1055_v56 }
  0x30   :  { %978 = vmatpush3.bf16.msra.mxu0 %v1030_v44  ;;  %v537_v44 = vsub.s32 2, %v528_v42 }
  0x31   :  { %979 = vmatprep.subr.bf16.mxu0 %v1089_v39 }
  0x32   :  { %714 = vmatpush1.bf16.msra.mxu1 %v1053_v57 }
  0x33   :  { %715 = vmatprep.subr.bf16.mxu1 %v1061_v58 }
  0x34   :  { %980 = vmatpush3.bf16.msra.mxu0 %v1031_v45  ;;  %v525_v45 = vld [vmem:[%s1393_s6] sm:$0xf] }
  0x35   :  { %981 = vmatprep.subr.bf16.mxu0 %v1089_v39  ;;  %v530_v49 = vrot.slane %v525_v45, %v529_v43  ;;  %v538_v50 = vrot.slane %v525_v45, %v537_v44 }
  0x36   :  { %716 = vmatpush1.bf16.msra.mxu1 %v1059_v59 }
  0x37   :  { %717 = vmatprep.subr.bf16.mxu1 %v1067_v60 }
  0x38   :  { %982 = vmatpush3.bf16.msra.mxu0 %v1032_v46  ;;  %v533_v46 = vsub.s32 1, %v528_v42 }
  0x39   :  { %983 = vmatprep.subr.bf16.mxu0 %v1089_v39 }
  0x3a   :  { %718 = vmatpush1.bf16.msra.mxu1 %v1065_v61  ;;  %v805_v61 = vmax.f32 %v803_v54, -1e+30 }
  0x3b   :  { %719 = vmatprep.subr.bf16.mxu1 %v1073_v62 }
  0x3c   :  { %984 = vmatpush3.bf16.msra.mxu0 %v1033_v47  ;;  %v541_v47 = vsub.s32 3, %v528_v42 }
  0x3d   :  { %985 = vmatprep.subr.bf16.mxu0 %v1089_v39 }
  0x3e   :  { %720 = vmatpush1.bf16.msra.mxu1 %v1071_v63  ;;  %v542_v52 = vrot.slane %v525_v45, %v541_v47 }
  0x3f   :  { %721 = vmatprep.subr.bf16.mxu1 %v1079_v28 }
  0x40   :  { %986 = vmatpush3.bf16.msra.mxu0 %v1034_v48  ;;  %v790_v48 = vand.u32 127, %v527_v41 }
  0x41   :  { %748 = vmatprep.subr.bf16.mxu0 %v1040_v51  ;;  %v534_v51 = vrot.slane %v525_v45, %v533_v46 }
  0x42   :  { %722 = vmatpush1.bf16.msra.mxu1 %v1077_v30  ;;  %vm794_vm2 = vcmp.lt.s32.totalorder %v790_v48, 91 }
  0xe3   :  { %v934_v0 = vpop.f32.mrf.mxu0 }
  0xe4   :  { %v956_v1 = vpop.f32.mrf.mxu1 }
  0xe5   :  { %v935_v3 = vpop.f32.mrf.mxu0 }
  0xe6   :  { %v957_v4 = vpop.f32.mrf.mxu1  ;;  %v936_v5 = vadd.f32 %v935_v3, %v934_v0 }
  0xe7   :  { %v937_v6 = vpop.f32.mrf.mxu0  ;;  %v958_v9 = vadd.f32 %v957_v4, %v956_v1 }
  0xe8   :  { %v959_v7 = vpop.f32.mrf.mxu1  ;;  %v333_v8 = vadd.f32 %v936_v5, %v844_v2 }
  0xe9   :  { %v938_v10 = vpop.f32.mrf.mxu0 }
  0xea   :  { %v960_v11 = vpop.f32.mrf.mxu1  ;;  %v373_v12 = vadd.f32 %v958_v9, %v333_v8 }
  0xec   :  { %v378_v13 = vmax.f32 %v373_v12, 0.0 }
  0xee   :  { %v379_v15 = vpack.c.bf16 %v378_v13, %v378_v13 }
  0xf0   :  { %988 = vmatmul.mubr.bf16.vlgmr.msra.gmra.mxu0 %v379_v15 }
  0xf1   :  { %749 = vmatpush1.bf16.msra.mxu0 %v1038_v14  ;;  %780 = vmatprep.mubr.bf16.mxu0 %v1091_v32 }
  0xf2   :  { %750 = vmatprep.subr.bf16.mxu0 %v1046_v16 }
  0xf5   :  { %751 = vmatpush1.bf16.msra.mxu0 %v1044_v17 }
  0xf6   :  { %752 = vmatprep.subr.bf16.mxu0 %v1052_v18 }
  0xf9   :  { %753 = vmatpush1.bf16.msra.mxu0 %v1050_v19 }
  0xfa   :  { %754 = vmatprep.subr.bf16.mxu0 %v1058_v20 }
  0xfd   :  { %755 = vmatpush1.bf16.msra.mxu0 %v1056_v21 }
  0xfe   :  { %756 = vmatprep.subr.bf16.mxu0 %v1064_v22 }
 0x101   :  { %757 = vmatpush1.bf16.msra.mxu0 %v1062_v23 }
 0x102   :  { %758 = vmatprep.subr.bf16.mxu0 %v1070_v24 }
 0x105   :  { %759 = vmatpush1.bf16.msra.mxu0 %v1068_v25 }
 0x106   :  { %760 = vmatprep.subr.bf16.mxu0 %v1076_v26 }
 0x109   :  { %761 = vmatpush1.bf16.msra.mxu0 %v1074_v27 }
 0x10a   :  { %762 = vmatprep.subr.bf16.mxu0 %v1082_v29 }
 0x10d   :  { %763 = vmatpush1.bf16.msra.mxu0 %v1080_v31 }
 0x1b0   :  { %v485_v34 = vpop.f32.mrf.mxu0 }
 0x1b1   :  { %v486_v35 = vadd.f32 %v877_v33, %v485_v34 }
 0x1b2   :  { %v989_v36 = vpop.f32.mrf.mxu0 }
 0x1b3   :  { %v491_v37 = vmax.f32 %v486_v35, 0.0 }
 0x1b4   :  { %v488_v38 = vpop.f32.mrf.mxu0 }
 0x1b5   :  { %v492_v39 = vpack.c.bf16 %v491_v37, %v491_v37 }
 0x1b6   :  { %v990_v40 = vpop.f32.mrf.mxu0 }
 0x1b7   :  { %740 = vmatmul.mubr.bf16.vlgmr.msra.gmra.mxu1 %v492_v39  ;;  %781 = vmatmul.mubr.bf16.vlgmr.msra.gmra.mxu0 %v492_v39 }
 0x277   :  { %v741_v55 = vpop.f32.mrf.mxu1  ;;  %v782_v56 = vpop.f32.mrf.mxu0 }
 0x278   :  { %v742_v57 = vadd.f32 %v741_v55, %v530_v49  ;;  %v783_v58 = vadd.f32 %v782_v56, %v538_v50 }
 0x279   :  { %v743_v59 = vpop.f32.mrf.mxu1  ;;  %v784_v60 = vpop.f32.mrf.mxu0 }
 0x27a   :  { %v798_v62 = vsel %vm794_vm2, %v742_v57, -1e+30  ;;  %838 = vst [vmem:[%s1394_s7 + $0x10] sm:$0xff] %v783_v58  ;;  %v744_v63 = vadd.f32 %v743_v59, %v534_v51  ;;  %v785_v0 = vadd.f32 %v784_v60, %v542_v52 }
 0x27b   :  { %v745_v1 = vpop.f32.mrf.mxu1  ;;  %v786_v2 = vpop.f32.mrf.mxu0  ;;  %v804_v3 = vmax.f32 %v798_v62, -1e+30 }
 0x27c   :  { %837 = vst [vmem:[%s1394_s7 + $0x8] sm:$0xff] %v744_v63  ;;  %839 = vst.msk [vmem:[%s1394_s7 + $0x18] sm:$0xff] %vm802_vm1, %v785_v0 }
 0x27d   :  { %v746_v4 = vpop.f32.mrf.mxu1  ;;  %v787_v5 = vpop.f32.mrf.mxu0  ;;  %v806_v6 = vmax.f32 %v804_v3, %v805_v61 }
 0x27f   :  { %807 = vmax.xlane.f32.xlu0 %v806_v6 }
 0x308   :  { %v808_v7 = vpop.xlane.xlu0 %807 }
 0x309   :  { %v809_v8 = vsub.f32 %v798_v62, %v808_v7  ;;  %v810_v9 = vsub.f32 -1e+30, %v808_v7 }
 0x30b   :  { %v813_v10 = vmul.f32 1.442695, %v809_v8  ;;  %v815_v11 = vmul.f32 1.442695, %v810_v9 }
 0x30d   :  { %1083 = vpow2.f32 %v813_v10 }
 0x30e   :  { %1085 = vpow2.f32 %v815_v11 }
 0x31a   :  { %v1084_v12 = vpop.eup %1083 }
 0x31b   :  { %v1086_v13 = vpop.eup %1085 }
 0x31c   :  { %v821_v14 = vadd.f32 %v1086_v13, %v1084_v12  ;;  %v823_v16 = vsel %vm802_vm1, %v1086_v13, 0.0 }
 0x31e   :  { %v822_v15 = vadd.f32 %v1086_v13, %v821_v14 }
 0x320   :  { %v824_v17 = vadd.f32 %v823_v16, %v822_v15 }
 0x322   :  { %825 = vadd.xlane.f32.xlu0 %v824_v17 }
 0x3ab   :  { %v826_v18 = vpop.xlane.xlu0 %825 }
 0x3ac   :  { %1087 = vrcp.f32 %v826_v18 }
 0x3b9   :  { %v1088_v19 = vpop.eup %1087 }
 0x3ba   :  { %v828_v20 = vmul.f32 %v1088_v19, %v1084_v12 }
 0x3bc   :  { %v832_v21 = vsel %vm794_vm2, %v828_v20, %v742_v57 }
 0x3bd   :  { %836 = vst [vmem:[%s1394_s7] sm:$0xff] %v832_v21 }

</bundles_post_ra>
